<compile_context>
chip_gen: v5e
topology: v5e:2x2
jax: 0.10.0
libtpu: 0.0.40
codegen_flags: <defaults>
</compile_context>

<pallas_src>
import jax
import jax.numpy as jnp
from jax.experimental import pallas as pl
from jax.experimental.pallas import tpu as pltpu

LANES = 128  # all channel / contraction dims are zero-padded to 128 lanes


# ------------------------------- fused kernel -------------------------------

def net_kernel(p1_ref, w1_ref, b1_ref, w2_ref, b2_ref, wf_ref, bf_ref,
               o_ref, act1_ref, acc2_ref):
    """Full Net forward for one batch tile.

    p1_ref : (Bt, 4, 144, 128) bf16  pool-grouped conv1 im2col patches
                                     (4 = positions in each 2x2 pool window,
                                      144 = 12*12 pooled positions, K 25->128)
    w1_ref : (128, 128) bf16   conv1 weight, rows=(kh,kw) padded 25->128,
                               cols=C_out padded 10->128
    b1_ref : (1, 128)   f32
    w2_ref : (25, 128, 128) bf16  per-(kh,kw) slabs [ci(10->128), co(20->128)]
    b2_ref : (1, 128)   f32
    wf_ref : (16, 128, 128) bf16  per-spatial slabs [c(20->128), out(10->128)]
    bf_ref : (1, 128)   f32
    o_ref  : (Bt, 128)  f32    logits (real cols 0..9)
    act1_ref : VMEM (Bt, 12, 12, 128) bf16   conv1 pooled+ReLU activation
    acc2_ref : VMEM (Bt*64, 128) f32         conv2 accumulator (8x8 spatial)
    """
    Bt = p1_ref.shape[0]
    C = p1_ref.shape[-1]

    # ---- conv1: one batched MXU matmul, tree-max 2x2 pool, bias, ReLU ----
    x = p1_ref[...].reshape(Bt * 4 * 144, C)
    a1 = jnp.dot(x, w1_ref[...], preferred_element_type=jnp.float32)
    a1 = a1.reshape(Bt, 4, 144, C)
    pooled1 = jnp.maximum(jnp.maximum(a1[:, 0], a1[:, 1]),
                          jnp.maximum(a1[:, 2], a1[:, 3]))
    act1 = jnp.maximum(pooled1 + b1_ref[...], 0.0)          # (Bt, 144, 128) f32
    act1_ref[...] = act1.reshape(Bt, 12, 12, C).astype(act1_ref.dtype)

    # ---- conv2: 25 shifted lane-dense matmuls over the VMEM-resident act1 ----
    # out2[b,ho,wo,co] = sum_{kh,kw,ci} act1[b,ho+kh,wo+kw,ci] * w2[kh,kw,ci,co]
    acc2_ref[...] = jnp.zeros_like(acc2_ref)
    for kh in range(5):
        for kw in range(5):
            win = act1_ref[:, kh:kh + 8, kw:kw + 8, :].reshape(Bt * 64, C)
            acc2_ref[...] += jnp.dot(win, w2_ref[kh * 5 + kw],
                                     preferred_element_type=jnp.float32)

    # ---- 2x2 max-pool + bias + ReLU on the 8x8 conv2 output ----
    c2 = acc2_ref[...].reshape(Bt, 8, 4, 2, C)
    c2 = jnp.maximum(c2[:, :, :, 0, :], c2[:, :, :, 1, :])   # pool along W
    c2 = c2.reshape(Bt, 4, 2, 4, C)
    c2 = jnp.maximum(c2[:, :, 0, :, :], c2[:, :, 1, :, :])   # pool along H
    act2 = jnp.maximum(c2 + b2_ref[...], 0.0).astype(jnp.bfloat16)
    act2 = act2.reshape(Bt, 16, C)                           # (b, s=ph*4+pw, c)

    # ---- fc: 16 accumulating (Bt,128)x(128,128) matmuls (flatten-free) ----
    acc = jnp.zeros((Bt, C), jnp.float32)
    for s in range(16):
        acc = acc + jnp.dot(act2[:, s, :], wf_ref[s],
                            preferred_element_type=jnp.float32)
    o_ref[...] = (acc + bf_ref[...]).astype(o_ref.dtype)


# ------------------------------ pallas_call wrapper -------------------------

def _tile_and_vmem_limit(batch):
    """Generation-aware batch tile & scoped-VMEM limit.

    v5e/v6e (128 MiB VMEM): larger tiles amortize per-step overhead.
    v7x (64 MiB per TensorCore): smaller tile + lower limit keeps the
    double-buffered patch blocks + f32 matmul temporaries comfortably resident.
    """
    try:
        vmem_cap = int(pltpu.get_tpu_info().vmem_capacity_bytes)
    except Exception:
        vmem_cap = 64 * 1024 * 1024            # conservative fallback
    if vmem_cap >= 100 * 1024 * 1024:          # v5e / v6e
        max_tile, limit = 32, 64 * 1024 * 1024
    else:                                      # v7x
        max_tile, limit = 16, 40 * 1024 * 1024
    return min(max_tile, batch), limit


def _cost_estimate(bp):
    flops = bp * 2 * (4 * 144 * LANES * LANES      # conv1
                      + 25 * 64 * LANES * LANES    # conv2
                      + 16 * LANES * LANES)        # fc
    bytes_accessed = (bp * 4 * 144 * LANES * 2                      # patches
                      + (1 + 25 + 16) * LANES * LANES * 2           # weights
                      + 3 * LANES * 4                               # biases
                      + bp * LANES * 4)                             # logits
    return pl.CostEstimate(flops=flops, transcendentals=0,
                           bytes_accessed=bytes_accessed)


def fused_net(p1, params, *, batch_tile, vmem_limit):
    Bp = p1.shape[0]
    return pl.pallas_call(
        net_kernel,
        out_shape=jax.ShapeDtypeStruct((Bp, LANES), jnp.float32),
        grid=(Bp // batch_tile,),
        in_specs=[
            pl.BlockSpec((batch_tile, 4, 144, LANES), lambda b: (b, 0, 0, 0)),
            pl.BlockSpec((LANES, LANES), lambda b: (0, 0)),
            pl.BlockSpec((1, LANES), lambda b: (0, 0)),
            pl.BlockSpec((25, LANES, LANES), lambda b: (0, 0, 0)),
            pl.BlockSpec((1, LANES), lambda b: (0, 0)),
            pl.BlockSpec((16, LANES, LANES), lambda b: (0, 0, 0)),
            pl.BlockSpec((1, LANES), lambda b: (0, 0)),
        ],
        out_specs=pl.BlockSpec((batch_tile, LANES), lambda b: (b, 0)),
        scratch_shapes=[
            pltpu.VMEM((batch_tile, 12, 12, LANES), jnp.bfloat16),
            pltpu.VMEM((batch_tile * 64, LANES), jnp.float32),
        ],
        compiler_params=pltpu.CompilerParams(
            dimension_semantics=("parallel",),
            vmem_limit_bytes=vmem_limit),
        cost_estimate=_cost_estimate(Bp),
    )(p1, params["w1k"], params["b1k"], params["w2k"], params["b2k"],
      params["wfk"], params["bfk"])


# ------------------------------ host-side glue -------------------------------

def conv1_pool_patches(x_nchw):
    """conv1 im2col, grouped by 2x2 pool window, K padded 25->128 (lane-dense).

    x_nchw: (B, 1, 28, 28) bf16 -> (B, 4, 144, 128) bf16.
    """
    B = x_nchw.shape[0]
    x_nhwc = jnp.transpose(x_nchw, (0, 2, 3, 1))                  # (B,28,28,1)
    patches = jax.lax.conv_general_dilated_patches(
        x_nhwc, (5, 5), (1, 1), "VALID",
        dimension_numbers=("NHWC", "HWIO", "NHWC"))               # (B,24,24,25)
    patches = patches.reshape(B, 12, 2, 12, 2, 25)
    patches = patches.transpose(0, 2, 4, 1, 3, 5)                 # (B,2,2,12,12,25)
    patches = patches.reshape(B, 4, 144, 25)
    patches = jnp.pad(patches, ((0, 0), (0, 0), (0, 0), (0, LANES - 25)))
    return patches.astype(jnp.bfloat16)


def init_params(key):
    # Deterministic synthetic parameters; shapes exactly as in the PyTorch Net.
    k1, k2, k3, k4, k5, k6 = jax.random.split(key, 6)
    return {
        "w_conv1": 0.10 * jax.random.normal(k1, (10, 1, 5, 5), jnp.float32),
        "b_conv1": 0.10 * jax.random.normal(k2, (10,), jnp.float32),
        "w_conv2": 0.05 * jax.random.normal(k3, (20, 10, 5, 5), jnp.float32),
        "b_conv2": 0.05 * jax.random.normal(k4, (20,), jnp.float32),
        "w_fc":    0.05 * jax.random.normal(k5, (10, 320), jnp.float32),
        "b_fc":    0.05 * jax.random.normal(k6, (10,), jnp.float32),
    }


def prepare_params(raw):
    """PyTorch-layout params -> zero-padded, kernel-friendly layouts."""
    def pad_to(m, shape):
        return jnp.pad(m, [(0, t - s) for s, t in zip(m.shape, shape)])

    # conv1: rows = (kh,kw) (C_in = 1), cols = C_out.
    w1 = raw["w_conv1"].reshape(10, 25).T                           # (25, 10)
    # conv2: one (ci, co) slab per (kh, kw).
    w2 = raw["w_conv2"].transpose(2, 3, 1, 0).reshape(25, 10, 20)   # (25,10,20)
    # fc: one (c, out) slab per pooled spatial position s = h*4 + w, matching
    # PyTorch's (c, h, w) flatten: wf[s][c, o] = w_fc[o, c*16 + s].
    wf = raw["w_fc"].reshape(10, 20, 4, 4).transpose(2, 3, 1, 0).reshape(16, 20, 10)

    return {
        "w1k": pad_to(w1, (LANES, LANES)).astype(jnp.bfloat16),
        "w2k": pad_to(w2, (25, LANES, LANES)).astype(jnp.bfloat16),
        "wfk": pad_to(wf, (16, LANES, LANES)).astype(jnp.bfloat16),
        "b1k": pad_to(raw["b_conv1"].reshape(1, 10), (1, LANES)).astype(jnp.float32),
        "b2k": pad_to(raw["b_conv2"].reshape(1, 20), (1, LANES)).astype(jnp.float32),
        "bfk": pad_to(raw["b_fc"].reshape(1, 10), (1, LANES)).astype(jnp.float32),
    }


@jax.jit
def net_forward(x, params):
    B = x.shape[0]
    bt, vmem_limit = _tile_and_vmem_limit(B)
    Bp = pl.cdiv(B, bt) * bt
    xb = x.astype(jnp.bfloat16)
    if Bp != B:                                    # pad batch to tile multiple
        xb = jnp.pad(xb, ((0, Bp - B), (0, 0), (0, 0), (0, 0)))
    p1 = conv1_pool_patches(xb)                    # (Bp, 4, 144, 128) bf16
    logits = fused_net(p1, params, batch_tile=bt, vmem_limit=vmem_limit)
    return logits[:B, :10]


# --------------------------- pure-JAX f32 reference --------------------------

def reference_forward(x, raw):
    """Float32 forward with exact PyTorch `Net` semantics (for validation)."""
    def conv(y, w):
        return jax.lax.conv_general_dilated(
            y, w, window_strides=(1, 1), padding="VALID",
            dimension_numbers=("NCHW", "OIHW", "NCHW"))

    def pool(y):
        return jax.lax.reduce_window(y, -jnp.inf, jax.lax.max,
                                     (1, 1, 2, 2), (1, 1, 2, 2), "VALID")

    y = conv(x, raw["w_conv1"]) + raw["b_conv1"][None, :, None, None]
    y = jnp.maximum(pool(y), 0.0)
    y = conv(y, raw["w_conv2"]) + raw["b_conv2"][None, :, None, None]
    y = jnp.maximum(pool(y), 0.0)
    y = y.reshape(y.shape[0], -1)                  # (B, 320), (c, h, w) order
    return y @ raw["w_fc"].T + raw["b_fc"][None, :]


if __name__ == "__main__":
    key = jax.random.PRNGKey(0)
    kx, kp = jax.random.split(key)
    # fc expects 320 = 20*4*4 features, which forces MNIST-shaped 1x28x28 input.
    x = jax.random.normal(kx, (2, 1, 28, 28), jnp.float32)
    raw = init_params(kp)
    params = prepare_params(raw)

    out = jax.block_until_ready(net_forward(x, params))
    assert out.shape == (2, 10) and out.dtype == jnp.float32

    # Validate against the float32 PyTorch-semantics reference (bf16 matmul
    # operands inside the kernel -> allow a generous-but-bug-catching tolerance).
    ref = reference_forward(x, raw)
    max_err = float(jnp.max(jnp.abs(out - ref)))
    assert max_err < 0.1, f"kernel/reference mismatch: max |diff| = {max_err}"

    print("KERNEL_OK")
</pallas_src>

<mosaic_0001>
module attributes {stable_mosaic.version = 11 : i64} {
  func.func @net_kernel(%arg0: i32, %arg1: memref<2x4x144x128xbf16, #tpu.memory_space<vmem>>, %arg2: memref<128x128xbf16, #tpu.memory_space<vmem>>, %arg3: memref<1x128xf32, #tpu.memory_space<vmem>>, %arg4: memref<25x128x128xbf16, #tpu.memory_space<vmem>>, %arg5: memref<1x128xf32, #tpu.memory_space<vmem>>, %arg6: memref<16x128x128xbf16, #tpu.memory_space<vmem>>, %arg7: memref<1x128xf32, #tpu.memory_space<vmem>>, %arg8: memref<2x128xf32, #tpu.memory_space<vmem>>, %arg9: memref<2x12x12x128xbf16, #tpu.memory_space<vmem>>, %arg10: memref<128x128xf32, #tpu.memory_space<vmem>>) attributes {dimension_semantics = [#tpu.dimension_semantics<parallel>], iteration_bounds = array<i64: 1>, scalar_prefetch = 0 : i64, scratch_operands = 2 : i64, tpu.core_type = #tpu.core_type<tc>, window_params = [{transform_indices = @transform_0, window_bounds = array<i64: 2, 4, 144, 128>}, {pipeline_mode = #tpu.pipeline_mode<synchronous>, transform_indices = @transform_1, window_bounds = array<i64: 128, 128>}, {pipeline_mode = #tpu.pipeline_mode<synchronous>, transform_indices = @transform_2, window_bounds = array<i64: 1, 128>}, {pipeline_mode = #tpu.pipeline_mode<synchronous>, transform_indices = @transform_3, window_bounds = array<i64: 25, 128, 128>}, {pipeline_mode = #tpu.pipeline_mode<synchronous>, transform_indices = @transform_4, window_bounds = array<i64: 1, 128>}, {pipeline_mode = #tpu.pipeline_mode<synchronous>, transform_indices = @transform_5, window_bounds = array<i64: 16, 128, 128>}, {pipeline_mode = #tpu.pipeline_mode<synchronous>, transform_indices = @transform_6, window_bounds = array<i64: 1, 128>}, {transform_indices = @transform_7, window_bounds = array<i64: 2, 128>}]} {
    %c0 = arith.constant 0 : index
    %c0_0 = arith.constant 0 : index
    %c0_1 = arith.constant 0 : index
    %c0_2 = arith.constant 0 : index
    %0 = vector.load %arg1[%c0, %c0_0, %c0_1, %c0_2] : memref<2x4x144x128xbf16, #tpu.memory_space<vmem>>, vector<2x4x144x128xbf16>
    %1 = vector.shape_cast %0 : vector<2x4x144x128xbf16> to vector<1152x128xbf16>
    %c0_3 = arith.constant 0 : index
    %c0_4 = arith.constant 0 : index
    %2 = vector.load %arg2[%c0_3, %c0_4] : memref<128x128xbf16, #tpu.memory_space<vmem>>, vector<128x128xbf16>
    %cst = arith.constant dense<0.000000e+00> : vector<1152x128xf32>
    %3 = tpu.matmul %1, %2, %cst {dimension_numbers = #tpu.dot_dimension_numbers<[1], [0], [0], [1], [0, 0, 1, 1], [], []>} : vector<1152x128xbf16>, vector<128x128xbf16>, vector<1152x128xf32> -> vector<1152x128xf32>
    %4 = vector.shape_cast %3 : vector<1152x128xf32> to vector<2x4x144x128xf32>
    %5 = vector.extract_strided_slice %4 {offsets = [0, 0, 0, 0], sizes = [2, 1, 144, 128], strides = [1, 1, 1, 1]} : vector<2x4x144x128xf32> to vector<2x1x144x128xf32>
    %6 = vector.shape_cast %5 : vector<2x1x144x128xf32> to vector<2x144x128xf32>
    %7 = vector.extract_strided_slice %4 {offsets = [0, 1, 0, 0], sizes = [2, 1, 144, 128], strides = [1, 1, 1, 1]} : vector<2x4x144x128xf32> to vector<2x1x144x128xf32>
    %8 = vector.shape_cast %7 : vector<2x1x144x128xf32> to vector<2x144x128xf32>
    %9 = arith.maximumf %6, %8 : vector<2x144x128xf32>
    %10 = vector.extract_strided_slice %4 {offsets = [0, 2, 0, 0], sizes = [2, 1, 144, 128], strides = [1, 1, 1, 1]} : vector<2x4x144x128xf32> to vector<2x1x144x128xf32>
    %11 = vector.shape_cast %10 : vector<2x1x144x128xf32> to vector<2x144x128xf32>
    %12 = vector.extract_strided_slice %4 {offsets = [0, 3, 0, 0], sizes = [2, 1, 144, 128], strides = [1, 1, 1, 1]} : vector<2x4x144x128xf32> to vector<2x1x144x128xf32>
    %13 = vector.shape_cast %12 : vector<2x1x144x128xf32> to vector<2x144x128xf32>
    %14 = arith.maximumf %11, %13 : vector<2x144x128xf32>
    %15 = arith.maximumf %9, %14 : vector<2x144x128xf32>
    %c0_5 = arith.constant 0 : index
    %c0_6 = arith.constant 0 : index
    %16 = vector.load %arg3[%c0_5, %c0_6] : memref<1x128xf32, #tpu.memory_space<vmem>>, vector<1x128xf32>
    %17 = vector.shape_cast %16 : vector<1x128xf32> to vector<1x1x128xf32>
    %18 = vector.broadcast %17 : vector<1x1x128xf32> to vector<2x144x128xf32>
    %19 = arith.addf %15, %18 : vector<2x144x128xf32>
    %cst_7 = arith.constant 0.000000e+00 : f32
    %20 = vector.broadcast %cst_7 : f32 to vector<2x144x128xf32>
    %21 = arith.maximumf %19, %20 : vector<2x144x128xf32>
    %22 = vector.shape_cast %21 : vector<2x144x128xf32> to vector<2x12x12x128xf32>
    %23 = arith.truncf %22 : vector<2x12x12x128xf32> to vector<2x12x12x128xbf16>
    %c0_8 = arith.constant 0 : index
    %c0_9 = arith.constant 0 : index
    %c0_10 = arith.constant 0 : index
    %c0_11 = arith.constant 0 : index
    %24 = vector.load %arg9[%c0_8, %c0_9, %c0_10, %c0_11] : memref<2x12x12x128xbf16, #tpu.memory_space<vmem>>, vector<2x12x12x128xbf16>
    tpu.vector_store %arg9[%c0_8, %c0_9, %c0_10, %c0_11], %23 {strides = array<i32>} : memref<2x12x12x128xbf16, #tpu.memory_space<vmem>>, vector<2x12x12x128xbf16>,
    %cst_12 = arith.constant 0.000000e+00 : f32
    %25 = vector.broadcast %cst_12 : f32 to vector<128x128xf32>
    %c0_13 = arith.constant 0 : index
    %c0_14 = arith.constant 0 : index
    %26 = vector.load %arg10[%c0_13, %c0_14] : memref<128x128xf32, #tpu.memory_space<vmem>>, vector<128x128xf32>
    tpu.vector_store %arg10[%c0_13, %c0_14], %25 {strides = array<i32>} : memref<128x128xf32, #tpu.memory_space<vmem>>, vector<128x128xf32>,
    %c0_15 = arith.constant 0 : index
    %c0_16 = arith.constant 0 : index
    %c0_17 = arith.constant 0 : index
    %c0_18 = arith.constant 0 : index
    %27 = vector.load %arg9[%c0_15, %c0_16, %c0_17, %c0_18] : memref<2x12x12x128xbf16, #tpu.memory_space<vmem>>, vector<2x8x8x128xbf16>
    %28 = vector.shape_cast %27 : vector<2x8x8x128xbf16> to vector<128x128xbf16>
    %c0_19 = arith.constant 0 : index
    %c0_20 = arith.constant 0 : index
    %29 = vector.load %arg10[%c0_19, %c0_20] : memref<128x128xf32, #tpu.memory_space<vmem>>, vector<128x128xf32>
    %c0_21 = arith.constant 0 : index
    %c0_22 = arith.constant 0 : index
    %c0_23 = arith.constant 0 : index
    %30 = vector.load %arg4[%c0_21, %c0_22, %c0_23] : memref<25x128x128xbf16, #tpu.memory_space<vmem>>, vector<1x128x128xbf16>
    %31 = vector.shape_cast %30 : vector<1x128x128xbf16> to vector<128x128xbf16>
    %cst_24 = arith.constant dense<0.000000e+00> : vector<128x128xf32>
    %32 = tpu.matmul %28, %31, %cst_24 {dimension_numbers = #tpu.dot_dimension_numbers<[1], [0], [0], [1], [0, 0, 1, 1], [], []>} : vector<128x128xbf16>, vector<128x128xbf16>, vector<128x128xf32> -> vector<128x128xf32>
    %33 = arith.addf %29, %32 : vector<128x128xf32>
    %c0_25 = arith.constant 0 : index
    %c0_26 = arith.constant 0 : index
    %34 = vector.load %arg10[%c0_25, %c0_26] : memref<128x128xf32, #tpu.memory_space<vmem>>, vector<128x128xf32>
    tpu.vector_store %arg10[%c0_25, %c0_26], %33 {strides = array<i32>} : memref<128x128xf32, #tpu.memory_space<vmem>>, vector<128x128xf32>,
    %c0_27 = arith.constant 0 : index
    %c0_28 = arith.constant 0 : index
    %c1 = arith.constant 1 : index
    %c0_29 = arith.constant 0 : index
    %35 = vector.load %arg9[%c0_27, %c0_28, %c1, %c0_29] : memref<2x12x12x128xbf16, #tpu.memory_space<vmem>>, vector<2x8x8x128xbf16>
    %36 = vector.shape_cast %35 : vector<2x8x8x128xbf16> to vector<128x128xbf16>
    %c0_30 = arith.constant 0 : index
    %c0_31 = arith.constant 0 : index
    %37 = vector.load %arg10[%c0_30, %c0_31] : memref<128x128xf32, #tpu.memory_space<vmem>>, vector<128x128xf32>
    %c1_32 = arith.constant 1 : index
    %c0_33 = arith.constant 0 : index
    %c0_34 = arith.constant 0 : index
    %38 = vector.load %arg4[%c1_32, %c0_33, %c0_34] : memref<25x128x128xbf16, #tpu.memory_space<vmem>>, vector<1x128x128xbf16>
    %39 = vector.shape_cast %38 : vector<1x128x128xbf16> to vector<128x128xbf16>
    %cst_35 = arith.constant dense<0.000000e+00> : vector<128x128xf32>
    %40 = tpu.matmul %36, %39, %cst_35 {dimension_numbers = #tpu.dot_dimension_numbers<[1], [0], [0], [1], [0, 0, 1, 1], [], []>} : vector<128x128xbf16>, vector<128x128xbf16>, vector<128x128xf32> -> vector<128x128xf32>
    %41 = arith.addf %37, %40 : vector<128x128xf32>
    %c0_36 = arith.constant 0 : index
    %c0_37 = arith.constant 0 : index
    %42 = vector.load %arg10[%c0_36, %c0_37] : memref<128x128xf32, #tpu.memory_space<vmem>>, vector<128x128xf32>
    tpu.vector_store %arg10[%c0_36, %c0_37], %41 {strides = array<i32>} : memref<128x128xf32, #tpu.memory_space<vmem>>, vector<128x128xf32>,
    %c0_38 = arith.constant 0 : index
    %c0_39 = arith.constant 0 : index
    %c2 = arith.constant 2 : index
    %c0_40 = arith.constant 0 : index
    %43 = vector.load %arg9[%c0_38, %c0_39, %c2, %c0_40] : memref<2x12x12x128xbf16, #tpu.memory_space<vmem>>, vector<2x8x8x128xbf16>
    %44 = vector.shape_cast %43 : vector<2x8x8x128xbf16> to vector<128x128xbf16>
    %c0_41 = arith.constant 0 : index
    %c0_42 = arith.constant 0 : index
    %45 = vector.load %arg10[%c0_41, %c0_42] : memref<128x128xf32, #tpu.memory_space<vmem>>, vector<128x128xf32>
    %c2_43 = arith.constant 2 : index
    %c0_44 = arith.constant 0 : index
    %c0_45 = arith.constant 0 : index
    %46 = vector.load %arg4[%c2_43, %c0_44, %c0_45] : memref<25x128x128xbf16, #tpu.memory_space<vmem>>, vector<1x128x128xbf16>
    %47 = vector.shape_cast %46 : vector<1x128x128xbf16> to vector<128x128xbf16>
    %cst_46 = arith.constant dense<0.000000e+00> : vector<128x128xf32>
    %48 = tpu.matmul %44, %47, %cst_46 {dimension_numbers = #tpu.dot_dimension_numbers<[1], [0], [0], [1], [0, 0, 1, 1], [], []>} : vector<128x128xbf16>, vector<128x128xbf16>, vector<128x128xf32> -> vector<128x128xf32>
    %49 = arith.addf %45, %48 : vector<128x128xf32>
    %c0_47 = arith.constant 0 : index
    %c0_48 = arith.constant 0 : index
    %50 = vector.load %arg10[%c0_47, %c0_48] : memref<128x128xf32, #tpu.memory_space<vmem>>, vector<128x128xf32>
    tpu.vector_store %arg10[%c0_47, %c0_48], %49 {strides = array<i32>} : memref<128x128xf32, #tpu.memory_space<vmem>>, vector<128x128xf32>,
    %c0_49 = arith.constant 0 : index
    %c0_50 = arith.constant 0 : index
    %c3 = arith.constant 3 : index
    %c0_51 = arith.constant 0 : index
    %51 = vector.load %arg9[%c0_49, %c0_50, %c3, %c0_51] : memref<2x12x12x128xbf16, #tpu.memory_space<vmem>>, vector<2x8x8x128xbf16>
    %52 = vector.shape_cast %51 : vector<2x8x8x128xbf16> to vector<128x128xbf16>
    %c0_52 = arith.constant 0 : index
    %c0_53 = arith.constant 0 : index
    %53 = vector.load %arg10[%c0_52, %c0_53] : memref<128x128xf32, #tpu.memory_space<vmem>>, vector<128x128xf32>
    %c3_54 = arith.constant 3 : index
    %c0_55 = arith.constant 0 : index
    %c0_56 = arith.constant 0 : index
    %54 = vector.load %arg4[%c3_54, %c0_55, %c0_56] : memref<25x128x128xbf16, #tpu.memory_space<vmem>>, vector<1x128x128xbf16>
    %55 = vector.shape_cast %54 : vector<1x128x128xbf16> to vector<128x128xbf16>
    %cst_57 = arith.constant dense<0.000000e+00> : vector<128x128xf32>
    %56 = tpu.matmul %52, %55, %cst_57 {dimension_numbers = #tpu.dot_dimension_numbers<[1], [0], [0], [1], [0, 0, 1, 1], [], []>} : vector<128x128xbf16>, vector<128x128xbf16>, vector<128x128xf32> -> vector<128x128xf32>
    %57 = arith.addf %53, %56 : vector<128x128xf32>
    %c0_58 = arith.constant 0 : index
    %c0_59 = arith.constant 0 : index
    %58 = vector.load %arg10[%c0_58, %c0_59] : memref<128x128xf32, #tpu.memory_space<vmem>>, vector<128x128xf32>
    tpu.vector_store %arg10[%c0_58, %c0_59], %57 {strides = array<i32>} : memref<128x128xf32, #tpu.memory_space<vmem>>, vector<128x128xf32>,
    %c0_60 = arith.constant 0 : index
    %c0_61 = arith.constant 0 : index
    %c4 = arith.constant 4 : index
    %c0_62 = arith.constant 0 : index
    %59 = vector.load %arg9[%c0_60, %c0_61, %c4, %c0_62] : memref<2x12x12x128xbf16, #tpu.memory_space<vmem>>, vector<2x8x8x128xbf16>
    %60 = vector.shape_cast %59 : vector<2x8x8x128xbf16> to vector<128x128xbf16>
    %c0_63 = arith.constant 0 : index
    %c0_64 = arith.constant 0 : index
    %61 = vector.load %arg10[%c0_63, %c0_64] : memref<128x128xf32, #tpu.memory_space<vmem>>, vector<128x128xf32>
    %c4_65 = arith.constant 4 : index
    %c0_66 = arith.constant 0 : index
    %c0_67 = arith.constant 0 : index
    %62 = vector.load %arg4[%c4_65, %c0_66, %c0_67] : memref<25x128x128xbf16, #tpu.memory_space<vmem>>, vector<1x128x128xbf16>
    %63 = vector.shape_cast %62 : vector<1x128x128xbf16> to vector<128x128xbf16>
    %cst_68 = arith.constant dense<0.000000e+00> : vector<128x128xf32>
    %64 = tpu.matmul %60, %63, %cst_68 {dimension_numbers = #tpu.dot_dimension_numbers<[1], [0], [0], [1], [0, 0, 1, 1], [], []>} : vector<128x128xbf16>, vector<128x128xbf16>, vector<128x128xf32> -> vector<128x128xf32>
    %65 = arith.addf %61, %64 : vector<128x128xf32>
    %c0_69 = arith.constant 0 : index
    %c0_70 = arith.constant 0 : index
    %66 = vector.load %arg10[%c0_69, %c0_70] : memref<128x128xf32, #tpu.memory_space<vmem>>, vector<128x128xf32>
    tpu.vector_store %arg10[%c0_69, %c0_70], %65 {strides = array<i32>} : memref<128x128xf32, #tpu.memory_space<vmem>>, vector<128x128xf32>,
    %c0_71 = arith.constant 0 : index
    %c1_72 = arith.constant 1 : index
    %c0_73 = arith.constant 0 : index
    %c0_74 = arith.constant 0 : index
    %67 = vector.load %arg9[%c0_71, %c1_72, %c0_73, %c0_74] : memref<2x12x12x128xbf16, #tpu.memory_space<vmem>>, vector<2x8x8x128xbf16>
    %68 = vector.shape_cast %67 : vector<2x8x8x128xbf16> to vector<128x128xbf16>
    %c0_75 = arith.constant 0 : index
    %c0_76 = arith.constant 0 : index
    %69 = vector.load %arg10[%c0_75, %c0_76] : memref<128x128xf32, #tpu.memory_space<vmem>>, vector<128x128xf32>
    %c5 = arith.constant 5 : index
    %c0_77 = arith.constant 0 : index
    %c0_78 = arith.constant 0 : index
    %70 = vector.load %arg4[%c5, %c0_77, %c0_78] : memref<25x128x128xbf16, #tpu.memory_space<vmem>>, vector<1x128x128xbf16>
    %71 = vector.shape_cast %70 : vector<1x128x128xbf16> to vector<128x128xbf16>
    %cst_79 = arith.constant dense<0.000000e+00> : vector<128x128xf32>
    %72 = tpu.matmul %68, %71, %cst_79 {dimension_numbers = #tpu.dot_dimension_numbers<[1], [0], [0], [1], [0, 0, 1, 1], [], []>} : vector<128x128xbf16>, vector<128x128xbf16>, vector<128x128xf32> -> vector<128x128xf32>
    %73 = arith.addf %69, %72 : vector<128x128xf32>
    %c0_80 = arith.constant 0 : index
    %c0_81 = arith.constant 0 : index
    %74 = vector.load %arg10[%c0_80, %c0_81] : memref<128x128xf32, #tpu.memory_space<vmem>>, vector<128x128xf32>
    tpu.vector_store %arg10[%c0_80, %c0_81], %73 {strides = array<i32>} : memref<128x128xf32, #tpu.memory_space<vmem>>, vector<128x128xf32>,
    %c0_82 = arith.constant 0 : index
    %c1_83 = arith.constant 1 : index
    %c1_84 = arith.constant 1 : index
    %c0_85 = arith.constant 0 : index
    %75 = vector.load %arg9[%c0_82, %c1_83, %c1_84, %c0_85] : memref<2x12x12x128xbf16, #tpu.memory_space<vmem>>, vector<2x8x8x128xbf16>
    %76 = vector.shape_cast %75 : vector<2x8x8x128xbf16> to vector<128x128xbf16>
    %c0_86 = arith.constant 0 : index
    %c0_87 = arith.constant 0 : index
    %77 = vector.load %arg10[%c0_86, %c0_87] : memref<128x128xf32, #tpu.memory_space<vmem>>, vector<128x128xf32>
    %c6 = arith.constant 6 : index
    %c0_88 = arith.constant 0 : index
    %c0_89 = arith.constant 0 : index
    %78 = vector.load %arg4[%c6, %c0_88, %c0_89] : memref<25x128x128xbf16, #tpu.memory_space<vmem>>, vector<1x128x128xbf16>
    %79 = vector.shape_cast %78 : vector<1x128x128xbf16> to vector<128x128xbf16>
    %cst_90 = arith.constant dense<0.000000e+00> : vector<128x128xf32>
    %80 = tpu.matmul %76, %79, %cst_90 {dimension_numbers = #tpu.dot_dimension_numbers<[1], [0], [0], [1], [0, 0, 1, 1], [], []>} : vector<128x128xbf16>, vector<128x128xbf16>, vector<128x128xf32> -> vector<128x128xf32>
    %81 = arith.addf %77, %80 : vector<128x128xf32>
    %c0_91 = arith.constant 0 : index
    %c0_92 = arith.constant 0 : index
    %82 = vector.load %arg10[%c0_91, %c0_92] : memref<128x128xf32, #tpu.memory_space<vmem>>, vector<128x128xf32>
    tpu.vector_store %arg10[%c0_91, %c0_92], %81 {strides = array<i32>} : memref<128x128xf32, #tpu.memory_space<vmem>>, vector<128x128xf32>,
    %c0_93 = arith.constant 0 : index
    %c1_94 = arith.constant 1 : index
    %c2_95 = arith.constant 2 : index
    %c0_96 = arith.constant 0 : index
    %83 = vector.load %arg9[%c0_93, %c1_94, %c2_95, %c0_96] : memref<2x12x12x128xbf16, #tpu.memory_space<vmem>>, vector<2x8x8x128xbf16>
    %84 = vector.shape_cast %83 : vector<2x8x8x128xbf16> to vector<128x128xbf16>
    %c0_97 = arith.constant 0 : index
    %c0_98 = arith.constant 0 : index
    %85 = vector.load %arg10[%c0_97, %c0_98] : memref<128x128xf32, #tpu.memory_space<vmem>>, vector<128x128xf32>
    %c7 = arith.constant 7 : index
    %c0_99 = arith.constant 0 : index
    %c0_100 = arith.constant 0 : index
    %86 = vector.load %arg4[%c7, %c0_99, %c0_100] : memref<25x128x128xbf16, #tpu.memory_space<vmem>>, vector<1x128x128xbf16>
    %87 = vector.shape_cast %86 : vector<1x128x128xbf16> to vector<128x128xbf16>
    %cst_101 = arith.constant dense<0.000000e+00> : vector<128x128xf32>
    %88 = tpu.matmul %84, %87, %cst_101 {dimension_numbers = #tpu.dot_dimension_numbers<[1], [0], [0], [1], [0, 0, 1, 1], [], []>} : vector<128x128xbf16>, vector<128x128xbf16>, vector<128x128xf32> -> vector<128x128xf32>
    %89 = arith.addf %85, %88 : vector<128x128xf32>
    %c0_102 = arith.constant 0 : index
    %c0_103 = arith.constant 0 : index
    %90 = vector.load %arg10[%c0_102, %c0_103] : memref<128x128xf32, #tpu.memory_space<vmem>>, vector<128x128xf32>
    tpu.vector_store %arg10[%c0_102, %c0_103], %89 {strides = array<i32>} : memref<128x128xf32, #tpu.memory_space<vmem>>, vector<128x128xf32>,
    %c0_104 = arith.constant 0 : index
    %c1_105 = arith.constant 1 : index
    %c3_106 = arith.constant 3 : index
    %c0_107 = arith.constant 0 : index
    %91 = vector.load %arg9[%c0_104, %c1_105, %c3_106, %c0_107] : memref<2x12x12x128xbf16, #tpu.memory_space<vmem>>, vector<2x8x8x128xbf16>
    %92 = vector.shape_cast %91 : vector<2x8x8x128xbf16> to vector<128x128xbf16>
    %c0_108 = arith.constant 0 : index
    %c0_109 = arith.constant 0 : index
    %93 = vector.load %arg10[%c0_108, %c0_109] : memref<128x128xf32, #tpu.memory_space<vmem>>, vector<128x128xf32>
    %c8 = arith.constant 8 : index
    %c0_110 = arith.constant 0 : index
    %c0_111 = arith.constant 0 : index
    %94 = vector.load %arg4[%c8, %c0_110, %c0_111] : memref<25x128x128xbf16, #tpu.memory_space<vmem>>, vector<1x128x128xbf16>
    %95 = vector.shape_cast %94 : vector<1x128x128xbf16> to vector<128x128xbf16>
    %cst_112 = arith.constant dense<0.000000e+00> : vector<128x128xf32>
    %96 = tpu.matmul %92, %95, %cst_112 {dimension_numbers = #tpu.dot_dimension_numbers<[1], [0], [0], [1], [0, 0, 1, 1], [], []>} : vector<128x128xbf16>, vector<128x128xbf16>, vector<128x128xf32> -> vector<128x128xf32>
    %97 = arith.addf %93, %96 : vector<128x128xf32>
    %c0_113 = arith.constant 0 : index
    %c0_114 = arith.constant 0 : index
    %98 = vector.load %arg10[%c0_113, %c0_114] : memref<128x128xf32, #tpu.memory_space<vmem>>, vector<128x128xf32>
    tpu.vector_store %arg10[%c0_113, %c0_114], %97 {strides = array<i32>} : memref<128x128xf32, #tpu.memory_space<vmem>>, vector<128x128xf32>,
    %c0_115 = arith.constant 0 : index
    %c1_116 = arith.constant 1 : index
    %c4_117 = arith.constant 4 : index
    %c0_118 = arith.constant 0 : index
    %99 = vector.load %arg9[%c0_115, %c1_116, %c4_117, %c0_118] : memref<2x12x12x128xbf16, #tpu.memory_space<vmem>>, vector<2x8x8x128xbf16>
    %100 = vector.shape_cast %99 : vector<2x8x8x128xbf16> to vector<128x128xbf16>
    %c0_119 = arith.constant 0 : index
    %c0_120 = arith.constant 0 : index
    %101 = vector.load %arg10[%c0_119, %c0_120] : memref<128x128xf32, #tpu.memory_space<vmem>>, vector<128x128xf32>
    %c9 = arith.constant 9 : index
    %c0_121 = arith.constant 0 : index
    %c0_122 = arith.constant 0 : index
    %102 = vector.load %arg4[%c9, %c0_121, %c0_122] : memref<25x128x128xbf16, #tpu.memory_space<vmem>>, vector<1x128x128xbf16>
    %103 = vector.shape_cast %102 : vector<1x128x128xbf16> to vector<128x128xbf16>
    %cst_123 = arith.constant dense<0.000000e+00> : vector<128x128xf32>
    %104 = tpu.matmul %100, %103, %cst_123 {dimension_numbers = #tpu.dot_dimension_numbers<[1], [0], [0], [1], [0, 0, 1, 1], [], []>} : vector<128x128xbf16>, vector<128x128xbf16>, vector<128x128xf32> -> vector<128x128xf32>
    %105 = arith.addf %101, %104 : vector<128x128xf32>
    %c0_124 = arith.constant 0 : index
    %c0_125 = arith.constant 0 : index
    %106 = vector.load %arg10[%c0_124, %c0_125] : memref<128x128xf32, #tpu.memory_space<vmem>>, vector<128x128xf32>
    tpu.vector_store %arg10[%c0_124, %c0_125], %105 {strides = array<i32>} : memref<128x128xf32, #tpu.memory_space<vmem>>, vector<128x128xf32>,
    %c0_126 = arith.constant 0 : index
    %c2_127 = arith.constant 2 : index
    %c0_128 = arith.constant 0 : index
    %c0_129 = arith.constant 0 : index
    %107 = vector.load %arg9[%c0_126, %c2_127, %c0_128, %c0_129] : memref<2x12x12x128xbf16, #tpu.memory_space<vmem>>, vector<2x8x8x128xbf16>
    %108 = vector.shape_cast %107 : vector<2x8x8x128xbf16> to vector<128x128xbf16>
    %c0_130 = arith.constant 0 : index
    %c0_131 = arith.constant 0 : index
    %109 = vector.load %arg10[%c0_130, %c0_131] : memref<128x128xf32, #tpu.memory_space<vmem>>, vector<128x128xf32>
    %c10 = arith.constant 10 : index
    %c0_132 = arith.constant 0 : index
    %c0_133 = arith.constant 0 : index
    %110 = vector.load %arg4[%c10, %c0_132, %c0_133] : memref<25x128x128xbf16, #tpu.memory_space<vmem>>, vector<1x128x128xbf16>
    %111 = vector.shape_cast %110 : vector<1x128x128xbf16> to vector<128x128xbf16>
    %cst_134 = arith.constant dense<0.000000e+00> : vector<128x128xf32>
    %112 = tpu.matmul %108, %111, %cst_134 {dimension_numbers = #tpu.dot_dimension_numbers<[1], [0], [0], [1], [0, 0, 1, 1], [], []>} : vector<128x128xbf16>, vector<128x128xbf16>, vector<128x128xf32> -> vector<128x128xf32>
    %113 = arith.addf %109, %112 : vector<128x128xf32>
    %c0_135 = arith.constant 0 : index
    %c0_136 = arith.constant 0 : index
    %114 = vector.load %arg10[%c0_135, %c0_136] : memref<128x128xf32, #tpu.memory_space<vmem>>, vector<128x128xf32>
    tpu.vector_store %arg10[%c0_135, %c0_136], %113 {strides = array<i32>} : memref<128x128xf32, #tpu.memory_space<vmem>>, vector<128x128xf32>,
    %c0_137 = arith.constant 0 : index
    %c2_138 = arith.constant 2 : index
    %c1_139 = arith.constant 1 : index
    %c0_140 = arith.constant 0 : index
    %115 = vector.load %arg9[%c0_137, %c2_138, %c1_139, %c0_140] : memref<2x12x12x128xbf16, #tpu.memory_space<vmem>>, vector<2x8x8x128xbf16>
    %116 = vector.shape_cast %115 : vector<2x8x8x128xbf16> to vector<128x128xbf16>
    %c0_141 = arith.constant 0 : index
    %c0_142 = arith.constant 0 : index
    %117 = vector.load %arg10[%c0_141, %c0_142] : memref<128x128xf32, #tpu.memory_space<vmem>>, vector<128x128xf32>
    %c11 = arith.constant 11 : index
    %c0_143 = arith.constant 0 : index
    %c0_144 = arith.constant 0 : index
    %118 = vector.load %arg4[%c11, %c0_143, %c0_144] : memref<25x128x128xbf16, #tpu.memory_space<vmem>>, vector<1x128x128xbf16>
    %119 = vector.shape_cast %118 : vector<1x128x128xbf16> to vector<128x128xbf16>
    %cst_145 = arith.constant dense<0.000000e+00> : vector<128x128xf32>
    %120 = tpu.matmul %116, %119, %cst_145 {dimension_numbers = #tpu.dot_dimension_numbers<[1], [0], [0], [1], [0, 0, 1, 1], [], []>} : vector<128x128xbf16>, vector<128x128xbf16>, vector<128x128xf32> -> vector<128x128xf32>
    %121 = arith.addf %117, %120 : vector<128x128xf32>
    %c0_146 = arith.constant 0 : index
    %c0_147 = arith.constant 0 : index
    %122 = vector.load %arg10[%c0_146, %c0_147] : memref<128x128xf32, #tpu.memory_space<vmem>>, vector<128x128xf32>
    tpu.vector_store %arg10[%c0_146, %c0_147], %121 {strides = array<i32>} : memref<128x128xf32, #tpu.memory_space<vmem>>, vector<128x128xf32>,
    %c0_148 = arith.constant 0 : index
    %c2_149 = arith.constant 2 : index
    %c2_150 = arith.constant 2 : index
    %c0_151 = arith.constant 0 : index
    %123 = vector.load %arg9[%c0_148, %c2_149, %c2_150, %c0_151] : memref<2x12x12x128xbf16, #tpu.memory_space<vmem>>, vector<2x8x8x128xbf16>
    %124 = vector.shape_cast %123 : vector<2x8x8x128xbf16> to vector<128x128xbf16>
    %c0_152 = arith.constant 0 : index
    %c0_153 = arith.constant 0 : index
    %125 = vector.load %arg10[%c0_152, %c0_153] : memref<128x128xf32, #tpu.memory_space<vmem>>, vector<128x128xf32>
    %c12 = arith.constant 12 : index
    %c0_154 = arith.constant 0 : index
    %c0_155 = arith.constant 0 : index
    %126 = vector.load %arg4[%c12, %c0_154, %c0_155] : memref<25x128x128xbf16, #tpu.memory_space<vmem>>, vector<1x128x128xbf16>
    %127 = vector.shape_cast %126 : vector<1x128x128xbf16> to vector<128x128xbf16>
    %cst_156 = arith.constant dense<0.000000e+00> : vector<128x128xf32>
    %128 = tpu.matmul %124, %127, %cst_156 {dimension_numbers = #tpu.dot_dimension_numbers<[1], [0], [0], [1], [0, 0, 1, 1], [], []>} : vector<128x128xbf16>, vector<128x128xbf16>, vector<128x128xf32> -> vector<128x128xf32>
    %129 = arith.addf %125, %128 : vector<128x128xf32>
    %c0_157 = arith.constant 0 : index
    %c0_158 = arith.constant 0 : index
    %130 = vector.load %arg10[%c0_157, %c0_158] : memref<128x128xf32, #tpu.memory_space<vmem>>, vector<128x128xf32>
    tpu.vector_store %arg10[%c0_157, %c0_158], %129 {strides = array<i32>} : memref<128x128xf32, #tpu.memory_space<vmem>>, vector<128x128xf32>,
    %c0_159 = arith.constant 0 : index
    %c2_160 = arith.constant 2 : index
    %c3_161 = arith.constant 3 : index
    %c0_162 = arith.constant 0 : index
    %131 = vector.load %arg9[%c0_159, %c2_160, %c3_161, %c0_162] : memref<2x12x12x128xbf16, #tpu.memory_space<vmem>>, vector<2x8x8x128xbf16>
    %132 = vector.shape_cast %131 : vector<2x8x8x128xbf16> to vector<128x128xbf16>
    %c0_163 = arith.constant 0 : index
    %c0_164 = arith.constant 0 : index
    %133 = vector.load %arg10[%c0_163, %c0_164] : memref<128x128xf32, #tpu.memory_space<vmem>>, vector<128x128xf32>
    %c13 = arith.constant 13 : index
    %c0_165 = arith.constant 0 : index
    %c0_166 = arith.constant 0 : index
    %134 = vector.load %arg4[%c13, %c0_165, %c0_166] : memref<25x128x128xbf16, #tpu.memory_space<vmem>>, vector<1x128x128xbf16>
    %135 = vector.shape_cast %134 : vector<1x128x128xbf16> to vector<128x128xbf16>
    %cst_167 = arith.constant dense<0.000000e+00> : vector<128x128xf32>
    %136 = tpu.matmul %132, %135, %cst_167 {dimension_numbers = #tpu.dot_dimension_numbers<[1], [0], [0], [1], [0, 0, 1, 1], [], []>} : vector<128x128xbf16>, vector<128x128xbf16>, vector<128x128xf32> -> vector<128x128xf32>
    %137 = arith.addf %133, %136 : vector<128x128xf32>
    %c0_168 = arith.constant 0 : index
    %c0_169 = arith.constant 0 : index
    %138 = vector.load %arg10[%c0_168, %c0_169] : memref<128x128xf32, #tpu.memory_space<vmem>>, vector<128x128xf32>
    tpu.vector_store %arg10[%c0_168, %c0_169], %137 {strides = array<i32>} : memref<128x128xf32, #tpu.memory_space<vmem>>, vector<128x128xf32>,
    %c0_170 = arith.constant 0 : index
    %c2_171 = arith.constant 2 : index
    %c4_172 = arith.constant 4 : index
    %c0_173 = arith.constant 0 : index
    %139 = vector.load %arg9[%c0_170, %c2_171, %c4_172, %c0_173] : memref<2x12x12x128xbf16, #tpu.memory_space<vmem>>, vector<2x8x8x128xbf16>
    %140 = vector.shape_cast %139 : vector<2x8x8x128xbf16> to vector<128x128xbf16>
    %c0_174 = arith.constant 0 : index
    %c0_175 = arith.constant 0 : index
    %141 = vector.load %arg10[%c0_174, %c0_175] : memref<128x128xf32, #tpu.memory_space<vmem>>, vector<128x128xf32>
    %c14 = arith.constant 14 : index
    %c0_176 = arith.constant 0 : index
    %c0_177 = arith.constant 0 : index
    %142 = vector.load %arg4[%c14, %c0_176, %c0_177] : memref<25x128x128xbf16, #tpu.memory_space<vmem>>, vector<1x128x128xbf16>
    %143 = vector.shape_cast %142 : vector<1x128x128xbf16> to vector<128x128xbf16>
    %cst_178 = arith.constant dense<0.000000e+00> : vector<128x128xf32>
    %144 = tpu.matmul %140, %143, %cst_178 {dimension_numbers = #tpu.dot_dimension_numbers<[1], [0], [0], [1], [0, 0, 1, 1], [], []>} : vector<128x128xbf16>, vector<128x128xbf16>, vector<128x128xf32> -> vector<128x128xf32>
    %145 = arith.addf %141, %144 : vector<128x128xf32>
    %c0_179 = arith.constant 0 : index
    %c0_180 = arith.constant 0 : index
    %146 = vector.load %arg10[%c0_179, %c0_180] : memref<128x128xf32, #tpu.memory_space<vmem>>, vector<128x128xf32>
    tpu.vector_store %arg10[%c0_179, %c0_180], %145 {strides = array<i32>} : memref<128x128xf32, #tpu.memory_space<vmem>>, vector<128x128xf32>,
    %c0_181 = arith.constant 0 : index
    %c3_182 = arith.constant 3 : index
    %c0_183 = arith.constant 0 : index
    %c0_184 = arith.constant 0 : index
    %147 = vector.load %arg9[%c0_181, %c3_182, %c0_183, %c0_184] : memref<2x12x12x128xbf16, #tpu.memory_space<vmem>>, vector<2x8x8x128xbf16>
    %148 = vector.shape_cast %147 : vector<2x8x8x128xbf16> to vector<128x128xbf16>
    %c0_185 = arith.constant 0 : index
    %c0_186 = arith.constant 0 : index
    %149 = vector.load %arg10[%c0_185, %c0_186] : memref<128x128xf32, #tpu.memory_space<vmem>>, vector<128x128xf32>
    %c15 = arith.constant 15 : index
    %c0_187 = arith.constant 0 : index
    %c0_188 = arith.constant 0 : index
    %150 = vector.load %arg4[%c15, %c0_187, %c0_188] : memref<25x128x128xbf16, #tpu.memory_space<vmem>>, vector<1x128x128xbf16>
    %151 = vector.shape_cast %150 : vector<1x128x128xbf16> to vector<128x128xbf16>
    %cst_189 = arith.constant dense<0.000000e+00> : vector<128x128xf32>
    %152 = tpu.matmul %148, %151, %cst_189 {dimension_numbers = #tpu.dot_dimension_numbers<[1], [0], [0], [1], [0, 0, 1, 1], [], []>} : vector<128x128xbf16>, vector<128x128xbf16>, vector<128x128xf32> -> vector<128x128xf32>
    %153 = arith.addf %149, %152 : vector<128x128xf32>
    %c0_190 = arith.constant 0 : index
    %c0_191 = arith.constant 0 : index
    %154 = vector.load %arg10[%c0_190, %c0_191] : memref<128x128xf32, #tpu.memory_space<vmem>>, vector<128x128xf32>
    tpu.vector_store %arg10[%c0_190, %c0_191], %153 {strides = array<i32>} : memref<128x128xf32, #tpu.memory_space<vmem>>, vector<128x128xf32>,
    %c0_192 = arith.constant 0 : index
    %c3_193 = arith.constant 3 : index
    %c1_194 = arith.constant 1 : index
    %c0_195 = arith.constant 0 : index
    %155 = vector.load %arg9[%c0_192, %c3_193, %c1_194, %c0_195] : memref<2x12x12x128xbf16, #tpu.memory_space<vmem>>, vector<2x8x8x128xbf16>
    %156 = vector.shape_cast %155 : vector<2x8x8x128xbf16> to vector<128x128xbf16>
    %c0_196 = arith.constant 0 : index
    %c0_197 = arith.constant 0 : index
    %157 = vector.load %arg10[%c0_196, %c0_197] : memref<128x128xf32, #tpu.memory_space<vmem>>, vector<128x128xf32>
    %c16 = arith.constant 16 : index
    %c0_198 = arith.constant 0 : index
    %c0_199 = arith.constant 0 : index
    %158 = vector.load %arg4[%c16, %c0_198, %c0_199] : memref<25x128x128xbf16, #tpu.memory_space<vmem>>, vector<1x128x128xbf16>
    %159 = vector.shape_cast %158 : vector<1x128x128xbf16> to vector<128x128xbf16>
    %cst_200 = arith.constant dense<0.000000e+00> : vector<128x128xf32>
    %160 = tpu.matmul %156, %159, %cst_200 {dimension_numbers = #tpu.dot_dimension_numbers<[1], [0], [0], [1], [0, 0, 1, 1], [], []>} : vector<128x128xbf16>, vector<128x128xbf16>, vector<128x128xf32> -> vector<128x128xf32>
    %161 = arith.addf %157, %160 : vector<128x128xf32>
    %c0_201 = arith.constant 0 : index
    %c0_202 = arith.constant 0 : index
    %162 = vector.load %arg10[%c0_201, %c0_202] : memref<128x128xf32, #tpu.memory_space<vmem>>, vector<128x128xf32>
    tpu.vector_store %arg10[%c0_201, %c0_202], %161 {strides = array<i32>} : memref<128x128xf32, #tpu.memory_space<vmem>>, vector<128x128xf32>,
    %c0_203 = arith.constant 0 : index
    %c3_204 = arith.constant 3 : index
    %c2_205 = arith.constant 2 : index
    %c0_206 = arith.constant 0 : index
    %163 = vector.load %arg9[%c0_203, %c3_204, %c2_205, %c0_206] : memref<2x12x12x128xbf16, #tpu.memory_space<vmem>>, vector<2x8x8x128xbf16>
    %164 = vector.shape_cast %163 : vector<2x8x8x128xbf16> to vector<128x128xbf16>
    %c0_207 = arith.constant 0 : index
    %c0_208 = arith.constant 0 : index
    %165 = vector.load %arg10[%c0_207, %c0_208] : memref<128x128xf32, #tpu.memory_space<vmem>>, vector<128x128xf32>
    %c17 = arith.constant 17 : index
    %c0_209 = arith.constant 0 : index
    %c0_210 = arith.constant 0 : index
    %166 = vector.load %arg4[%c17, %c0_209, %c0_210] : memref<25x128x128xbf16, #tpu.memory_space<vmem>>, vector<1x128x128xbf16>
    %167 = vector.shape_cast %166 : vector<1x128x128xbf16> to vector<128x128xbf16>
    %cst_211 = arith.constant dense<0.000000e+00> : vector<128x128xf32>
    %168 = tpu.matmul %164, %167, %cst_211 {dimension_numbers = #tpu.dot_dimension_numbers<[1], [0], [0], [1], [0, 0, 1, 1], [], []>} : vector<128x128xbf16>, vector<128x128xbf16>, vector<128x128xf32> -> vector<128x128xf32>
    %169 = arith.addf %165, %168 : vector<128x128xf32>
    %c0_212 = arith.constant 0 : index
    %c0_213 = arith.constant 0 : index
    %170 = vector.load %arg10[%c0_212, %c0_213] : memref<128x128xf32, #tpu.memory_space<vmem>>, vector<128x128xf32>
    tpu.vector_store %arg10[%c0_212, %c0_213], %169 {strides = array<i32>} : memref<128x128xf32, #tpu.memory_space<vmem>>, vector<128x128xf32>,
    %c0_214 = arith.constant 0 : index
    %c3_215 = arith.constant 3 : index
    %c3_216 = arith.constant 3 : index
    %c0_217 = arith.constant 0 : index
    %171 = vector.load %arg9[%c0_214, %c3_215, %c3_216, %c0_217] : memref<2x12x12x128xbf16, #tpu.memory_space<vmem>>, vector<2x8x8x128xbf16>
    %172 = vector.shape_cast %171 : vector<2x8x8x128xbf16> to vector<128x128xbf16>
    %c0_218 = arith.constant 0 : index
    %c0_219 = arith.constant 0 : index
    %173 = vector.load %arg10[%c0_218, %c0_219] : memref<128x128xf32, #tpu.memory_space<vmem>>, vector<128x128xf32>
    %c18 = arith.constant 18 : index
    %c0_220 = arith.constant 0 : index
    %c0_221 = arith.constant 0 : index
    %174 = vector.load %arg4[%c18, %c0_220, %c0_221] : memref<25x128x128xbf16, #tpu.memory_space<vmem>>, vector<1x128x128xbf16>
    %175 = vector.shape_cast %174 : vector<1x128x128xbf16> to vector<128x128xbf16>
    %cst_222 = arith.constant dense<0.000000e+00> : vector<128x128xf32>
    %176 = tpu.matmul %172, %175, %cst_222 {dimension_numbers = #tpu.dot_dimension_numbers<[1], [0], [0], [1], [0, 0, 1, 1], [], []>} : vector<128x128xbf16>, vector<128x128xbf16>, vector<128x128xf32> -> vector<128x128xf32>
    %177 = arith.addf %173, %176 : vector<128x128xf32>
    %c0_223 = arith.constant 0 : index
    %c0_224 = arith.constant 0 : index
    %178 = vector.load %arg10[%c0_223, %c0_224] : memref<128x128xf32, #tpu.memory_space<vmem>>, vector<128x128xf32>
    tpu.vector_store %arg10[%c0_223, %c0_224], %177 {strides = array<i32>} : memref<128x128xf32, #tpu.memory_space<vmem>>, vector<128x128xf32>,
    %c0_225 = arith.constant 0 : index
    %c3_226 = arith.constant 3 : index
    %c4_227 = arith.constant 4 : index
    %c0_228 = arith.constant 0 : index
    %179 = vector.load %arg9[%c0_225, %c3_226, %c4_227, %c0_228] : memref<2x12x12x128xbf16, #tpu.memory_space<vmem>>, vector<2x8x8x128xbf16>
    %180 = vector.shape_cast %179 : vector<2x8x8x128xbf16> to vector<128x128xbf16>
    %c0_229 = arith.constant 0 : index
    %c0_230 = arith.constant 0 : index
    %181 = vector.load %arg10[%c0_229, %c0_230] : memref<128x128xf32, #tpu.memory_space<vmem>>, vector<128x128xf32>
    %c19 = arith.constant 19 : index
    %c0_231 = arith.constant 0 : index
    %c0_232 = arith.constant 0 : index
    %182 = vector.load %arg4[%c19, %c0_231, %c0_232] : memref<25x128x128xbf16, #tpu.memory_space<vmem>>, vector<1x128x128xbf16>
    %183 = vector.shape_cast %182 : vector<1x128x128xbf16> to vector<128x128xbf16>
    %cst_233 = arith.constant dense<0.000000e+00> : vector<128x128xf32>
    %184 = tpu.matmul %180, %183, %cst_233 {dimension_numbers = #tpu.dot_dimension_numbers<[1], [0], [0], [1], [0, 0, 1, 1], [], []>} : vector<128x128xbf16>, vector<128x128xbf16>, vector<128x128xf32> -> vector<128x128xf32>
    %185 = arith.addf %181, %184 : vector<128x128xf32>
    %c0_234 = arith.constant 0 : index
    %c0_235 = arith.constant 0 : index
    %186 = vector.load %arg10[%c0_234, %c0_235] : memref<128x128xf32, #tpu.memory_space<vmem>>, vector<128x128xf32>
    tpu.vector_store %arg10[%c0_234, %c0_235], %185 {strides = array<i32>} : memref<128x128xf32, #tpu.memory_space<vmem>>, vector<128x128xf32>,
    %c0_236 = arith.constant 0 : index
    %c4_237 = arith.constant 4 : index
    %c0_238 = arith.constant 0 : index
    %c0_239 = arith.constant 0 : index
    %187 = vector.load %arg9[%c0_236, %c4_237, %c0_238, %c0_239] : memref<2x12x12x128xbf16, #tpu.memory_space<vmem>>, vector<2x8x8x128xbf16>
    %188 = vector.shape_cast %187 : vector<2x8x8x128xbf16> to vector<128x128xbf16>
    %c0_240 = arith.constant 0 : index
    %c0_241 = arith.constant 0 : index
    %189 = vector.load %arg10[%c0_240, %c0_241] : memref<128x128xf32, #tpu.memory_space<vmem>>, vector<128x128xf32>
    %c20 = arith.constant 20 : index
    %c0_242 = arith.constant 0 : index
    %c0_243 = arith.constant 0 : index
    %190 = vector.load %arg4[%c20, %c0_242, %c0_243] : memref<25x128x128xbf16, #tpu.memory_space<vmem>>, vector<1x128x128xbf16>
    %191 = vector.shape_cast %190 : vector<1x128x128xbf16> to vector<128x128xbf16>
    %cst_244 = arith.constant dense<0.000000e+00> : vector<128x128xf32>
    %192 = tpu.matmul %188, %191, %cst_244 {dimension_numbers = #tpu.dot_dimension_numbers<[1], [0], [0], [1], [0, 0, 1, 1], [], []>} : vector<128x128xbf16>, vector<128x128xbf16>, vector<128x128xf32> -> vector<128x128xf32>
    %193 = arith.addf %189, %192 : vector<128x128xf32>
    %c0_245 = arith.constant 0 : index
    %c0_246 = arith.constant 0 : index
    %194 = vector.load %arg10[%c0_245, %c0_246] : memref<128x128xf32, #tpu.memory_space<vmem>>, vector<128x128xf32>
    tpu.vector_store %arg10[%c0_245, %c0_246], %193 {strides = array<i32>} : memref<128x128xf32, #tpu.memory_space<vmem>>, vector<128x128xf32>,
    %c0_247 = arith.constant 0 : index
    %c4_248 = arith.constant 4 : index
    %c1_249 = arith.constant 1 : index
    %c0_250 = arith.constant 0 : index
    %195 = vector.load %arg9[%c0_247, %c4_248, %c1_249, %c0_250] : memref<2x12x12x128xbf16, #tpu.memory_space<vmem>>, vector<2x8x8x128xbf16>
    %196 = vector.shape_cast %195 : vector<2x8x8x128xbf16> to vector<128x128xbf16>
    %c0_251 = arith.constant 0 : index
    %c0_252 = arith.constant 0 : index
    %197 = vector.load %arg10[%c0_251, %c0_252] : memref<128x128xf32, #tpu.memory_space<vmem>>, vector<128x128xf32>
    %c21 = arith.constant 21 : index
    %c0_253 = arith.constant 0 : index
    %c0_254 = arith.constant 0 : index
    %198 = vector.load %arg4[%c21, %c0_253, %c0_254] : memref<25x128x128xbf16, #tpu.memory_space<vmem>>, vector<1x128x128xbf16>
    %199 = vector.shape_cast %198 : vector<1x128x128xbf16> to vector<128x128xbf16>
    %cst_255 = arith.constant dense<0.000000e+00> : vector<128x128xf32>
    %200 = tpu.matmul %196, %199, %cst_255 {dimension_numbers = #tpu.dot_dimension_numbers<[1], [0], [0], [1], [0, 0, 1, 1], [], []>} : vector<128x128xbf16>, vector<128x128xbf16>, vector<128x128xf32> -> vector<128x128xf32>
    %201 = arith.addf %197, %200 : vector<128x128xf32>
    %c0_256 = arith.constant 0 : index
    %c0_257 = arith.constant 0 : index
    %202 = vector.load %arg10[%c0_256, %c0_257] : memref<128x128xf32, #tpu.memory_space<vmem>>, vector<128x128xf32>
    tpu.vector_store %arg10[%c0_256, %c0_257], %201 {strides = array<i32>} : memref<128x128xf32, #tpu.memory_space<vmem>>, vector<128x128xf32>,
    %c0_258 = arith.constant 0 : index
    %c4_259 = arith.constant 4 : index
    %c2_260 = arith.constant 2 : index
    %c0_261 = arith.constant 0 : index
    %203 = vector.load %arg9[%c0_258, %c4_259, %c2_260, %c0_261] : memref<2x12x12x128xbf16, #tpu.memory_space<vmem>>, vector<2x8x8x128xbf16>
    %204 = vector.shape_cast %203 : vector<2x8x8x128xbf16> to vector<128x128xbf16>
    %c0_262 = arith.constant 0 : index
    %c0_263 = arith.constant 0 : index
    %205 = vector.load %arg10[%c0_262, %c0_263] : memref<128x128xf32, #tpu.memory_space<vmem>>, vector<128x128xf32>
    %c22 = arith.constant 22 : index
    %c0_264 = arith.constant 0 : index
    %c0_265 = arith.constant 0 : index
    %206 = vector.load %arg4[%c22, %c0_264, %c0_265] : memref<25x128x128xbf16, #tpu.memory_space<vmem>>, vector<1x128x128xbf16>
    %207 = vector.shape_cast %206 : vector<1x128x128xbf16> to vector<128x128xbf16>
    %cst_266 = arith.constant dense<0.000000e+00> : vector<128x128xf32>
    %208 = tpu.matmul %204, %207, %cst_266 {dimension_numbers = #tpu.dot_dimension_numbers<[1], [0], [0], [1], [0, 0, 1, 1], [], []>} : vector<128x128xbf16>, vector<128x128xbf16>, vector<128x128xf32> -> vector<128x128xf32>
    %209 = arith.addf %205, %208 : vector<128x128xf32>
    %c0_267 = arith.constant 0 : index
    %c0_268 = arith.constant 0 : index
    %210 = vector.load %arg10[%c0_267, %c0_268] : memref<128x128xf32, #tpu.memory_space<vmem>>, vector<128x128xf32>
    tpu.vector_store %arg10[%c0_267, %c0_268], %209 {strides = array<i32>} : memref<128x128xf32, #tpu.memory_space<vmem>>, vector<128x128xf32>,
    %c0_269 = arith.constant 0 : index
    %c4_270 = arith.constant 4 : index
    %c3_271 = arith.constant 3 : index
    %c0_272 = arith.constant 0 : index
    %211 = vector.load %arg9[%c0_269, %c4_270, %c3_271, %c0_272] : memref<2x12x12x128xbf16, #tpu.memory_space<vmem>>, vector<2x8x8x128xbf16>
    %212 = vector.shape_cast %211 : vector<2x8x8x128xbf16> to vector<128x128xbf16>
    %c0_273 = arith.constant 0 : index
    %c0_274 = arith.constant 0 : index
    %213 = vector.load %arg10[%c0_273, %c0_274] : memref<128x128xf32, #tpu.memory_space<vmem>>, vector<128x128xf32>
    %c23 = arith.constant 23 : index
    %c0_275 = arith.constant 0 : index
    %c0_276 = arith.constant 0 : index
    %214 = vector.load %arg4[%c23, %c0_275, %c0_276] : memref<25x128x128xbf16, #tpu.memory_space<vmem>>, vector<1x128x128xbf16>
    %215 = vector.shape_cast %214 : vector<1x128x128xbf16> to vector<128x128xbf16>
    %cst_277 = arith.constant dense<0.000000e+00> : vector<128x128xf32>
    %216 = tpu.matmul %212, %215, %cst_277 {dimension_numbers = #tpu.dot_dimension_numbers<[1], [0], [0], [1], [0, 0, 1, 1], [], []>} : vector<128x128xbf16>, vector<128x128xbf16>, vector<128x128xf32> -> vector<128x128xf32>
    %217 = arith.addf %213, %216 : vector<128x128xf32>
    %c0_278 = arith.constant 0 : index
    %c0_279 = arith.constant 0 : index
    %218 = vector.load %arg10[%c0_278, %c0_279] : memref<128x128xf32, #tpu.memory_space<vmem>>, vector<128x128xf32>
    tpu.vector_store %arg10[%c0_278, %c0_279], %217 {strides = array<i32>} : memref<128x128xf32, #tpu.memory_space<vmem>>, vector<128x128xf32>,
    %c0_280 = arith.constant 0 : index
    %c4_281 = arith.constant 4 : index
    %c4_282 = arith.constant 4 : index
    %c0_283 = arith.constant 0 : index
    %219 = vector.load %arg9[%c0_280, %c4_281, %c4_282, %c0_283] : memref<2x12x12x128xbf16, #tpu.memory_space<vmem>>, vector<2x8x8x128xbf16>
    %220 = vector.shape_cast %219 : vector<2x8x8x128xbf16> to vector<128x128xbf16>
    %c0_284 = arith.constant 0 : index
    %c0_285 = arith.constant 0 : index
    %221 = vector.load %arg10[%c0_284, %c0_285] : memref<128x128xf32, #tpu.memory_space<vmem>>, vector<128x128xf32>
    %c24 = arith.constant 24 : index
    %c0_286 = arith.constant 0 : index
    %c0_287 = arith.constant 0 : index
    %222 = vector.load %arg4[%c24, %c0_286, %c0_287] : memref<25x128x128xbf16, #tpu.memory_space<vmem>>, vector<1x128x128xbf16>
    %223 = vector.shape_cast %222 : vector<1x128x128xbf16> to vector<128x128xbf16>
    %cst_288 = arith.constant dense<0.000000e+00> : vector<128x128xf32>
    %224 = tpu.matmul %220, %223, %cst_288 {dimension_numbers = #tpu.dot_dimension_numbers<[1], [0], [0], [1], [0, 0, 1, 1], [], []>} : vector<128x128xbf16>, vector<128x128xbf16>, vector<128x128xf32> -> vector<128x128xf32>
    %225 = arith.addf %221, %224 : vector<128x128xf32>
    %c0_289 = arith.constant 0 : index
    %c0_290 = arith.constant 0 : index
    %226 = vector.load %arg10[%c0_289, %c0_290] : memref<128x128xf32, #tpu.memory_space<vmem>>, vector<128x128xf32>
    tpu.vector_store %arg10[%c0_289, %c0_290], %225 {strides = array<i32>} : memref<128x128xf32, #tpu.memory_space<vmem>>, vector<128x128xf32>,
    %c0_291 = arith.constant 0 : index
    %c0_292 = arith.constant 0 : index
    %227 = vector.load %arg10[%c0_291, %c0_292] : memref<128x128xf32, #tpu.memory_space<vmem>>, vector<128x128xf32>
    %228 = vector.shape_cast %227 : vector<128x128xf32> to vector<2x8x4x2x128xf32>
    %229 = vector.extract_strided_slice %228 {offsets = [0, 0, 0, 0, 0], sizes = [2, 8, 4, 1, 128], strides = [1, 1, 1, 1, 1]} : vector<2x8x4x2x128xf32> to vector<2x8x4x1x128xf32>
    %230 = vector.shape_cast %229 : vector<2x8x4x1x128xf32> to vector<2x8x4x128xf32>
    %231 = vector.extract_strided_slice %228 {offsets = [0, 0, 0, 1, 0], sizes = [2, 8, 4, 1, 128], strides = [1, 1, 1, 1, 1]} : vector<2x8x4x2x128xf32> to vector<2x8x4x1x128xf32>
    %232 = vector.shape_cast %231 : vector<2x8x4x1x128xf32> to vector<2x8x4x128xf32>
    %233 = arith.maximumf %230, %232 : vector<2x8x4x128xf32>
    %234 = vector.shape_cast %233 : vector<2x8x4x128xf32> to vector<2x4x2x4x128xf32>
    %235 = vector.extract_strided_slice %234 {offsets = [0, 0, 0, 0, 0], sizes = [2, 4, 1, 4, 128], strides = [1, 1, 1, 1, 1]} : vector<2x4x2x4x128xf32> to vector<2x4x1x4x128xf32>
    %236 = vector.shape_cast %235 : vector<2x4x1x4x128xf32> to vector<2x4x4x128xf32>
    %237 = vector.extract_strided_slice %234 {offsets = [0, 0, 1, 0, 0], sizes = [2, 4, 1, 4, 128], strides = [1, 1, 1, 1, 1]} : vector<2x4x2x4x128xf32> to vector<2x4x1x4x128xf32>
    %238 = vector.shape_cast %237 : vector<2x4x1x4x128xf32> to vector<2x4x4x128xf32>
    %239 = arith.maximumf %236, %238 : vector<2x4x4x128xf32>
    %c0_293 = arith.constant 0 : index
    %c0_294 = arith.constant 0 : index
    %240 = vector.load %arg5[%c0_293, %c0_294] : memref<1x128xf32, #tpu.memory_space<vmem>>, vector<1x128xf32>
    %241 = vector.shape_cast %240 : vector<1x128xf32> to vector<1x1x1x128xf32>
    %242 = vector.broadcast %241 : vector<1x1x1x128xf32> to vector<2x4x4x128xf32>
    %243 = arith.addf %239, %242 : vector<2x4x4x128xf32>
    %cst_295 = arith.constant 0.000000e+00 : f32
    %244 = vector.broadcast %cst_295 : f32 to vector<2x4x4x128xf32>
    %245 = arith.maximumf %243, %244 : vector<2x4x4x128xf32>
    %246 = arith.truncf %245 : vector<2x4x4x128xf32> to vector<2x4x4x128xbf16>
    %247 = vector.shape_cast %246 : vector<2x4x4x128xbf16> to vector<2x16x128xbf16>
    %cst_296 = arith.constant 0.000000e+00 : f32
    %248 = vector.broadcast %cst_296 : f32 to vector<2x128xf32>
    %249 = vector.extract_strided_slice %247 {offsets = [0, 0, 0], sizes = [2, 1, 128], strides = [1, 1, 1]} : vector<2x16x128xbf16> to vector<2x1x128xbf16>
    %250 = vector.shape_cast %249 : vector<2x1x128xbf16> to vector<2x128xbf16>
    %c0_297 = arith.constant 0 : index
    %c0_298 = arith.constant 0 : index
    %c0_299 = arith.constant 0 : index
    %251 = vector.load %arg6[%c0_297, %c0_298, %c0_299] : memref<16x128x128xbf16, #tpu.memory_space<vmem>>, vector<1x128x128xbf16>
    %252 = vector.shape_cast %251 : vector<1x128x128xbf16> to vector<128x128xbf16>
    %cst_300 = arith.constant dense<0.000000e+00> : vector<2x128xf32>
    %253 = tpu.matmul %250, %252, %cst_300 {dimension_numbers = #tpu.dot_dimension_numbers<[1], [0], [0], [1], [0, 0, 1, 1], [], []>} : vector<2x128xbf16>, vector<128x128xbf16>, vector<2x128xf32> -> vector<2x128xf32>
    %254 = arith.addf %248, %253 : vector<2x128xf32>
    %255 = vector.extract_strided_slice %247 {offsets = [0, 1, 0], sizes = [2, 1, 128], strides = [1, 1, 1]} : vector<2x16x128xbf16> to vector<2x1x128xbf16>
    %256 = vector.shape_cast %255 : vector<2x1x128xbf16> to vector<2x128xbf16>
    %c1_301 = arith.constant 1 : index
    %c0_302 = arith.constant 0 : index
    %c0_303 = arith.constant 0 : index
    %257 = vector.load %arg6[%c1_301, %c0_302, %c0_303] : memref<16x128x128xbf16, #tpu.memory_space<vmem>>, vector<1x128x128xbf16>
    %258 = vector.shape_cast %257 : vector<1x128x128xbf16> to vector<128x128xbf16>
    %cst_304 = arith.constant dense<0.000000e+00> : vector<2x128xf32>
    %259 = tpu.matmul %256, %258, %cst_304 {dimension_numbers = #tpu.dot_dimension_numbers<[1], [0], [0], [1], [0, 0, 1, 1], [], []>} : vector<2x128xbf16>, vector<128x128xbf16>, vector<2x128xf32> -> vector<2x128xf32>
    %260 = arith.addf %254, %259 : vector<2x128xf32>
    %261 = vector.extract_strided_slice %247 {offsets = [0, 2, 0], sizes = [2, 1, 128], strides = [1, 1, 1]} : vector<2x16x128xbf16> to vector<2x1x128xbf16>
    %262 = vector.shape_cast %261 : vector<2x1x128xbf16> to vector<2x128xbf16>
    %c2_305 = arith.constant 2 : index
    %c0_306 = arith.constant 0 : index
    %c0_307 = arith.constant 0 : index
    %263 = vector.load %arg6[%c2_305, %c0_306, %c0_307] : memref<16x128x128xbf16, #tpu.memory_space<vmem>>, vector<1x128x128xbf16>
    %264 = vector.shape_cast %263 : vector<1x128x128xbf16> to vector<128x128xbf16>
    %cst_308 = arith.constant dense<0.000000e+00> : vector<2x128xf32>
    %265 = tpu.matmul %262, %264, %cst_308 {dimension_numbers = #tpu.dot_dimension_numbers<[1], [0], [0], [1], [0, 0, 1, 1], [], []>} : vector<2x128xbf16>, vector<128x128xbf16>, vector<2x128xf32> -> vector<2x128xf32>
    %266 = arith.addf %260, %265 : vector<2x128xf32>
    %267 = vector.extract_strided_slice %247 {offsets = [0, 3, 0], sizes = [2, 1, 128], strides = [1, 1, 1]} : vector<2x16x128xbf16> to vector<2x1x128xbf16>
    %268 = vector.shape_cast %267 : vector<2x1x128xbf16> to vector<2x128xbf16>
    %c3_309 = arith.constant 3 : index
    %c0_310 = arith.constant 0 : index
    %c0_311 = arith.constant 0 : index
    %269 = vector.load %arg6[%c3_309, %c0_310, %c0_311] : memref<16x128x128xbf16, #tpu.memory_space<vmem>>, vector<1x128x128xbf16>
    %270 = vector.shape_cast %269 : vector<1x128x128xbf16> to vector<128x128xbf16>
    %cst_312 = arith.constant dense<0.000000e+00> : vector<2x128xf32>
    %271 = tpu.matmul %268, %270, %cst_312 {dimension_numbers = #tpu.dot_dimension_numbers<[1], [0], [0], [1], [0, 0, 1, 1], [], []>} : vector<2x128xbf16>, vector<128x128xbf16>, vector<2x128xf32> -> vector<2x128xf32>
    %272 = arith.addf %266, %271 : vector<2x128xf32>
    %273 = vector.extract_strided_slice %247 {offsets = [0, 4, 0], sizes = [2, 1, 128], strides = [1, 1, 1]} : vector<2x16x128xbf16> to vector<2x1x128xbf16>
    %274 = vector.shape_cast %273 : vector<2x1x128xbf16> to vector<2x128xbf16>
    %c4_313 = arith.constant 4 : index
    %c0_314 = arith.constant 0 : index
    %c0_315 = arith.constant 0 : index
    %275 = vector.load %arg6[%c4_313, %c0_314, %c0_315] : memref<16x128x128xbf16, #tpu.memory_space<vmem>>, vector<1x128x128xbf16>
    %276 = vector.shape_cast %275 : vector<1x128x128xbf16> to vector<128x128xbf16>
    %cst_316 = arith.constant dense<0.000000e+00> : vector<2x128xf32>
    %277 = tpu.matmul %274, %276, %cst_316 {dimension_numbers = #tpu.dot_dimension_numbers<[1], [0], [0], [1], [0, 0, 1, 1], [], []>} : vector<2x128xbf16>, vector<128x128xbf16>, vector<2x128xf32> -> vector<2x128xf32>
    %278 = arith.addf %272, %277 : vector<2x128xf32>
    %279 = vector.extract_strided_slice %247 {offsets = [0, 5, 0], sizes = [2, 1, 128], strides = [1, 1, 1]} : vector<2x16x128xbf16> to vector<2x1x128xbf16>
    %280 = vector.shape_cast %279 : vector<2x1x128xbf16> to vector<2x128xbf16>
    %c5_317 = arith.constant 5 : index
    %c0_318 = arith.constant 0 : index
    %c0_319 = arith.constant 0 : index
    %281 = vector.load %arg6[%c5_317, %c0_318, %c0_319] : memref<16x128x128xbf16, #tpu.memory_space<vmem>>, vector<1x128x128xbf16>
    %282 = vector.shape_cast %281 : vector<1x128x128xbf16> to vector<128x128xbf16>
    %cst_320 = arith.constant dense<0.000000e+00> : vector<2x128xf32>
    %283 = tpu.matmul %280, %282, %cst_320 {dimension_numbers = #tpu.dot_dimension_numbers<[1], [0], [0], [1], [0, 0, 1, 1], [], []>} : vector<2x128xbf16>, vector<128x128xbf16>, vector<2x128xf32> -> vector<2x128xf32>
    %284 = arith.addf %278, %283 : vector<2x128xf32>
    %285 = vector.extract_strided_slice %247 {offsets = [0, 6, 0], sizes = [2, 1, 128], strides = [1, 1, 1]} : vector<2x16x128xbf16> to vector<2x1x128xbf16>
    %286 = vector.shape_cast %285 : vector<2x1x128xbf16> to vector<2x128xbf16>
    %c6_321 = arith.constant 6 : index
    %c0_322 = arith.constant 0 : index
    %c0_323 = arith.constant 0 : index
    %287 = vector.load %arg6[%c6_321, %c0_322, %c0_323] : memref<16x128x128xbf16, #tpu.memory_space<vmem>>, vector<1x128x128xbf16>
    %288 = vector.shape_cast %287 : vector<1x128x128xbf16> to vector<128x128xbf16>
    %cst_324 = arith.constant dense<0.000000e+00> : vector<2x128xf32>
    %289 = tpu.matmul %286, %288, %cst_324 {dimension_numbers = #tpu.dot_dimension_numbers<[1], [0], [0], [1], [0, 0, 1, 1], [], []>} : vector<2x128xbf16>, vector<128x128xbf16>, vector<2x128xf32> -> vector<2x128xf32>
    %290 = arith.addf %284, %289 : vector<2x128xf32>
    %291 = vector.extract_strided_slice %247 {offsets = [0, 7, 0], sizes = [2, 1, 128], strides = [1, 1, 1]} : vector<2x16x128xbf16> to vector<2x1x128xbf16>
    %292 = vector.shape_cast %291 : vector<2x1x128xbf16> to vector<2x128xbf16>
    %c7_325 = arith.constant 7 : index
    %c0_326 = arith.constant 0 : index
    %c0_327 = arith.constant 0 : index
    %293 = vector.load %arg6[%c7_325, %c0_326, %c0_327] : memref<16x128x128xbf16, #tpu.memory_space<vmem>>, vector<1x128x128xbf16>
    %294 = vector.shape_cast %293 : vector<1x128x128xbf16> to vector<128x128xbf16>
    %cst_328 = arith.constant dense<0.000000e+00> : vector<2x128xf32>
    %295 = tpu.matmul %292, %294, %cst_328 {dimension_numbers = #tpu.dot_dimension_numbers<[1], [0], [0], [1], [0, 0, 1, 1], [], []>} : vector<2x128xbf16>, vector<128x128xbf16>, vector<2x128xf32> -> vector<2x128xf32>
    %296 = arith.addf %290, %295 : vector<2x128xf32>
    %297 = vector.extract_strided_slice %247 {offsets = [0, 8, 0], sizes = [2, 1, 128], strides = [1, 1, 1]} : vector<2x16x128xbf16> to vector<2x1x128xbf16>
    %298 = vector.shape_cast %297 : vector<2x1x128xbf16> to vector<2x128xbf16>
    %c8_329 = arith.constant 8 : index
    %c0_330 = arith.constant 0 : index
    %c0_331 = arith.constant 0 : index
    %299 = vector.load %arg6[%c8_329, %c0_330, %c0_331] : memref<16x128x128xbf16, #tpu.memory_space<vmem>>, vector<1x128x128xbf16>
    %300 = vector.shape_cast %299 : vector<1x128x128xbf16> to vector<128x128xbf16>
    %cst_332 = arith.constant dense<0.000000e+00> : vector<2x128xf32>
    %301 = tpu.matmul %298, %300, %cst_332 {dimension_numbers = #tpu.dot_dimension_numbers<[1], [0], [0], [1], [0, 0, 1, 1], [], []>} : vector<2x128xbf16>, vector<128x128xbf16>, vector<2x128xf32> -> vector<2x128xf32>
    %302 = arith.addf %296, %301 : vector<2x128xf32>
    %303 = vector.extract_strided_slice %247 {offsets = [0, 9, 0], sizes = [2, 1, 128], strides = [1, 1, 1]} : vector<2x16x128xbf16> to vector<2x1x128xbf16>
    %304 = vector.shape_cast %303 : vector<2x1x128xbf16> to vector<2x128xbf16>
    %c9_333 = arith.constant 9 : index
    %c0_334 = arith.constant 0 : index
    %c0_335 = arith.constant 0 : index
    %305 = vector.load %arg6[%c9_333, %c0_334, %c0_335] : memref<16x128x128xbf16, #tpu.memory_space<vmem>>, vector<1x128x128xbf16>
    %306 = vector.shape_cast %305 : vector<1x128x128xbf16> to vector<128x128xbf16>
    %cst_336 = arith.constant dense<0.000000e+00> : vector<2x128xf32>
    %307 = tpu.matmul %304, %306, %cst_336 {dimension_numbers = #tpu.dot_dimension_numbers<[1], [0], [0], [1], [0, 0, 1, 1], [], []>} : vector<2x128xbf16>, vector<128x128xbf16>, vector<2x128xf32> -> vector<2x128xf32>
    %308 = arith.addf %302, %307 : vector<2x128xf32>
    %309 = vector.extract_strided_slice %247 {offsets = [0, 10, 0], sizes = [2, 1, 128], strides = [1, 1, 1]} : vector<2x16x128xbf16> to vector<2x1x128xbf16>
    %310 = vector.shape_cast %309 : vector<2x1x128xbf16> to vector<2x128xbf16>
    %c10_337 = arith.constant 10 : index
    %c0_338 = arith.constant 0 : index
    %c0_339 = arith.constant 0 : index
    %311 = vector.load %arg6[%c10_337, %c0_338, %c0_339] : memref<16x128x128xbf16, #tpu.memory_space<vmem>>, vector<1x128x128xbf16>
    %312 = vector.shape_cast %311 : vector<1x128x128xbf16> to vector<128x128xbf16>
    %cst_340 = arith.constant dense<0.000000e+00> : vector<2x128xf32>
    %313 = tpu.matmul %310, %312, %cst_340 {dimension_numbers = #tpu.dot_dimension_numbers<[1], [0], [0], [1], [0, 0, 1, 1], [], []>} : vector<2x128xbf16>, vector<128x128xbf16>, vector<2x128xf32> -> vector<2x128xf32>
    %314 = arith.addf %308, %313 : vector<2x128xf32>
    %315 = vector.extract_strided_slice %247 {offsets = [0, 11, 0], sizes = [2, 1, 128], strides = [1, 1, 1]} : vector<2x16x128xbf16> to vector<2x1x128xbf16>
    %316 = vector.shape_cast %315 : vector<2x1x128xbf16> to vector<2x128xbf16>
    %c11_341 = arith.constant 11 : index
    %c0_342 = arith.constant 0 : index
    %c0_343 = arith.constant 0 : index
    %317 = vector.load %arg6[%c11_341, %c0_342, %c0_343] : memref<16x128x128xbf16, #tpu.memory_space<vmem>>, vector<1x128x128xbf16>
    %318 = vector.shape_cast %317 : vector<1x128x128xbf16> to vector<128x128xbf16>
    %cst_344 = arith.constant dense<0.000000e+00> : vector<2x128xf32>
    %319 = tpu.matmul %316, %318, %cst_344 {dimension_numbers = #tpu.dot_dimension_numbers<[1], [0], [0], [1], [0, 0, 1, 1], [], []>} : vector<2x128xbf16>, vector<128x128xbf16>, vector<2x128xf32> -> vector<2x128xf32>
    %320 = arith.addf %314, %319 : vector<2x128xf32>
    %321 = vector.extract_strided_slice %247 {offsets = [0, 12, 0], sizes = [2, 1, 128], strides = [1, 1, 1]} : vector<2x16x128xbf16> to vector<2x1x128xbf16>
    %322 = vector.shape_cast %321 : vector<2x1x128xbf16> to vector<2x128xbf16>
    %c12_345 = arith.constant 12 : index
    %c0_346 = arith.constant 0 : index
    %c0_347 = arith.constant 0 : index
    %323 = vector.load %arg6[%c12_345, %c0_346, %c0_347] : memref<16x128x128xbf16, #tpu.memory_space<vmem>>, vector<1x128x128xbf16>
    %324 = vector.shape_cast %323 : vector<1x128x128xbf16> to vector<128x128xbf16>
    %cst_348 = arith.constant dense<0.000000e+00> : vector<2x128xf32>
    %325 = tpu.matmul %322, %324, %cst_348 {dimension_numbers = #tpu.dot_dimension_numbers<[1], [0], [0], [1], [0, 0, 1, 1], [], []>} : vector<2x128xbf16>, vector<128x128xbf16>, vector<2x128xf32> -> vector<2x128xf32>
    %326 = arith.addf %320, %325 : vector<2x128xf32>
    %327 = vector.extract_strided_slice %247 {offsets = [0, 13, 0], sizes = [2, 1, 128], strides = [1, 1, 1]} : vector<2x16x128xbf16> to vector<2x1x128xbf16>
    %328 = vector.shape_cast %327 : vector<2x1x128xbf16> to vector<2x128xbf16>
    %c13_349 = arith.constant 13 : index
    %c0_350 = arith.constant 0 : index
    %c0_351 = arith.constant 0 : index
    %329 = vector.load %arg6[%c13_349, %c0_350, %c0_351] : memref<16x128x128xbf16, #tpu.memory_space<vmem>>, vector<1x128x128xbf16>
    %330 = vector.shape_cast %329 : vector<1x128x128xbf16> to vector<128x128xbf16>
    %cst_352 = arith.constant dense<0.000000e+00> : vector<2x128xf32>
    %331 = tpu.matmul %328, %330, %cst_352 {dimension_numbers = #tpu.dot_dimension_numbers<[1], [0], [0], [1], [0, 0, 1, 1], [], []>} : vector<2x128xbf16>, vector<128x128xbf16>, vector<2x128xf32> -> vector<2x128xf32>
    %332 = arith.addf %326, %331 : vector<2x128xf32>
    %333 = vector.extract_strided_slice %247 {offsets = [0, 14, 0], sizes = [2, 1, 128], strides = [1, 1, 1]} : vector<2x16x128xbf16> to vector<2x1x128xbf16>
    %334 = vector.shape_cast %333 : vector<2x1x128xbf16> to vector<2x128xbf16>
    %c14_353 = arith.constant 14 : index
    %c0_354 = arith.constant 0 : index
    %c0_355 = arith.constant 0 : index
    %335 = vector.load %arg6[%c14_353, %c0_354, %c0_355] : memref<16x128x128xbf16, #tpu.memory_space<vmem>>, vector<1x128x128xbf16>
    %336 = vector.shape_cast %335 : vector<1x128x128xbf16> to vector<128x128xbf16>
    %cst_356 = arith.constant dense<0.000000e+00> : vector<2x128xf32>
    %337 = tpu.matmul %334, %336, %cst_356 {dimension_numbers = #tpu.dot_dimension_numbers<[1], [0], [0], [1], [0, 0, 1, 1], [], []>} : vector<2x128xbf16>, vector<128x128xbf16>, vector<2x128xf32> -> vector<2x128xf32>
    %338 = arith.addf %332, %337 : vector<2x128xf32>
    %339 = vector.extract_strided_slice %247 {offsets = [0, 15, 0], sizes = [2, 1, 128], strides = [1, 1, 1]} : vector<2x16x128xbf16> to vector<2x1x128xbf16>
    %340 = vector.shape_cast %339 : vector<2x1x128xbf16> to vector<2x128xbf16>
    %c15_357 = arith.constant 15 : index
    %c0_358 = arith.constant 0 : index
    %c0_359 = arith.constant 0 : index
    %341 = vector.load %arg6[%c15_357, %c0_358, %c0_359] : memref<16x128x128xbf16, #tpu.memory_space<vmem>>, vector<1x128x128xbf16>
    %342 = vector.shape_cast %341 : vector<1x128x128xbf16> to vector<128x128xbf16>
    %cst_360 = arith.constant dense<0.000000e+00> : vector<2x128xf32>
    %343 = tpu.matmul %340, %342, %cst_360 {dimension_numbers = #tpu.dot_dimension_numbers<[1], [0], [0], [1], [0, 0, 1, 1], [], []>} : vector<2x128xbf16>, vector<128x128xbf16>, vector<2x128xf32> -> vector<2x128xf32>
    %344 = arith.addf %338, %343 : vector<2x128xf32>
    %c0_361 = arith.constant 0 : index
    %c0_362 = arith.constant 0 : index
    %345 = vector.load %arg7[%c0_361, %c0_362] : memref<1x128xf32, #tpu.memory_space<vmem>>, vector<1x128xf32>
    %346 = vector.broadcast %345 : vector<1x128xf32> to vector<2x128xf32>
    %347 = arith.addf %344, %346 : vector<2x128xf32>
    %c0_363 = arith.constant 0 : index
    %c0_364 = arith.constant 0 : index
    %348 = vector.load %arg8[%c0_363, %c0_364] : memref<2x128xf32, #tpu.memory_space<vmem>>, vector<2x128xf32>
    tpu.vector_store %arg8[%c0_363, %c0_364], %347 {strides = array<i32>} : memref<2x128xf32, #tpu.memory_space<vmem>>, vector<2x128xf32>,
    return
  }
  func.func @transform_0(%arg0: i32) -> (i32, i32, i32, i32) {
    %c0_i32 = arith.constant 0 : i32
    %c0_i32_0 = arith.constant 0 : i32
    %c0_i32_1 = arith.constant 0 : i32
    %c0_i32_2 = arith.constant 0 : i32
    return %arg0, %c0_i32, %c0_i32_0, %c0_i32_1 : i32, i32, i32, i32
  }
  func.func @transform_1(%arg0: i32) -> (i32, i32) {
    %c0_i32 = arith.constant 0 : i32
    %c0_i32_0 = arith.constant 0 : i32
    %c0_i32_1 = arith.constant 0 : i32
    return %c0_i32, %c0_i32_0 : i32, i32
  }
  func.func @transform_2(%arg0: i32) -> (i32, i32) {
    %c0_i32 = arith.constant 0 : i32
    %c0_i32_0 = arith.constant 0 : i32
    %c0_i32_1 = arith.constant 0 : i32
    return %c0_i32, %c0_i32_0 : i32, i32
  }
  func.func @transform_3(%arg0: i32) -> (i32, i32, i32) {
    %c0_i32 = arith.constant 0 : i32
    %c0_i32_0 = arith.constant 0 : i32
    %c0_i32_1 = arith.constant 0 : i32
    %c0_i32_2 = arith.constant 0 : i32
    return %c0_i32, %c0_i32_0, %c0_i32_1 : i32, i32, i32
  }
  func.func @transform_4(%arg0: i32) -> (i32, i32) {
    %c0_i32 = arith.constant 0 : i32
    %c0_i32_0 = arith.constant 0 : i32
    %c0_i32_1 = arith.constant 0 : i32
    return %c0_i32, %c0_i32_0 : i32, i32
  }
  func.func @transform_5(%arg0: i32) -> (i32, i32, i32) {
    %c0_i32 = arith.constant 0 : i32
    %c0_i32_0 = arith.constant 0 : i32
    %c0_i32_1 = arith.constant 0 : i32
    %c0_i32_2 = arith.constant 0 : i32
    return %c0_i32, %c0_i32_0, %c0_i32_1 : i32, i32, i32
  }
  func.func @transform_6(%arg0: i32) -> (i32, i32) {
    %c0_i32 = arith.constant 0 : i32
    %c0_i32_0 = arith.constant 0 : i32
    %c0_i32_1 = arith.constant 0 : i32
    return %c0_i32, %c0_i32_0 : i32, i32
  }
  func.func @transform_7(%arg0: i32) -> (i32, i32) {
    %c0_i32 = arith.constant 0 : i32
    %c0_i32_0 = arith.constant 0 : i32
    return %arg0, %c0_i32 : i32, i32
  }
}

</mosaic_0001>

<bundles_post_ra>
// kernel: net_forward.1
= control target key start
LH: loop header
LB: loop body
LE: loop exit
PB: predicated region body
PF: predicated region fallthrough
CT: control target
= control target key end

     0   :  { %s19715_s0 = inlined_call_operand.vmem [shape: bf16[2,4,144,128], index: 0, kind: input, shape index: {}]   ;;  %s19716_s1 = inlined_call_operand.vmem [shape: bf16[128,128], index: 1, kind: input, shape index: {}]   ;;  %s19717_s2 = inlined_call_operand.vmem [shape: f32[1,128], index: 2, kind: input, shape index: {}]   ;;  %s19718_s3 = inlined_call_operand.vmem [shape: bf16[25,128,128], index: 3, kind: input, shape index: {}]   ;;  %s19719_s4 = inlined_call_operand.vmem [shape: f32[1,128], index: 4, kind: input, shape index: {}]   ;;  %s19720_s5 = inlined_call_operand.vmem [shape: bf16[16,128,128], index: 5, kind: input, shape index: {}]   ;;  %s19721_s6 = inlined_call_operand.vmem [shape: f32[1,128], index: 6, kind: input, shape index: {}]   ;;  %s19722_s7 = inlined_call_operand.hbm [shape: f32[2,128], index: 7, kind: output, shape index: {}]  }
   0x1   :  { %v15511_v0 = vld [vmem:[%s19716_s1 + $0x38] sm:$0xff]  ;;  %v15510_v1 = vld [vmem:[%s19716_s1 + $0x30] sm:$0xff] }
   0x2   :  { %667 = vmatpush.bf16.msra.mxu0 %v15511_v0 }
   0x3   :  { %12 = vsyncpa [#allocation5], 0  ;;  %v15509_v2 = vld [vmem:[%s19716_s1 + $0x28] sm:$0xff]  ;;  %v15508_v3 = vld [vmem:[%s19716_s1 + $0x20] sm:$0xff]  ;;  %vm2319_vm0 = vcmask 1042432   ;;  %vm2320_vm1 = vcmask 1046532  }
   0x4   :  { %v15507_v4 = vld [vmem:[%s19716_s1 + $0x18] sm:$0xff]  ;;  %v15506_v5 = vld [vmem:[%s19716_s1 + $0x10] sm:$0xff]  ;;  %v15505_v6 = vld [vmem:[%s19716_s1 + $0x8] sm:$0xff]  ;;  %vm1834_vm2 = vsmask.f32 3328  ;;  %vm3161_vm9 = vcmask 1041408  }
   0x5   :  { %v15504_v7 = vld [vmem:[%s19716_s1] sm:$0xff]  ;;  %v15433_v9 = vld [vmem:[%s19715_s0 + $0x8] sm:$0xff]  ;;  %v15434_v10 = vld [vmem:[%s19715_s0 + $0x10] sm:$0xff]  ;;  %vm1835_vm3 = vsmask.f32 7440  ;;  %vm3162_vm10 = vcmask 1045508  }
   0x6   :  { %668 = vmatpush.bf16.msra.mxu0 %v15510_v1  ;;  %v15432_v8 = vld [vmem:[%s19715_s0] sm:$0xff]  ;;  %v15435_v11 = vld [vmem:[%s19715_s0 + $0x18] sm:$0xff]  ;;  %v15437_v13 = vld [vmem:[%s19715_s0 + $0x28] sm:$0xff]  ;;  %vm2612_vm6 = vsmask.f32 2304  ;;  %vm11326_vm12 = vcmask 1041409  }
   0x7   :  { %v15436_v12 = vld [vmem:[%s19715_s0 + $0x20] sm:$0xff]  ;;  %v15438_v14 = vld [vmem:[%s19715_s0 + $0x30] sm:$0xff]  ;;  %v15439_v15 = vld [vmem:[%s19715_s0 + $0x38] sm:$0xff]  ;;  %vm2613_vm7 = vsmask.f32 6416  ;;  %s15912_s21 = smov [#allocation4]  }
   0x8   :  { %v15440_v16 = vld [vmem:[%s19715_s0 + $0x40] sm:$0xff]  ;;  %v15441_v19 = vld [vmem:[%s19715_s0 + $0x48] sm:$0xff]  ;;  %v15442_v22 = vld [vmem:[%s19715_s0 + $0x50] sm:$0xff]  ;;  %s12749_s22 = sshll.u32 %s15912_s21, 4  ;;  %s12751_s24 = sshll.u32 %s19722_s7, 4  ;;  %s12750_s22 = int_to_ptr.vmem [resolvable:$true] %s12749_s22  ;;  %s12752_s24 = int_to_ptr.hbm [resolvable:$true] %s12751_s24 }
   0x9   :  { %v15443_v25 = vld [vmem:[%s19715_s0 + $0x58] sm:$0xff]  ;;  %v15444_v28 = vld [vmem:[%s19715_s0 + $0x60] sm:$0xff]  ;;  %v15445_v31 = vld [vmem:[%s19715_s0 + $0x68] sm:$0xff] }
   0xa   :  { %669 = vmatpush.bf16.msra.mxu0 %v15509_v2  ;;  %v15446_v34 = vld [vmem:[%s19715_s0 + $0x70] sm:$0xff]  ;;  %v15447_v37 = vld [vmem:[%s19715_s0 + $0x78] sm:$0xff]  ;;  %v15448_v40 = vld [vmem:[%s19715_s0 + $0x80] sm:$0xff] }
   0xb   :  { %v15449_v43 = vld [vmem:[%s19715_s0 + $0x88] sm:$0xff]  ;;  %v15450_v46 = vld [vmem:[%s19715_s0 + $0x90] sm:$0xff]  ;;  %v15451_v49 = vld [vmem:[%s19715_s0 + $0x98] sm:$0xff] }
   0xc   :  { %v15452_v52 = vld [vmem:[%s19715_s0 + $0xa0] sm:$0xff]  ;;  %v15453_v55 = vld [vmem:[%s19715_s0 + $0xa8] sm:$0xff]  ;;  %v15454_v58 = vld [vmem:[%s19715_s0 + $0xb0] sm:$0xff] }
   0xd   :  { %v15455_v61 = vld [vmem:[%s19715_s0 + $0xb8] sm:$0xff]  ;;  %v15456_v0 = vld [vmem:[%s19715_s0 + $0xc0] sm:$0xff]  ;;  %vm16301_vm4 = vmor %vm2319_vm0, %vm2320_vm1 }
   0xe   :  { %670 = vmatpush.bf16.msra.mxu0 %v15508_v3  ;;  %v15457_v3 = vld [vmem:[%s19715_s0 + $0xc8] sm:$0xff]  ;;  %vm16317_vm5 = vmor %vm1834_vm2, %vm1835_vm3 }
   0xf   :  { %vm16811_vm8 = vmor %vm2612_vm6, %vm2613_vm7 }
  0x10   :  { %vm16824_vm11 = vmor %vm3161_vm9, %vm3162_vm10 }
  0x12   :  { %671 = vmatpush.bf16.msra.mxu0 %v15507_v4 }
  0x16   :  { %672 = vmatpush.bf16.msra.mxu0 %v15506_v5 }
  0x1a   :  { %673 = vmatpush.bf16.msra.mxu0 %v15505_v6  ;;  %v15458_v6 = vld [vmem:[%s19715_s0 + $0xd0] sm:$0xff] }
  0x1e   :  { %674 = vmatpush.bf16.msra.mxu0 %v15504_v7 }
  0x21   :  { %675 = vmatmul.bf16.vlgmr.msra.gmra.mxu0 %v15432_v8 }
  0x31   :  { %680 = vmatmul.bf16.gmra.mxu0 %v15433_v9  ;;  %v15459_v9 = vld [vmem:[%s19715_s0 + $0xd8] sm:$0xff] }
  0x41   :  { %685 = vmatmul.bf16.gmra.mxu0 %v15434_v10 }
  0x51   :  { %690 = vmatmul.bf16.gmra.mxu0 %v15435_v11 }
  0x61   :  { %695 = vmatmul.bf16.gmra.mxu0 %v15436_v12  ;;  %v15460_v12 = vld [vmem:[%s19715_s0 + $0xe0] sm:$0xff] }
  0x71   :  { %700 = vmatmul.bf16.gmra.mxu0 %v15437_v13 }
  0x81   :  { %705 = vmatmul.bf16.gmra.mxu0 %v15438_v14 }
  0x91   :  { %710 = vmatmul.bf16.gmra.mxu0 %v15439_v15  ;;  %v15461_v15 = vld [vmem:[%s19715_s0 + $0xe8] sm:$0xff] }
  0x9e   :  { %v16004_v17 = vpop.f32.mrf.mxu0 }
  0xa1   :  { %715 = vmatmul.bf16.gmra.mxu0 %v15440_v16 }
  0xa6   :  { %v16006_v18 = vpop.f32.mrf.mxu0 }
  0xae   :  { %v16011_v20 = vpop.f32.mrf.mxu0 }
  0xb1   :  { %720 = vmatmul.bf16.gmra.mxu0 %v15441_v19 }
  0xb6   :  { %v16013_v21 = vpop.f32.mrf.mxu0 }
  0xbe   :  { %v16018_v23 = vpop.f32.mrf.mxu0 }
  0xc1   :  { %725 = vmatmul.bf16.gmra.mxu0 %v15442_v22  ;;  %v15462_v22 = vld [vmem:[%s19715_s0 + $0xf0] sm:$0xff] }
  0xc6   :  { %v16020_v24 = vpop.f32.mrf.mxu0 }
  0xce   :  { %v16025_v26 = vpop.f32.mrf.mxu0 }
  0xd1   :  { %730 = vmatmul.bf16.gmra.mxu0 %v15443_v25 }
  0xd6   :  { %v16027_v27 = vpop.f32.mrf.mxu0 }
  0xde   :  { %v16032_v29 = vpop.f32.mrf.mxu0 }
  0xe1   :  { %735 = vmatmul.bf16.gmra.mxu0 %v15444_v28 }
  0xe6   :  { %v16034_v30 = vpop.f32.mrf.mxu0 }
  0xee   :  { %v16039_v32 = vpop.f32.mrf.mxu0 }
  0xf1   :  { %740 = vmatmul.bf16.gmra.mxu0 %v15445_v31  ;;  %v15463_v31 = vld [vmem:[%s19715_s0 + $0xf8] sm:$0xff] }
  0xf6   :  { %v16041_v33 = vpop.f32.mrf.mxu0 }
  0xfe   :  { %v16046_v35 = vpop.f32.mrf.mxu0 }
 0x101   :  { %745 = vmatmul.bf16.gmra.mxu0 %v15446_v34 }
 0x106   :  { %v16048_v36 = vpop.f32.mrf.mxu0 }
 0x10e   :  { %v16053_v38 = vpop.f32.mrf.mxu0 }
 0x111   :  { %750 = vmatmul.bf16.gmra.mxu0 %v15447_v37 }
 0x116   :  { %v16055_v39 = vpop.f32.mrf.mxu0 }
 0x11e   :  { %v16060_v41 = vpop.f32.mrf.mxu0 }
 0x121   :  { %755 = vmatmul.bf16.gmra.mxu0 %v15448_v40  ;;  %v15464_v40 = vld [vmem:[%s19715_s0 + $0x100] sm:$0xff] }
 0x126   :  { %v16062_v42 = vpop.f32.mrf.mxu0 }
 0x12e   :  { %v16067_v44 = vpop.f32.mrf.mxu0 }
 0x131   :  { %760 = vmatmul.bf16.gmra.mxu0 %v15449_v43 }
 0x136   :  { %v16069_v45 = vpop.f32.mrf.mxu0 }
 0x13e   :  { %v16074_v47 = vpop.f32.mrf.mxu0 }
 0x141   :  { %765 = vmatmul.bf16.gmra.mxu0 %v15450_v46 }
 0x146   :  { %v16076_v48 = vpop.f32.mrf.mxu0 }
 0x14e   :  { %v16081_v50 = vpop.f32.mrf.mxu0 }
 0x151   :  { %770 = vmatmul.bf16.gmra.mxu0 %v15451_v49  ;;  %v15465_v49 = vld [vmem:[%s19715_s0 + $0x108] sm:$0xff] }
 0x156   :  { %v16083_v51 = vpop.f32.mrf.mxu0 }
 0x15e   :  { %v16088_v53 = vpop.f32.mrf.mxu0 }
 0x161   :  { %775 = vmatmul.bf16.gmra.mxu0 %v15452_v52 }
 0x166   :  { %v16090_v54 = vpop.f32.mrf.mxu0 }
 0x16e   :  { %v16095_v56 = vpop.f32.mrf.mxu0 }
 0x171   :  { %780 = vmatmul.bf16.gmra.mxu0 %v15453_v55 }
 0x176   :  { %v16097_v57 = vpop.f32.mrf.mxu0 }
 0x17e   :  { %v16102_v59 = vpop.f32.mrf.mxu0 }
 0x181   :  { %785 = vmatmul.bf16.gmra.mxu0 %v15454_v58  ;;  %v15527_v58 = vld [vmem:[%s19718_s3 + $0x38] sm:$0xff] }
 0x182   :  { %1721 = vmatpush.bf16.msra.mxu1 %v15527_v58  ;;  %v15523_v58 = vld [vmem:[%s19718_s3 + $0x18] sm:$0xff] }
 0x186   :  { %v16104_v60 = vpop.f32.mrf.mxu0 }
 0x18e   :  { %v16109_v62 = vpop.f32.mrf.mxu0 }
 0x191   :  { %790 = vmatmul.bf16.gmra.mxu0 %v15455_v61  ;;  %v15466_v61 = vld [vmem:[%s19715_s0 + $0x110] sm:$0xff] }
 0x196   :  { %v16111_v63 = vpop.f32.mrf.mxu0 }
 0x19e   :  { %v16116_v1 = vpop.f32.mrf.mxu0 }
 0x1a1   :  { %795 = vmatmul.bf16.gmra.mxu0 %v15456_v0 }
 0x1a6   :  { %v16118_v2 = vpop.f32.mrf.mxu0 }
 0x1ae   :  { %v16123_v4 = vpop.f32.mrf.mxu0 }
 0x1b1   :  { %800 = vmatmul.bf16.gmra.mxu0 %v15457_v3  ;;  %v15526_v3 = vld [vmem:[%s19718_s3 + $0x30] sm:$0xff] }
 0x1b2   :  { %1722 = vmatpush.bf16.msra.mxu1 %v15526_v3  ;;  %v15533_v3 = vld [vmem:[%s19718_s3 + $0x68] sm:$0xff] }
 0x1b6   :  { %v16125_v5 = vpop.f32.mrf.mxu0 }
 0x1be   :  { %v16130_v7 = vpop.f32.mrf.mxu0 }
 0x1c1   :  { %805 = vmatmul.bf16.gmra.mxu0 %v15458_v6  ;;  %v15543_v6 = vld [vmem:[%s19718_s3 + $0xb8] sm:$0xff] }
 0x1c2   :  { %2499 = vmatpush.bf16.msra.mxu3 %v15543_v6  ;;  %v15540_v6 = vld [vmem:[%s19718_s3 + $0xa0] sm:$0xff] }
 0x1c6   :  { %v16132_v8 = vpop.f32.mrf.mxu0 }
 0x1ce   :  { %v16137_v10 = vpop.f32.mrf.mxu0 }
 0x1d1   :  { %810 = vmatmul.bf16.gmra.mxu0 %v15459_v9  ;;  %v15525_v9 = vld [vmem:[%s19718_s3 + $0x28] sm:$0xff] }
 0x1d2   :  { %1723 = vmatpush.bf16.msra.mxu1 %v15525_v9 }
 0x1d6   :  { %v16139_v11 = vpop.f32.mrf.mxu0 }
 0x1de   :  { %v16144_v13 = vpop.f32.mrf.mxu0 }
 0x1e1   :  { %815 = vmatmul.bf16.gmra.mxu0 %v15460_v12  ;;  %v15535_v12 = vld [vmem:[%s19718_s3 + $0x78] sm:$0xff] }
 0x1e2   :  { %2174 = vmatpush.bf16.msra.mxu2 %v15535_v12  ;;  %v15522_v12 = vld [vmem:[%s19718_s3 + $0x10] sm:$0xff] }
 0x1e6   :  { %v16146_v14 = vpop.f32.mrf.mxu0 }
 0x1ee   :  { %v16151_v16 = vpop.f32.mrf.mxu0 }
 0x1f1   :  { %820 = vmatmul.bf16.gmra.mxu0 %v15461_v15  ;;  %v15542_v15 = vld [vmem:[%s19718_s3 + $0xb0] sm:$0xff] }
 0x1f2   :  { %2500 = vmatpush.bf16.msra.mxu3 %v15542_v15  ;;  %v1036_v15 = vmax.f32 %v16004_v17, %v16067_v44  ;;  %v15539_v17 = vld [vmem:[%s19718_s3 + $0x98] sm:$0xff]  ;;  %v15521_v44 = vld [vmem:[%s19718_s3 + $0x8] sm:$0xff] }
 0x1f6   :  { %v16153_v19 = vpop.f32.mrf.mxu0 }
 0x1fe   :  { %v16158_v25 = vpop.f32.mrf.mxu0 }
 0x201   :  { %825 = vmatmul.bf16.gmra.mxu0 %v15462_v22 }
 0x206   :  { %v16160_v28 = vpop.f32.mrf.mxu0 }
 0x20e   :  { %v16165_v34 = vpop.f32.mrf.mxu0 }
 0x211   :  { %830 = vmatmul.bf16.gmra.mxu0 %v15463_v31  ;;  %v15524_v31 = vld [vmem:[%s19718_s3 + $0x20] sm:$0xff] }
 0x212   :  { %1724 = vmatpush.bf16.msra.mxu1 %v15524_v31 }
 0x216   :  { %v16167_v37 = vpop.f32.mrf.mxu0  ;;  %1725 = vmatpush.bf16.msra.mxu1 %v15523_v58  ;;  %v15532_v58 = vld [vmem:[%s19718_s3 + $0x60] sm:$0xff] }
 0x21a   :  { %1726 = vmatpush.bf16.msra.mxu1 %v15522_v12  ;;  %v15520_v12 = vld [vmem:[%s19718_s3] sm:$0xff] }
 0x21e   :  { %v16172_v43 = vpop.f32.mrf.mxu0  ;;  %1727 = vmatpush.bf16.msra.mxu1 %v15521_v44  ;;  %v15537_v44 = vld [vmem:[%s19718_s3 + $0x88] sm:$0xff] }
 0x221   :  { %835 = vmatmul.bf16.gmra.mxu0 %v15464_v40  ;;  %v15534_v40 = vld [vmem:[%s19718_s3 + $0x70] sm:$0xff] }
 0x222   :  { %2175 = vmatpush.bf16.msra.mxu2 %v15534_v40  ;;  %v16238_v40 = vld [vmem:[%s19717_s2] ss:$0 sm:$0xff]  ;;  %1728 = vmatpush.bf16.msra.mxu1 %v15520_v12 }
 0x226   :  { %v16174_v46 = vpop.f32.mrf.mxu0  ;;  %2176 = vmatpush.bf16.msra.mxu2 %v15533_v3 }
 0x22a   :  { %2177 = vmatpush.bf16.msra.mxu2 %v15532_v58 }
 0x22e   :  { %v16179_v52 = vpop.f32.mrf.mxu0 }
 0x231   :  { %840 = vmatmul.bf16.gmra.mxu0 %v15465_v49  ;;  %v15541_v49 = vld [vmem:[%s19718_s3 + $0xa8] sm:$0xff] }
 0x232   :  { %2501 = vmatpush.bf16.msra.mxu3 %v15541_v49 }
 0x236   :  { %v16181_v55 = vpop.f32.mrf.mxu0  ;;  %2502 = vmatpush.bf16.msra.mxu3 %v15540_v6  ;;  %v15538_v6 = vld [vmem:[%s19718_s3 + $0x90] sm:$0xff] }
 0x23a   :  { %2503 = vmatpush.bf16.msra.mxu3 %v15539_v17  ;;  %v15530_v17 = vld [vmem:[%s19718_s3 + $0x50] sm:$0xff] }
 0x23e   :  { %v16189_v0 = vpop.f32.mrf.mxu0  ;;  %2504 = vmatpush.bf16.msra.mxu3 %v15538_v6  ;;  %v1038_v6 = vmax.f32 %v16011_v20, %v16074_v47 }
 0x241   :  { %845 = vmatmul.bf16.gmra.mxu0 %v15466_v61  ;;  %v15467_v61 = vld [vmem:[%s19715_s0 + $0x118] sm:$0xff] }
 0x242   :  { %2505 = vmatpush.bf16.msra.mxu3 %v15537_v44 }
 0x246   :  { %v16206_v22 = vpop.f32.mrf.mxu0 }
 0x24e   :  { %v811_v9 = vpop.f32.mrf.mxu0 }
 0x24f   :  { %v1072_v31 = vmax.f32 %v16130_v7, %v811_v9 }
 0x251   :  { %v1108_v49 = vmax.f32 %v1036_v15, %v1072_v31  ;;  %850 = vmatmul.bf16.gmra.mxu0 %v15467_v61  ;;  %v15531_v61 = vld [vmem:[%s19718_s3 + $0x58] sm:$0xff]  ;;  %v1037_v15 = vmax.f32 %v16006_v18, %v16069_v45  ;;  %v15468_v45 = vld [vmem:[%s19715_s0 + $0x120] sm:$0xff] }
 0x252   :  { %2178 = vmatpush.bf16.msra.mxu2 %v15531_v61  ;;  %v15536_v61 = vld [vmem:[%s19718_s3 + $0x80] sm:$0xff] }
 0x253   :  { %v1148_v7 = vadd.f32 %v16238_v40, %v1108_v49  ;;  %2506 = vmatpush.bf16.msra.mxu3 %v15536_v61 }
 0x255   :  { %v1184_v3 = vmax.f32 %v1148_v7, 0.0 }
 0x256   :  { %v813_v9 = vpop.f32.mrf.mxu0  ;;  %2179 = vmatpush.bf16.msra.mxu2 %v15530_v17 }
 0x257   :  { %v1256_v31 = vrot.slane %v1184_v3, 4  ;;  %1292 = vst [vmem:[#allocation1] ss:$2 sm:$0xff] %v1184_v3  ;;  %v1073_v49 = vmax.f32 %v16132_v8, %v813_v9  ;;  %v15529_v3 = vld [vmem:[%s19718_s3 + $0x48] sm:$0xff] }
 0x259   :  { %1294 = vst [vmem:[#allocation1 + $0x1] ss:$2 sm:$0xff] %v1256_v31  ;;  %v1109_v58 = vmax.f32 %v1037_v15, %v1073_v49 }
 0x25a   :  { %2180 = vmatpush.bf16.msra.mxu2 %v15529_v3 }
 0x25b   :  { %v1149_v7 = vadd.f32 %v16238_v40, %v1109_v58  ;;  %v15528_v58 = vld [vmem:[%s19718_s3 + $0x40] sm:$0xff] }
 0x25d   :  { %v1185_v18 = vmax.f32 %v1149_v7, 0.0 }
 0x25e   :  { %v816_v8 = vpop.f32.mrf.mxu0  ;;  %2181 = vmatpush.bf16.msra.mxu2 %v15528_v58 }
 0x25f   :  { %v1257_v9 = vrot.slane %v1185_v18, 4  ;;  %1296 = vst [vmem:[#allocation1 + $0x10] ss:$2 sm:$0xff] %v1185_v18  ;;  %v1074_v12 = vmax.f32 %v16137_v10, %v816_v8  ;;  %v1039_v10 = vmax.f32 %v16013_v21, %v16076_v48  ;;  %v1040_v21 = vmax.f32 %v16018_v23, %v16081_v50 }
 0x260   :  { %v1297_v15 = vld.sshfl [vmem:[#allocation1] sm:$0xff pattern:$0x75316420] }
 0x261   :  { %1300 = vst [vmem:[#allocation1 + $0x20] ss:$2 sm:$0xff] %v1257_v9  ;;  %v1110_v31 = vmax.f32 %v1038_v6, %v1074_v12  ;;  %855 = vmatmul.bf16.gmra.mxu0 %v15468_v45  ;;  %v1465_v49 = vpack.c.bf16 %v1297_v15, %v1297_v15  ;;  %v15469_v6 = vld [vmem:[%s19715_s0 + $0x128] sm:$0xff] }
 0x263   :  { %v1150_v17 = vadd.f32 %v16238_v40, %v1110_v31  ;;  %1513 = vst [vmem:[#allocation2] sm:$0xf] %v1465_v49 }
 0x265   :  { %v1186_v20 = vmax.f32 %v1150_v17, 0.0 }
 0x266   :  { %v1298_v47 = vld.sshfl [vmem:[#allocation1 + $0x10] sm:$0xff pattern:$0x75316420]  ;;  %v818_v44 = vpop.f32.mrf.mxu0 }
 0x267   :  { %v1258_v7 = vrot.slane %v1186_v20, 4  ;;  %1302 = vst [vmem:[#allocation1 + $0x21] ss:$2 sm:$0xff] %v1186_v20  ;;  %v1075_v18 = vmax.f32 %v16139_v11, %v818_v44  ;;  %v1466_v45 = vpack.c.bf16 %v1298_v47, %v1298_v47 }
 0x269   :  { %1304 = vst [vmem:[#allocation1 + $0x30] ss:$2 sm:$0xff] %v1258_v7  ;;  %v1111_v8 = vmax.f32 %v1039_v10, %v1075_v18 }
 0x26a   :  { %1514 = vst [vmem:[#allocation2 + $0x4] sm:$0x3] %v1466_v45  ;;  %v1802_v31 = vld [vmem:[#allocation2] sm:$0xf] }
 0x26b   :  { %v1151_v3 = vadd.f32 %v16238_v40, %v1111_v8  ;;  %v1838_v20 = vshrl.u32 %v1802_v31, 16  ;;  %v1841_v47 = vshll.u32 %v1802_v31, 16  ;;  %v2255_v50 = vld [vmem:[#allocation2] sm:$0xe] }
 0x26d   :  { %v1187_v61 = vmax.f32 %v1151_v3, 0.0  ;;  %v1840_v45 = vrot.slane %v1838_v20, 4  ;;  %v1843_v8 = vrot.slane %v1841_v47, 5  ;;  %v1041_v3 = vmax.f32 %v16020_v24, %v16083_v51 }
 0x26e   :  { %v1305_v9 = vld.sshfl [vmem:[#allocation1 + $0x20] sm:$0xff pattern:$0x75316420]  ;;  %v821_v12 = vpop.f32.mrf.mxu0 }
 0x26f   :  { %v1259_v48 = vrot.slane %v1187_v61, 4  ;;  %1307 = vst [vmem:[#allocation1] ss:$2 sm:$0xff] %v1187_v61  ;;  %v1076_v11 = vmax.f32 %v16144_v13, %v821_v12  ;;  %v1467_v15 = vpack.c.bf16 %v1305_v9, %v1305_v9  ;;  %v13082_v9 = vld [vmem:[#allocation2] sm:$0xf]  ;;  %v1844_v47 = vor.u32 %v1843_v8, %v1840_v45 }
 0x270   :  { %v1306_v49 = vld.sshfl [vmem:[#allocation1 + $0x30] sm:$0xff pattern:$0x75316420]  ;;  %v1042_v8 = vmax.f32 %v16025_v26, %v16088_v53 }
 0x271   :  { %1308 = vst [vmem:[#allocation1 + $0x1] ss:$2 sm:$0xff] %v1259_v48  ;;  %v1112_v58 = vmax.f32 %v1040_v21, %v1076_v11  ;;  %860 = vmatmul.bf16.gmra.mxu0 %v15469_v6  ;;  %v1468_v17 = vpack.c.bf16 %v1306_v49, %v1306_v49  ;;  %v2256_v10 = vld [vmem:[#allocation2 + $0x4] sm:$0x1]  ;;  %v13192_v48 = vrot.slane %v2255_v50, 9 }
 0x272   :  { %1515 = vst [vmem:[#allocation2 + $0x8] sm:$0xf] %v1467_v15  ;;  %v1803_v13 = vld [vmem:[#allocation2 + $0x4] sm:$0x1]  ;;  %v2324_v18 = vrot.slane %v2256_v10, 5 }
 0x273   :  { %v1152_v44 = vadd.f32 %v16238_v40, %v1112_v58  ;;  %1516 = vst [vmem:[#allocation2 + $0xc] sm:$0x3] %v1468_v17  ;;  %v1847_v11 = vshll.u32 %v1803_v13, 16 }
 0x275   :  { %v1188_v23 = vmax.f32 %v1152_v44, 0.0  ;;  %v1849_v13 = vrot.slane %v1847_v11, 5  ;;  %v19734_v11 = vmov 0 }
 0x276   :  { %v823_v7 = vpop.f32.mrf.mxu0  ;;  %v19735_v11 = vsel %vm16317_vm5, 4294967295, %v19734_v11 }
 0x277   :  { %v1260_v61 = vrot.slane %v1188_v23, 4  ;;  %1309 = vst [vmem:[#allocation1 + $0x10] ss:$2 sm:$0xff] %v1188_v23  ;;  %v1077_v6 = vmax.f32 %v16146_v14, %v823_v7  ;;  %v2325_v14 = vsel %vm16301_vm4, %v13192_v48, %v2324_v18 }
 0x278   :  { %v1310_v21 = vld.sshfl [vmem:[#allocation1] sm:$0xff pattern:$0x75316420]  ;;  %19736 = vst [vmem:[#allocation7_spill] sm:$0xff] %v19735_v11 }
 0x279   :  { %1312 = vst [vmem:[#allocation1 + $0x20] ss:$2 sm:$0xff] %v1260_v61  ;;  %v1113_v15 = vmax.f32 %v1041_v3, %v1077_v6  ;;  %v15512_v31 = vld [vmem:[#allocation2 + $0x4] sm:$0xf0]  ;;  %v1469_v58 = vpack.c.bf16 %v1310_v21, %v1310_v21 }
 0x27a   :  { %v2257_v49 = vld [vmem:[#allocation2 + $0x8] sm:$0xe]  ;;  %v13083_v24 = vor.u32 %v15512_v31, %v13082_v9  ;;  %v2258_v51 = vld [vmem:[#allocation2 + $0xc] sm:$0x1] }
 0x27b   :  { %v13193_v17 = vrot.slane %v2257_v49, 9  ;;  %v1804_v20 = vld [vmem:[#allocation2 + $0x8] sm:$0xf]  ;;  %v1153_v44 = vadd.f32 %v16238_v40, %v1113_v15  ;;  %v2328_v10 = vrot.slane %v2258_v51, 5  ;;  %v1805_v23 = vld [vmem:[#allocation2 + $0xc] sm:$0x1]  ;;  %v2419_v15 = vunpack.c.l.b16 %v2325_v14 }
 0x27c   :  { %v1852_v7 = vshrl.u32 %v1804_v20, 16  ;;  %v1855_v50 = vshll.u32 %v1804_v20, 16  ;;  %1729 = vmatmul.bf16.vlgmr.msra.gmra.mxu1 %v13083_v24  ;;  %v1861_v3 = vshll.u32 %v1805_v23, 16  ;;  %1517 = vst [vmem:[#allocation2 + $0x10] sm:$0xf] %v1469_v58  ;;  %v15470_v6 = vld [vmem:[%s19715_s0 + $0x130] sm:$0xff] }
 0x27d   :  { %v1189_v61 = vmax.f32 %v1153_v44, 0.0  ;;  %v2329_v18 = vsel %vm16301_vm4, %v13193_v17, %v2328_v10  ;;  %v1845_v49 = vrot.slane %v1844_v47, 4 }
 0x27e   :  { %v1854_v9 = vrot.slane %v1852_v7, 4  ;;  %v1857_v45 = vrot.slane %v1855_v50, 5  ;;  %v1311_v21 = vld.sshfl [vmem:[#allocation1 + $0x10] sm:$0xff pattern:$0x75316420]  ;;  %v826_v48 = vpop.f32.mrf.mxu0  ;;  %v2420_v31 = vunpack.c.l.b16 %v2329_v18  ;;  %v1863_v44 = vrot.slane %v1861_v3, 5 }
 0x27f   :  { %v1261_v58 = vrot.slane %v1189_v61, 4  ;;  %1313 = vst [vmem:[#allocation1 + $0x21] ss:$2 sm:$0xff] %v1189_v61  ;;  %v1078_v24 = vmax.f32 %v16151_v16, %v826_v48  ;;  %v1470_v17 = vpack.c.bf16 %v1311_v21, %v1311_v21  ;;  %v1850_v53 = vsel %vm16317_vm5, %v1845_v49, %v1849_v13 }
 0x280   :  { %v1858_v51 = vor.u32 %v1857_v45, %v1854_v9  ;;  %v2435_v20 = vpack.c.b16 %v2420_v31, %v2419_v15  ;;  %v2094_v23 = vunpack.c.l.b16 %v1850_v53  ;;  %v1044_v53 = vmax.f32 %v16032_v29, %v16095_v56 }
 0x281   :  { %1314 = vst [vmem:[#allocation1 + $0x30] ss:$2 sm:$0xff] %v1261_v58  ;;  %v1114_v26 = vmax.f32 %v1042_v8, %v1078_v24  ;;  %865 = vmatmul.bf16.gmra.mxu0 %v15470_v6  ;;  %v1043_v6 = vmax.f32 %v16027_v27, %v16090_v54  ;;  %v15471_v27 = vld [vmem:[%s19715_s0 + $0x138] sm:$0xff] }
 0x282   :  { %v1859_v14 = vrot.slane %v1858_v51, 4  ;;  %2507 = vmatmul.bf16.vlgmr.msra.gmra.mxu3 %v2435_v20  ;;  %1518 = vst [vmem:[#allocation2 + $0x14] sm:$0x3] %v1470_v17 }
 0x283   :  { %v1154_v10 = vadd.f32 %v16238_v40, %v1114_v26  ;;  %v1806_v45 = vld [vmem:[#allocation2 + $0x10] sm:$0xf] }
 0x284   :  { %v1864_v47 = vsel %vm16317_vm5, %v1859_v14, %v1863_v44  ;;  %v1866_v15 = vshrl.u32 %v1806_v45, 16  ;;  %v1869_v31 = vshll.u32 %v1806_v45, 16  ;;  %v2259_v54 = vld [vmem:[#allocation2 + $0x10] sm:$0xe] }
 0x285   :  { %v2095_v16 = vunpack.c.l.b16 %v1864_v47  ;;  %v1190_v7 = vmax.f32 %v1154_v10, 0.0  ;;  %v13086_v10 = vld [vmem:[#allocation2 + $0x10] sm:$0xf] }
 0x286   :  { %v1315_v50 = vld.sshfl [vmem:[#allocation1 + $0x20] sm:$0xff pattern:$0x75316420]  ;;  %v828_v61 = vpop.f32.mrf.mxu0  ;;  %v1868_v20 = vrot.slane %v1866_v15, 4  ;;  %v1871_v26 = vrot.slane %v1869_v31, 5 }
 0x287   :  { %v2110_v18 = vpack.c.b16 %v2095_v16, %v2094_v23  ;;  %v1262_v9 = vrot.slane %v1190_v7, 4  ;;  %1317 = vst [vmem:[#allocation1] ss:$2 sm:$0xff] %v1190_v7  ;;  %v1079_v13 = vmax.f32 %v16153_v19, %v828_v61  ;;  %v1471_v3 = vpack.c.bf16 %v1315_v50, %v1315_v50 }
 0x288   :  { %v1316_v8 = vld.sshfl [vmem:[#allocation1 + $0x30] sm:$0xff pattern:$0x75316420]  ;;  %v13194_v23 = vrot.slane %v2259_v54, 9  ;;  %v1045_v54 = vmax.f32 %v16034_v30, %v16097_v57 }
 0x289   :  { %2182 = vmatmul.bf16.vlgmr.msra.gmra.mxu2 %v2110_v18  ;;  %1318 = vst [vmem:[#allocation1 + $0x1] ss:$2 sm:$0xff] %v1262_v9  ;;  %v1115_v21 = vmax.f32 %v1043_v6, %v1079_v13  ;;  %v1472_v48 = vpack.c.bf16 %v1316_v8, %v1316_v8  ;;  %v2260_v58 = vld [vmem:[#allocation2 + $0x14] sm:$0x1] }
 0x28a   :  { %1519 = vst [vmem:[#allocation2 + $0x18] sm:$0xf] %v1471_v3  ;;  %v1807_v19 = vld [vmem:[#allocation2 + $0x14] sm:$0x1]  ;;  %v2332_v17 = vrot.slane %v2260_v58, 5  ;;  %v1872_v3 = vor.u32 %v1871_v26, %v1868_v20 }
 0x28b   :  { %v1155_v49 = vadd.f32 %v16238_v40, %v1115_v21  ;;  %1520 = vst [vmem:[#allocation2 + $0x1c] sm:$0x3] %v1472_v48  ;;  %v1875_v16 = vshll.u32 %v1807_v19, 16 }
 0x28c   :  { %v2333_v13 = vsel %vm16301_vm4, %v13194_v23, %v2332_v17  ;;  %v1873_v26 = vrot.slane %v1872_v3, 4 }
 0x28d   :  { %v1191_v24 = vmax.f32 %v1155_v49, 0.0  ;;  %v1877_v15 = vrot.slane %v1875_v16, 5 }
 0x28e   :  { %v831_v51 = vpop.f32.mrf.mxu0 }
 0x28f   :  { %v1263_v14 = vrot.slane %v1191_v24, 4  ;;  %1319 = vst [vmem:[#allocation1 + $0x10] ss:$2 sm:$0xff] %v1191_v24  ;;  %v1080_v44 = vmax.f32 %v16158_v25, %v831_v51  ;;  %v2421_v51 = vunpack.c.l.b16 %v2333_v13  ;;  %v1878_v16 = vsel %vm16317_vm5, %v1873_v26, %v1877_v15 }
 0x290   :  { %v1320_v47 = vld.sshfl [vmem:[#allocation1] sm:$0xff pattern:$0x75316420] }
 0x291   :  { %1322 = vst [vmem:[#allocation1 + $0x20] ss:$2 sm:$0xff] %v1263_v14  ;;  %v1116_v7 = vmax.f32 %v1044_v53, %v1080_v44  ;;  %870 = vmatmul.bf16.gmra.mxu0 %v15471_v27  ;;  %v15513_v50 = vld [vmem:[#allocation2 + $0x14] sm:$0xf0]  ;;  %v1473_v18 = vpack.c.bf16 %v1320_v47, %v1320_v47 }
 0x292   :  { %v2261_v61 = vld [vmem:[#allocation2 + $0x18] sm:$0xe]  ;;  %v13087_v6 = vor.u32 %v15513_v50, %v13086_v10  ;;  %v2262_v9 = vld [vmem:[#allocation2 + $0x1c] sm:$0x1] }
 0x293   :  { %v13195_v29 = vrot.slane %v2261_v61, 9  ;;  %v1808_v56 = vld [vmem:[#allocation2 + $0x18] sm:$0xf]  ;;  %v1156_v25 = vadd.f32 %v16238_v40, %v1116_v7  ;;  %v2336_v45 = vrot.slane %v2262_v9, 5  ;;  %v1809_v8 = vld [vmem:[#allocation2 + $0x1c] sm:$0x1]  ;;  %v2096_v61 = vunpack.c.l.b16 %v1878_v16 }
 0x294   :  { %v1880_v21 = vshrl.u32 %v1808_v56, 16  ;;  %v1883_v48 = vshll.u32 %v1808_v56, 16  ;;  %1734 = vmatmul.bf16.gmra.mxu1 %v13087_v6  ;;  %v1889_v31 = vshll.u32 %v1809_v8, 16  ;;  %1521 = vst [vmem:[#allocation2 + $0x20] sm:$0xf] %v1473_v18  ;;  %v15472_v6 = vld [vmem:[%s19715_s0 + $0x140] sm:$0xff]  ;;  %v1046_v56 = vmax.f32 %v16039_v32, %v16102_v59 }
 0x295   :  { %v1192_v49 = vmax.f32 %v1156_v25, 0.0  ;;  %v2337_v58 = vsel %vm16301_vm4, %v13195_v29, %v2336_v45 }
 0x296   :  { %v1882_v24 = vrot.slane %v1880_v21, 4  ;;  %v1885_v27 = vrot.slane %v1883_v48, 5  ;;  %v833_v19 = vpop.f32.mrf.mxu0  ;;  %v2422_v17 = vunpack.c.l.b16 %v2337_v58  ;;  %v1321_v20 = vld.sshfl [vmem:[#allocation1 + $0x10] sm:$0xff pattern:$0x75316420]  ;;  %v1891_v50 = vrot.slane %v1889_v31, 5 }
 0x297   :  { %v1264_v53 = vrot.slane %v1192_v49, 4  ;;  %1323 = vst [vmem:[#allocation1 + $0x21] ss:$2 sm:$0xff] %v1192_v49  ;;  %v1081_v14 = vmax.f32 %v16160_v28, %v833_v19  ;;  %v1474_v10 = vpack.c.bf16 %v1321_v20, %v1321_v20 }
 0x298   :  { %v1886_v44 = vor.u32 %v1885_v27, %v1882_v24  ;;  %v2436_v47 = vpack.c.b16 %v2422_v17, %v2421_v51  ;;  %v1047_v17 = vmax.f32 %v16041_v33, %v16104_v60 }
 0x299   :  { %1324 = vst [vmem:[#allocation1 + $0x30] ss:$2 sm:$0xff] %v1264_v53  ;;  %v1117_v23 = vmax.f32 %v1045_v54, %v1081_v14 }
 0x29a   :  { %v1887_v7 = vrot.slane %v1886_v44, 4  ;;  %2512 = vmatmul.bf16.gmra.mxu3 %v2436_v47  ;;  %1522 = vst [vmem:[#allocation2 + $0x24] sm:$0x3] %v1474_v10 }
 0x29b   :  { %v1157_v30 = vadd.f32 %v16238_v40, %v1117_v23  ;;  %v1810_v8 = vld [vmem:[#allocation2 + $0x20] sm:$0xf] }
 0x29c   :  { %v1892_v57 = vsel %vm16317_vm5, %v1887_v7, %v1891_v50  ;;  %v1894_v31 = vshrl.u32 %v1810_v8, 16  ;;  %v1897_v49 = vshll.u32 %v1810_v8, 16  ;;  %v2263_v59 = vld [vmem:[#allocation2 + $0x20] sm:$0xe] }
 0x29d   :  { %v2097_v18 = vunpack.c.l.b16 %v1892_v57  ;;  %v1193_v28 = vmax.f32 %v1157_v30, 0.0  ;;  %v13090_v53 = vld [vmem:[#allocation2 + $0x20] sm:$0xf]  ;;  %v13196_v44 = vrot.slane %v2263_v59, 9 }
 0x29e   :  { %v1325_v9 = vld.sshfl [vmem:[#allocation1 + $0x20] sm:$0xff pattern:$0x75316420]  ;;  %v836_v13 = vpop.f32.mrf.mxu0  ;;  %v1896_v19 = vrot.slane %v1894_v31, 4  ;;  %v1899_v51 = vrot.slane %v1897_v49, 5 }
 0x29f   :  { %v2111_v29 = vpack.c.b16 %v2097_v18, %v2096_v61  ;;  %v1265_v3 = vrot.slane %v1193_v28, 4  ;;  %1327 = vst [vmem:[#allocation1] ss:$2 sm:$0xff] %v1193_v28  ;;  %v1082_v25 = vmax.f32 %v16165_v34, %v836_v13  ;;  %v1475_v45 = vpack.c.bf16 %v1325_v9, %v1325_v9 }
 0x2a0   :  { %v1326_v21 = vld.sshfl [vmem:[#allocation1 + $0x30] sm:$0xff pattern:$0x75316420]  ;;  %v1900_v60 = vor.u32 %v1899_v51, %v1896_v19 }
 0x2a1   :  { %2187 = vmatmul.bf16.gmra.mxu2 %v2111_v29  ;;  %1328 = vst [vmem:[#allocation1 + $0x1] ss:$2 sm:$0xff] %v1265_v3  ;;  %v1118_v48 = vmax.f32 %v1046_v56, %v1082_v25  ;;  %875 = vmatmul.bf16.gmra.mxu0 %v15472_v6  ;;  %v1476_v15 = vpack.c.bf16 %v1326_v21, %v1326_v21  ;;  %v2264_v24 = vld [vmem:[#allocation2 + $0x24] sm:$0x1] }
 0x2a2   :  { %1523 = vst [vmem:[#allocation2 + $0x28] sm:$0xf] %v1475_v45  ;;  %v1811_v27 = vld [vmem:[#allocation2 + $0x24] sm:$0x1]  ;;  %v2340_v34 = vrot.slane %v2264_v24, 5  ;;  %v1048_v21 = vmax.f32 %v16046_v35, %v16109_v62 }
 0x2a3   :  { %v1158_v58 = vadd.f32 %v16238_v40, %v1118_v48  ;;  %1524 = vst [vmem:[#allocation2 + $0x2c] sm:$0x3] %v1476_v15  ;;  %v1903_v10 = vshll.u32 %v1811_v27, 16  ;;  %v15473_v3 = vld [vmem:[%s19715_s0 + $0x148] sm:$0xff] }
 0x2a4   :  { %v2341_v57 = vsel %vm16301_vm4, %v13196_v44, %v2340_v34 }
 0x2a5   :  { %v1194_v32 = vmax.f32 %v1158_v58, 0.0  ;;  %v1905_v13 = vrot.slane %v1903_v10, 5  ;;  %v2423_v15 = vunpack.c.l.b16 %v2341_v57  ;;  %v1901_v58 = vrot.slane %v1900_v60, 4 }
 0x2a6   :  { %v838_v54 = vpop.f32.mrf.mxu0  ;;  %v1049_v10 = vmax.f32 %v16048_v36, %v16111_v63  ;;  %v15474_v36 = vld [vmem:[%s19715_s0 + $0x150] sm:$0xff] }
 0x2a7   :  { %v1266_v20 = vrot.slane %v1194_v32, 4  ;;  %1329 = vst [vmem:[#allocation1 + $0x10] ss:$2 sm:$0xff] %v1194_v32  ;;  %v1083_v26 = vmax.f32 %v16167_v37, %v838_v54  ;;  %v1906_v19 = vsel %vm16317_vm5, %v1901_v58, %v1905_v13 }
 0x2a8   :  { %v1330_v14 = vld.sshfl [vmem:[#allocation1] sm:$0xff pattern:$0x75316420] }
 0x2a9   :  { %1332 = vst [vmem:[#allocation1 + $0x20] ss:$2 sm:$0xff] %v1266_v20  ;;  %v1119_v47 = vmax.f32 %v1047_v17, %v1083_v26  ;;  %v15514_v23 = vld [vmem:[#allocation2 + $0x24] sm:$0xf0]  ;;  %v1477_v7 = vpack.c.bf16 %v1330_v14, %v1330_v14  ;;  %v2098_v20 = vunpack.c.l.b16 %v1906_v19 }
 0x2aa   :  { %v2265_v16 = vld [vmem:[#allocation2 + $0x28] sm:$0xe]  ;;  %v13091_v50 = vor.u32 %v15514_v23, %v13090_v53  ;;  %v2266_v30 = vld [vmem:[#allocation2 + $0x2c] sm:$0x1] }
 0x2ab   :  { %v13197_v61 = vrot.slane %v2265_v16, 9  ;;  %v1812_v33 = vld [vmem:[#allocation2 + $0x28] sm:$0xf]  ;;  %v1159_v18 = vadd.f32 %v16238_v40, %v1119_v47  ;;  %v2344_v37 = vrot.slane %v2266_v30, 5  ;;  %v1813_v28 = vld [vmem:[#allocation2 + $0x2c] sm:$0x1] }
 0x2ac   :  { %v1908_v6 = vshrl.u32 %v1812_v33, 16  ;;  %v1911_v9 = vshll.u32 %v1812_v33, 16  ;;  %1739 = vmatmul.bf16.gmra.mxu1 %v13091_v50  ;;  %v1917_v29 = vshll.u32 %v1813_v28, 16  ;;  %1525 = vst [vmem:[#allocation2 + $0x30] sm:$0xf] %v1477_v7 }
 0x2ad   :  { %v1195_v56 = vmax.f32 %v1159_v18, 0.0  ;;  %v2345_v25 = vsel %vm16301_vm4, %v13197_v61, %v2344_v37 }
 0x2ae   :  { %v1910_v45 = vrot.slane %v1908_v6, 4  ;;  %v1913_v8 = vrot.slane %v1911_v9, 5  ;;  %v841_v48 = vpop.f32.mrf.mxu0  ;;  %v2424_v31 = vunpack.c.l.b16 %v2345_v25  ;;  %v1331_v49 = vld.sshfl [vmem:[#allocation1 + $0x10] sm:$0xff pattern:$0x75316420]  ;;  %v1919_v35 = vrot.slane %v1917_v29, 5 }
 0x2af   :  { %v1267_v24 = vrot.slane %v1195_v56, 4  ;;  %1333 = vst [vmem:[#allocation1 + $0x21] ss:$2 sm:$0xff] %v1195_v56  ;;  %v1084_v32 = vmax.f32 %v16172_v43, %v841_v48  ;;  %v1478_v27 = vpack.c.bf16 %v1331_v49, %v1331_v49  ;;  %v1050_v29 = vmax.f32 %v16053_v38, %v16116_v1 }
 0x2b0   :  { %v1914_v59 = vor.u32 %v1913_v8, %v1910_v45  ;;  %v2437_v54 = vpack.c.b16 %v2424_v31, %v2423_v15 }
 0x2b1   :  { %1334 = vst [vmem:[#allocation1 + $0x30] ss:$2 sm:$0xff] %v1267_v24  ;;  %v1120_v34 = vmax.f32 %v1048_v21, %v1084_v32  ;;  %880 = vmatmul.bf16.gmra.mxu0 %v15473_v3 }
 0x2b2   :  { %v1915_v51 = vrot.slane %v1914_v59, 4  ;;  %2517 = vmatmul.bf16.gmra.mxu3 %v2437_v54  ;;  %1526 = vst [vmem:[#allocation2 + $0x34] sm:$0x3] %v1478_v27 }
 0x2b3   :  { %v1160_v62 = vadd.f32 %v16238_v40, %v1120_v34  ;;  %v1814_v7 = vld [vmem:[#allocation2 + $0x30] sm:$0xf] }
 0x2b4   :  { %v1920_v17 = vsel %vm16317_vm5, %v1915_v51, %v1919_v35  ;;  %v1922_v61 = vshrl.u32 %v1814_v7, 16  ;;  %v1925_v33 = vshll.u32 %v1814_v7, 16  ;;  %v2267_v63 = vld [vmem:[#allocation2 + $0x30] sm:$0xe] }
 0x2b5   :  { %v2099_v43 = vunpack.c.l.b16 %v1920_v17  ;;  %v1196_v26 = vmax.f32 %v1160_v62, 0.0  ;;  %v13094_v25 = vld [vmem:[#allocation2 + $0x30] sm:$0xf]  ;;  %v13198_v8 = vrot.slane %v2267_v63, 9  ;;  %v1052_v63 = vmax.f32 %v16060_v41, %v16123_v4 }
 0x2b6   :  { %v1335_v53 = vld.sshfl [vmem:[#allocation1 + $0x20] sm:$0xff pattern:$0x75316420]  ;;  %v843_v14 = vpop.f32.mrf.mxu0  ;;  %v1924_v9 = vrot.slane %v1922_v61, 4  ;;  %v1927_v13 = vrot.slane %v1925_v33, 5 }
 0x2b7   :  { %v2112_v44 = vpack.c.b16 %v2099_v43, %v2098_v20  ;;  %v1268_v47 = vrot.slane %v1196_v26, 4  ;;  %1337 = vst [vmem:[#allocation1] ss:$2 sm:$0xff] %v1196_v26  ;;  %v1085_v23 = vmax.f32 %v16174_v46, %v843_v14  ;;  %v1479_v16 = vpack.c.bf16 %v1335_v53, %v1335_v53 }
 0x2b8   :  { %v1336_v50 = vld.sshfl [vmem:[#allocation1 + $0x30] sm:$0xff pattern:$0x75316420]  ;;  %v1928_v59 = vor.u32 %v1927_v13, %v1924_v9  ;;  %v1051_v26 = vmax.f32 %v16055_v39, %v16118_v2 }
 0x2b9   :  { %2192 = vmatmul.bf16.gmra.mxu2 %v2112_v44  ;;  %1338 = vst [vmem:[#allocation1 + $0x1] ss:$2 sm:$0xff] %v1268_v47  ;;  %v1121_v30 = vmax.f32 %v1049_v10, %v1085_v23  ;;  %v1480_v57 = vpack.c.bf16 %v1336_v50, %v1336_v50  ;;  %v2268_v18 = vld [vmem:[#allocation2 + $0x34] sm:$0x1] }
 0x2ba   :  { %1527 = vst [vmem:[#allocation2 + $0x38] sm:$0xf] %v1479_v16  ;;  %v1815_v46 = vld [vmem:[#allocation2 + $0x34] sm:$0x1]  ;;  %v2348_v6 = vrot.slane %v2268_v18, 5  ;;  %v1929_v23 = vrot.slane %v1928_v59, 4 }
 0x2bb   :  { %v1161_v60 = vadd.f32 %v16238_v40, %v1121_v30  ;;  %1528 = vst [vmem:[#allocation2 + $0x3c] sm:$0x3] %v1480_v57  ;;  %v1931_v21 = vshll.u32 %v1815_v46, 16 }
 0x2bc   :  { %v2349_v32 = vsel %vm16301_vm4, %v13198_v8, %v2348_v6 }
 0x2bd   :  { %v1197_v37 = vmax.f32 %v1161_v60, 0.0  ;;  %v1933_v51 = vrot.slane %v1931_v21, 5  ;;  %v2425_v14 = vunpack.c.l.b16 %v2349_v32  ;;  %v15476_v21 = vld [vmem:[%s19715_s0 + $0x160] sm:$0xff] }
 0x2be   :  { %v846_v28 = vpop.f32.mrf.mxu0 }
 0x2bf   :  { %v1269_v56 = vrot.slane %v1197_v37, 4  ;;  %1339 = vst [vmem:[#allocation1 + $0x10] ss:$2 sm:$0xff] %v1197_v37  ;;  %v1086_v3 = vmax.f32 %v16179_v52, %v846_v28  ;;  %v1934_v30 = vsel %vm16317_vm5, %v1929_v23, %v1933_v51 }
 0x2c0   :  { %v1340_v45 = vld.sshfl [vmem:[#allocation1] sm:$0xff pattern:$0x75316420]  ;;  %v2100_v33 = vunpack.c.l.b16 %v1934_v30 }
 0x2c1   :  { %1342 = vst [vmem:[#allocation1 + $0x20] ss:$2 sm:$0xff] %v1269_v56  ;;  %v1122_v48 = vmax.f32 %v1050_v29, %v1086_v3  ;;  %885 = vmatmul.bf16.gmra.mxu0 %v15474_v36  ;;  %v15515_v15 = vld [vmem:[#allocation2 + $0x34] sm:$0xf0]  ;;  %v1481_v49 = vpack.c.bf16 %v1340_v45, %v1340_v45  ;;  %v1053_v3 = vmax.f32 %v16062_v42, %v16125_v5  ;;  %v15477_v5 = vld [vmem:[%s19715_s0 + $0x168] sm:$0xff] }
 0x2c2   :  { %v2269_v31 = vld [vmem:[#allocation2 + $0x38] sm:$0xe]  ;;  %v13095_v58 = vor.u32 %v15515_v15, %v13094_v25  ;;  %v2270_v24 = vld [vmem:[#allocation2 + $0x3c] sm:$0x1] }
 0x2c3   :  { %v13199_v38 = vrot.slane %v2269_v31, 9  ;;  %v1816_v1 = vld [vmem:[#allocation2 + $0x38] sm:$0xf]  ;;  %v1162_v52 = vadd.f32 %v16238_v40, %v1122_v48  ;;  %v2352_v27 = vrot.slane %v2270_v24, 5  ;;  %v1817_v54 = vld [vmem:[#allocation2 + $0x3c] sm:$0x1] }
 0x2c4   :  { %v1936_v34 = vshrl.u32 %v1816_v1, 16  ;;  %v1939_v19 = vshll.u32 %v1816_v1, 16  ;;  %1744 = vmatmul.bf16.gmra.mxu1 %v13095_v58  ;;  %v1945_v35 = vshll.u32 %v1817_v54, 16  ;;  %1529 = vst [vmem:[#allocation2 + $0x40] sm:$0xf] %v1481_v49  ;;  %v15478_v49 = vld [vmem:[%s19715_s0 + $0x170] sm:$0xff] }
 0x2c5   :  { %v1198_v62 = vmax.f32 %v1162_v52, 0.0  ;;  %v2353_v17 = vsel %vm16301_vm4, %v13199_v38, %v2352_v27  ;;  %v15479_v27 = vld [vmem:[%s19715_s0 + $0x178] sm:$0xff] }
 0x2c6   :  { %v1938_v20 = vrot.slane %v1936_v34, 4  ;;  %v1941_v43 = vrot.slane %v1939_v19, 5  ;;  %v848_v53 = vpop.f32.mrf.mxu0  ;;  %v2426_v44 = vunpack.c.l.b16 %v2353_v17  ;;  %v1947_v61 = vrot.slane %v1945_v35, 5  ;;  %v1341_v29 = vld.sshfl [vmem:[#allocation1 + $0x10] sm:$0xff pattern:$0x75316420] }
 0x2c7   :  { %v1270_v10 = vrot.slane %v1198_v62, 4  ;;  %1343 = vst [vmem:[#allocation1 + $0x21] ss:$2 sm:$0xff] %v1198_v62  ;;  %v1087_v47 = vmax.f32 %v16181_v55, %v848_v53  ;;  %v15475_v55 = vld [vmem:[%s19715_s0 + $0x158] sm:$0xff]  ;;  %v1482_v24 = vpack.c.bf16 %v1341_v29, %v1341_v29  ;;  %v15480_v62 = vld [vmem:[%s19715_s0 + $0x180] sm:$0xff] }
 0x2c8   :  { %v1942_v16 = vor.u32 %v1941_v43, %v1938_v20  ;;  %v2438_v7 = vpack.c.b16 %v2426_v44, %v2425_v14  ;;  %v15481_v44 = vld [vmem:[%s19715_s0 + $0x188] sm:$0xff] }
 0x2c9   :  { %1344 = vst [vmem:[#allocation1 + $0x30] ss:$2 sm:$0xff] %v1270_v10  ;;  %v1123_v50 = vmax.f32 %v1051_v26, %v1087_v47 }
 0x2ca   :  { %v1943_v57 = vrot.slane %v1942_v16, 4  ;;  %2522 = vmatmul.bf16.gmra.mxu3 %v2438_v7  ;;  %1530 = vst [vmem:[#allocation2 + $0x44] sm:$0x3] %v1482_v24 }
 0x2cb   :  { %v1163_v39 = vadd.f32 %v16238_v40, %v1123_v50 }
 0x2cc   :  { %v1948_v2 = vsel %vm16317_vm5, %v1943_v57, %v1947_v61  ;;  %v15482_v61 = vld [vmem:[%s19715_s0 + $0x190] sm:$0xff] }
 0x2cd   :  { %v2101_v60 = vunpack.c.l.b16 %v1948_v2  ;;  %v1199_v18 = vmax.f32 %v1163_v39, 0.0 }
 0x2ce   :  { %v851_v37 = vpop.f32.mrf.mxu0  ;;  %v1345_v4 = vld.sshfl [vmem:[#allocation1 + $0x20] sm:$0xff pattern:$0x75316420] }
 0x2cf   :  { %v2113_v36 = vpack.c.b16 %v2101_v60, %v2100_v33  ;;  %v1271_v46 = vrot.slane %v1199_v18, 4  ;;  %1347 = vst [vmem:[#allocation1] ss:$2 sm:$0xff] %v1199_v18  ;;  %v1088_v28 = vmax.f32 %v16189_v0, %v851_v37  ;;  %v1483_v14 = vpack.c.bf16 %v1345_v4, %v1345_v4  ;;  %v15483_v18 = vld [vmem:[%s19715_s0 + $0x198] sm:$0xff] }
 0x2d0   :  { %v1346_v31 = vld.sshfl [vmem:[#allocation1 + $0x30] sm:$0xff pattern:$0x75316420] }
 0x2d1   :  { %2197 = vmatmul.bf16.gmra.mxu2 %v2113_v36  ;;  %1348 = vst [vmem:[#allocation1 + $0x1] ss:$2 sm:$0xff] %v1271_v46  ;;  %v1124_v6 = vmax.f32 %v1052_v63, %v1088_v28  ;;  %890 = vmatmul.bf16.gmra.mxu0 %v15475_v55  ;;  %v1484_v47 = vpack.c.bf16 %v1346_v31, %v1346_v31 }
 0x2d2   :  { %1531 = vst [vmem:[#allocation2 + $0x48] sm:$0xf] %v1483_v14  ;;  %v15489_v14 = vld [vmem:[%s19715_s0 + $0x1c8] sm:$0xff] }
 0x2d3   :  { %v1164_v9 = vadd.f32 %v16238_v40, %v1124_v6  ;;  %1532 = vst [vmem:[#allocation2 + $0x4c] sm:$0x3] %v1484_v47  ;;  %v15484_v6 = vld [vmem:[%s19715_s0 + $0x1a0] sm:$0xff] }
 0x2d5   :  { %v1200_v13 = vmax.f32 %v1164_v9, 0.0 }
 0x2d6   :  { %v853_v56 = vpop.f32.mrf.mxu0 }
 0x2d7   :  { %v1272_v25 = vrot.slane %v1200_v13, 4  ;;  %1349 = vst [vmem:[#allocation1 + $0x10] ss:$2 sm:$0xff] %v1200_v13  ;;  %v1089_v41 = vmax.f32 %v16206_v22, %v853_v56 }
 0x2d9   :  { %1352 = vst [vmem:[#allocation1 + $0x20] ss:$2 sm:$0xff] %v1272_v25  ;;  %v1125_v45 = vmax.f32 %v1053_v3, %v1089_v41  ;;  %v15485_v3 = vld [vmem:[%s19715_s0 + $0x1a8] sm:$0xff] }
 0x2db   :  { %v1165_v0 = vadd.f32 %v16238_v40, %v1125_v45 }
 0x2dd   :  { %v1201_v8 = vmax.f32 %v1165_v0, 0.0  ;;  %v1350_v0 = vld.sshfl [vmem:[#allocation1] sm:$0xff pattern:$0x75316420] }
 0x2de   :  { %v16413_v48 = vpop.f32.mrf.mxu0 }
 0x2df   :  { %v1273_v15 = vrot.slane %v1201_v8, 4  ;;  %1353 = vst [vmem:[#allocation1 + $0x21] ss:$2 sm:$0xff] %v1201_v8 }
 0x2e1   :  { %1354 = vst [vmem:[#allocation1 + $0x30] ss:$2 sm:$0xff] %v1273_v15  ;;  %895 = vmatmul.bf16.gmra.mxu0 %v15476_v21  ;;  %v1485_v21 = vpack.c.bf16 %v1350_v0, %v1350_v0  ;;  %v15486_v15 = vld [vmem:[%s19715_s0 + $0x1b0] sm:$0xff] }
 0x2e3   :  { %1533 = vst [vmem:[#allocation2 + $0x50] sm:$0xf] %v1485_v21  ;;  %v15493_v21 = vld [vmem:[%s19715_s0 + $0x1e8] sm:$0xff] }
 0x2e6   :  { %v16415_v42 = vpop.f32.mrf.mxu0  ;;  %v1355_v47 = vld.sshfl [vmem:[#allocation1 + $0x20] sm:$0xff pattern:$0x75316420] }
 0x2ee   :  { %v16420_v22 = vpop.f32.mrf.mxu0 }
 0x2f1   :  { %900 = vmatmul.bf16.gmra.mxu0 %v15477_v5  ;;  %v1351_v5 = vld.sshfl [vmem:[#allocation1 + $0x10] sm:$0xff pattern:$0x75316420] }
 0x2f6   :  { %v16422_v40 = vpop.f32.mrf.mxu0 }
 0x2f9   :  { %v1730_v38 = vpop.f32.mrf.mxu1 }
 0x2fe   :  { %v16427_v58 = vpop.f32.mrf.mxu0 }
 0x301   :  { %905 = vmatmul.bf16.gmra.mxu0 %v15478_v49  ;;  %v16440_v51 = vpop.f32.mrf.mxu1  ;;  %v1486_v49 = vpack.c.bf16 %v1351_v5, %v1351_v5 }
 0x302   :  { %19738 = vst [vmem:[#allocation9_spill] sm:$0xff] %v16440_v51 }
 0x303   :  { %1534 = vst [vmem:[#allocation2 + $0x54] sm:$0x3] %v1486_v49  ;;  %v15494_v49 = vld [vmem:[%s19715_s0 + $0x1f0] sm:$0xff] }
 0x305   :  { %v2508_v52 = vpop.f32.mrf.mxu3 }
 0x306   :  { %v16429_v32 = vpop.f32.mrf.mxu0 }
 0x30c   :  { %v2183_v1 = vpop.f32.mrf.mxu2 }
 0x30d   :  { %v2223_v59 = vadd.f32 %v2183_v1, %v1730_v38  ;;  %v16480_v28 = vpop.f32.mrf.mxu3  ;;  %v15487_v1 = vld [vmem:[%s19715_s0 + $0x1b8] sm:$0xff] }
 0x30e   :  { %v16434_v54 = vpop.f32.mrf.mxu0  ;;  %19744 = vst [vmem:[#allocation15_spill] sm:$0xff] %v16480_v28 }
 0x30f   :  { %v16436_v34 = vadd.f32 %v2508_v52, %v2223_v59 }
 0x311   :  { %19737 = vst [vmem:[#allocation8_spill] sm:$0xff] %v16436_v34  ;;  %910 = vmatmul.bf16.gmra.mxu0 %v15479_v27  ;;  %v1735_v20 = vpop.f32.mrf.mxu1 }
 0x314   :  { %v16442_v35 = vpop.f32.mrf.mxu2 }
 0x315   :  { %19739 = vst [vmem:[#allocation10_spill] sm:$0xff] %v16442_v35 }
 0x316   :  { %v16438_v19 = vpop.f32.mrf.mxu0 }
 0x319   :  { %v16456_v23 = vpop.f32.mrf.mxu1 }
 0x31a   :  { %19740 = vst [vmem:[#allocation11_spill] sm:$0xff] %v16456_v23 }
 0x31d   :  { %v2513_v13 = vpop.f32.mrf.mxu3 }
 0x31e   :  { %v16447_v17 = vpop.f32.mrf.mxu0 }
 0x321   :  { %915 = vmatmul.bf16.gmra.mxu0 %v15480_v62 }
 0x324   :  { %v2188_v43 = vpop.f32.mrf.mxu2 }
 0x325   :  { %v2225_v26 = vadd.f32 %v2188_v43, %v1735_v20  ;;  %v16496_v41 = vpop.f32.mrf.mxu3  ;;  %v15488_v20 = vld [vmem:[%s19715_s0 + $0x1c0] sm:$0xff] }
 0x326   :  { %v16449_v53 = vpop.f32.mrf.mxu0  ;;  %19748 = vst [vmem:[#allocation19_spill] sm:$0xff] %v16496_v41 }
 0x327   :  { %v16487_v29 = vadd.f32 %v2513_v13, %v2225_v26 }
 0x329   :  { %v1740_v50 = vpop.f32.mrf.mxu1  ;;  %19746 = vst [vmem:[#allocation17_spill] sm:$0xff] %v16487_v29  ;;  %v16627_v29 = vld [vmem:[%s19717_s2] ss:$0 sm:$0xff] }
 0x32c   :  { %v16458_v16 = vpop.f32.mrf.mxu2 }
 0x32d   :  { %19741 = vst [vmem:[#allocation12_spill] sm:$0xff] %v16458_v16 }
 0x32e   :  { %v16454_v10 = vpop.f32.mrf.mxu0 }
 0x331   :  { %920 = vmatmul.bf16.gmra.mxu0 %v15481_v44  ;;  %v16469_v33 = vpop.f32.mrf.mxu1 }
 0x332   :  { %19742 = vst [vmem:[#allocation13_spill] sm:$0xff] %v16469_v33 }
 0x335   :  { %v2518_v45 = vpop.f32.mrf.mxu3 }
 0x336   :  { %v16460_v7 = vpop.f32.mrf.mxu0 }
 0x33c   :  { %v2193_v30 = vpop.f32.mrf.mxu2 }
 0x33d   :  { %v2227_v57 = vadd.f32 %v2193_v30, %v1740_v50  ;;  %v16509_v38 = vpop.f32.mrf.mxu3  ;;  %v1487_v50 = vpack.c.bf16 %v1355_v47, %v1355_v47 }
 0x33e   :  { %v16465_v39 = vpop.f32.mrf.mxu0  ;;  %19750 = vst [vmem:[#allocation21_spill] sm:$0xff] %v16509_v38 }
 0x33f   :  { %v16500_v8 = vadd.f32 %v2518_v45, %v2227_v57  ;;  %1535 = vst [vmem:[#allocation2 + $0x58] sm:$0xf] %v1487_v50  ;;  %v15490_v57 = vld [vmem:[%s19715_s0 + $0x1d0] sm:$0xff]  ;;  %v15496_v50 = vld [vmem:[%s19715_s0 + $0x200] sm:$0xff] }
 0x341   :  { %925 = vmatmul.bf16.gmra.mxu0 %v15482_v61  ;;  %v1745_v37 = vpop.f32.mrf.mxu1  ;;  %19749 = vst [vmem:[#allocation20_spill] sm:$0xff] %v16500_v8 }
 0x344   :  { %v16471_v60 = vpop.f32.mrf.mxu2 }
 0x345   :  { %19743 = vst [vmem:[#allocation14_spill] sm:$0xff] %v16471_v60 }
 0x346   :  { %v16467_v2 = vpop.f32.mrf.mxu0 }
 0x34d   :  { %v2523_v52 = vpop.f32.mrf.mxu3 }
 0x34e   :  { %v16476_v55 = vpop.f32.mrf.mxu0 }
 0x351   :  { %930 = vmatmul.bf16.gmra.mxu0 %v15483_v18 }
 0x354   :  { %v2198_v36 = vpop.f32.mrf.mxu2 }
 0x355   :  { %v2229_v63 = vadd.f32 %v2198_v36, %v1745_v37  ;;  %v15491_v37 = vld [vmem:[%s19715_s0 + $0x1d8] sm:$0xff] }
 0x356   :  { %v16478_v46 = vpop.f32.mrf.mxu0 }
 0x357   :  { %v16516_v27 = vadd.f32 %v2523_v52, %v2229_v63 }
 0x359   :  { %19751 = vst [vmem:[#allocation22_spill] sm:$0xff] %v16516_v27 }
 0x35e   :  { %v16485_v9 = vpop.f32.mrf.mxu0 }
 0x35f   :  { %19745 = vst [vmem:[#allocation16_spill] sm:$0xff] %v16485_v9 }
 0x361   :  { %935 = vmatmul.bf16.gmra.mxu0 %v15484_v6  ;;  %v1356_v6 = vld.sshfl [vmem:[#allocation1 + $0x30] sm:$0xff pattern:$0x75316420] }
 0x362   :  { %v1488_v13 = vpack.c.bf16 %v1356_v6, %v1356_v6  ;;  %v15497_v6 = vld [vmem:[%s19715_s0 + $0x208] sm:$0xff] }
 0x364   :  { %1536 = vst [vmem:[#allocation2 + $0x5c] sm:$0x3] %v1488_v13 }
 0x366   :  { %v16489_v56 = vpop.f32.mrf.mxu0 }
 0x367   :  { %19747 = vst [vmem:[#allocation18_spill] sm:$0xff] %v16489_v56 }
 0x36e   :  { %v16494_v25 = vpop.f32.mrf.mxu0 }
 0x36f   :  { %v1054_v35 = vmax.f32 %v16413_v48, %v16494_v25 }
 0x371   :  { %940 = vmatmul.bf16.gmra.mxu0 %v15485_v3  ;;  %v15492_v3 = vld [vmem:[%s19715_s0 + $0x1e0] sm:$0xff] }
 0x376   :  { %v16498_v4 = vpop.f32.mrf.mxu0 }
 0x37e   :  { %v16505_v31 = vpop.f32.mrf.mxu0 }
 0x381   :  { %945 = vmatmul.bf16.gmra.mxu0 %v15486_v15 }
 0x386   :  { %v16507_v24 = vpop.f32.mrf.mxu0 }
 0x38e   :  { %v16514_v59 = vpop.f32.mrf.mxu0 }
 0x391   :  { %950 = vmatmul.bf16.gmra.mxu0 %v15487_v1 }
 0x396   :  { %v16518_v62 = vpop.f32.mrf.mxu0 }
 0x39e   :  { %v16523_v43 = vpop.f32.mrf.mxu0 }
 0x3a1   :  { %955 = vmatmul.bf16.gmra.mxu0 %v15488_v20  ;;  %v15495_v20 = vld [vmem:[%s19715_s0 + $0x1f8] sm:$0xff] }
 0x3a6   :  { %v16525_v26 = vpop.f32.mrf.mxu0 }
 0x3ae   :  { %v16530_v44 = vpop.f32.mrf.mxu0 }
 0x3b1   :  { %960 = vmatmul.bf16.gmra.mxu0 %v15489_v14 }
 0x3b6   :  { %v16532_v30 = vpop.f32.mrf.mxu0 }
 0x3be   :  { %v16537_v61 = vpop.f32.mrf.mxu0 }
 0x3c1   :  { %965 = vmatmul.bf16.gmra.mxu0 %v15490_v57 }
 0x3c6   :  { %v16539_v18 = vpop.f32.mrf.mxu0 }
 0x3ce   :  { %v16544_v36 = vpop.f32.mrf.mxu0 }
 0x3d1   :  { %970 = vmatmul.bf16.gmra.mxu0 %v15491_v37 }
 0x3d6   :  { %v16546_v63 = vpop.f32.mrf.mxu0 }
 0x3de   :  { %v16551_v45 = vpop.f32.mrf.mxu0 }
 0x3e1   :  { %975 = vmatmul.bf16.gmra.mxu0 %v15492_v3 }
 0x3e6   :  { %v16553_v0 = vpop.f32.mrf.mxu0 }
 0x3ee   :  { %v16558_v15 = vpop.f32.mrf.mxu0 }
 0x3ef   :  { %19752 = vst [vmem:[#allocation23_spill] sm:$0xff] %v16558_v15 }
 0x3f1   :  { %980 = vmatmul.bf16.gmra.mxu0 %v15493_v21  ;;  %v15498_v21 = vld [vmem:[%s19715_s0 + $0x210] sm:$0xff] }
 0x3f6   :  { %v16560_v5 = vpop.f32.mrf.mxu0 }
 0x3f7   :  { %19753 = vst [vmem:[#allocation24_spill] sm:$0xff] %v16560_v5  ;;  %v1055_v5 = vmax.f32 %v16415_v42, %v16498_v4  ;;  %v15551_v4 = vld [vmem:[%s19718_s3 + $0xf8] sm:$0xff] }
 0x3f8   :  { %3016 = vmatpush.bf16.msrb.mxu1 %v15551_v4 }
 0x3fe   :  { %v946_v1 = vpop.f32.mrf.mxu0 }
 0x401   :  { %985 = vmatmul.bf16.gmra.mxu0 %v15494_v49 }
 0x406   :  { %v948_v52 = vpop.f32.mrf.mxu0 }
 0x40e   :  { %v951_v14 = vpop.f32.mrf.mxu0 }
 0x411   :  { %990 = vmatmul.bf16.gmra.mxu0 %v15495_v20 }
 0x416   :  { %v16568_v47 = vpop.f32.mrf.mxu0 }
 0x41e   :  { %v16573_v57 = vpop.f32.mrf.mxu0 }
 0x421   :  { %995 = vmatmul.bf16.gmra.mxu0 %v15496_v50  ;;  %v15499_v50 = vld [vmem:[%s19715_s0 + $0x218] sm:$0xff] }
 0x426   :  { %v16575_v37 = vpop.f32.mrf.mxu0 }
 0x42e   :  { %v16580_v13 = vpop.f32.mrf.mxu0 }
 0x431   :  { %1000 = vmatmul.bf16.gmra.mxu0 %v15497_v6  ;;  %v15500_v6 = vld [vmem:[%s19715_s0 + $0x220] sm:$0xff] }
 0x436   :  { %v16582_v3 = vpop.f32.mrf.mxu0 }
 0x43e   :  { %v16587_v49 = vpop.f32.mrf.mxu0 }
 0x441   :  { %1005 = vmatmul.bf16.gmra.mxu0 %v15498_v21  ;;  %v15501_v21 = vld [vmem:[%s19715_s0 + $0x228] sm:$0xff] }
 0x446   :  { %v16589_v20 = vpop.f32.mrf.mxu0 }
 0x44e   :  { %v16594_v38 = vpop.f32.mrf.mxu0 }
 0x451   :  { %1010 = vmatmul.bf16.gmra.mxu0 %v15499_v50  ;;  %v15502_v50 = vld [vmem:[%s19715_s0 + $0x230] sm:$0xff] }
 0x456   :  { %v16596_v60 = vpop.f32.mrf.mxu0 }
 0x45e   :  { %v16601_v33 = vpop.f32.mrf.mxu0 }
 0x461   :  { %1015 = vmatmul.bf16.gmra.mxu0 %v15500_v6  ;;  %v15503_v6 = vld [vmem:[%s19715_s0 + $0x238] sm:$0xff] }
 0x466   :  { %v16603_v27 = vpop.f32.mrf.mxu0 }
 0x46e   :  { %v16608_v41 = vpop.f32.mrf.mxu0 }
 0x471   :  { %1020 = vmatmul.bf16.gmra.mxu0 %v15501_v21 }
 0x476   :  { %v16610_v16 = vpop.f32.mrf.mxu0 }
 0x47e   :  { %v16615_v23 = vpop.f32.mrf.mxu0 }
 0x481   :  { %1025 = vmatmul.bf16.gmra.mxu0 %v15502_v50 }
 0x486   :  { %v16617_v8 = vpop.f32.mrf.mxu0 }
 0x487   :  { %19754 = vst [vmem:[#allocation25_spill] sm:$0xff] %v16617_v8 }
 0x48e   :  { %v991_v28 = vpop.f32.mrf.mxu0 }
 0x48f   :  { %v1090_v21 = vmax.f32 %v946_v1, %v991_v28  ;;  %v1056_v1 = vmax.f32 %v16420_v22, %v16505_v31  ;;  %v1057_v22 = vmax.f32 %v16422_v40, %v16507_v24 }
 0x491   :  { %v1126_v51 = vmax.f32 %v1054_v35, %v1090_v21  ;;  %1030 = vmatmul.bf16.gmra.mxu0 %v15503_v6 }
 0x493   :  { %v1166_v50 = vadd.f32 %v16627_v29, %v1126_v51 }
 0x495   :  { %v1202_v34 = vmax.f32 %v1166_v50, 0.0 }
 0x496   :  { %v993_v56 = vpop.f32.mrf.mxu0 }
 0x497   :  { %v1274_v8 = vrot.slane %v1202_v34, 4  ;;  %1357 = vst [vmem:[#allocation1] ss:$2 sm:$0xff] %v1202_v34  ;;  %v1091_v9 = vmax.f32 %v948_v52, %v993_v56 }
 0x499   :  { %1358 = vst [vmem:[#allocation1 + $0x1] ss:$2 sm:$0xff] %v1274_v8  ;;  %v1127_v48 = vmax.f32 %v1055_v5, %v1091_v9 }
 0x49b   :  { %v1167_v35 = vadd.f32 %v16627_v29, %v1127_v48 }
 0x49d   :  { %v1203_v28 = vmax.f32 %v1167_v35, 0.0 }
 0x49e   :  { %v996_v25 = vpop.f32.mrf.mxu0 }
 0x49f   :  { %v1275_v6 = vrot.slane %v1203_v28, 4  ;;  %1359 = vst [vmem:[#allocation1 + $0x10] ss:$2 sm:$0xff] %v1203_v28  ;;  %v1092_v51 = vmax.f32 %v951_v14, %v996_v25  ;;  %v1058_v28 = vmax.f32 %v16427_v58, %v16514_v59 }
 0x4a0   :  { %v1360_v21 = vld.sshfl [vmem:[#allocation1] sm:$0xff pattern:$0x75316420] }
 0x4a1   :  { %1362 = vst [vmem:[#allocation1 + $0x20] ss:$2 sm:$0xff] %v1275_v6  ;;  %v1128_v50 = vmax.f32 %v1056_v1, %v1092_v51  ;;  %v1489_v15 = vpack.c.bf16 %v1360_v21, %v1360_v21 }
 0x4a3   :  { %v1168_v42 = vadd.f32 %v16627_v29, %v1128_v50  ;;  %1537 = vst [vmem:[#allocation2 + $0x60] sm:$0xf] %v1489_v15 }
 0x4a5   :  { %v1204_v34 = vmax.f32 %v1168_v42, 0.0  ;;  %v15550_v42 = vld [vmem:[%s19718_s3 + $0xf0] sm:$0xff] }
 0x4a6   :  { %v998_v56 = vpop.f32.mrf.mxu0  ;;  %v1361_v9 = vld.sshfl [vmem:[#allocation1 + $0x10] sm:$0xff pattern:$0x75316420]  ;;  %3017 = vmatpush.bf16.msrb.mxu1 %v15550_v42 }
 0x4a7   :  { %v1276_v8 = vrot.slane %v1204_v34, 4  ;;  %1363 = vst [vmem:[#allocation1 + $0x21] ss:$2 sm:$0xff] %v1204_v34  ;;  %v1093_v31 = vmax.f32 %v16568_v47, %v998_v56  ;;  %v1490_v5 = vpack.c.bf16 %v1361_v9, %v1361_v9 }
 0x4a9   :  { %1364 = vst [vmem:[#allocation1 + $0x30] ss:$2 sm:$0xff] %v1276_v8  ;;  %v1129_v52 = vmax.f32 %v1057_v22, %v1093_v31  ;;  %v1059_v31 = vmax.f32 %v16429_v32, %v16518_v62 }
 0x4aa   :  { %1538 = vst [vmem:[#allocation2 + $0x64] sm:$0x3] %v1490_v5  ;;  %v1818_v1 = vld [vmem:[#allocation2 + $0x60] sm:$0xf] }
 0x4ab   :  { %v1169_v15 = vadd.f32 %v16627_v29, %v1129_v52  ;;  %v1950_v21 = vshrl.u32 %v1818_v1, 16  ;;  %v1953_v50 = vshll.u32 %v1818_v1, 16 }
 0x4ad   :  { %v1205_v14 = vmax.f32 %v1169_v15, 0.0  ;;  %v1952_v22 = vrot.slane %v1950_v21, 4  ;;  %v1955_v8 = vrot.slane %v1953_v50, 5  ;;  %v13098_v15 = vld [vmem:[#allocation2 + $0x60] sm:$0xf] }
 0x4ae   :  { %v1365_v48 = vld.sshfl [vmem:[#allocation1 + $0x20] sm:$0xff pattern:$0x75316420]  ;;  %v1001_v35 = vpop.f32.mrf.mxu0 }
 0x4af   :  { %v1277_v25 = vrot.slane %v1205_v14, 4  ;;  %1367 = vst [vmem:[#allocation1] ss:$2 sm:$0xff] %v1205_v14  ;;  %v1094_v40 = vmax.f32 %v16573_v57, %v1001_v35  ;;  %v1491_v24 = vpack.c.bf16 %v1365_v48, %v1365_v48  ;;  %v2271_v57 = vld [vmem:[#allocation2 + $0x60] sm:$0xe]  ;;  %v1956_v62 = vor.u32 %v1955_v8, %v1952_v22 }
 0x4b0   :  { %v1366_v47 = vld.sshfl [vmem:[#allocation1 + $0x30] sm:$0xff pattern:$0x75316420]  ;;  %v13200_v48 = vrot.slane %v2271_v57, 9 }
 0x4b1   :  { %1368 = vst [vmem:[#allocation1 + $0x1] ss:$2 sm:$0xff] %v1277_v25  ;;  %v1130_v6 = vmax.f32 %v1058_v28, %v1094_v40  ;;  %v1492_v51 = vpack.c.bf16 %v1366_v47, %v1366_v47  ;;  %v2272_v58 = vld [vmem:[#allocation2 + $0x64] sm:$0x1] }
 0x4b2   :  { %1539 = vst [vmem:[#allocation2 + $0x68] sm:$0xf] %v1491_v24  ;;  %v1819_v56 = vld [vmem:[#allocation2 + $0x64] sm:$0x1]  ;;  %v2356_v4 = vrot.slane %v2272_v58, 5 }
 0x4b3   :  { %v1170_v34 = vadd.f32 %v16627_v29, %v1130_v6  ;;  %1540 = vst [vmem:[#allocation2 + $0x6c] sm:$0x3] %v1492_v51  ;;  %v1959_v35 = vshll.u32 %v1819_v56, 16 }
 0x4b4   :  { %v2357_v6 = vsel %vm16301_vm4, %v13200_v48, %v2356_v4  ;;  %v1060_v4 = vmax.f32 %v16434_v54, %v16523_v43 }
 0x4b5   :  { %v1206_v59 = vmax.f32 %v1170_v34, 0.0  ;;  %v1961_v58 = vrot.slane %v1959_v35, 5  ;;  %v2427_v8 = vunpack.c.l.b16 %v2357_v6 }
 0x4b6   :  { %v1003_v9 = vpop.f32.mrf.mxu0 }
 0x4b7   :  { %v1278_v5 = vrot.slane %v1206_v59, 4  ;;  %1369 = vst [vmem:[#allocation1 + $0x10] ss:$2 sm:$0xff] %v1206_v59  ;;  %v1095_v52 = vmax.f32 %v16575_v37, %v1003_v9 }
 0x4b8   :  { %v1370_v14 = vld.sshfl [vmem:[#allocation1] sm:$0xff pattern:$0x75316420] }
 0x4b9   :  { %1372 = vst [vmem:[#allocation1 + $0x20] ss:$2 sm:$0xff] %v1278_v5  ;;  %v1131_v28 = vmax.f32 %v1059_v31, %v1095_v52  ;;  %v15516_v25 = vld [vmem:[#allocation2 + $0x64] sm:$0xf0]  ;;  %v1493_v24 = vpack.c.bf16 %v1370_v14, %v1370_v14  ;;  %v1957_v52 = vrot.slane %v1956_v62, 4 }
 0x4ba   :  { %v2273_v40 = vld [vmem:[#allocation2 + $0x68] sm:$0xe]  ;;  %v13099_v1 = vor.u32 %v15516_v25, %v13098_v15  ;;  %v2274_v47 = vld [vmem:[#allocation2 + $0x6c] sm:$0x1] }
 0x4bb   :  { %v13201_v51 = vrot.slane %v2273_v40, 9  ;;  %v1820_v32 = vld [vmem:[#allocation2 + $0x68] sm:$0xf]  ;;  %v1171_v21 = vadd.f32 %v16627_v29, %v1131_v28  ;;  %v2360_v37 = vrot.slane %v2274_v47, 5  ;;  %v1821_v50 = vld [vmem:[#allocation2 + $0x6c] sm:$0x1]  ;;  %v1962_v54 = vsel %vm16317_vm5, %v1957_v52, %v1961_v58 }
 0x4bc   :  { %v1964_v42 = vshrl.u32 %v1820_v32, 16  ;;  %v1967_v34 = vshll.u32 %v1820_v32, 16  ;;  %1749 = vmatmul.bf16.gmra.mxu1 %v13099_v1  ;;  %v1973_v59 = vshll.u32 %v1821_v50, 16  ;;  %1541 = vst [vmem:[#allocation2 + $0x70] sm:$0xf] %v1493_v24  ;;  %v15549_v28 = vld [vmem:[%s19718_s3 + $0xe8] sm:$0xff]  ;;  %v2102_v6 = vunpack.c.l.b16 %v1962_v54 }
 0x4bd   :  { %v1207_v57 = vmax.f32 %v1171_v21, 0.0  ;;  %v2361_v56 = vsel %vm16301_vm4, %v13201_v51, %v2360_v37  ;;  %3018 = vmatpush.bf16.msrb.mxu1 %v15549_v28  ;;  %v1061_v50 = vmax.f32 %v16438_v19, %v16525_v26 }
 0x4be   :  { %v1966_v9 = vrot.slane %v1964_v42, 4  ;;  %v1969_v31 = vrot.slane %v1967_v34, 5  ;;  %v1006_v22 = vpop.f32.mrf.mxu0  ;;  %v2428_v5 = vunpack.c.l.b16 %v2361_v56  ;;  %v1371_v15 = vld.sshfl [vmem:[#allocation1 + $0x10] sm:$0xff pattern:$0x75316420]  ;;  %v1975_v1 = vrot.slane %v1973_v59, 5 }
 0x4bf   :  { %v1279_v14 = vrot.slane %v1207_v57, 4  ;;  %1373 = vst [vmem:[#allocation1 + $0x21] ss:$2 sm:$0xff] %v1207_v57  ;;  %v1096_v48 = vmax.f32 %v16580_v13, %v1006_v22  ;;  %v1494_v25 = vpack.c.bf16 %v1371_v15, %v1371_v15 }
 0x4c0   :  { %v1970_v35 = vor.u32 %v1969_v31, %v1966_v9  ;;  %v2439_v40 = vpack.c.b16 %v2428_v5, %v2427_v8 }
 0x4c1   :  { %1374 = vst [vmem:[#allocation1 + $0x30] ss:$2 sm:$0xff] %v1279_v14  ;;  %v1132_v24 = vmax.f32 %v1060_v4, %v1096_v48  ;;  %v1062_v48 = vmax.f32 %v16447_v17, %v16530_v44 }
 0x4c2   :  { %v1971_v43 = vrot.slane %v1970_v35, 4  ;;  %2527 = vmatmul.bf16.gmra.mxu3 %v2439_v40  ;;  %1542 = vst [vmem:[#allocation2 + $0x74] sm:$0x3] %v1494_v25  ;;  %v15548_v40 = vld [vmem:[%s19718_s3 + $0xe0] sm:$0xff] }
 0x4c3   :  { %v1172_v47 = vadd.f32 %v16627_v29, %v1132_v24  ;;  %v1822_v59 = vld [vmem:[#allocation2 + $0x70] sm:$0xf]  ;;  %3019 = vmatpush.bf16.msrb.mxu1 %v15548_v40 }
 0x4c4   :  { %v1976_v13 = vsel %vm16317_vm5, %v1971_v43, %v1975_v1  ;;  %v1978_v31 = vshrl.u32 %v1822_v59, 16  ;;  %v1981_v4 = vshll.u32 %v1822_v59, 16  ;;  %v2275_v19 = vld [vmem:[#allocation2 + $0x70] sm:$0xe] }
 0x4c5   :  { %v2103_v51 = vunpack.c.l.b16 %v1976_v13  ;;  %v1208_v32 = vmax.f32 %v1172_v47, 0.0  ;;  %v13102_v25 = vld [vmem:[#allocation2 + $0x70] sm:$0xf]  ;;  %v13202_v24 = vrot.slane %v2275_v19, 9 }
 0x4c6   :  { %v1375_v62 = vld.sshfl [vmem:[#allocation1 + $0x20] sm:$0xff pattern:$0x75316420]  ;;  %v1008_v21 = vpop.f32.mrf.mxu0  ;;  %v1983_v14 = vrot.slane %v1981_v4, 5  ;;  %v1063_v4 = vmax.f32 %v16449_v53, %v16532_v30 }
 0x4c7   :  { %v2114_v37 = vpack.c.b16 %v2103_v51, %v2102_v6  ;;  %v1280_v42 = vrot.slane %v1208_v32, 4  ;;  %1377 = vst [vmem:[#allocation1] ss:$2 sm:$0xff] %v1208_v32  ;;  %v1097_v34 = vmax.f32 %v16582_v3, %v1008_v21  ;;  %v1495_v58 = vpack.c.bf16 %v1375_v62, %v1375_v62 }
 0x4c8   :  { %v1376_v57 = vld.sshfl [vmem:[#allocation1 + $0x30] sm:$0xff pattern:$0x75316420]  ;;  %v1980_v3 = vrot.slane %v1978_v31, 4 }
 0x4c9   :  { %2202 = vmatmul.bf16.gmra.mxu2 %v2114_v37  ;;  %1378 = vst [vmem:[#allocation1 + $0x1] ss:$2 sm:$0xff] %v1280_v42  ;;  %v1133_v56 = vmax.f32 %v1061_v50, %v1097_v34  ;;  %v1496_v9 = vpack.c.bf16 %v1376_v57, %v1376_v57  ;;  %v2276_v8 = vld [vmem:[#allocation2 + $0x74] sm:$0x1] }
 0x4ca   :  { %1543 = vst [vmem:[#allocation2 + $0x78] sm:$0xf] %v1495_v58  ;;  %v1823_v26 = vld [vmem:[#allocation2 + $0x74] sm:$0x1]  ;;  %v2364_v15 = vrot.slane %v2276_v8, 5  ;;  %v1984_v62 = vor.u32 %v1983_v14, %v1980_v3 }
 0x4cb   :  { %v1173_v22 = vadd.f32 %v16627_v29, %v1133_v56  ;;  %1544 = vst [vmem:[#allocation2 + $0x7c] sm:$0x3] %v1496_v9  ;;  %v1987_v54 = vshll.u32 %v1823_v26, 16 }
 0x4cc   :  { %v2365_v44 = vsel %vm16301_vm4, %v13202_v24, %v2364_v15  ;;  %v1985_v19 = vrot.slane %v1984_v62, 4  ;;  %v15559_v62 = vld [vmem:[%s19718_s3 + $0x138] sm:$0xff] }
 0x4cd   :  { %v1209_v5 = vmax.f32 %v1173_v22, 0.0  ;;  %v1989_v58 = vrot.slane %v1987_v54, 5  ;;  %v2429_v8 = vunpack.c.l.b16 %v2365_v44  ;;  %3341 = vmatpush.bf16.msrb.mxu2 %v15559_v62  ;;  %v15571_v62 = vld [vmem:[%s19718_s3 + $0x158] sm:$0xff] }
 0x4ce   :  { %v1011_v52 = vpop.f32.mrf.mxu0 }
 0x4cf   :  { %v1281_v35 = vrot.slane %v1209_v5, 4  ;;  %v1098_v28 = vmax.f32 %v16587_v49, %v1011_v52  ;;  %1379 = vst [vmem:[#allocation1 + $0x10] ss:$2 sm:$0xff] %v1209_v5 }
 0x4d0   :  { %v1380_v43 = vld.sshfl [vmem:[#allocation1] sm:$0xff pattern:$0x75316420] }
 0x4d1   :  { %1382 = vst [vmem:[#allocation1 + $0x20] ss:$2 sm:$0xff] %v1281_v35  ;;  %v1134_v1 = vmax.f32 %v1062_v48, %v1098_v28  ;;  %v15517_v47 = vld [vmem:[#allocation2 + $0x74] sm:$0xf0]  ;;  %v1497_v6 = vpack.c.bf16 %v1380_v43, %v1380_v43  ;;  %v1990_v28 = vsel %vm16317_vm5, %v1985_v19, %v1989_v58 }
 0x4d2   :  { %v2277_v13 = vld [vmem:[#allocation2 + $0x78] sm:$0xe]  ;;  %v13103_v51 = vor.u32 %v15517_v47, %v13102_v25  ;;  %v2278_v17 = vld [vmem:[#allocation2 + $0x7c] sm:$0x1]  ;;  %v2104_v24 = vunpack.c.l.b16 %v1990_v28 }
 0x4d3   :  { %v13203_v49 = vrot.slane %v2277_v13, 9  ;;  %v1824_v32 = vld [vmem:[#allocation2 + $0x78] sm:$0xf]  ;;  %v1174_v21 = vadd.f32 %v16627_v29, %v1134_v1  ;;  %v2368_v37 = vrot.slane %v2278_v17, 5  ;;  %v1825_v50 = vld [vmem:[#allocation2 + $0x7c] sm:$0x1] }
 0x4d4   :  { %v1992_v42 = vshrl.u32 %v1824_v32, 16  ;;  %v1995_v34 = vshll.u32 %v1824_v32, 16  ;;  %1754 = vmatmul.bf16.gmra.mxu1 %v13103_v51  ;;  %v2001_v59 = vshll.u32 %v1825_v50, 16  ;;  %1545 = vst [vmem:[#allocation2 + $0x80] sm:$0xf] %v1497_v6  ;;  %v1064_v51 = vmax.f32 %v16454_v10, %v16537_v61  ;;  %v15547_v32 = vld [vmem:[%s19718_s3 + $0xd8] sm:$0xff] }
 0x4d5   :  { %v1210_v57 = vmax.f32 %v1174_v21, 0.0  ;;  %v2369_v56 = vsel %vm16301_vm4, %v13203_v49, %v2368_v37  ;;  %v15574_v21 = vld [vmem:[%s19718_s3 + $0x170] sm:$0xff]  ;;  %3020 = vmatpush.bf16.msrb.mxu1 %v15547_v32  ;;  %v15556_v32 = vld [vmem:[%s19718_s3 + $0x120] sm:$0xff] }
 0x4d6   :  { %v1994_v9 = vrot.slane %v1992_v42, 4  ;;  %v1997_v31 = vrot.slane %v1995_v34, 5  ;;  %v1013_v22 = vpop.f32.mrf.mxu0  ;;  %v2430_v5 = vunpack.c.l.b16 %v2369_v56  ;;  %v1381_v26 = vld.sshfl [vmem:[#allocation1 + $0x10] sm:$0xff pattern:$0x75316420]  ;;  %v2003_v40 = vrot.slane %v2001_v59, 5 }
 0x4d7   :  { %v1282_v52 = vrot.slane %v1210_v57, 4  ;;  %1383 = vst [vmem:[#allocation1 + $0x21] ss:$2 sm:$0xff] %v1210_v57  ;;  %v1099_v15 = vmax.f32 %v16589_v20, %v1013_v22  ;;  %v1498_v14 = vpack.c.bf16 %v1381_v26, %v1381_v26  ;;  %v15575_v20 = vld [vmem:[%s19718_s3 + $0x178] sm:$0xff]  ;;  %v15558_v57 = vld [vmem:[%s19718_s3 + $0x130] sm:$0xff]  ;;  %v15573_v56 = vld [vmem:[%s19718_s3 + $0x168] sm:$0xff] }
 0x4d8   :  { %v1998_v3 = vor.u32 %v1997_v31, %v1994_v9  ;;  %v2440_v48 = vpack.c.b16 %v2430_v5, %v2429_v8  ;;  %3568 = vmatpush.bf16.msrb.mxu3 %v15575_v20  ;;  %v1065_v31 = vmax.f32 %v16460_v7, %v16539_v18  ;;  %3342 = vmatpush.bf16.msrb.mxu2 %v15558_v57  ;;  %v15557_v18 = vld [vmem:[%s19718_s3 + $0x128] sm:$0xff]  ;;  %v15546_v20 = vld [vmem:[%s19718_s3 + $0xd0] sm:$0xff] }
 0x4d9   :  { %v1135_v35 = vmax.f32 %v1063_v4, %v1099_v15  ;;  %1384 = vst [vmem:[#allocation1 + $0x30] ss:$2 sm:$0xff] %v1282_v52  ;;  %3021 = vmatpush.bf16.msrb.mxu1 %v15546_v20 }
 0x4da   :  { %v1999_v25 = vrot.slane %v1998_v3, 4  ;;  %2532 = vmatmul.bf16.gmra.mxu3 %v2440_v48  ;;  %1546 = vst [vmem:[#allocation2 + $0x84] sm:$0x3] %v1498_v14 }
 0x4db   :  { %v1175_v53 = vadd.f32 %v16627_v29, %v1135_v35  ;;  %v1826_v6 = vld [vmem:[#allocation2 + $0x80] sm:$0xf] }
 0x4dc   :  { %v2004_v30 = vsel %vm16317_vm5, %v1999_v25, %v2003_v40  ;;  %v2009_v50 = vshll.u32 %v1826_v6, 16  ;;  %3569 = vmatpush.bf16.msrb.mxu3 %v15574_v21  ;;  %v2279_v34 = vld [vmem:[#allocation2 + $0x80] sm:$0xe]  ;;  %v15572_v40 = vld [vmem:[%s19718_s3 + $0x160] sm:$0xff]  ;;  %3343 = vmatpush.bf16.msrb.mxu2 %v15557_v18 }
 0x4dd   :  { %v2105_v54 = vunpack.c.l.b16 %v2004_v30  ;;  %v1211_v43 = vmax.f32 %v1175_v53, 0.0  ;;  %v13106_v22 = vld [vmem:[#allocation2 + $0x80] sm:$0xf]  ;;  %v13204_v15 = vrot.slane %v2279_v34, 9 }
 0x4de   :  { %v1016_v1 = vpop.f32.mrf.mxu0  ;;  %v1385_v13 = vld.sshfl [vmem:[#allocation1 + $0x20] sm:$0xff pattern:$0x75316420]  ;;  %v2011_v19 = vrot.slane %v2009_v50, 5 }
 0x4df   :  { %v2115_v47 = vpack.c.b16 %v2105_v54, %v2104_v24  ;;  %v1283_v17 = vrot.slane %v1211_v43, 4  ;;  %v1100_v44 = vmax.f32 %v16594_v38, %v1016_v1  ;;  %v1499_v49 = vpack.c.bf16 %v1385_v13, %v1385_v13  ;;  %1387 = vst [vmem:[#allocation1] ss:$2 sm:$0xff] %v1211_v43 }
 0x4e0   :  { %v1386_v37 = vld.sshfl [vmem:[#allocation1 + $0x30] sm:$0xff pattern:$0x75316420]  ;;  %v2006_v38 = vshrl.u32 %v1826_v6, 16  ;;  %3570 = vmatpush.bf16.msrb.mxu3 %v15573_v56  ;;  %3344 = vmatpush.bf16.msrb.mxu2 %v15556_v32 }
 0x4e1   :  { %2207 = vmatmul.bf16.gmra.mxu2 %v2115_v47  ;;  %v1136_v10 = vmax.f32 %v1064_v51, %v1100_v44  ;;  %1547 = vst [vmem:[#allocation2 + $0x88] sm:$0xf] %v1499_v49  ;;  %v1500_v61 = vpack.c.bf16 %v1386_v37, %v1386_v37  ;;  %v2280_v58 = vld [vmem:[#allocation2 + $0x84] sm:$0x1] }
 0x4e2   :  { %1388 = vst [vmem:[#allocation1 + $0x1] ss:$2 sm:$0xff] %v1283_v17  ;;  %v1827_v59 = vld [vmem:[#allocation2 + $0x84] sm:$0x1]  ;;  %v2372_v8 = vrot.slane %v2280_v58, 5  ;;  %v2008_v5 = vrot.slane %v2006_v38, 4 }
 0x4e3   :  { %v1176_v42 = vadd.f32 %v16627_v29, %v1136_v10  ;;  %1548 = vst [vmem:[#allocation2 + $0x8c] sm:$0x3] %v1500_v61  ;;  %v2015_v3 = vshll.u32 %v1827_v59, 16  ;;  %v15545_v10 = vld [vmem:[%s19718_s3 + $0xc8] sm:$0xff]  ;;  %v1066_v59 = vmax.f32 %v16465_v39, %v16544_v36  ;;  %v15570_v36 = vld [vmem:[%s19718_s3 + $0x150] sm:$0xff] }
 0x4e4   :  { %v2012_v24 = vor.u32 %v2011_v19, %v2008_v5  ;;  %3571 = vmatpush.bf16.msrb.mxu3 %v15572_v40  ;;  %3022 = vmatpush.bf16.msrb.mxu1 %v15545_v10  ;;  %v2580_v19 = vld [vmem:[#allocation2] sm:$0xe] }
 0x4e5   :  { %v1212_v9 = vmax.f32 %v1176_v42, 0.0  ;;  %v2017_v51 = vrot.slane %v2015_v3, 5  ;;  %v15544_v3 = vld [vmem:[%s19718_s3 + $0xc0] sm:$0xff] }
 0x4e6   :  { %v1018_v4 = vpop.f32.mrf.mxu0  ;;  %v2013_v42 = vrot.slane %v2012_v24, 4 }
 0x4e7   :  { %v1284_v26 = vrot.slane %v1212_v9, 4  ;;  %v1101_v52 = vmax.f32 %v16596_v60, %v1018_v4  ;;  %1389 = vst [vmem:[#allocation1 + $0x10] ss:$2 sm:$0xff] %v1212_v9  ;;  %v2373_v60 = vsel %vm16301_vm4, %v13204_v15, %v2372_v8 }
 0x4e8   :  { %v15518_v14 = vld [vmem:[#allocation2 + $0x84] sm:$0xf0]  ;;  %v2431_v38 = vunpack.c.l.b16 %v2373_v60  ;;  %v2018_v4 = vsel %vm16317_vm5, %v2013_v42, %v2017_v51  ;;  %3572 = vmatpush.bf16.msrb.mxu3 %v15571_v62  ;;  %3023 = vmatpush.bf16.msrb.mxu1 %v15544_v3  ;;  %v2619_v60 = vshll.u32 %v2580_v19, 16 }
 0x4e9   :  { %v2281_v48 = vld [vmem:[#allocation2 + $0x88] sm:$0xe]  ;;  %v1137_v28 = vmax.f32 %v1065_v31, %v1101_v52  ;;  %v13107_v25 = vor.u32 %v15518_v14, %v13106_v22  ;;  %1392 = vst [vmem:[#allocation1 + $0x20] ss:$2 sm:$0xff] %v1284_v26  ;;  %v2106_v52 = vunpack.c.l.b16 %v2018_v4  ;;  %v16757_v14 = vld [vmem:[#allocation2 + $0x4] sm:$0x3] }
 0x4ea   :  { %v1828_v35 = vld [vmem:[#allocation2 + $0x88] sm:$0xf]  ;;  %v2282_v53 = vld [vmem:[#allocation2 + $0x8c] sm:$0x1]  ;;  %v13205_v1 = vrot.slane %v2281_v48, 9 }
 0x4eb   :  { %v2020_v7 = vshrl.u32 %v1828_v35, 16  ;;  %v1829_v30 = vld [vmem:[#allocation2 + $0x8c] sm:$0x1]  ;;  %v2023_v54 = vshll.u32 %v1828_v35, 16  ;;  %v1177_v43 = vadd.f32 %v16627_v29, %v1137_v28  ;;  %1759 = vmatmul.bf16.gmra.mxu1 %v13107_v25  ;;  %v2376_v47 = vrot.slane %v2282_v53, 5 }
 0x4ec   :  { %v1390_v6 = vld.sshfl [vmem:[#allocation1] sm:$0xff pattern:$0x75316420]  ;;  %v2029_v44 = vshll.u32 %v1829_v30, 16  ;;  %3573 = vmatpush.bf16.msrb.mxu3 %v15570_v36  ;;  %v2582_v28 = vld [vmem:[#allocation2 + $0x8] sm:$0xe]  ;;  %v1067_v30 = vmax.f32 %v16467_v2, %v16546_v63 }
 0x4ed   :  { %v2022_v13 = vrot.slane %v2020_v7, 4  ;;  %v2025_v17 = vrot.slane %v2023_v54, 5  ;;  %v1501_v49 = vpack.c.bf16 %v1390_v6, %v1390_v6  ;;  %v1213_v21 = vmax.f32 %v1177_v43, 0.0  ;;  %v16759_v25 = vld [vmem:[#allocation2 + $0xc] sm:$0x3] }
 0x4ee   :  { %v2377_v37 = vsel %vm16301_vm4, %v13205_v1, %v2376_v47  ;;  %v1021_v61 = vpop.f32.mrf.mxu0  ;;  %v1391_v58 = vld.sshfl [vmem:[#allocation1 + $0x10] sm:$0xff pattern:$0x75316420]  ;;  %v2031_v8 = vrot.slane %v2029_v44, 5  ;;  %v2616_v7 = vshrl.u32 %v2580_v19, 16  ;;  %v15569_v1 = vld [vmem:[%s19718_s3 + $0x148] sm:$0xff] }
 0x4ef   :  { %v2432_v50 = vunpack.c.l.b16 %v2377_v37  ;;  %v2026_v34 = vor.u32 %v2025_v17, %v2022_v13  ;;  %1549 = vst [vmem:[#allocation2 + $0x90] sm:$0xf] %v1501_v49  ;;  %v1285_v57 = vrot.slane %v1213_v21, 4  ;;  %v1102_v56 = vmax.f32 %v16601_v33, %v1021_v61  ;;  %v15555_v33 = vld [vmem:[%s19718_s3 + $0x118] sm:$0xff]  ;;  %v15554_v43 = vld [vmem:[%s19718_s3 + $0x110] sm:$0xff] }
 0x4f0   :  { %1393 = vst [vmem:[#allocation1 + $0x21] ss:$2 sm:$0xff] %v1213_v21  ;;  %v1502_v9 = vpack.c.bf16 %v1391_v58, %v1391_v58  ;;  %3345 = vmatpush.bf16.msrb.mxu2 %v15555_v33  ;;  %v2634_v13 = vshrl.u32 %v2582_v28, 16  ;;  %v2637_v6 = vshll.u32 %v2582_v28, 16  ;;  %v2625_v63 = vshrl.u32 %v16757_v14, 16  ;;  %3574 = vmatpush.bf16.msrb.mxu3 %v15569_v1 }
 0x4f1   :  { %v2441_v31 = vpack.c.b16 %v2432_v50, %v2431_v38  ;;  %v2027_v22 = vrot.slane %v2026_v34, 4  ;;  %v1138_v5 = vmax.f32 %v1066_v59, %v1102_v56  ;;  %1394 = vst [vmem:[#allocation1 + $0x30] ss:$2 sm:$0xff] %v1285_v57  ;;  %v16772_v49 = vrot.slane %v2616_v7, 5  ;;  %v15553_v57 = vld [vmem:[%s19718_s3 + $0x108] sm:$0xff]  ;;  %v15568_v56 = vld [vmem:[%s19718_s3 + $0x140] sm:$0xff] }
 0x4f2   :  { %1550 = vst [vmem:[#allocation2 + $0x94] sm:$0x3] %v1502_v9  ;;  %v16775_v21 = vrot.slane %v2619_v60, 6  ;;  %v2628_v37 = vshll.u32 %v16757_v14, 16  ;;  %v2636_v38 = vrot.slane %v2634_v13, 5  ;;  %v2639_v50 = vrot.slane %v2637_v6, 6 }
 0x4f3   :  { %2537 = vmatmul.bf16.gmra.mxu3 %v2441_v31  ;;  %v2032_v39 = vsel %vm16317_vm5, %v2027_v22, %v2031_v8  ;;  %v1178_v26 = vadd.f32 %v16627_v29, %v1138_v5  ;;  %v16778_v34 = vrot.slane %v2625_v63, 5  ;;  %v2646_v59 = vshll.u32 %v16759_v25, 16 }
 0x4f4   :  { %v2107_v15 = vunpack.c.l.b16 %v2032_v39  ;;  %3346 = vmatpush.bf16.msrb.mxu2 %v15554_v43  ;;  %v1068_v9 = vmax.f32 %v16476_v55, %v16551_v45  ;;  %3575 = vmatpush.bf16.msrb.mxu3 %v15568_v56  ;;  %v2622_v1 = vor.u32 %v16775_v21, %v16772_v49 }
 0x4f5   :  { %v1214_v48 = vmax.f32 %v1178_v26, 0.0  ;;  %v15552_v26 = vld [vmem:[%s19718_s3 + $0x100] sm:$0xff] }
 0x4f6   :  { %v2116_v35 = vpack.c.b16 %v2107_v15, %v2106_v52  ;;  %v1023_v18 = vpop.f32.mrf.mxu0  ;;  %v1830_v53 = vld [vmem:[#allocation2 + $0x90] sm:$0xf]  ;;  %v2640_v15 = vor.u32 %v2639_v50, %v2636_v38 }
 0x4f7   :  { %v1395_v40 = vld.sshfl [vmem:[#allocation1 + $0x20] sm:$0xff pattern:$0x75316420]  ;;  %v1286_v24 = vrot.slane %v1214_v48, 4  ;;  %v1103_v54 = vmax.f32 %v16603_v27, %v1023_v18  ;;  %1397 = vst [vmem:[#allocation1] ss:$2 sm:$0xff] %v1214_v48 }
 0x4f8   :  { %2212 = vmatmul.bf16.gmra.mxu2 %v2116_v35  ;;  %v1503_v20 = vpack.c.bf16 %v1395_v40, %v1395_v40  ;;  %v1396_v47 = vld.sshfl [vmem:[#allocation1 + $0x30] sm:$0xff pattern:$0x75316420]  ;;  %v2643_v27 = vshrl.u32 %v16759_v25, 16  ;;  %v2034_v17 = vshrl.u32 %v1830_v53, 16  ;;  %v2037_v44 = vshll.u32 %v1830_v53, 16 }
 0x4f9   :  { %v1139_v51 = vmax.f32 %v1067_v30, %v1103_v54  ;;  %v1504_v2 = vpack.c.bf16 %v1396_v47, %v1396_v47  ;;  %1398 = vst [vmem:[#allocation1 + $0x1] ss:$2 sm:$0xff] %v1286_v24  ;;  %v2284_v62 = vld [vmem:[#allocation2 + $0x94] sm:$0x1]  ;;  %v2283_v10 = vld [vmem:[#allocation2 + $0x90] sm:$0xe]  ;;  %3347 = vmatpush.bf16.msrb.mxu2 %v15553_v57 }
 0x4fa   :  { %1551 = vst [vmem:[#allocation2 + $0x98] sm:$0xf] %v1503_v20  ;;  %v1831_v61 = vld [vmem:[#allocation2 + $0x94] sm:$0x1]  ;;  %v16780_v58 = vrot.slane %v2643_v27, 5  ;;  %v2380_v22 = vrot.slane %v2284_v62, 5  ;;  %v1069_v62 = vmax.f32 %v16478_v46, %v16553_v0 }
 0x4fb   :  { %v1179_v32 = vadd.f32 %v16627_v29, %v1139_v51  ;;  %1552 = vst [vmem:[#allocation2 + $0x9c] sm:$0x3] %v1504_v2  ;;  %v13110_v4 = vld [vmem:[#allocation2 + $0x90] sm:$0xf]  ;;  %v2036_v8 = vrot.slane %v2034_v17, 4  ;;  %v2039_v5 = vrot.slane %v2037_v44, 5 }
 0x4fc   :  { %v13206_v36 = vrot.slane %v2283_v10, 9  ;;  %v2043_v19 = vshll.u32 %v1831_v61, 16  ;;  %v2648_v35 = vrot.slane %v2646_v59, 6  ;;  %v2630_v40 = vrot.slane %v2628_v37, 6  ;;  %v2586_v10 = vld [vmem:[#allocation2 + $0x18] sm:$0xe] }
 0x4fd   :  { %v1215_v42 = vmax.f32 %v1179_v32, 0.0  ;;  %v2040_v7 = vor.u32 %v2039_v5, %v2036_v8  ;;  %3348 = vmatpush.bf16.msrb.mxu2 %v15552_v26  ;;  %v2641_v6 = vrot.slane %v2640_v15, 4  ;;  %v2623_v46 = vrot.slane %v2622_v1, 4  ;;  %v2584_v0 = vld [vmem:[#allocation2 + $0x10] sm:$0xe] }
 0x4fe   :  { %v1026_v31 = vpop.f32.mrf.mxu0  ;;  %v2045_v54 = vrot.slane %v2043_v19, 5  ;;  %v2649_v51 = vor.u32 %v2648_v35, %v16780_v58  ;;  %v2631_v21 = vor.u32 %v2630_v40, %v16778_v34  ;;  %v2670_v56 = vshrl.u32 %v2586_v10, 16  ;;  %v2587_v8 = vld [vmem:[#allocation2 + $0x1c] sm:$0x3]  ;;  %v2585_v26 = vld [vmem:[#allocation2 + $0x14] sm:$0x3] }
 0x4ff   :  { %v1287_v39 = vrot.slane %v1215_v42, 4  ;;  %v1104_v33 = vmax.f32 %v16608_v41, %v1026_v31  ;;  %1399 = vst [vmem:[#allocation1 + $0x10] ss:$2 sm:$0xff] %v1215_v42  ;;  %v2381_v41 = vsel %vm16301_vm4, %v13206_v36, %v2380_v22  ;;  %v2041_v17 = vrot.slane %v2040_v7, 4  ;;  %v3098_v35 = vld [vmem:[#allocation2 + $0x4] sm:$0x3] }
 0x500   :  { %v2433_v63 = vunpack.c.l.b16 %v2381_v41  ;;  %v1400_v32 = vld.sshfl [vmem:[#allocation1] sm:$0xff pattern:$0x75316420]  ;;  %v2650_v57 = vsel %vm16811_vm8, %v2641_v6, %v2649_v51  ;;  %v2632_v5 = vsel %vm16811_vm8, %v2623_v46, %v2631_v21  ;;  %v2664_v41 = vshll.u32 %v2585_v26, 16  ;;  %v3099_v7 = vld [vmem:[#allocation2 + $0x8] sm:$0xc] }
 0x501   :  { %v15519_v55 = vld [vmem:[#allocation2 + $0x94] sm:$0xf0]  ;;  %v1140_v3 = vmax.f32 %v1068_v9, %v1104_v33  ;;  %1402 = vst [vmem:[#allocation1 + $0x20] ss:$2 sm:$0xff] %v1287_v39  ;;  %v2046_v38 = vsel %vm16317_vm5, %v2041_v17, %v2045_v54  ;;  %v2673_v9 = vshll.u32 %v2586_v10, 16  ;;  %v2652_v39 = vshrl.u32 %v2584_v0, 16 }
 0x502   :  { %v2285_v45 = vld [vmem:[#allocation2 + $0x98] sm:$0xe]  ;;  %v13111_v14 = vor.u32 %v15519_v55, %v13110_v4  ;;  %v2286_v28 = vld [vmem:[#allocation2 + $0x9c] sm:$0x1]  ;;  %v2108_v4 = vunpack.c.l.b16 %v2046_v38  ;;  %v2937_v19 = vunpack.c.l.b16 %v2650_v57  ;;  %v2655_v55 = vshll.u32 %v2584_v0, 16  ;;  %v15583_v10 = vld [vmem:[%s19718_s3 + $0x1b8] sm:$0xff] }
 0x503   :  { %v1832_v52 = vld [vmem:[#allocation2 + $0x98] sm:$0xf]  ;;  %v1833_v25 = vld [vmem:[#allocation2 + $0x9c] sm:$0x1]  ;;  %v1180_v53 = vadd.f32 %v16627_v29, %v1140_v3  ;;  %v13207_v60 = vrot.slane %v2285_v45, 9  ;;  %v2384_v30 = vrot.slane %v2286_v28, 5  ;;  %4018 = vmatpush.bf16.msra.mxu1 %v15583_v10 }
 0x504   :  { %v2048_v48 = vshrl.u32 %v1832_v52, 16  ;;  %v2051_v18 = vshll.u32 %v1832_v52, 16  ;;  %1764 = vmatmul.bf16.gmra.mxu1 %v13111_v14  ;;  %v2057_v43 = vshll.u32 %v1833_v25, 16  ;;  %v3100_v45 = vld [vmem:[#allocation2 + $0xc] sm:$0x3]  ;;  %v2672_v52 = vrot.slane %v2670_v56, 5 }
 0x505   :  { %v1216_v47 = vmax.f32 %v1180_v53, 0.0  ;;  %v2385_v13 = vsel %vm16301_vm4, %v13207_v60, %v2384_v30  ;;  %v2675_v15 = vrot.slane %v2673_v9, 6  ;;  %v2679_v3 = vshrl.u32 %v2587_v8, 16  ;;  %v3097_v53 = vld [vmem:[#allocation2] sm:$0xc]  ;;  %v15767_v6 = vld [vmem:[%s19720_s5 + $0x78] sm:$0xff] }
 0x506   :  { %v2050_v24 = vrot.slane %v2048_v48, 4  ;;  %v2053_v20 = vrot.slane %v2051_v18, 5  ;;  %v1028_v2 = vpop.f32.mrf.mxu0  ;;  %v2434_v27 = vunpack.c.l.b16 %v2385_v13  ;;  %v2059_v42 = vrot.slane %v2057_v43, 5  ;;  %v15560_v13 = vld [vmem:[#allocation2 + $0xc] sm:$0xf0] }
 0x507   :  { %v1288_v37 = vrot.slane %v1216_v47, 4  ;;  %1403 = vst [vmem:[#allocation1 + $0x21] ss:$2 sm:$0xff] %v1216_v47  ;;  %v1105_v49 = vmax.f32 %v16610_v16, %v1028_v2  ;;  %v1505_v16 = vpack.c.bf16 %v1400_v32, %v1400_v32  ;;  %v2682_v14 = vshll.u32 %v2587_v8, 16  ;;  %v2590_v32 = vld [vmem:[#allocation2 + $0x28] sm:$0xe] }
 0x508   :  { %v2054_v44 = vor.u32 %v2053_v20, %v2050_v24  ;;  %v2442_v61 = vpack.c.b16 %v2434_v27, %v2433_v63  ;;  %v2661_v28 = vshrl.u32 %v2585_v26, 16  ;;  %v3170_v18 = vrot.slane %v3100_v45, 6  ;;  %v2591_v0 = vld [vmem:[#allocation2 + $0x2c] sm:$0x3]  ;;  %v2589_v56 = vld [vmem:[#allocation2 + $0x24] sm:$0x3] }
 0x509   :  { %v1141_v58 = vmax.f32 %v1069_v62, %v1105_v49  ;;  %1404 = vst [vmem:[#allocation1 + $0x30] ss:$2 sm:$0xff] %v1288_v37  ;;  %v2654_v40 = vrot.slane %v2652_v39, 5  ;;  %v2657_v60 = vrot.slane %v2655_v55, 6  ;;  %v2676_v30 = vor.u32 %v2675_v15, %v2672_v52  ;;  %v3102_v55 = vld [vmem:[#allocation2 + $0x14] sm:$0x3] }
 0x50a   :  { %v2055_v50 = vrot.slane %v2054_v44, 4  ;;  %2542 = vmatmul.bf16.gmra.mxu3 %v2442_v61  ;;  %1553 = vst [vmem:[#allocation2 + $0xa0] sm:$0xf] %v1505_v16  ;;  %v2681_v24 = vrot.slane %v2679_v3, 5  ;;  %v2684_v54 = vrot.slane %v2682_v14, 6  ;;  %v3166_v20 = vrot.slane %v3098_v35, 6 }
 0x50b   :  { %v1181_v31 = vadd.f32 %v16627_v29, %v1141_v58  ;;  %v2936_v29 = vunpack.c.l.b16 %v2632_v5  ;;  %v13305_v43 = vrot.slane %v3099_v7, 10  ;;  %v2663_v1 = vrot.slane %v2661_v28, 5  ;;  %v13386_v44 = vld [vmem:[#allocation2 + $0x8] sm:$0xf]  ;;  %v3103_v45 = vld [vmem:[#allocation2 + $0x18] sm:$0xc] }
 0x50c   :  { %v2060_v34 = vsel %vm16317_vm5, %v2055_v50, %v2059_v42  ;;  %v2666_v47 = vrot.slane %v2664_v41, 6  ;;  %v13304_v51 = vrot.slane %v3097_v53, 10  ;;  %v2658_v63 = vor.u32 %v2657_v60, %v2654_v40  ;;  %v2588_v50 = vld [vmem:[#allocation2 + $0x20] sm:$0xe]  ;;  %v3101_v3 = vld [vmem:[#allocation2 + $0x10] sm:$0xc] }
 0x50d   :  { %v2109_v22 = vunpack.c.l.b16 %v2060_v34  ;;  %v1217_v33 = vmax.f32 %v1181_v31, 0.0  ;;  %v2952_v25 = vpack.c.b16 %v2937_v19, %v2936_v29  ;;  %v3171_v2 = vsel %vm16824_vm11, %v13305_v43, %v3170_v18  ;;  %v15561_v18 = vld [vmem:[#allocation2 + $0x1c] sm:$0xf0]  ;;  %v2593_v10 = vld [vmem:[#allocation2 + $0x34] sm:$0x3] }
 0x50e   :  { %v2677_v27 = vrot.slane %v2676_v30, 4  ;;  %v2685_v17 = vor.u32 %v2684_v54, %v2681_v24  ;;  %v13387_v62 = vor.u32 %v15560_v13, %v13386_v44  ;;  %v3167_v37 = vsel %vm16824_vm11, %v13304_v51, %v3166_v20  ;;  %v13390_v54 = vld [vmem:[#allocation2 + $0x18] sm:$0xf]  ;;  %v10440_v59 = vld [vmem:[#allocation2 + $0x20] sm:$0xc] }
 0x50f   :  { %v2117_v36 = vpack.c.b16 %v2109_v22, %v2108_v4  ;;  %v1289_v48 = vrot.slane %v1217_v33, 4  ;;  %1407 = vst [vmem:[#allocation1] ss:$2 sm:$0xff] %v1217_v33  ;;  %v2667_v49 = vor.u32 %v2666_v47, %v2663_v1  ;;  %v3262_v21 = vunpack.c.l.b16 %v3171_v2  ;;  %v3104_v4 = vld [vmem:[#allocation2 + $0x1c] sm:$0x3] }
 0x510   :  { %v2659_v61 = vrot.slane %v2658_v63, 4  ;;  %v2686_v38 = vsel %vm16811_vm8, %v2677_v27, %v2685_v17  ;;  %v2706_v42 = vshrl.u32 %v2590_v32, 16  ;;  %v2709_v58 = vshll.u32 %v2590_v32, 16  ;;  %v2594_v20 = vld [vmem:[#allocation2 + $0x38] sm:$0xe] }
 0x511   :  { %2217 = vmatmul.bf16.gmra.mxu2 %v2117_v36  ;;  %1408 = vst [vmem:[#allocation1 + $0x1] ss:$2 sm:$0xff] %v1289_v48  ;;  %v3261_v46 = vunpack.c.l.b16 %v3167_v37  ;;  %v2939_v57 = vunpack.c.l.b16 %v2686_v38  ;;  %v2688_v9 = vshrl.u32 %v2588_v50, 16  ;;  %v2691_v31 = vshll.u32 %v2588_v50, 16  ;;  %v2592_v63 = vld [vmem:[#allocation2 + $0x30] sm:$0xe] }
 0x512   :  { %v2668_v16 = vsel %vm16811_vm8, %v2659_v61, %v2667_v49  ;;  %v2708_v22 = vrot.slane %v2706_v42, 5  ;;  %v2711_v8 = vrot.slane %v2709_v58, 6  ;;  %v2715_v5 = vshrl.u32 %v2591_v0, 16  ;;  %v2595_v32 = vld [vmem:[#allocation2 + $0x3c] sm:$0x3]  ;;  %v15582_v37 = vld [vmem:[%s19718_s3 + $0x1b0] sm:$0xff] }
 0x513   :  { %v3277_v34 = vpack.c.b16 %v3262_v21, %v3261_v46  ;;  %v2718_v39 = vshll.u32 %v2591_v0, 16  ;;  %v2938_v33 = vunpack.c.l.b16 %v2668_v16  ;;  %v2697_v36 = vshrl.u32 %v2589_v56, 16  ;;  %4019 = vmatpush.bf16.msra.mxu1 %v15582_v37  ;;  %v3108_v16 = vld [vmem:[#allocation2 + $0x2c] sm:$0x3] }
 0x514   :  { %3024 = vmatmul.bf16.vlgmr.msrb.gmra.mxu1 %v2952_v25  ;;  %v2700_v19 = vshll.u32 %v2589_v56, 16  ;;  %v3178_v52 = vrot.slane %v3104_v4, 6  ;;  %v2690_v15 = vrot.slane %v2688_v9, 5  ;;  %v2693_v14 = vrot.slane %v2691_v31, 6  ;;  %v3106_v9 = vld [vmem:[#allocation2 + $0x24] sm:$0x3] }
 0x515   :  { %v2953_v26 = vpack.c.b16 %v2939_v57, %v2938_v33  ;;  %v2712_v48 = vor.u32 %v2711_v8, %v2708_v22  ;;  %v2717_v29 = vrot.slane %v2715_v5, 5  ;;  %v2720_v35 = vrot.slane %v2718_v39, 6  ;;  %v3107_v31 = vld [vmem:[#allocation2 + $0x28] sm:$0xc] }
 0x516   :  { %v3174_v28 = vrot.slane %v3102_v55, 6  ;;  %v13307_v41 = vrot.slane %v3103_v45, 10  ;;  %v2699_v25 = vrot.slane %v2697_v36, 5  ;;  %v2702_v7 = vrot.slane %v2700_v19, 6  ;;  %v3105_v36 = vld [vmem:[#allocation2 + $0x20] sm:$0xc] }
 0x517   :  { %v13306_v40 = vrot.slane %v3101_v3, 10  ;;  %v2694_v60 = vor.u32 %v2693_v14, %v2690_v15  ;;  %v2713_v30 = vrot.slane %v2712_v48, 4  ;;  %v2721_v24 = vor.u32 %v2720_v35, %v2717_v29  ;;  %v15562_v15 = vld [vmem:[#allocation2 + $0x2c] sm:$0xf0] }
 0x518   :  { %v3179_v53 = vsel %vm16824_vm11, %v13307_v41, %v3178_v52  ;;  %v13391_v43 = vor.u32 %v15561_v18, %v13390_v54  ;;  %v2703_v47 = vor.u32 %v2702_v7, %v2699_v25  ;;  %v2742_v27 = vshrl.u32 %v2594_v20, 16  ;;  %v1031_v52 = vpop.f32.mrf.mxu0  ;;  %v2598_v41 = vld [vmem:[#allocation2 + $0x68] sm:$0xe] }
 0x519   :  { %v3175_v1 = vsel %vm16824_vm11, %v13306_v40, %v3174_v28  ;;  %v3264_v13 = vunpack.c.l.b16 %v3179_v53  ;;  %v2695_v51 = vrot.slane %v2694_v60, 4  ;;  %v2722_v2 = vsel %vm16811_vm8, %v2713_v30, %v2721_v24  ;;  %v13394_v28 = vld [vmem:[#allocation2 + $0x28] sm:$0xf]  ;;  %v15581_v30 = vld [vmem:[%s19718_s3 + $0x1a8] sm:$0xff] }
 0x51a   :  { %3576 = vmatmul.bf16.vlgmr.msrb.gmra.mxu3 %v13387_v62  ;;  %v2745_v17 = vshll.u32 %v2594_v20, 16  ;;  %v3263_v44 = vunpack.c.l.b16 %v3175_v1  ;;  %v2941_v21 = vunpack.c.l.b16 %v2722_v2  ;;  %v2724_v61 = vshrl.u32 %v2592_v63, 16  ;;  %v19759_v24 = vld [vmem:[#allocation23_spill] sm:$0xff]  ;;  %v19760_v54 = vld [vmem:[#allocation16_spill] sm:$0xff]  ;;  %4020 = vmatpush.bf16.msra.mxu1 %v15581_v30 }
 0x51b   :  { %v2704_v62 = vsel %vm16811_vm8, %v2695_v51, %v2703_v47  ;;  %v2727_v38 = vshll.u32 %v2592_v63, 16  ;;  %v2744_v50 = vrot.slane %v2742_v27, 5  ;;  %v2751_v58 = vshrl.u32 %v2595_v32, 16  ;;  %v2596_v1 = vld [vmem:[#allocation2 + $0x60] sm:$0xe] }
 0x51c   :  { %v3278_v49 = vpack.c.b16 %v3264_v13, %v3263_v44  ;;  %v2747_v42 = vrot.slane %v2745_v17, 6  ;;  %v2754_v46 = vshll.u32 %v2595_v32, 16  ;;  %v2940_v0 = vunpack.c.l.b16 %v2704_v62  ;;  %v15823_v13 = vld [vmem:[%s19720_s5 + $0x238] sm:$0xff]  ;;  %v2599_v2 = vld [vmem:[#allocation2 + $0x6c] sm:$0x3] }
 0x51d   :  { %v2736_v57 = vshll.u32 %v2593_v10, 16  ;;  %v2726_v4 = vrot.slane %v2724_v61, 5  ;;  %v2729_v22 = vrot.slane %v2727_v38, 6  ;;  %v3186_v8 = vrot.slane %v3108_v16, 6  ;;  %12087 = vmatpush.bf16.msrb.mxu0 %v15823_v13  ;;  %v2597_v32 = vld [vmem:[#allocation2 + $0x64] sm:$0x3] }
 0x51e   :  { %v2954_v56 = vpack.c.b16 %v2941_v21, %v2940_v0  ;;  %v2748_v5 = vor.u32 %v2747_v42, %v2744_v50  ;;  %v2753_v39 = vrot.slane %v2751_v58, 5  ;;  %v2756_v33 = vrot.slane %v2754_v46, 6  ;;  %v3112_v50 = vld [vmem:[#allocation2 + $0x3c] sm:$0x3]  ;;  %v16870_v42 = vld [vmem:[%s19717_s2] ss:$0 sm:$0xff] }
 0x51f   :  { %v3182_v19 = vrot.slane %v3106_v9, 6  ;;  %v2738_v45 = vrot.slane %v2736_v57, 6  ;;  %v2730_v3 = vor.u32 %v2729_v22, %v2726_v4  ;;  %v13308_v14 = vrot.slane %v3105_v36, 10  ;;  %v3110_v46 = vld [vmem:[#allocation2 + $0x34] sm:$0x3] }
 0x520   :  { %v2749_v29 = vrot.slane %v2748_v5, 4  ;;  %v2757_v35 = vor.u32 %v2756_v33, %v2753_v39  ;;  %v1106_v25 = vmax.f32 %v16615_v23, %v1031_v52  ;;  %v13395_v7 = vor.u32 %v15562_v15, %v13394_v28  ;;  %v3111_v57 = vld [vmem:[#allocation2 + $0x38] sm:$0xc]  ;;  %v16877_v39 = vpop.f32.mrf.mxu2  ;;  %v3109_v33 = vld [vmem:[#allocation2 + $0x30] sm:$0xc] }
 0x521   :  { %3349 = vmatmul.bf16.vlgmr.msrb.gmra.mxu2 %v3277_v34  ;;  %v2733_v34 = vshrl.u32 %v2593_v10, 16  ;;  %v3183_v18 = vsel %vm16824_vm11, %v13308_v14, %v3182_v19  ;;  %v2731_v60 = vrot.slane %v2730_v3, 4  ;;  %v1070_v20 = vmax.f32 %v19760_v54, %v19759_v24  ;;  %v15563_v52 = vld [vmem:[#allocation2 + $0x3c] sm:$0xf0]  ;;  %v13398_v3 = vld [vmem:[#allocation2 + $0x38] sm:$0xf] }
 0x522   :  { %v2778_v23 = vshrl.u32 %v2598_v41, 16  ;;  %v2781_v47 = vshll.u32 %v2598_v41, 16  ;;  %v3265_v51 = vunpack.c.l.b16 %v3183_v18  ;;  %v2760_v62 = vshrl.u32 %v2596_v1, 16  ;;  %v2602_v28 = vld [vmem:[#allocation2 + $0x78] sm:$0xe] }
 0x523   :  { %v2735_v55 = vrot.slane %v2733_v34, 5  ;;  %v1142_v63 = vmax.f32 %v1070_v20, %v1106_v25  ;;  %v2763_v37 = vshll.u32 %v2596_v1, 16  ;;  %v2787_v10 = vshrl.u32 %v2599_v2, 16  ;;  %v1401_v41 = vld.sshfl [vmem:[#allocation1 + $0x10] sm:$0xff pattern:$0x75316420] }
 0x524   :  { %3029 = vmatmul.bf16.gmra.mxu1 %v2953_v26  ;;  %v13309_v26 = vrot.slane %v3107_v31, 10  ;;  %v2783_v21 = vrot.slane %v2781_v47, 6  ;;  %v2790_v61 = vshll.u32 %v2599_v2, 16  ;;  %v2769_v0 = vshrl.u32 %v2597_v32, 16  ;;  %v16875_v31 = vpop.f32.mrf.mxu1  ;;  %v2600_v54 = vld [vmem:[#allocation2 + $0x70] sm:$0xe] }
 0x525   :  { %v2739_v40 = vor.u32 %v2738_v45, %v2735_v55  ;;  %v16873_v58 = vadd.f32 %v16870_v42, %v1142_v63  ;;  %v2772_v16 = vshll.u32 %v2597_v32, 16  ;;  %v2765_v9 = vrot.slane %v2763_v37, 6  ;;  %v2603_v47 = vld [vmem:[#allocation2 + $0x7c] sm:$0x3]  ;;  %v3116_v37 = vld [vmem:[#allocation2 + $0x6c] sm:$0x3] }
 0x526   :  { %v3187_v48 = vsel %vm16824_vm11, %v13309_v26, %v3186_v8  ;;  %v3194_v4 = vrot.slane %v3112_v50, 6  ;;  %v2789_v8 = vrot.slane %v2787_v10, 5  ;;  %v2792_v5 = vrot.slane %v2790_v61, 6  ;;  %v15580_v2 = vld [vmem:[%s19718_s3 + $0x1a0] sm:$0xff] }
 0x527   :  { %v3266_v53 = vunpack.c.l.b16 %v3187_v48  ;;  %v2740_v27 = vsel %vm16811_vm8, %v2731_v60, %v2739_v40  ;;  %v3190_v36 = vrot.slane %v3110_v46, 6  ;;  %v1218_v19 = vmax.f32 %v16873_v58, 0.0  ;;  %4021 = vmatpush.bf16.msra.mxu1 %v15580_v2  ;;  %v3115_v46 = vld [vmem:[#allocation2 + $0x68] sm:$0xc] }
 0x528   :  { %v2942_v38 = vunpack.c.l.b16 %v2740_v27  ;;  %v13311_v26 = vrot.slane %v3111_v57, 10  ;;  %v2771_v55 = vrot.slane %v2769_v0, 5  ;;  %v2774_v45 = vrot.slane %v2772_v16, 6  ;;  %v3113_v57 = vld [vmem:[#allocation2 + $0x60] sm:$0xc] }
 0x529   :  { %v3279_v17 = vpack.c.b16 %v3266_v53, %v3265_v51  ;;  %v13310_v14 = vrot.slane %v3109_v33, 10  ;;  %v13399_v25 = vor.u32 %v15563_v52, %v13398_v3  ;;  %v1506_v40 = vpack.c.bf16 %v1401_v41, %v1401_v41  ;;  %1409 = vst [vmem:[#allocation1 + $0x10] ss:$2 sm:$0xff] %v1218_v19  ;;  %v13402_v41 = vld [vmem:[#allocation2 + $0x68] sm:$0xf] }
 0x52a   :  { %3581 = vmatmul.bf16.gmra.mxu3 %v13391_v43  ;;  %v2758_v43 = vsel %vm16811_vm8, %v2749_v29, %v2757_v35  ;;  %v3195_v48 = vsel %vm16824_vm11, %v13311_v26, %v3194_v4  ;;  %v2793_v35 = vor.u32 %v2792_v5, %v2789_v8  ;;  %v2775_v18 = vor.u32 %v2774_v45, %v2771_v55 }
 0x52b   :  { %v2943_v44 = vunpack.c.l.b16 %v2758_v43  ;;  %v3268_v53 = vunpack.c.l.b16 %v3195_v48  ;;  %v2814_v20 = vshrl.u32 %v2602_v28, 16  ;;  %v2817_v43 = vshll.u32 %v2602_v28, 16  ;;  %1554 = vst [vmem:[#allocation2 + $0xa4] sm:$0x3] %v1506_v40 }
 0x52c   :  { %v2796_v32 = vshrl.u32 %v2600_v54, 16  ;;  %v2823_v10 = vshrl.u32 %v2603_v47, 16  ;;  %v2826_v61 = vshll.u32 %v2603_v47, 16  ;;  %v13312_v55 = vrot.slane %v3113_v57, 10  ;;  %v15579_v47 = vld [vmem:[%s19718_s3 + $0x198] sm:$0xff] }
 0x52d   :  { %v2955_v34 = vpack.c.b16 %v2943_v44, %v2942_v38  ;;  %v2601_v44 = vld [vmem:[#allocation2 + $0x74] sm:$0x3]  ;;  %v16895_v38 = vpop.f32.mrf.mxu3  ;;  %4022 = vmatpush.bf16.msra.mxu1 %v15579_v47 }
 0x52e   :  { %v2805_v0 = vshrl.u32 %v2601_v44, 16  ;;  %v2808_v16 = vshll.u32 %v2601_v44, 16  ;;  %v2798_v4 = vrot.slane %v2796_v32, 5  ;;  %v2825_v5 = vrot.slane %v2823_v10, 5 }
 0x52f   :  { %v2828_v33 = vrot.slane %v2826_v61, 6 }
 0x530   :  { %v2807_v45 = vrot.slane %v2805_v0, 5  ;;  %v2810_v52 = vrot.slane %v2808_v16, 6  ;;  %v19762_v0 = vld [vmem:[#allocation24_spill] sm:$0xff]  ;;  %v19763_v16 = vld [vmem:[#allocation18_spill] sm:$0xff] }
 0x531   :  { %3354 = vmatmul.bf16.gmra.mxu2 %v3278_v49  ;;  %v2780_v49 = vrot.slane %v2778_v23, 5 }
 0x532   :  { %v2811_v40 = vor.u32 %v2810_v52, %v2807_v45 }
 0x533   :  { %v2784_v22 = vor.u32 %v2783_v21, %v2780_v49  ;;  %v2816_v49 = vrot.slane %v2814_v20, 5  ;;  %v2819_v21 = vrot.slane %v2817_v43, 6 }
 0x534   :  { %3034 = vmatmul.bf16.gmra.mxu1 %v2954_v56  ;;  %v2762_v56 = vrot.slane %v2760_v62, 5  ;;  %v2799_v62 = vshll.u32 %v2600_v54, 16  ;;  %v2604_v54 = vld [vmem:[#allocation2 + $0x80] sm:$0xe] }
 0x535   :  { %v2785_v29 = vrot.slane %v2784_v22, 4  ;;  %v2820_v8 = vor.u32 %v2819_v21, %v2816_v49  ;;  %v2835_v49 = vshll.u32 %v2604_v54, 16  ;;  %v3120_v21 = vld [vmem:[#allocation2 + $0x7c] sm:$0x3] }
 0x536   :  { %v2766_v15 = vor.u32 %v2765_v9, %v2762_v56  ;;  %v3202_v9 = vrot.slane %v3116_v37, 6  ;;  %v2801_v22 = vrot.slane %v2799_v62, 6  ;;  %v2605_v62 = vld [vmem:[#allocation2 + $0x84] sm:$0x3]  ;;  %v2832_v37 = vshrl.u32 %v2604_v54, 16 }
 0x537   :  { %v2794_v24 = vsel %vm16811_vm8, %v2785_v29, %v2793_v35  ;;  %v2821_v29 = vrot.slane %v2820_v8, 4  ;;  %v2829_v35 = vor.u32 %v2828_v33, %v2825_v5  ;;  %v2841_v8 = vshrl.u32 %v2605_v62, 16 }
 0x538   :  { %v2767_v60 = vrot.slane %v2766_v15, 4  ;;  %v2945_v27 = vunpack.c.l.b16 %v2794_v24  ;;  %v15564_v15 = vld [vmem:[#allocation2 + $0x6c] sm:$0xf0]  ;;  %v2802_v48 = vor.u32 %v2801_v22, %v2798_v4  ;;  %v3118_v4 = vld [vmem:[#allocation2 + $0x74] sm:$0x3]  ;;  %v2844_v5 = vshll.u32 %v2605_v62, 16 }
 0x539   :  { %v1750_v30 = vpop.f32.mrf.mxu1  ;;  %v2830_v24 = vsel %vm16811_vm8, %v2821_v29, %v2829_v35  ;;  %v3119_v22 = vld [vmem:[#allocation2 + $0x78] sm:$0xc]  ;;  %v3210_v45 = vrot.slane %v3120_v21, 6  ;;  %v2834_v52 = vrot.slane %v2832_v37, 5  ;;  %v16956_v21 = vld [vmem:[#allocation2 + $0x8] sm:$0xf] }
 0x53a   :  { %3586 = vmatmul.bf16.gmra.mxu3 %v13395_v7  ;;  %v3191_v7 = vsel %vm16824_vm11, %v13310_v14, %v3190_v36  ;;  %v2776_v51 = vsel %vm16811_vm8, %v2767_v60, %v2775_v18  ;;  %v13313_v36 = vrot.slane %v3115_v46, 10  ;;  %v1033_v60 = vpop.f32.mrf.mxu0  ;;  %v2947_v32 = vunpack.c.l.b16 %v2830_v24  ;;  %v15565_v24 = vld [vmem:[#allocation2 + $0x7c] sm:$0xf0] }
 0x53b   :  { %v3267_v23 = vunpack.c.l.b16 %v3191_v7  ;;  %v2944_v50 = vunpack.c.l.b16 %v2776_v51  ;;  %v13403_v7 = vor.u32 %v15564_v15, %v13402_v41  ;;  %v15599_v51 = vld [vmem:[%s19718_s3 + $0x238] sm:$0xff]  ;;  %v3206_v41 = vrot.slane %v3118_v4, 6 }
 0x53c   :  { %v3203_v3 = vsel %vm16824_vm11, %v13313_v36, %v3202_v9  ;;  %4854 = vmatpush.bf16.msra.mxu3 %v15599_v51  ;;  %v15598_v9 = vld [vmem:[%s19718_s3 + $0x230] sm:$0xff]  ;;  %v3117_v15 = vld [vmem:[#allocation2 + $0x70] sm:$0xc]  ;;  %v3682_v4 = vshrl.u32 %v16956_v21, 16 }
 0x53d   :  { %v3280_v63 = vpack.c.b16 %v3268_v53, %v3267_v23  ;;  %v3270_v18 = vunpack.c.l.b16 %v3203_v3  ;;  %v2607_v23 = vld [vmem:[#allocation2 + $0x8c] sm:$0x3]  ;;  %v2837_v3 = vrot.slane %v2835_v49, 6  ;;  %v13314_v54 = vrot.slane %v3117_v15, 10 }
 0x53e   :  { %v2862_v46 = vshll.u32 %v2607_v23, 16  ;;  %v15578_v49 = vld [vmem:[%s19718_s3 + $0x190] sm:$0xff] }
 0x53f   :  { %v2838_v51 = vor.u32 %v2837_v3, %v2834_v52  ;;  %4023 = vmatpush.bf16.msra.mxu1 %v15578_v49 }
 0x540   :  { %4855 = vmatpush.bf16.msra.mxu3 %v15598_v9  ;;  %v2864_v29 = vrot.slane %v2862_v46, 6  ;;  %v2611_v9 = vld [vmem:[#allocation2 + $0x9c] sm:$0x3] }
 0x541   :  { %3359 = vmatmul.bf16.gmra.mxu2 %v3279_v17  ;;  %v3114_v17 = vld [vmem:[#allocation2 + $0x64] sm:$0x3]  ;;  %v16897_v26 = vpop.f32.mrf.mxu1 }
 0x542   :  { %v3198_v56 = vrot.slane %v3114_v17, 6  ;;  %v19761_v17 = vld [vmem:[#allocation25_spill] sm:$0xff] }
 0x543   :  { %v1107_v44 = vmax.f32 %v19761_v17, %v1033_v60  ;;  %v2846_v60 = vrot.slane %v2844_v5, 6  ;;  %v3207_v17 = vsel %vm16824_vm11, %v13314_v54, %v3206_v41  ;;  %v3123_v54 = vld [vmem:[#allocation2 + $0x88] sm:$0xc] }
 0x544   :  { %3039 = vmatmul.bf16.gmra.mxu1 %v2955_v34  ;;  %v2956_v34 = vpack.c.b16 %v2945_v27, %v2944_v50  ;;  %v3199_v14 = vsel %vm16824_vm11, %v13312_v55, %v3198_v56  ;;  %v2859_v50 = vshrl.u32 %v2607_v23, 16  ;;  %v15591_v56 = vld [vmem:[%s19718_s3 + $0x1f8] sm:$0xff]  ;;  %v15596_v23 = vld [vmem:[%s19718_s3 + $0x220] sm:$0xff]  ;;  %v3271_v58 = vunpack.c.l.b16 %v3207_v17  ;;  %v3121_v17 = vld [vmem:[#allocation2 + $0x80] sm:$0xc] }
 0x545   :  { %v16903_v28 = vpop.f32.mrf.mxu3  ;;  %v3269_v53 = vunpack.c.l.b16 %v3199_v14  ;;  %4340 = vmatpush.bf16.msra.mxu2 %v15591_v56  ;;  %v15577_v56 = vld [vmem:[%s19718_s3 + $0x188] sm:$0xff] }
 0x546   :  { %4024 = vmatpush.bf16.msra.mxu1 %v15577_v56 }
 0x54a   :  { %3591 = vmatmul.bf16.gmra.mxu3 %v13399_v25  ;;  %v2606_v25 = vld [vmem:[#allocation2 + $0x88] sm:$0xe] }
 0x54b   :  { %v2850_v20 = vshrl.u32 %v2606_v25, 16  ;;  %v2853_v43 = vshll.u32 %v2606_v25, 16  ;;  %v13315_v25 = vrot.slane %v3119_v22, 10  ;;  %v1405_v22 = vld.sshfl [vmem:[#allocation1 + $0x20] sm:$0xff pattern:$0x75316420] }
 0x54c   :  { %v2203_v1 = vpop.f32.mrf.mxu2  ;;  %v1507_v52 = vpack.c.bf16 %v1405_v22, %v1405_v22 }
 0x54d   :  { %v16888_v13 = vadd.f32 %v2203_v1, %v1750_v30  ;;  %v2803_v30 = vrot.slane %v2802_v48, 4  ;;  %v2852_v10 = vrot.slane %v2850_v20, 5  ;;  %v2855_v61 = vrot.slane %v2853_v43, 6  ;;  %v16926_v36 = vpop.f32.mrf.mxu3  ;;  %v15589_v43 = vld [vmem:[%s19718_s3 + $0x1e8] sm:$0xff] }
 0x54e   :  { %v2861_v48 = vrot.slane %v2859_v50, 5  ;;  %v3211_v20 = vsel %vm16824_vm11, %v13315_v25, %v3210_v45  ;;  %v2608_v50 = vld [vmem:[#allocation2 + $0x90] sm:$0xe]  ;;  %v2895_v25 = vshrl.u32 %v2611_v9, 16  ;;  %1555 = vst [vmem:[#allocation2 + $0xa8] sm:$0xf] %v1507_v52 }
 0x54f   :  { %v2812_v27 = vsel %vm16811_vm8, %v2803_v30, %v2811_v40  ;;  %v2856_v14 = vor.u32 %v2855_v61, %v2852_v10  ;;  %v3272_v62 = vunpack.c.l.b16 %v3211_v20  ;;  %v2868_v45 = vshrl.u32 %v2608_v50, 16 }
 0x550   :  { %v2946_v57 = vunpack.c.l.b16 %v2812_v27  ;;  %v13406_v27 = vld [vmem:[#allocation2 + $0x78] sm:$0xf] }
 0x551   :  { %3364 = vmatmul.bf16.gmra.mxu2 %v3280_v63  ;;  %v1755_v2 = vpop.f32.mrf.mxu1  ;;  %v3281_v63 = vpack.c.b16 %v3270_v18, %v3269_v53  ;;  %v15597_v18 = vld [vmem:[%s19718_s3 + $0x228] sm:$0xff]  ;;  %v2843_v53 = vrot.slane %v2841_v8, 5  ;;  %v3282_v8 = vpack.c.b16 %v3272_v62, %v3271_v58  ;;  %v2897_v62 = vrot.slane %v2895_v25, 5  ;;  %v3652_v25 = vld [vmem:[#allocation2 + $0x14] sm:$0x1] }
 0x552   :  { %v2957_v55 = vpack.c.b16 %v2947_v32, %v2946_v57  ;;  %4856 = vmatpush.bf16.msra.mxu3 %v15597_v18  ;;  %v13407_v32 = vor.u32 %v15565_v24, %v13406_v27  ;;  %v15595_v57 = vld [vmem:[%s19718_s3 + $0x218] sm:$0xff]  ;;  %v15594_v24 = vld [vmem:[%s19718_s3 + $0x210] sm:$0xff]  ;;  %v13317_v58 = vrot.slane %v3123_v54, 10 }
 0x553   :  { %v2847_v37 = vor.u32 %v2846_v60, %v2843_v53  ;;  %v3122_v60 = vld [vmem:[#allocation2 + $0x84] sm:$0x3] }
 0x554   :  { %3044 = vmatmul.bf16.gmra.mxu1 %v2956_v34  ;;  %v16907_v1 = vpop.f32.mrf.mxu2  ;;  %v1071_v34 = vmax.f32 %v19763_v16, %v19762_v0 }
 0x556   :  { %v1143_v33 = vmax.f32 %v1071_v34, %v1107_v44  ;;  %v1290_v44 = vrot.slane %v1218_v19, 4  ;;  %4857 = vmatpush.bf16.msra.mxu3 %v15596_v23  ;;  %v2839_v19 = vrot.slane %v2838_v51, 4  ;;  %v15588_v34 = vld [vmem:[%s19718_s3 + $0x1e0] sm:$0xff] }
 0x558   :  { %v16937_v30 = vadd.f32 %v16870_v42, %v1143_v33  ;;  %v2857_v42 = vrot.slane %v2856_v14, 4  ;;  %v2848_v5 = vsel %vm16811_vm8, %v2839_v19, %v2847_v37  ;;  %v16975_v33 = vld [vmem:[#allocation2 + $0x8c] sm:$0x3]  ;;  %1412 = vst [vmem:[#allocation1 + $0x20] ss:$2 sm:$0xff] %v1290_v44  ;;  %v2871_v14 = vshll.u32 %v2608_v50, 16 }
 0x559   :  { %v16947_v47 = vpop.f32.mrf.mxu1  ;;  %v2948_v53 = vunpack.c.l.b16 %v2848_v5  ;;  %v3218_v51 = vrot.slane %v16975_v33, 6  ;;  %v15586_v50 = vld [vmem:[%s19718_s3 + $0x1d0] sm:$0xff] }
 0x55a   :  { %3596 = vmatmul.bf16.gmra.mxu3 %v13403_v7  ;;  %v15590_v7 = vld [vmem:[%s19718_s3 + $0x1f0] sm:$0xff]  ;;  %v1219_v10 = vmax.f32 %v16937_v30, 0.0  ;;  %v15587_v30 = vld [vmem:[%s19718_s3 + $0x1d8] sm:$0xff]  ;;  %v2873_v44 = vrot.slane %v2871_v14, 6 }
 0x55b   :  { %4341 = vmatpush.bf16.msra.mxu2 %v15590_v7  ;;  %4858 = vmatpush.bf16.msra.mxu3 %v15595_v57  ;;  %v2898_v7 = vshll.u32 %v2611_v9, 16  ;;  %v13316_v57 = vrot.slane %v3121_v17, 10  ;;  %v15585_v9 = vld [vmem:[%s19718_s3 + $0x1c8] sm:$0xff]  ;;  %v3219_v22 = vsel %vm16824_vm11, %v13317_v58, %v3218_v51  ;;  %v15584_v51 = vld [vmem:[%s19718_s3 + $0x1c0] sm:$0xff] }
 0x55c   :  { %v1291_v15 = vrot.slane %v1219_v10, 4  ;;  %1413 = vst [vmem:[#allocation1 + $0x21] ss:$2 sm:$0xff] %v1219_v10  ;;  %v3684_v10 = vrot.slane %v3682_v4, 4  ;;  %v15592_v4 = vld [vmem:[%s19718_s3 + $0x200] sm:$0xff] }
 0x55d   :  { %v16959_v61 = vpop.f32.mrf.mxu3  ;;  %v2900_v37 = vrot.slane %v2898_v7, 6 }
 0x55f   :  { %4342 = vmatpush.bf16.msra.mxu2 %v15589_v43  ;;  %4859 = vmatpush.bf16.msra.mxu3 %v15594_v24  ;;  %v2901_v33 = vor.u32 %v2900_v37, %v2897_v62  ;;  %v3128_v37 = vld [vmem:[#allocation2 + $0x9c] sm:$0x3] }
 0x561   :  { %3369 = vmatmul.bf16.gmra.mxu2 %v3281_v63  ;;  %v2610_v63 = vld [vmem:[#allocation2 + $0x98] sm:$0xe] }
 0x562   :  { %v2886_v46 = vshrl.u32 %v2610_v63, 16  ;;  %v2889_v16 = vshll.u32 %v2610_v63, 16  ;;  %v3685_v63 = vshll.u32 %v16956_v21, 16  ;;  %v15593_v21 = vld [vmem:[%s19718_s3 + $0x208] sm:$0xff] }
 0x563   :  { %4343 = vmatpush.bf16.msra.mxu2 %v15588_v34  ;;  %v15566_v34 = vld [vmem:[#allocation2 + $0x8c] sm:$0xf0]  ;;  %4860 = vmatpush.bf16.msra.mxu3 %v15593_v21  ;;  %v4422_v21 = vld [vmem:[#allocation2 + $0xc] sm:$0x3] }
 0x564   :  { %v2208_v35 = vpop.f32.mrf.mxu2  ;;  %3049 = vmatmul.bf16.gmra.mxu1 %v2957_v55  ;;  %v2609_v55 = vld [vmem:[#allocation2 + $0x94] sm:$0x3]  ;;  %v2891_v41 = vrot.slane %v2889_v16, 6  ;;  %v3651_v16 = vld [vmem:[#allocation2 + $0x10] sm:$0xf]  ;;  %v3687_v56 = vrot.slane %v3685_v63, 5 }
 0x565   :  { %v16934_v40 = vadd.f32 %v2208_v35, %v1755_v2  ;;  %v2865_v2 = vor.u32 %v2864_v29, %v2861_v48  ;;  %v2888_v48 = vrot.slane %v2886_v46, 5  ;;  %v1406_v29 = vld.sshfl [vmem:[#allocation1 + $0x30] sm:$0xff pattern:$0x75316420]  ;;  %v2877_v20 = vshrl.u32 %v2609_v55, 16  ;;  %v16992_v49 = vpop.f32.mrf.mxu3 }
 0x566   :  { %v1508_v18 = vpack.c.bf16 %v1406_v29, %v1406_v29  ;;  %v2880_v43 = vshll.u32 %v2609_v55, 16  ;;  %1414 = vst [vmem:[#allocation1 + $0x30] ss:$2 sm:$0xff] %v1291_v15  ;;  %v3214_v46 = vrot.slane %v3122_v60, 6  ;;  %v13410_v55 = vld [vmem:[#allocation2 + $0x88] sm:$0xf]  ;;  %v3274_v29 = vunpack.c.l.b16 %v3219_v22 }
 0x567   :  { %v2866_v0 = vsel %vm16811_vm8, %v2857_v42, %v2865_v2  ;;  %v2870_v42 = vrot.slane %v2868_v45, 5  ;;  %4344 = vmatpush.bf16.msra.mxu2 %v15587_v30  ;;  %v15576_v2 = vld [vmem:[%s19718_s3 + $0x180] sm:$0xff]  ;;  %v2879_v19 = vrot.slane %v2877_v20, 5  ;;  %v3696_v45 = vshrl.u32 %v3651_v16, 16  ;;  %4861 = vmatpush.bf16.msra.mxu3 %v15592_v4 }
 0x568   :  { %v2949_v3 = vunpack.c.l.b16 %v2866_v0  ;;  %v16977_v35 = vpop.f32.mrf.mxu1  ;;  %1556 = vst [vmem:[#allocation2 + $0xac] sm:$0x3] %v1508_v18  ;;  %v2882_v0 = vrot.slane %v2880_v43, 6  ;;  %4025 = vmatpush.bf16.msra.mxu1 %v15576_v2  ;;  %v3699_v52 = vshll.u32 %v3651_v16, 16  ;;  %v3215_v14 = vsel %vm16824_vm11, %v13316_v57, %v3214_v46  ;;  %v4424_v16 = vld [vmem:[#allocation2 + $0x14] sm:$0x3] }
 0x569   :  { %v3688_v60 = vor.u32 %v3687_v56, %v3684_v10  ;;  %v3273_v54 = vunpack.c.l.b16 %v3215_v14  ;;  %v3698_v20 = vrot.slane %v3696_v45, 4  ;;  %v3705_v63 = vshll.u32 %v3652_v25, 16  ;;  %v3126_v57 = vld [vmem:[#allocation2 + $0x94] sm:$0x3]  ;;  %v3127_v56 = vld [vmem:[#allocation2 + $0x98] sm:$0xc] }
 0x56a   :  { %3601 = vmatmul.bf16.gmra.mxu3 %v13407_v32  ;;  %v2958_v23 = vpack.c.b16 %v2949_v3, %v2948_v53  ;;  %v2892_v32 = vor.u32 %v2891_v41, %v2888_v48  ;;  %v13411_v3 = vor.u32 %v15566_v34, %v13410_v55  ;;  %v2883_v48 = vor.u32 %v2882_v0, %v2879_v19  ;;  %v3650_v41 = vld [vmem:[#allocation2 + $0xc] sm:$0x1]  ;;  %v3653_v45 = vld [vmem:[#allocation2 + $0x18] sm:$0xf] }
 0x56b   :  { %4345 = vmatpush.bf16.msra.mxu2 %v15586_v50  ;;  %v3701_v43 = vrot.slane %v3699_v52, 5  ;;  %v3691_v2 = vshll.u32 %v3650_v41, 16  ;;  %v3283_v17 = vpack.c.b16 %v3274_v29, %v3273_v54  ;;  %v3689_v10 = vrot.slane %v3688_v60, 4  ;;  %v3655_v41 = vld [vmem:[#allocation2 + $0x20] sm:$0xf] }
 0x56c   :  { %v16990_v27 = vpop.f32.mrf.mxu2  ;;  %v2893_v5 = vrot.slane %v2892_v32, 4  ;;  %v4423_v32 = vld [vmem:[#allocation2 + $0x10] sm:$0xe]  ;;  %v3707_v0 = vrot.slane %v3705_v63, 5  ;;  %v4466_v55 = vshll.u32 %v4422_v21, 16  ;;  %v3222_v25 = vrot.slane %v3126_v57, 6 }
 0x56d   :  { %v3702_v50 = vor.u32 %v3701_v43, %v3698_v20  ;;  %v3693_v19 = vrot.slane %v3691_v2, 5  ;;  %v4475_v4 = vshll.u32 %v4423_v32, 16  ;;  %v15567_v54 = vld [vmem:[#allocation2 + $0x9c] sm:$0xf0]  ;;  %v3724_v2 = vshrl.u32 %v3655_v41, 16 }
 0x56e   :  { %v2902_v53 = vsel %vm16811_vm8, %v2893_v5, %v2901_v33  ;;  %v4463_v33 = vshrl.u32 %v4422_v21, 16  ;;  %v3727_v63 = vshll.u32 %v3655_v41, 16 }
 0x56f   :  { %4346 = vmatpush.bf16.msra.mxu2 %v15585_v9  ;;  %v4472_v9 = vshrl.u32 %v4423_v32, 16  ;;  %v3694_v14 = vsel %vm16317_vm5, %v3689_v10, %v3693_v19  ;;  %v4477_v43 = vrot.slane %v4475_v4, 6  ;;  %v4425_v19 = vld [vmem:[#allocation2 + $0x18] sm:$0xe]  ;;  %v4102_v4 = vld [vmem:[#allocation2 + $0x14] sm:$0x1] }
 0x570   :  { %v1762_v15 = vpop.f32.mrf.mxu1  ;;  %v4493_v41 = vshll.u32 %v4425_v19, 16 }
 0x571   :  { %3374 = vmatmul.bf16.gmra.mxu2 %v3282_v8  ;;  %v2874_v8 = vor.u32 %v2873_v44, %v2870_v42  ;;  %v2951_v44 = vunpack.c.l.b16 %v2902_v53  ;;  %v4484_v53 = vshll.u32 %v4424_v16, 16  ;;  %v4474_v20 = vrot.slane %v4472_v9, 5  ;;  %v4100_v9 = vld [vmem:[#allocation2 + $0xc] sm:$0x1] }
 0x573   :  { %v2875_v18 = vrot.slane %v2874_v8, 4  ;;  %4347 = vmatpush.bf16.msra.mxu2 %v15584_v51  ;;  %v3226_v8 = vrot.slane %v3128_v37, 6  ;;  %v4478_v57 = vor.u32 %v4477_v43, %v4474_v20  ;;  %v4169_v20 = vrot.slane %v4102_v4, 5 }
 0x574   :  { %3054 = vmatmul.bf16.gmra.mxu1 %v2958_v23  ;;  %v4421_v23 = vld [vmem:[#allocation2 + $0x8] sm:$0xe] }
 0x575   :  { %v2884_v42 = vsel %vm16811_vm8, %v2875_v18, %v2883_v48  ;;  %v4454_v62 = vshrl.u32 %v4421_v23, 16  ;;  %v4457_v46 = vshll.u32 %v4421_v23, 16  ;;  %v3703_v48 = vrot.slane %v3702_v50, 4 }
 0x576   :  { %v17012_v30 = vpop.f32.mrf.mxu3  ;;  %v4481_v18 = vshrl.u32 %v4424_v16, 16  ;;  %v3710_v23 = vshrl.u32 %v3653_v45, 16 }
 0x577   :  { %v4456_v5 = vrot.slane %v4454_v62, 5  ;;  %v4459_v29 = vrot.slane %v4457_v46, 6  ;;  %v4465_v62 = vrot.slane %v4463_v33, 5  ;;  %v4486_v46 = vrot.slane %v4484_v53, 6  ;;  %v4426_v53 = vld [vmem:[#allocation2 + $0x1c] sm:$0x3] }
 0x578   :  { %v4483_v21 = vrot.slane %v4481_v18, 5  ;;  %v3726_v33 = vrot.slane %v3724_v2, 4 }
 0x579   :  { %v4460_v32 = vor.u32 %v4459_v29, %v4456_v5  ;;  %v4490_v29 = vshrl.u32 %v4425_v19, 16  ;;  %v19764_v19 = vld [vmem:[#allocation8_spill] sm:$0xff] }
 0x57a   :  { %3606 = vmatmul.bf16.gmra.mxu3 %v13411_v3  ;;  %v3125_v3 = vld [vmem:[#allocation2 + $0x90] sm:$0xc] }
 0x57b   :  { %v2213_v7 = vpop.f32.mrf.mxu2  ;;  %v13318_v51 = vrot.slane %v3125_v3, 10 }
 0x57c   :  { %v17015_v24 = vadd.f32 %v2213_v7, %v16977_v35  ;;  %v2950_v35 = vunpack.c.l.b16 %v2884_v42  ;;  %v13319_v7 = vrot.slane %v3127_v56, 10  ;;  %v4099_v56 = vld [vmem:[#allocation2 + $0x8] sm:$0xe] }
 0x57d   :  { %v3223_v50 = vsel %vm16824_vm11, %v13318_v51, %v3222_v25  ;;  %v13496_v18 = vrot.slane %v4099_v56, 9 }
 0x57e   :  { %v2959_v34 = vpack.c.b16 %v2951_v44, %v2950_v35  ;;  %v17028_v60 = vpop.f32.mrf.mxu3  ;;  %v3227_v42 = vsel %vm16824_vm11, %v13319_v7, %v3226_v8  ;;  %v3708_v44 = vsel %vm16317_vm5, %v3703_v48, %v3707_v0  ;;  %v4468_v35 = vrot.slane %v4466_v55, 6  ;;  %v4101_v48 = vld [vmem:[#allocation2 + $0x10] sm:$0xe] }
 0x57f   :  { %v3276_v16 = vunpack.c.l.b16 %v3227_v42  ;;  %v17040_v0 = vadd.f32 %v16903_v28, %v16888_v13  ;;  %v3712_v8 = vrot.slane %v3710_v23, 4  ;;  %v3729_v55 = vrot.slane %v3727_v63, 5  ;;  %v4427_v23 = vld [vmem:[#allocation2 + $0x20] sm:$0xe]  ;;  %v3654_v42 = vld [vmem:[#allocation2 + $0x1c] sm:$0x1] }
 0x580   :  { %v3939_v3 = vunpack.c.l.b16 %v3708_v44  ;;  %v4469_v25 = vor.u32 %v4468_v35, %v4465_v62  ;;  %v4487_v7 = vor.u32 %v4486_v46, %v4483_v21  ;;  %v4165_v28 = vrot.slane %v4100_v9, 5 }
 0x581   :  { %3379 = vmatmul.bf16.gmra.mxu2 %v3283_v17  ;;  %v17022_v58 = vpop.f32.mrf.mxu1  ;;  %v13414_v17 = vld [vmem:[#allocation2 + $0x98] sm:$0xf]  ;;  %v13497_v51 = vrot.slane %v4101_v48, 9  ;;  %v3730_v63 = vor.u32 %v3729_v55, %v3726_v33  ;;  %v4495_v44 = vrot.slane %v4493_v41, 6  ;;  %v4502_v62 = vshll.u32 %v4426_v53, 16 }
 0x582   :  { %v13415_v10 = vor.u32 %v15567_v54, %v13414_v17  ;;  %v4492_v17 = vrot.slane %v4490_v29, 5  ;;  %v4508_v21 = vshrl.u32 %v4427_v23, 16  ;;  %v4511_v46 = vshll.u32 %v4427_v23, 16  ;;  %v4428_v33 = vld [vmem:[#allocation2 + $0x24] sm:$0x3] }
 0x583   :  { %v2215_v22 = vpop.f32.mrf.mxu2  ;;  %v3719_v56 = vshll.u32 %v3654_v42, 16  ;;  %v4504_v48 = vrot.slane %v4502_v62, 6  ;;  %v4104_v42 = vld [vmem:[#allocation2 + $0x1c] sm:$0x1] }
 0x584   :  { %v17024_v52 = vadd.f32 %v2215_v22, %v1762_v15  ;;  %3059 = vmatmul.bf16.gmra.mxu1 %v2959_v34  ;;  %v3713_v15 = vshll.u32 %v3653_v45, 16  ;;  %v3938_v34 = vunpack.c.l.b16 %v3694_v14  ;;  %v3656_v22 = vld [vmem:[#allocation2 + $0x24] sm:$0x1]  ;;  %v3275_v45 = vunpack.c.l.b16 %v3223_v50 }
 0x585   :  { %v4461_v14 = vrot.slane %v4460_v32, 4  ;;  %v3733_v43 = vshll.u32 %v3656_v22, 16  ;;  %v4499_v32 = vshrl.u32 %v4426_v53, 16  ;;  %v4513_v53 = vrot.slane %v4511_v46, 6 }
 0x586   :  { %v3715_v5 = vrot.slane %v3713_v15, 5  ;;  %v3284_v13 = vpack.c.b16 %v3276_v16, %v3275_v45  ;;  %v4479_v15 = vrot.slane %v4478_v57, 4  ;;  %v4170_v57 = vsel %vm16301_vm4, %v13497_v51, %v4169_v20 }
 0x587   :  { %v3735_v9 = vrot.slane %v3733_v43, 5  ;;  %v4470_v22 = vsel %vm16811_vm8, %v4461_v14, %v4469_v25  ;;  %v4496_v45 = vor.u32 %v4495_v44, %v4492_v17  ;;  %v4261_v41 = vunpack.c.l.b16 %v4170_v57 }
 0x588   :  { %v3716_v2 = vor.u32 %v3715_v5, %v3712_v8  ;;  %v4488_v50 = vsel %vm16811_vm8, %v4479_v15, %v4487_v7  ;;  %v3731_v5 = vrot.slane %v3730_v63, 4  ;;  %v4510_v7 = vrot.slane %v4508_v21, 5 }
 0x589   :  { %v17034_v37 = vpop.f32.mrf.mxu1  ;;  %v4775_v29 = vunpack.c.l.b16 %v4488_v50  ;;  %v3721_v14 = vrot.slane %v3719_v56, 5  ;;  %v4774_v20 = vunpack.c.l.b16 %v4470_v22  ;;  %v4497_v15 = vrot.slane %v4496_v45, 4  ;;  %v4429_v50 = vld [vmem:[#allocation2 + $0x28] sm:$0xe]  ;;  %v15607_v45 = vld [vmem:[%s19718_s3 + $0x278] sm:$0xff] }
 0x58a   :  { %3611 = vmatmul.bf16.gmra.mxu3 %v13415_v10  ;;  %v3954_v10 = vpack.c.b16 %v3939_v3, %v3938_v34  ;;  %v4166_v34 = vsel %vm16301_vm4, %v13496_v18, %v4165_v28  ;;  %v3717_v8 = vrot.slane %v3716_v2, 4  ;;  %v4501_v3 = vrot.slane %v4499_v32, 5  ;;  %v3659_v2 = vld [vmem:[#allocation2 + $0x30] sm:$0xf]  ;;  %5176 = vmatpush.bf16.msrb.mxu1 %v15607_v45 }
 0x58b   :  { %v3736_v25 = vsel %vm16317_vm5, %v3731_v5, %v3735_v9  ;;  %v4517_v18 = vshrl.u32 %v4428_v33, 16  ;;  %v4520_v28 = vshll.u32 %v4428_v33, 16  ;;  %v4260_v43 = vunpack.c.l.b16 %v4166_v34 }
 0x58c   :  { %v3722_v23 = vsel %vm16317_vm5, %v3717_v8, %v3721_v14  ;;  %v4505_v51 = vor.u32 %v4504_v48, %v4501_v3  ;;  %v4790_v17 = vpack.c.b16 %v4775_v29, %v4774_v20  ;;  %v3941_v32 = vunpack.c.l.b16 %v3736_v25  ;;  %v4430_v3 = vld [vmem:[#allocation2 + $0x2c] sm:$0x3] }
 0x58d   :  { %v17042_v54 = vpop.f32.mrf.mxu3  ;;  %v4276_v44 = vpack.c.b16 %v4261_v41, %v4260_v43  ;;  %v4514_v62 = vor.u32 %v4513_v53, %v4510_v7  ;;  %v4519_v21 = vrot.slane %v4517_v18, 5  ;;  %v4522_v46 = vrot.slane %v4520_v28, 6  ;;  %v3660_v28 = vld [vmem:[#allocation2 + $0x34] sm:$0x1] }
 0x58e   :  { %v4173_v22 = vrot.slane %v4104_v42, 5  ;;  %v3752_v34 = vshrl.u32 %v3659_v2, 16  ;;  %v3755_v8 = vshll.u32 %v3659_v2, 16  ;;  %v17071_v33 = vsel %vm16811_vm8, %v4497_v15, %v4505_v51  ;;  %v3658_v15 = vld [vmem:[#allocation2 + $0x2c] sm:$0x1] }
 0x58f   :  { %v4526_v48 = vshrl.u32 %v4429_v50, 16  ;;  %v4529_v29 = vshll.u32 %v4429_v50, 16  ;;  %v4515_v41 = vrot.slane %v4514_v62, 4  ;;  %v4535_v2 = vshrl.u32 %v4430_v3, 16  ;;  %v4432_v62 = vld [vmem:[#allocation2 + $0x34] sm:$0x3] }
 0x590   :  { %v3754_v51 = vrot.slane %v3752_v34, 4  ;;  %v3757_v42 = vrot.slane %v3755_v8, 5  ;;  %v4553_v45 = vshrl.u32 %v4432_v62, 16 }
 0x591   :  { %3384 = vmatmul.bf16.gmra.mxu2 %v3284_v13  ;;  %v3025_v35 = vpop.f32.mrf.mxu1 }
 0x592   :  { %v17047_v16 = vadd.f32 %v3025_v35, %v19764_v19  ;;  %v4103_v35 = vld [vmem:[#allocation2 + $0x18] sm:$0xe]  ;;  %v4106_v19 = vld [vmem:[#allocation2 + $0x24] sm:$0x1]  ;;  %v3758_v8 = vor.u32 %v3757_v42, %v3754_v51  ;;  %v4110_v42 = vld [vmem:[#allocation2 + $0x34] sm:$0x1] }
 0x593   :  { %v13498_v7 = vrot.slane %v4103_v35, 9  ;;  %v4177_v14 = vrot.slane %v4106_v19, 5  ;;  %v4528_v35 = vrot.slane %v4526_v48, 5  ;;  %v19766_v48 = vld [vmem:[#allocation9_spill] sm:$0xff] }
 0x594   :  { %v2218_v4 = vpop.f32.mrf.mxu2  ;;  %4026 = vmatmul.bf16.vlgmr.msra.gmra.mxu1 %v3954_v10  ;;  %v4105_v10 = vld [vmem:[#allocation2 + $0x20] sm:$0xe] }
 0x595   :  { %v17056_v55 = vadd.f32 %v2218_v4, %v17022_v58  ;;  %v17058_v13 = vpop.f32.mrf.mxu3  ;;  %v3657_v58 = vld [vmem:[#allocation2 + $0x28] sm:$0xf]  ;;  %v3940_v4 = vunpack.c.l.b16 %v3722_v23  ;;  %v13499_v53 = vrot.slane %v4105_v10, 9  ;;  %v4776_v23 = vunpack.c.l.b16 %v17071_v33 }
 0x596   :  { %v3738_v57 = vshrl.u32 %v3657_v58, 16  ;;  %v3741_v56 = vshll.u32 %v3657_v58, 16  ;;  %v4431_v58 = vld [vmem:[#allocation2 + $0x30] sm:$0xe]  ;;  %v4538_v10 = vshll.u32 %v4430_v3, 16  ;;  %v4537_v33 = vrot.slane %v4535_v2, 5 }
 0x597   :  { %v3955_v18 = vpack.c.b16 %v3941_v32, %v3940_v4  ;;  %v4531_v32 = vrot.slane %v4529_v29, 6  ;;  %v4544_v19 = vshrl.u32 %v4431_v58, 16  ;;  %v4556_v3 = vshll.u32 %v4432_v62, 16  ;;  %v19767_v29 = vld [vmem:[#allocation10_spill] sm:$0xff] }
 0x598   :  { %v3740_v20 = vrot.slane %v3738_v57, 4  ;;  %v3743_v43 = vrot.slane %v3741_v56, 5  ;;  %v4547_v57 = vshll.u32 %v4431_v58, 16  ;;  %v19765_v56 = vld [vmem:[#allocation17_spill] sm:$0xff]  ;;  %v3759_v2 = vrot.slane %v3758_v8, 4 }
 0x599   :  { %v17064_v63 = vpop.f32.mrf.mxu1  ;;  %v4555_v62 = vrot.slane %v4553_v45, 5 }
 0x59a   :  { %4862 = vmatmul.bf16.vlgmr.msra.gmra.mxu3 %v4790_v17  ;;  %v17081_v17 = vsel %vm16301_vm4, %v13498_v7, %v4173_v22  ;;  %v3744_v4 = vor.u32 %v3743_v43, %v3740_v20  ;;  %v3747_v22 = vshll.u32 %v3658_v15, 16  ;;  %v2224_v7 = vadd.f32 %v19767_v29, %v19766_v48 }
 0x59b   :  { %v4262_v43 = vunpack.c.l.b16 %v17081_v17  ;;  %v3661_v17 = vld [vmem:[#allocation2 + $0x38] sm:$0xf] }
 0x59c   :  { %v2220_v9 = vpop.f32.mrf.mxu2  ;;  %v3745_v51 = vrot.slane %v3744_v4, 4 }
 0x59d   :  { %v17067_v5 = vadd.f32 %v2220_v9, %v17034_v37  ;;  %v17076_v25 = vpop.f32.mrf.mxu3  ;;  %v4523_v37 = vor.u32 %v4522_v46, %v4519_v21  ;;  %v17085_v21 = vsel %vm16301_vm4, %v13499_v53, %v4177_v14  ;;  %v3761_v46 = vshll.u32 %v3660_v28, 16 }
 0x59e   :  { %v4532_v14 = vor.u32 %v4531_v32, %v4528_v35  ;;  %v4540_v28 = vrot.slane %v4538_v10, 6  ;;  %v4263_v15 = vunpack.c.l.b16 %v17085_v21  ;;  %v4558_v35 = vrot.slane %v4556_v3, 6  ;;  %v4107_v32 = vld [vmem:[#allocation2 + $0x28] sm:$0xe]  ;;  %v3663_v3 = vld [vmem:[#allocation2 + $0x40] sm:$0xf] }
 0x59f   :  { %v19768_v10 = vld [vmem:[#allocation15_spill] sm:$0xff] }
 0x5a1   :  { %4348 = vmatmul.bf16.vlgmr.msra.gmra.mxu2 %v4276_v44  ;;  %v3030_v50 = vpop.f32.mrf.mxu1  ;;  %v4524_v44 = vsel %vm16811_vm8, %v4515_v41, %v4523_v37  ;;  %v4549_v41 = vrot.slane %v4547_v57, 6  ;;  %v4108_v37 = vld [vmem:[#allocation2 + $0x2c] sm:$0x1]  ;;  %v4541_v57 = vor.u32 %v4540_v28, %v4537_v33  ;;  %v13500_v33 = vrot.slane %v4107_v32, 9 }
 0x5a2   :  { %v17088_v9 = vadd.f32 %v3030_v50, %v19765_v56  ;;  %v4777_v58 = vunpack.c.l.b16 %v4524_v44  ;;  %v3763_v50 = vrot.slane %v3761_v46, 5  ;;  %v4546_v56 = vrot.slane %v4544_v19, 5  ;;  %v4109_v44 = vld [vmem:[#allocation2 + $0x30] sm:$0xe] }
 0x5a3   :  { %v2549_v46 = vadd.f32 %v19768_v10, %v2224_v7  ;;  %v4533_v19 = vrot.slane %v4532_v14, 4  ;;  %v4559_v7 = vor.u32 %v4558_v35, %v4555_v62  ;;  %v13501_v14 = vrot.slane %v4109_v44, 9  ;;  %v4435_v35 = vld [vmem:[#allocation2 + $0x40] sm:$0xe] }
 0x5a4   :  { %v3350_v34 = vpop.f32.mrf.mxu2  ;;  %4031 = vmatmul.bf16.gmra.mxu1 %v3955_v18  ;;  %v3749_v18 = vrot.slane %v3747_v22, 5  ;;  %v4791_v21 = vpack.c.b16 %v4777_v58, %v4776_v23  ;;  %v3764_v4 = vsel %vm16317_vm5, %v3759_v2, %v3763_v50  ;;  %v2234_v22 = vadd.f32 %v16990_v27, %v16947_v47  ;;  %v4433_v58 = vld [vmem:[#allocation2 + $0x38] sm:$0xe] }
 0x5a5   :  { %v17095_v53 = vadd.f32 %v3350_v34, %v17047_v16  ;;  %v17097_v20 = vpop.f32.mrf.mxu3  ;;  %v17103_v16 = vadd.f32 %v16959_v61, %v16934_v40  ;;  %v4181_v34 = vrot.slane %v4108_v37, 5  ;;  %v4550_v40 = vor.u32 %v4549_v41, %v4546_v56 }
 0x5a6   :  { %v4185_v61 = vrot.slane %v4110_v42, 5  ;;  %v3066_v8 = vadd.f32 %v17064_v63, %v2549_v46  ;;  %v3750_v45 = vsel %vm16317_vm5, %v3745_v51, %v3749_v18  ;;  %v3766_v23 = vshrl.u32 %v3661_v17, 16  ;;  %v15606_v63 = vld [vmem:[%s19718_s3 + $0x270] sm:$0xff] }
 0x5a7   :  { %v3769_v28 = vshll.u32 %v3661_v17, 16  ;;  %v3943_v56 = vunpack.c.l.b16 %v3764_v4  ;;  %v4542_v47 = vsel %vm16811_vm8, %v4533_v19, %v4541_v57  ;;  %v4182_v27 = vsel %vm16301_vm4, %v13500_v33, %v4181_v34  ;;  %5177 = vmatpush.bf16.msrb.mxu1 %v15606_v63  ;;  %v3662_v19 = vld [vmem:[#allocation2 + $0x3c] sm:$0x1]  ;;  %v19771_v63 = vld [vmem:[#allocation11_spill] sm:$0xff] }
 0x5a8   :  { %v4551_v41 = vrot.slane %v4550_v40, 4  ;;  %v4186_v37 = vsel %vm16301_vm4, %v13501_v14, %v4185_v61  ;;  %v3780_v51 = vshrl.u32 %v3663_v3, 16  ;;  %v3783_v42 = vshll.u32 %v3663_v3, 16  ;;  %v4434_v33 = vld [vmem:[#allocation2 + $0x3c] sm:$0x3]  ;;  %v19770_v3 = vld [vmem:[#allocation20_spill] sm:$0xff] }
 0x5a9   :  { %v17106_v48 = vpop.f32.mrf.mxu1  ;;  %v4277_v2 = vpack.c.b16 %v4263_v15, %v4262_v43  ;;  %v3942_v62 = vunpack.c.l.b16 %v3750_v45  ;;  %v4562_v32 = vshrl.u32 %v4433_v58, 16  ;;  %v17129_v10 = vadd.f32 %v16992_v49, %v2234_v22  ;;  %v3664_v43 = vld [vmem:[#allocation2 + $0x44] sm:$0x1] }
 0x5aa   :  { %4867 = vmatmul.bf16.gmra.mxu3 %v4791_v21  ;;  %v4560_v46 = vsel %vm16811_vm8, %v4551_v41, %v4559_v7  ;;  %v3768_v57 = vrot.slane %v3766_v23, 4  ;;  %v3771_v44 = vrot.slane %v3769_v28, 5  ;;  %v4565_v34 = vshll.u32 %v4433_v58, 16  ;;  %v4436_v15 = vld [vmem:[#allocation2 + $0x44] sm:$0x3]  ;;  %v19772_v41 = vld [vmem:[#allocation12_spill] sm:$0xff] }
 0x5ab   :  { %v3956_v17 = vpack.c.b16 %v3943_v56, %v3942_v62  ;;  %v4778_v21 = vunpack.c.l.b16 %v4542_v47  ;;  %v4264_v4 = vunpack.c.l.b16 %v4182_v27  ;;  %v4265_v40 = vunpack.c.l.b16 %v4186_v37 }
 0x5ac   :  { %v3352_v29 = vpop.f32.mrf.mxu2  ;;  %v3785_v45 = vrot.slane %v3783_v42, 5  ;;  %v4580_v49 = vshrl.u32 %v4435_v35, 16  ;;  %v4583_v22 = vshll.u32 %v4435_v35, 16  ;;  %v4779_v7 = vunpack.c.l.b16 %v4560_v46 }
 0x5ad   :  { %v17115_v50 = vadd.f32 %v3352_v29, %v3066_v8  ;;  %v17126_v18 = vpop.f32.mrf.mxu3  ;;  %v3782_v8 = vrot.slane %v3780_v51, 4  ;;  %v3775_v14 = vshll.u32 %v3662_v19, 16  ;;  %v4564_v23 = vrot.slane %v4562_v32, 5  ;;  %v3665_v19 = vld [vmem:[#allocation2 + $0x68] sm:$0xf] }
 0x5ae   :  { %19769 = vst [vmem:[#allocation23_spill] sm:$0xff] %v17126_v18  ;;  %v3772_v58 = vor.u32 %v3771_v44, %v3768_v57  ;;  %v3789_v56 = vshll.u32 %v3664_v43, 16  ;;  %v4567_v47 = vrot.slane %v4565_v34, 6  ;;  %v4589_v27 = vshrl.u32 %v4436_v15, 16  ;;  %v4111_v43 = vld [vmem:[#allocation2 + $0x38] sm:$0xe] }
 0x5af   :  { %v2226_v37 = vadd.f32 %v19772_v41, %v19771_v63  ;;  %v4571_v42 = vshrl.u32 %v4434_v33, 16  ;;  %v3786_v62 = vor.u32 %v3785_v45, %v3782_v8  ;;  %v4574_v35 = vshll.u32 %v4434_v33, 16 }
 0x5b0   :  { %v4585_v46 = vrot.slane %v4583_v22, 6  ;;  %v4792_v57 = vpack.c.b16 %v4779_v7, %v4778_v21  ;;  %v4278_v44 = vpack.c.b16 %v4265_v40, %v4264_v4  ;;  %v3777_v34 = vrot.slane %v3775_v14, 5 }
 0x5b1   :  { %4353 = vmatmul.bf16.gmra.mxu2 %v4277_v2  ;;  %v3035_v61 = vpop.f32.mrf.mxu1  ;;  %v4592_v2 = vshll.u32 %v4436_v15, 16  ;;  %v3791_v18 = vrot.slane %v3789_v56, 5  ;;  %v4568_v63 = vor.u32 %v4567_v47, %v4564_v23  ;;  %v4591_v41 = vrot.slane %v4589_v27, 5  ;;  %v4112_v15 = vld [vmem:[#allocation2 + $0x3c] sm:$0x1] }
 0x5b2   :  { %v17134_v29 = vadd.f32 %v3035_v61, %v19770_v3  ;;  %v4582_v61 = vrot.slane %v4580_v49, 5  ;;  %v3773_v3 = vrot.slane %v3772_v58, 4  ;;  %v3794_v8 = vshrl.u32 %v3665_v19, 16  ;;  %v4437_v23 = vld [vmem:[#allocation2 + $0x68] sm:$0xe] }
 0x5b3   :  { %v3797_v45 = vshll.u32 %v3665_v19, 16  ;;  %v3787_v49 = vrot.slane %v3786_v62, 4  ;;  %v4573_v22 = vrot.slane %v4571_v42, 5  ;;  %v13502_v40 = vrot.slane %v4111_v43, 9  ;;  %v3668_v43 = vld [vmem:[#allocation2 + $0x74] sm:$0x1] }
 0x5b4   :  { %v3355_v28 = vpop.f32.mrf.mxu2  ;;  %4036 = vmatmul.bf16.gmra.mxu1 %v3956_v17  ;;  %v4586_v21 = vor.u32 %v4585_v46, %v4582_v61  ;;  %v3778_v56 = vsel %vm16317_vm5, %v3773_v3, %v3777_v34  ;;  %v4569_v27 = vrot.slane %v4568_v63, 4  ;;  %v15605_v46 = vld [vmem:[%s19718_s3 + $0x268] sm:$0xff]  ;;  %v4598_v34 = vshrl.u32 %v4437_v23, 16 }
 0x5b5   :  { %v17139_v51 = vadd.f32 %v3355_v28, %v17088_v9  ;;  %v17141_v32 = vpop.f32.mrf.mxu3  ;;  %v3667_v9 = vld [vmem:[#allocation2 + $0x70] sm:$0xf]  ;;  %v19775_v28 = vld [vmem:[#allocation19_spill] sm:$0xff]  ;;  %v3792_v47 = vsel %vm16317_vm5, %v3787_v49, %v3791_v18  ;;  %v3799_v61 = vrot.slane %v3797_v45, 5  ;;  %v4601_v3 = vshll.u32 %v4437_v23, 16  ;;  %5178 = vmatpush.bf16.msrb.mxu1 %v15605_v46 }
 0x5b6   :  { %19774 = vst [vmem:[#allocation25_spill] sm:$0xff] %v17141_v32  ;;  %v2551_v17 = vadd.f32 %v19775_v28, %v2226_v37  ;;  %v4576_v32 = vrot.slane %v4574_v35, 6  ;;  %v3808_v7 = vshrl.u32 %v3667_v9, 16  ;;  %v3811_v14 = vshll.u32 %v3667_v9, 16  ;;  %v4113_v37 = vld [vmem:[#allocation2 + $0x40] sm:$0xe] }
 0x5b7   :  { %19773 = vst [vmem:[#allocation16_spill] sm:$0xff] %v17139_v51  ;;  %v4594_v51 = vrot.slane %v4592_v2, 6  ;;  %v4189_v2 = vrot.slane %v4112_v15, 5  ;;  %v4114_v35 = vld [vmem:[#allocation2 + $0x44] sm:$0x1]  ;;  %v3945_v18 = vunpack.c.l.b16 %v3792_v47  ;;  %v13503_v45 = vrot.slane %v4113_v37, 9 }
 0x5b8   :  { %v3068_v4 = vadd.f32 %v17106_v48, %v2551_v17  ;;  %v3796_v48 = vrot.slane %v3794_v8, 4  ;;  %v4577_v19 = vor.u32 %v4576_v32, %v4573_v22  ;;  %v3810_v63 = vrot.slane %v3808_v7, 4  ;;  %v4438_v17 = vld [vmem:[#allocation2 + $0x6c] sm:$0x3]  ;;  %v4439_v7 = vld [vmem:[#allocation2 + $0x70] sm:$0xe] }
 0x5b9   :  { %v17144_v33 = vpop.f32.mrf.mxu1  ;;  %v4595_v62 = vor.u32 %v4594_v51, %v4591_v41  ;;  %v3813_v28 = vrot.slane %v3811_v14, 5  ;;  %v17160_v51 = vadd.f32 %v17012_v30, %v17015_v24  ;;  %v3944_v41 = vunpack.c.l.b16 %v3778_v56  ;;  %v3666_v49 = vld [vmem:[#allocation2 + $0x6c] sm:$0x1] }
 0x5ba   :  { %4872 = vmatmul.bf16.gmra.mxu3 %v4792_v57  ;;  %v4587_v57 = vrot.slane %v4586_v21, 4  ;;  %v17164_v15 = vsel %vm16301_vm4, %v13502_v40, %v4189_v2  ;;  %v4193_v32 = vrot.slane %v4114_v35, 5  ;;  %v3800_v22 = vor.u32 %v3799_v61, %v3796_v48  ;;  %v19777_v2 = vld [vmem:[#allocation13_spill] sm:$0xff] }
 0x5bb   :  { %v3817_v21 = vshll.u32 %v3668_v43, 16  ;;  %v4600_v14 = vrot.slane %v4598_v34, 5  ;;  %v4603_v23 = vrot.slane %v4601_v3, 6  ;;  %v4607_v30 = vshrl.u32 %v4438_v17, 16 }
 0x5bc   :  { %v3357_v58 = vpop.f32.mrf.mxu2  ;;  %v4596_v8 = vsel %vm16811_vm8, %v4587_v57, %v4595_v62  ;;  %v4610_v24 = vshll.u32 %v4438_v17, 16  ;;  %v3957_v40 = vpack.c.b16 %v3945_v18, %v3944_v41  ;;  %v3814_v47 = vor.u32 %v3813_v28, %v3810_v63  ;;  %v19778_v62 = vld [vmem:[#allocation14_spill] sm:$0xff]  ;;  %v4440_v57 = vld [vmem:[#allocation2 + $0x74] sm:$0x3] }
 0x5bd   :  { %v17151_v42 = vadd.f32 %v3357_v58, %v3068_v4  ;;  %v17156_v9 = vpop.f32.mrf.mxu3  ;;  %v19776_v58 = vld [vmem:[#allocation22_spill] sm:$0xff]  ;;  %v2228_v37 = vadd.f32 %v19778_v62, %v19777_v2  ;;  %v4781_v48 = vunpack.c.l.b16 %v4596_v8  ;;  %v4194_v61 = vsel %vm16301_vm4, %v13503_v45, %v4193_v32  ;;  %v19779_v45 = vld [vmem:[#allocation21_spill] sm:$0xff]  ;;  %v4116_v62 = vld [vmem:[#allocation2 + $0x6c] sm:$0x1] }
 0x5be   :  { %v3803_v46 = vshll.u32 %v3666_v49, 16  ;;  %v3819_v34 = vrot.slane %v3817_v21, 5  ;;  %v4616_v3 = vshrl.u32 %v4439_v7, 16  ;;  %v4619_v18 = vshll.u32 %v4439_v7, 16 }
 0x5bf   :  { %v3801_v17 = vrot.slane %v3800_v22, 4  ;;  %v4612_v63 = vrot.slane %v4610_v24, 6  ;;  %v3815_v41 = vrot.slane %v3814_v47, 4  ;;  %v4625_v8 = vshrl.u32 %v4440_v57, 16 }
 0x5c0   :  { %v17184_v32 = vadd.f32 %v17028_v60, %v17024_v52  ;;  %v3805_v21 = vrot.slane %v3803_v46, 5  ;;  %v4618_v7 = vrot.slane %v4616_v3, 5  ;;  %v4266_v2 = vunpack.c.l.b16 %v17164_v15  ;;  %v3671_v46 = vld [vmem:[#allocation2 + $0x80] sm:$0xf]  ;;  %v4115_v3 = vld [vmem:[#allocation2 + $0x68] sm:$0xe] }
 0x5c1   :  { %4358 = vmatmul.bf16.gmra.mxu2 %v4278_v44  ;;  %v3040_v4 = vpop.f32.mrf.mxu1  ;;  %v4578_v44 = vsel %vm16811_vm8, %v4569_v27, %v4577_v19  ;;  %v4604_v27 = vor.u32 %v4603_v23, %v4600_v14  ;;  %v4609_v19 = vrot.slane %v4607_v30, 5  ;;  %v3820_v22 = vsel %vm16317_vm5, %v3815_v41, %v3819_v34  ;;  %v3669_v23 = vld [vmem:[#allocation2 + $0x78] sm:$0xf]  ;;  %v4118_v15 = vld [vmem:[#allocation2 + $0x74] sm:$0x1] }
 0x5c2   :  { %v17169_v56 = vadd.f32 %v3040_v4, %v19776_v58  ;;  %v4628_v4 = vshll.u32 %v4440_v57, 16  ;;  %v4780_v49 = vunpack.c.l.b16 %v4578_v44  ;;  %v4267_v58 = vunpack.c.l.b16 %v4194_v61  ;;  %v4117_v41 = vld [vmem:[#allocation2 + $0x70] sm:$0xe] }
 0x5c3   :  { %v4621_v14 = vrot.slane %v4619_v18, 6  ;;  %v4605_v52 = vrot.slane %v4604_v27, 4  ;;  %v4613_v60 = vor.u32 %v4612_v63, %v4609_v19  ;;  %v2230_v57 = vadd.f32 %v16877_v39, %v16875_v31  ;;  %v15822_v31 = vld [vmem:[%s19720_s5 + $0x230] sm:$0xff] }
 0x5c4   :  { %v3360_v35 = vpop.f32.mrf.mxu2  ;;  %4041 = vmatmul.bf16.gmra.mxu1 %v3957_v40  ;;  %v1410_v40 = vld.sshfl [vmem:[#allocation1] sm:$0xff pattern:$0x75316420]  ;;  %v4793_v47 = vpack.c.b16 %v4781_v48, %v4780_v49  ;;  %v4630_v61 = vrot.slane %v4628_v4, 6  ;;  %v3947_v48 = vunpack.c.l.b16 %v3820_v22  ;;  %v3822_v18 = vshrl.u32 %v3669_v23, 16  ;;  %12088 = vmatpush.bf16.msrb.mxu0 %v15822_v31 }
 0x5c5   :  { %v17178_v43 = vadd.f32 %v3360_v35, %v17134_v29  ;;  %v17180_v28 = vpop.f32.mrf.mxu3  ;;  %v2553_v29 = vadd.f32 %v19779_v45, %v2228_v37  ;;  %v1509_v30 = vpack.c.bf16 %v1410_v40, %v1410_v40  ;;  %v3806_v37 = vsel %vm16317_vm5, %v3801_v17, %v3805_v21  ;;  %v1411_v49 = vld.sshfl [vmem:[#allocation1 + $0x10] sm:$0xff pattern:$0x75316420] }
 0x5c6   :  { %v4627_v35 = vrot.slane %v4625_v8, 5  ;;  %v3825_v27 = vshll.u32 %v3669_v23, 16  ;;  %v4622_v63 = vor.u32 %v4621_v14, %v4618_v7  ;;  %v4197_v17 = vrot.slane %v4116_v62, 5  ;;  %v15604_v8 = vld [vmem:[%s19718_s3 + $0x260] sm:$0xff] }
 0x5c7   :  { %v3070_v44 = vadd.f32 %v17144_v33, %v2553_v29  ;;  %1557 = vst [vmem:[#allocation2 + $0xb0] sm:$0xf] %v1509_v30  ;;  %v4279_v33 = vpack.c.b16 %v4267_v58, %v4266_v2  ;;  %v3946_v39 = vunpack.c.l.b16 %v3806_v37  ;;  %v17207_v4 = vsel %vm16811_vm8, %v4605_v52, %v4613_v60  ;;  %5179 = vmatpush.bf16.msrb.mxu1 %v15604_v8  ;;  %v4441_v7 = vld [vmem:[#allocation2 + $0x78] sm:$0xe]  ;;  %v4442_v52 = vld [vmem:[#allocation2 + $0x7c] sm:$0x3] }
 0x5c8   :  { %v3836_v45 = vshrl.u32 %v3671_v46, 16  ;;  %v3839_v29 = vshll.u32 %v3671_v46, 16  ;;  %v4631_v21 = vor.u32 %v4630_v61, %v4627_v35  ;;  %v13504_v40 = vrot.slane %v4115_v3, 9  ;;  %v3672_v61 = vld [vmem:[#allocation2 + $0x84] sm:$0x1] }
 0x5c9   :  { %v17189_v24 = vpop.f32.mrf.mxu1  ;;  %v4201_v22 = vrot.slane %v4118_v15, 5  ;;  %v1510_v14 = vpack.c.bf16 %v1411_v49, %v1411_v49  ;;  %v2555_v23 = vadd.f32 %v16895_v38, %v2230_v57  ;;  %v3958_v30 = vpack.c.b16 %v3947_v48, %v3946_v39  ;;  %v4443_v15 = vld [vmem:[#allocation2 + $0x80] sm:$0xe]  ;;  %v4444_v8 = vld [vmem:[#allocation2 + $0x84] sm:$0x3] }
 0x5ca   :  { %4877 = vmatmul.bf16.gmra.mxu3 %v4793_v47  ;;  %v3670_v47 = vld [vmem:[#allocation2 + $0x7c] sm:$0x1]  ;;  %v3824_v2 = vrot.slane %v3822_v18, 4  ;;  %v3827_v62 = vrot.slane %v3825_v27, 5  ;;  %v4623_v60 = vrot.slane %v4622_v63, 4  ;;  %v4198_v37 = vsel %vm16301_vm4, %v13504_v40, %v4197_v17 }
 0x5cb   :  { %v13505_v35 = vrot.slane %v4117_v41, 9  ;;  %1558 = vst [vmem:[#allocation2 + $0xb4] sm:$0x3] %v1510_v14  ;;  %v3841_v3 = vrot.slane %v3839_v29, 5  ;;  %v4634_v38 = vshrl.u32 %v4441_v7, 16  ;;  %v4637_v57 = vshll.u32 %v4441_v7, 16 }
 0x5cc   :  { %v3362_v34 = vpop.f32.mrf.mxu2  ;;  %v4632_v18 = vsel %vm16811_vm8, %v4623_v60, %v4631_v21  ;;  %v3828_v41 = vor.u32 %v3827_v62, %v3824_v2  ;;  %v3845_v17 = vshll.u32 %v3672_v61, 16  ;;  %v4643_v31 = vshrl.u32 %v4442_v52, 16 }
 0x5cd   :  { %v17197_v19 = vadd.f32 %v3362_v34, %v3070_v44  ;;  %v17209_v58 = vpop.f32.mrf.mxu3  ;;  %v4782_v44 = vunpack.c.l.b16 %v17207_v4  ;;  %v3838_v34 = vrot.slane %v3836_v45, 4  ;;  %v4202_v27 = vsel %vm16301_vm4, %v13505_v35, %v4201_v22 }
 0x5ce   :  { %v4646_v39 = vshll.u32 %v4442_v52, 16  ;;  %v2232_v4 = vadd.f32 %v16907_v1, %v16897_v26  ;;  %v4655_v29 = vshll.u32 %v4443_v15, 16  ;;  %v4783_v49 = vunpack.c.l.b16 %v4632_v18 }
 0x5cf   :  { %v3842_v21 = vor.u32 %v3841_v3, %v3838_v34  ;;  %v4636_v40 = vrot.slane %v4634_v38, 5  ;;  %v4639_v22 = vrot.slane %v4637_v57, 6  ;;  %v4268_v14 = vunpack.c.l.b16 %v4198_v37 }
 0x5d0   :  { %v4664_v2 = vshll.u32 %v4444_v8, 16  ;;  %v17231_v62 = vadd.f32 %v17042_v54, %v17056_v55  ;;  %v4269_v26 = vunpack.c.l.b16 %v4202_v27  ;;  %v3829_v1 = vrot.slane %v3828_v41, 4  ;;  %v17237_v27 = vld [vmem:[#allocation2 + $0x78] sm:$0xe] }
 0x5d1   :  { %4363 = vmatmul.bf16.gmra.mxu2 %v4279_v33  ;;  %v3045_v46 = vpop.f32.mrf.mxu1  ;;  %v3831_v33 = vshll.u32 %v3670_v47, 16  ;;  %v4661_v47 = vshrl.u32 %v4444_v8, 16  ;;  %v4645_v52 = vrot.slane %v4643_v31, 5  ;;  %v4648_v60 = vrot.slane %v4646_v39, 6  ;;  %v17241_v8 = vld [vmem:[#allocation2 + $0x7c] sm:$0x1] }
 0x5d2   :  { %v17216_v48 = vadd.f32 %v3045_v46, %v17040_v0  ;;  %v4652_v0 = vshrl.u32 %v4443_v15, 16  ;;  %v4657_v61 = vrot.slane %v4655_v29, 6  ;;  %v3673_v46 = vld [vmem:[#allocation2 + $0x88] sm:$0xf]  ;;  %v4794_v3 = vpack.c.b16 %v4783_v49, %v4782_v44  ;;  %v17243_v44 = vld [vmem:[#allocation2 + $0x80] sm:$0xe] }
 0x5d3   :  { %v3833_v15 = vrot.slane %v3831_v33, 5  ;;  %v3843_v37 = vrot.slane %v3842_v21, 4  ;;  %v4640_v38 = vor.u32 %v4639_v22, %v4636_v40  ;;  %v3072_v57 = vadd.f32 %v17189_v24, %v2555_v23  ;;  %v4445_v29 = vld [vmem:[#allocation2 + $0x88] sm:$0xe]  ;;  %v15631_v49 = vld [vmem:[%s19718_s3 + $0x2f8] sm:$0xff] }
 0x5d4   :  { %v3365_v63 = vpop.f32.mrf.mxu2  ;;  %4046 = vmatmul.bf16.gmra.mxu1 %v3958_v30  ;;  %v2557_v30 = vadd.f32 %v16926_v36, %v2232_v4  ;;  %v4654_v35 = vrot.slane %v4652_v0, 5  ;;  %v4663_v54 = vrot.slane %v4661_v47, 5  ;;  %v4666_v55 = vrot.slane %v4664_v2, 6  ;;  %v15603_v0 = vld [vmem:[%s19718_s3 + $0x258] sm:$0xff]  ;;  %5853 = vmatpush.bf16.msrb.mxu3 %v15631_v49 }
 0x5d5   :  { %v17225_v45 = vadd.f32 %v3365_v63, %v17169_v56  ;;  %v17227_v7 = vpop.f32.mrf.mxu3  ;;  %v3847_v56 = vrot.slane %v3845_v17, 5  ;;  %v3675_v63 = vld [vmem:[#allocation2 + $0x90] sm:$0xf]  ;;  %v4280_v36 = vpack.c.b16 %v4269_v26, %v4268_v14  ;;  %v3850_v33 = vshrl.u32 %v3673_v46, 16  ;;  %5180 = vmatpush.bf16.msrb.mxu1 %v15603_v0 }
 0x5d6   :  { %v3853_v31 = vshll.u32 %v3673_v46, 16  ;;  %v3834_v23 = vsel %vm16317_vm5, %v3829_v1, %v3833_v15  ;;  %v4649_v39 = vor.u32 %v4648_v60, %v4645_v52  ;;  %v4658_v4 = vor.u32 %v4657_v61, %v4654_v35  ;;  %v4122_v1 = vld [vmem:[#allocation2 + $0x84] sm:$0x1]  ;;  %v4446_v61 = vld [vmem:[#allocation2 + $0x8c] sm:$0x3] }
 0x5d7   :  { %v3848_v17 = vsel %vm16317_vm5, %v3843_v37, %v3847_v56  ;;  %v4641_v21 = vrot.slane %v4640_v38, 4  ;;  %v13506_v40 = vrot.slane %v17237_v27, 9  ;;  %v3864_v22 = vshrl.u32 %v3675_v63, 16  ;;  %v3676_v15 = vld [vmem:[#allocation2 + $0x94] sm:$0x1] }
 0x5d8   :  { %v3867_v14 = vshll.u32 %v3675_v63, 16  ;;  %v3949_v2 = vunpack.c.l.b16 %v3848_v17  ;;  %v4667_v26 = vor.u32 %v4666_v55, %v4663_v54  ;;  %v4205_v56 = vrot.slane %v17241_v8, 5  ;;  %v15623_v38 = vld [vmem:[%s19718_s3 + $0x2b8] sm:$0xff]  ;;  %v3674_v8 = vld [vmem:[#allocation2 + $0x8c] sm:$0x1] }
 0x5d9   :  { %v3047_v34 = vpop.f32.mrf.mxu1  ;;  %v17261_v52 = vadd.f32 %v17058_v13, %v17067_v5  ;;  %v3852_v60 = vrot.slane %v3850_v33, 4  ;;  %v3855_v35 = vrot.slane %v3853_v31, 5  ;;  %v4670_v46 = vshrl.u32 %v4445_v29, 16  ;;  %v15630_v13 = vld [vmem:[%s19718_s3 + $0x2f0] sm:$0xff]  ;;  %v4447_v63 = vld [vmem:[#allocation2 + $0x90] sm:$0xe]  ;;  %5403 = vmatpush.bf16.msrb.mxu2 %v15623_v38 }
 0x5da   :  { %v17235_v18 = vadd.f32 %v3047_v34, %v2557_v30  ;;  %4882 = vmatmul.bf16.gmra.mxu3 %v4794_v3  ;;  %v13507_v30 = vrot.slane %v17243_v44, 9  ;;  %v3948_v34 = vunpack.c.l.b16 %v3834_v23  ;;  %v4659_v3 = vrot.slane %v4658_v4, 4  ;;  %v4448_v44 = vld [vmem:[#allocation2 + $0x94] sm:$0x3] }
 0x5db   :  { %v4673_v37 = vshll.u32 %v4445_v29, 16  ;;  %v4209_v54 = vrot.slane %v4122_v1, 5  ;;  %v3866_v55 = vrot.slane %v3864_v22, 4  ;;  %v3869_v27 = vrot.slane %v3867_v14, 5  ;;  %5854 = vmatpush.bf16.msrb.mxu3 %v15630_v13  ;;  %v15622_v22 = vld [vmem:[%s19718_s3 + $0x2b0] sm:$0xff]  ;;  %v15629_v14 = vld [vmem:[%s19718_s3 + $0x2e8] sm:$0xff] }
 0x5dc   :  { %v3367_v41 = vpop.f32.mrf.mxu2  ;;  %v4668_v17 = vsel %vm16811_vm8, %v4659_v3, %v4667_v26  ;;  %v4679_v33 = vshrl.u32 %v4446_v61, 16  ;;  %v3856_v23 = vor.u32 %v3855_v35, %v3852_v60  ;;  %v3873_v4 = vshll.u32 %v3676_v15, 16  ;;  %v15628_v3 = vld [vmem:[%s19718_s3 + $0x2e0] sm:$0xff] }
 0x5dd   :  { %v17245_v24 = vadd.f32 %v3367_v41, %v3072_v57  ;;  %v17256_v47 = vpop.f32.mrf.mxu3  ;;  %v4650_v57 = vsel %vm16811_vm8, %v4641_v21, %v4649_v39  ;;  %v4672_v39 = vrot.slane %v4670_v46, 5  ;;  %v4682_v0 = vshll.u32 %v4446_v61, 16  ;;  %5404 = vmatpush.bf16.msrb.mxu2 %v15622_v22  ;;  %v3679_v22 = vld [vmem:[#allocation2 + $0xa0] sm:$0xf] }
 0x5de   :  { %v4688_v49 = vshrl.u32 %v4447_v63, 16  ;;  %v4691_v21 = vshll.u32 %v4447_v63, 16  ;;  %v3859_v26 = vshll.u32 %v3674_v8, 16  ;;  %v3870_v1 = vor.u32 %v3869_v27, %v3866_v55 }
 0x5df   :  { %v4697_v60 = vshrl.u32 %v4448_v44, 16  ;;  %v4206_v61 = vsel %vm16301_vm4, %v13506_v40, %v4205_v56  ;;  %v4700_v46 = vshll.u32 %v4448_v44, 16  ;;  %5855 = vmatpush.bf16.msrb.mxu3 %v15629_v14  ;;  %v17298_v15 = vadd.f32 %v17076_v25, %v17095_v53  ;;  %v15627_v14 = vld [vmem:[%s19718_s3 + $0x2d8] sm:$0xff] }
 0x5e0   :  { %v3875_v38 = vrot.slane %v3873_v4, 5  ;;  %v4681_v40 = vrot.slane %v4679_v33, 5  ;;  %v4684_v56 = vrot.slane %v4682_v0, 6  ;;  %v3857_v13 = vrot.slane %v3856_v23, 4 }
 0x5e1   :  { %4368 = vmatmul.bf16.gmra.mxu2 %v4280_v36  ;;  %v3050_v5 = vpop.f32.mrf.mxu1  ;;  %v3959_v36 = vpack.c.b16 %v3949_v2, %v3948_v34  ;;  %v4785_v2 = vunpack.c.l.b16 %v4668_v17  ;;  %v15621_v34 = vld [vmem:[%s19718_s3 + $0x2a8] sm:$0xff]  ;;  %v4693_v55 = vrot.slane %v4691_v21, 6  ;;  %v3871_v17 = vrot.slane %v3870_v1, 4  ;;  %v15620_v21 = vld [vmem:[%s19718_s3 + $0x2a0] sm:$0xff] }
 0x5e2   :  { %v17273_v41 = vadd.f32 %v3050_v5, %v17103_v16  ;;  %v4675_v16 = vrot.slane %v4673_v37, 6  ;;  %v4210_v37 = vsel %vm16301_vm4, %v13507_v30, %v4209_v54  ;;  %v4699_v8 = vrot.slane %v4697_v60, 5  ;;  %5405 = vmatpush.bf16.msrb.mxu2 %v15621_v34  ;;  %v15602_v30 = vld [vmem:[%s19718_s3 + $0x250] sm:$0xff] }
 0x5e3   :  { %v4271_v25 = vunpack.c.l.b16 %v4210_v37  ;;  %v4702_v53 = vrot.slane %v4700_v46, 6  ;;  %5856 = vmatpush.bf16.msrb.mxu3 %v15628_v3  ;;  %v4270_v33 = vunpack.c.l.b16 %v4206_v61  ;;  %v3876_v23 = vsel %vm16317_vm5, %v3871_v17, %v3875_v38  ;;  %5181 = vmatpush.bf16.msrb.mxu1 %v15602_v30  ;;  %v4125_v38 = vld [vmem:[#allocation2 + $0x90] sm:$0xe] }
 0x5e4   :  { %v3370_v31 = vpop.f32.mrf.mxu2  ;;  %4051 = vmatmul.bf16.gmra.mxu1 %v3959_v36  ;;  %v4676_v5 = vor.u32 %v4675_v16, %v4672_v39  ;;  %v3861_v36 = vrot.slane %v3859_v26, 5  ;;  %v4685_v4 = vor.u32 %v4684_v56, %v4681_v40  ;;  %v4123_v39 = vld [vmem:[#allocation2 + $0x88] sm:$0xe]  ;;  %v3892_v60 = vshrl.u32 %v3679_v22, 16  ;;  %v4126_v40 = vld [vmem:[#allocation2 + $0x94] sm:$0x1] }
 0x5e5   :  { %v17278_v29 = vadd.f32 %v3370_v31, %v17216_v48  ;;  %v17286_v35 = vpop.f32.mrf.mxu3  ;;  %v4784_v48 = vunpack.c.l.b16 %v4650_v57  ;;  %v4690_v57 = vrot.slane %v4688_v49, 5  ;;  %v3677_v31 = vld [vmem:[#allocation2 + $0x98] sm:$0xf]  ;;  %v4281_v46 = vpack.c.b16 %v4271_v25, %v4270_v33 }
 0x5e6   :  { %v3862_v0 = vsel %vm16317_vm5, %v3857_v13, %v3861_v36  ;;  %v4677_v16 = vrot.slane %v4676_v5, 4  ;;  %v3878_v26 = vshrl.u32 %v3677_v31, 16  ;;  %v3881_v1 = vshll.u32 %v3677_v31, 16  ;;  %5406 = vmatpush.bf16.msrb.mxu2 %v15620_v21  ;;  %v4449_v56 = vld [vmem:[#allocation2 + $0x98] sm:$0xe]  ;;  %v15626_v36 = vld [vmem:[%s19718_s3 + $0x2d0] sm:$0xff] }
 0x5e7   :  { %v4795_v63 = vpack.c.b16 %v4785_v2, %v4784_v48  ;;  %v4694_v49 = vor.u32 %v4693_v55, %v4690_v57  ;;  %v15601_v2 = vld [vmem:[%s19718_s3 + $0x248] sm:$0xff]  ;;  %v3895_v48 = vshll.u32 %v3679_v22, 16  ;;  %v3951_v34 = vunpack.c.l.b16 %v3876_v23  ;;  %5857 = vmatpush.bf16.msrb.mxu3 %v15627_v14 }
 0x5e8   :  { %v4703_v3 = vor.u32 %v4702_v53, %v4699_v8  ;;  %v13508_v37 = vrot.slane %v4123_v39, 9  ;;  %v3950_v13 = vunpack.c.l.b16 %v3862_v0  ;;  %v4686_v5 = vsel %vm16811_vm8, %v4677_v16, %v4685_v4  ;;  %5182 = vmatpush.bf16.msrb.mxu1 %v15601_v2  ;;  %v4451_v22 = vld [vmem:[#allocation2 + $0xa0] sm:$0xe]  ;;  %v15600_v4 = vld [vmem:[%s19718_s3 + $0x240] sm:$0xff] }
 0x5e9   :  { %v3052_v27 = vpop.f32.mrf.mxu1  ;;  %v4695_v57 = vrot.slane %v4694_v49, 4  ;;  %v3880_v8 = vrot.slane %v3878_v26, 4  ;;  %v3883_v25 = vrot.slane %v3881_v1, 5  ;;  %v3894_v53 = vrot.slane %v3892_v60, 4  ;;  %v4452_v49 = vld [vmem:[#allocation2 + $0xa4] sm:$0x3] }
 0x5ea   :  { %v17303_v44 = vadd.f32 %v3052_v27, %v17129_v10  ;;  %4887 = vmatmul.bf16.gmra.mxu3 %v4795_v63  ;;  %v3680_v27 = vld [vmem:[#allocation2 + $0xa4] sm:$0x1]  ;;  %v15619_v63 = vld [vmem:[%s19718_s3 + $0x298] sm:$0xff]  ;;  %v3897_v31 = vrot.slane %v3895_v48, 5  ;;  %v4217_v23 = vrot.slane %v4126_v40, 5  ;;  %v13509_v0 = vrot.slane %v4125_v38, 9 }
 0x5eb   :  { %v4704_v33 = vsel %vm16811_vm8, %v4695_v57, %v4703_v3  ;;  %5407 = vmatpush.bf16.msrb.mxu2 %v15619_v63  ;;  %5858 = vmatpush.bf16.msrb.mxu3 %v15626_v36  ;;  %v3901_v16 = vshll.u32 %v3680_v27, 16  ;;  %v4706_v21 = vshrl.u32 %v4449_v56, 16  ;;  %v4709_v14 = vshll.u32 %v4449_v56, 16  ;;  %v15618_v60 = vld [vmem:[%s19718_s3 + $0x290] sm:$0xff]  ;;  %v15625_v48 = vld [vmem:[%s19718_s3 + $0x2c8] sm:$0xff] }
 0x5ec   :  { %v3372_v54 = vpop.f32.mrf.mxu2  ;;  %v4724_v26 = vshrl.u32 %v4451_v22, 16  ;;  %v4727_v1 = vshll.u32 %v4451_v22, 16  ;;  %v3884_v3 = vor.u32 %v3883_v25, %v3880_v8  ;;  %v4450_v38 = vld [vmem:[#allocation2 + $0x9c] sm:$0x3]  ;;  %5183 = vmatpush.bf16.msrb.mxu1 %v15600_v4  ;;  %v4736_v57 = vshll.u32 %v4452_v49, 16 }
 0x5ed   :  { %v17311_v10 = vadd.f32 %v3372_v54, %v17235_v18  ;;  %v4124_v18 = vld [vmem:[#allocation2 + $0x8c] sm:$0x1]  ;;  %v17324_v61 = vpop.f32.mrf.mxu3  ;;  %v3960_v54 = vpack.c.b16 %v3951_v34, %v3950_v13  ;;  %v4787_v34 = vunpack.c.l.b16 %v4704_v33  ;;  %v1415_v40 = vld.sshfl [vmem:[#allocation1 + $0x20] sm:$0xff pattern:$0x75316420]  ;;  %v4733_v13 = vshrl.u32 %v4452_v49, 16 }
 0x5ee   :  { %v4213_v55 = vrot.slane %v4124_v18, 5  ;;  %v3678_v18 = vld [vmem:[#allocation2 + $0x9c] sm:$0x1]  ;;  %v1511_v27 = vpack.c.bf16 %v1415_v40, %v1415_v40  ;;  %v3903_v36 = vrot.slane %v3901_v16, 5  ;;  %v4711_v8 = vrot.slane %v4709_v14, 6 }
 0x5ef   :  { %5408 = vmatpush.bf16.msrb.mxu2 %v15618_v60  ;;  %5859 = vmatpush.bf16.msrb.mxu3 %v15625_v48  ;;  %v3887_v63 = vshll.u32 %v3678_v18, 16  ;;  %v4715_v25 = vshrl.u32 %v4450_v38, 16  ;;  %v4729_v22 = vrot.slane %v4727_v1, 6  ;;  %v4735_v49 = vrot.slane %v4733_v13, 5 }
 0x5f0   :  { %v4214_v2 = vsel %vm16301_vm4, %v13508_v37, %v4213_v55  ;;  %v4218_v37 = vsel %vm16301_vm4, %v13509_v0, %v4217_v23  ;;  %v15617_v55 = vld [vmem:[%s19718_s3 + $0x288] sm:$0xff]  ;;  %1559 = vst [vmem:[#allocation2 + $0xb8] sm:$0xf] %v1511_v27  ;;  %v3885_v23 = vrot.slane %v3884_v3, 4  ;;  %v4738_v60 = vrot.slane %v4736_v57, 6 }
 0x5f1   :  { %4373 = vmatmul.bf16.gmra.mxu2 %v4281_v46  ;;  %v3055_v17 = vpop.f32.mrf.mxu1  ;;  %v4786_v46 = vunpack.c.l.b16 %v4686_v5  ;;  %v15624_v5 = vld [vmem:[%s19718_s3 + $0x2c0] sm:$0xff]  ;;  %v4273_v0 = vunpack.c.l.b16 %v4218_v37  ;;  %v3889_v14 = vrot.slane %v3887_v63, 5  ;;  %v4717_v48 = vrot.slane %v4715_v25, 5  ;;  %v5484_v63 = vld [vmem:[#allocation2 + $0x10] sm:$0xf] }
 0x5f2   :  { %v17335_v30 = vadd.f32 %v3055_v17, %v17160_v51  ;;  %v4708_v17 = vrot.slane %v4706_v21, 5  ;;  %v4272_v21 = vunpack.c.l.b16 %v4214_v2  ;;  %v4739_v40 = vor.u32 %v4738_v60, %v4735_v49  ;;  %v5486_v37 = vld [vmem:[#allocation2 + $0x18] sm:$0xf]  ;;  %v4936_v60 = vld [vmem:[#allocation2 + $0xc] sm:$0x3] }
 0x5f3   :  { %v4796_v33 = vpack.c.b16 %v4787_v34, %v4786_v46  ;;  %5409 = vmatpush.bf16.msrb.mxu2 %v15617_v55  ;;  %5860 = vmatpush.bf16.msrb.mxu3 %v15624_v5  ;;  %v15616_v34 = vld [vmem:[%s19718_s3 + $0x280] sm:$0xff]  ;;  %v3890_v3 = vsel %vm16317_vm5, %v3885_v23, %v3889_v14  ;;  %v4130_v5 = vld [vmem:[#allocation2 + $0xa4] sm:$0x1]  ;;  %v4935_v23 = vld [vmem:[#allocation2 + $0x8] sm:$0xc] }
 0x5f4   :  { %v3375_v39 = vpop.f32.mrf.mxu2  ;;  %4056 = vmatmul.bf16.gmra.mxu1 %v3960_v54  ;;  %v4282_v2 = vpack.c.b16 %v4273_v0, %v4272_v21 }
 0x5f5   :  { %v17343_v51 = vadd.f32 %v3375_v39, %v17273_v41  ;;  %v3898_v41 = vor.u32 %v3897_v31, %v3894_v53  ;;  %v17353_v56 = vpop.f32.mrf.mxu3  ;;  %v4718_v53 = vshll.u32 %v4450_v38, 16  ;;  %v4726_v31 = vrot.slane %v4724_v26, 5 }
 0x5f6   :  { %v4712_v26 = vor.u32 %v4711_v8, %v4708_v17 }
 0x5f7   :  { %v3899_v4 = vrot.slane %v3898_v41, 4  ;;  %v4720_v46 = vrot.slane %v4718_v53, 6  ;;  %5410 = vmatpush.bf16.msrb.mxu2 %v15616_v34  ;;  %v4128_v53 = vld [vmem:[#allocation2 + $0x9c] sm:$0x1] }
 0x5f8   :  { %v4713_v13 = vrot.slane %v4712_v26, 4  ;;  %v4221_v14 = vrot.slane %v4128_v53, 5  ;;  %v4937_v26 = vld [vmem:[#allocation2 + $0x10] sm:$0xc] }
 0x5f9   :  { %v3057_v54 = vpop.f32.mrf.mxu1  ;;  %v3904_v18 = vsel %vm16317_vm5, %v3899_v4, %v3903_v36  ;;  %v4721_v57 = vor.u32 %v4720_v46, %v4717_v48  ;;  %v5531_v36 = vshrl.u32 %v5486_v37, 16  ;;  %v4938_v4 = vld [vmem:[#allocation2 + $0x14] sm:$0x3]  ;;  %v5520_v48 = vshll.u32 %v5484_v63, 16 }
 0x5fa   :  { %v17364_v39 = vadd.f32 %v3057_v54, %v17184_v32  ;;  %4892 = vmatmul.bf16.gmra.mxu3 %v4796_v33  ;;  %v4730_v32 = vor.u32 %v4729_v22, %v4726_v31  ;;  %v3953_v38 = vunpack.c.l.b16 %v3904_v18  ;;  %v4129_v31 = vld [vmem:[#allocation2 + $0xa0] sm:$0xe]  ;;  %v5534_v22 = vshll.u32 %v5486_v37, 16 }
 0x5fb   :  { %v4225_v33 = vrot.slane %v4130_v5, 5  ;;  %v4722_v49 = vsel %vm16811_vm8, %v4713_v13, %v4721_v57  ;;  %v13511_v18 = vrot.slane %v4129_v31, 9  ;;  %v5533_v34 = vrot.slane %v5531_v36, 4  ;;  %v5485_v5 = vld [vmem:[#allocation2 + $0x14] sm:$0x1] }
 0x5fc   :  { %v3377_v16 = vpop.f32.mrf.mxu2  ;;  %v4731_v55 = vrot.slane %v4730_v32, 4  ;;  %v5005_v32 = vrot.slane %v4938_v4, 6  ;;  %v13608_v37 = vrot.slane %v4935_v23, 10  ;;  %v5526_v4 = vshll.u32 %v5485_v5, 16  ;;  %v4940_v5 = vld [vmem:[#allocation2 + $0x1c] sm:$0x3] }
 0x5fd   :  { %v17369_v1 = vadd.f32 %v3377_v16, %v17303_v44  ;;  %v17376_v41 = vpop.f32.mrf.mxu3  ;;  %v3952_v44 = vunpack.c.l.b16 %v3890_v3  ;;  %v5517_v16 = vshrl.u32 %v5484_v63, 16  ;;  %v5536_v3 = vrot.slane %v5534_v22, 5 }
 0x5fe   :  { %v4740_v25 = vsel %vm16811_vm8, %v4731_v55, %v4739_v40  ;;  %v5001_v40 = vrot.slane %v4936_v60, 6 }
 0x5ff   :  { %v3961_v8 = vpack.c.b16 %v3953_v38, %v3952_v44  ;;  %v4789_v21 = vunpack.c.l.b16 %v4740_v25  ;;  %v4226_v38 = vsel %vm16301_vm4, %v13511_v18, %v4225_v33  ;;  %v13609_v44 = vrot.slane %v4937_v26, 10  ;;  %v5490_v18 = vld [vmem:[#allocation2 + $0x28] sm:$0xf] }
 0x600   :  { %v5519_v63 = vrot.slane %v5517_v16, 4  ;;  %v4275_v25 = vunpack.c.l.b16 %v4226_v38  ;;  %v5537_v31 = vor.u32 %v5536_v3, %v5533_v34  ;;  %v5528_v26 = vrot.slane %v5526_v4, 5 }
 0x601   :  { %4378 = vmatmul.bf16.gmra.mxu2 %v4282_v2  ;;  %v3060_v27 = vpop.f32.mrf.mxu1  ;;  %v4788_v2 = vunpack.c.l.b16 %v4722_v49  ;;  %v5006_v53 = vsel %vm16824_vm11, %v13609_v44, %v5005_v32  ;;  %v5559_v38 = vshrl.u32 %v5490_v18, 16  ;;  %v4942_v44 = vld [vmem:[#allocation2 + $0x24] sm:$0x3] }
 0x602   :  { %v17379_v17 = vadd.f32 %v3060_v27, %v17231_v62  ;;  %v4127_v62 = vld [vmem:[#allocation2 + $0x98] sm:$0xe]  ;;  %v5487_v27 = vld [vmem:[#allocation2 + $0x1c] sm:$0x1] }
 0x603   :  { %v4797_v57 = vpack.c.b16 %v4789_v21, %v4788_v2  ;;  %v5540_v49 = vshll.u32 %v5487_v27, 16  ;;  %v5538_v21 = vrot.slane %v5537_v31, 4  ;;  %v4941_v27 = vld [vmem:[#allocation2 + $0x20] sm:$0xc] }
 0x604   :  { %v3380_v54 = vpop.f32.mrf.mxu2  ;;  %4061 = vmatmul.bf16.gmra.mxu1 %v3961_v8  ;;  %v5522_v8 = vrot.slane %v5520_v48, 5  ;;  %v13611_v4 = vrot.slane %v4941_v27, 10 }
 0x605   :  { %v17384_v0 = vadd.f32 %v3380_v54, %v17335_v30  ;;  %v17388_v46 = vpop.f32.mrf.mxu3  ;;  %v13510_v30 = vrot.slane %v4127_v62, 9  ;;  %v5002_v54 = vsel %vm16824_vm11, %v13608_v37, %v5001_v40  ;;  %v5097_v62 = vunpack.c.l.b16 %v5006_v53 }
 0x606   :  { %v5523_v60 = vor.u32 %v5522_v8, %v5519_v63  ;;  %v5542_v48 = vrot.slane %v5540_v49, 5  ;;  %v5562_v40 = vshll.u32 %v5490_v18, 16  ;;  %v5561_v53 = vrot.slane %v5559_v38, 4  ;;  %v15639_v38 = vld [vmem:[%s19718_s3 + $0x338] sm:$0xff] }
 0x607   :  { %v4222_v55 = vsel %vm16301_vm4, %v13510_v30, %v4221_v14  ;;  %v5096_v14 = vunpack.c.l.b16 %v5002_v54  ;;  %v5488_v30 = vld [vmem:[#allocation2 + $0x20] sm:$0xf]  ;;  %v4939_v54 = vld [vmem:[#allocation2 + $0x18] sm:$0xc]  ;;  %6175 = vmatpush.bf16.msra.mxu1 %v15639_v38 }
 0x608   :  { %v4274_v23 = vunpack.c.l.b16 %v4222_v55  ;;  %v5524_v3 = vrot.slane %v5523_v60, 4  ;;  %v5543_v2 = vsel %vm16317_vm5, %v5538_v21, %v5542_v48  ;;  %v5548_v63 = vshll.u32 %v5488_v30, 16  ;;  %v5489_v60 = vld [vmem:[#allocation2 + $0x24] sm:$0x1] }
 0x609   :  { %v3062_v13 = vpop.f32.mrf.mxu1  ;;  %v5112_v34 = vpack.c.b16 %v5097_v62, %v5096_v14  ;;  %v5774_v55 = vunpack.c.l.b16 %v5543_v2  ;;  %v5564_v31 = vrot.slane %v5562_v40, 5  ;;  %v13690_v40 = vld [vmem:[#allocation2 + $0x10] sm:$0xf] }
 0x60a   :  { %v3080_v36 = vadd.f32 %v3062_v13, %v17261_v52  ;;  %4897 = vmatmul.bf16.gmra.mxu3 %v4797_v57  ;;  %v4283_v52 = vpack.c.b16 %v4275_v25, %v4274_v23  ;;  %v5529_v57 = vsel %vm16317_vm5, %v5524_v3, %v5528_v26  ;;  %v5013_v25 = vrot.slane %v4942_v44, 6  ;;  %v15608_v3 = vld [vmem:[#allocation2 + $0x14] sm:$0xf0] }
 0x60b   :  { %v5009_v23 = vrot.slane %v4940_v5, 6  ;;  %v5550_v14 = vrot.slane %v5548_v63, 5  ;;  %v13610_v26 = vrot.slane %v4939_v54, 10  ;;  %v19781_v63 = vld [vmem:[#allocation23_spill] sm:$0xff] }
 0x60c   :  { %v3382_v22 = vpop.f32.mrf.mxu2  ;;  %v5014_v48 = vsel %vm16824_vm11, %v13611_v4, %v5013_v25 }
 0x60d   :  { %v17400_v33 = vadd.f32 %v3382_v22, %v17364_v39  ;;  %v17402_v16 = vpop.f32.mrf.mxu3  ;;  %v5773_v22 = vunpack.c.l.b16 %v5529_v57 }
 0x60f   :  { %v5789_v62 = vpack.c.b16 %v5774_v55, %v5773_v22  ;;  %v13691_v55 = vor.u32 %v15608_v3, %v13690_v40 }
 0x611   :  { %4383 = vmatmul.bf16.gmra.mxu2 %v4283_v52  ;;  %v4027_v32 = vpop.f32.mrf.mxu1  ;;  %v5491_v52 = vld [vmem:[#allocation2 + $0x2c] sm:$0x1] }
 0x612   :  { %v17405_v39 = vadd.f32 %v4027_v32, %v17298_v15  ;;  %v5545_v15 = vshrl.u32 %v5488_v30, 16  ;;  %v5565_v32 = vor.u32 %v5564_v31, %v5561_v53  ;;  %v5568_v30 = vshll.u32 %v5491_v52, 16 }
 0x614   :  { %v3385_v37 = vpop.f32.mrf.mxu2  ;;  %5184 = vmatmul.bf16.vlgmr.msrb.gmra.mxu1 %v5112_v34  ;;  %v5547_v21 = vrot.slane %v5545_v15, 4  ;;  %v5566_v5 = vrot.slane %v5565_v32, 4  ;;  %v19780_v15 = vld [vmem:[#allocation16_spill] sm:$0xff]  ;;  %v5570_v31 = vrot.slane %v5568_v30, 5 }
 0x615   :  { %v17410_v13 = vadd.f32 %v3385_v37, %v17379_v17  ;;  %v17414_v8 = vpop.f32.mrf.mxu3  ;;  %v3618_v17 = vadd.f32 %v17097_v20, %v17115_v50  ;;  %v5010_v20 = vsel %vm16824_vm11, %v13610_v26, %v5009_v23  ;;  %v5554_v50 = vshll.u32 %v5489_v60, 16  ;;  %v4944_v32 = vld [vmem:[#allocation2 + $0x2c] sm:$0x3] }
 0x616   :  { %v5099_v37 = vunpack.c.l.b16 %v5014_v48  ;;  %v5551_v44 = vor.u32 %v5550_v14, %v5547_v21  ;;  %v5098_v27 = vunpack.c.l.b16 %v5010_v20  ;;  %v3619_v25 = vadd.f32 %v19781_v63, %v19780_v15  ;;  %v4946_v21 = vld [vmem:[#allocation2 + $0x34] sm:$0x3] }
 0x617   :  { %v5556_v53 = vrot.slane %v5554_v50, 5  ;;  %v5571_v4 = vsel %vm16317_vm5, %v5566_v5, %v5570_v31  ;;  %v5021_v30 = vrot.slane %v4946_v21, 6  ;;  %v5017_v5 = vrot.slane %v4944_v32, 6  ;;  %v5493_v63 = vld [vmem:[#allocation2 + $0x34] sm:$0x1]  ;;  %v15638_v32 = vld [vmem:[%s19718_s3 + $0x330] sm:$0xff] }
 0x618   :  { %v5113_v54 = vpack.c.b16 %v5099_v37, %v5098_v27  ;;  %v5776_v48 = vunpack.c.l.b16 %v5571_v4  ;;  %6176 = vmatpush.bf16.msra.mxu1 %v15638_v32 }
 0x619   :  { %v4029_v49 = vpop.f32.mrf.mxu1 }
 0x61a   :  { %v17418_v18 = vadd.f32 %v4029_v49, %v3618_v17  ;;  %5861 = vmatmul.bf16.vlgmr.msrb.gmra.mxu3 %v5789_v62  ;;  %v5552_v17 = vrot.slane %v5551_v44, 4  ;;  %v5492_v49 = vld [vmem:[#allocation2 + $0x30] sm:$0xf]  ;;  %v4943_v44 = vld [vmem:[#allocation2 + $0x28] sm:$0xc] }
 0x61b   :  { %v5573_v3 = vshrl.u32 %v5492_v49, 16  ;;  %v5576_v20 = vshll.u32 %v5492_v49, 16  ;;  %v1416_v49 = vld.sshfl [vmem:[#allocation1 + $0x30] sm:$0xff pattern:$0x75316420] }
 0x61c   :  { %v3387_v34 = vpop.f32.mrf.mxu2  ;;  %v5557_v26 = vsel %vm16317_vm5, %v5552_v17, %v5556_v53 }
 0x61d   :  { %v17422_v2 = vadd.f32 %v3387_v34, %v3080_v36  ;;  %v17429_v57 = vpop.f32.mrf.mxu3  ;;  %v5494_v36 = vld [vmem:[#allocation2 + $0x38] sm:$0xf]  ;;  %v4945_v34 = vld [vmem:[#allocation2 + $0x30] sm:$0xc]  ;;  %v5775_v37 = vunpack.c.l.b16 %v5557_v26  ;;  %v5575_v53 = vrot.slane %v5573_v3, 4  ;;  %v5578_v31 = vrot.slane %v5576_v20, 5 }
 0x61e   :  { %v5587_v62 = vshrl.u32 %v5494_v36, 16  ;;  %v5590_v60 = vshll.u32 %v5494_v36, 16  ;;  %v13613_v27 = vrot.slane %v4945_v34, 10  ;;  %v5582_v26 = vshll.u32 %v5493_v63, 16  ;;  %v13694_v34 = vld [vmem:[#allocation2 + $0x20] sm:$0xf] }
 0x61f   :  { %v5790_v15 = vpack.c.b16 %v5776_v48, %v5775_v37  ;;  %v5579_v20 = vor.u32 %v5578_v31, %v5575_v53  ;;  %v5498_v37 = vld [vmem:[#allocation2 + $0x48] sm:$0xf] }
 0x620   :  { %v5589_v38 = vrot.slane %v5587_v62, 4  ;;  %v5592_v40 = vrot.slane %v5590_v60, 5  ;;  %v5022_v17 = vsel %vm16824_vm11, %v13613_v27, %v5021_v30  ;;  %v15609_v60 = vld [vmem:[#allocation2 + $0x24] sm:$0xf0]  ;;  %v5615_v53 = vshrl.u32 %v5498_v37, 16 }
 0x621   :  { %5411 = vmatmul.bf16.vlgmr.msrb.gmra.mxu2 %v13691_v55  ;;  %v4032_v22 = vpop.f32.mrf.mxu1  ;;  %v19782_v55 = vld [vmem:[#allocation25_spill] sm:$0xff]  ;;  %v5101_v3 = vunpack.c.l.b16 %v5022_v17  ;;  %v5618_v31 = vshll.u32 %v5498_v37, 16  ;;  %v4950_v17 = vld [vmem:[#allocation2 + $0x44] sm:$0x3] }
 0x622   :  { %v17433_v23 = vadd.f32 %v4032_v22, %v3619_v25  ;;  %v5495_v25 = vld [vmem:[#allocation2 + $0x3c] sm:$0x1]  ;;  %v5593_v4 = vor.u32 %v5592_v40, %v5589_v38  ;;  %v13695_v38 = vor.u32 %v15609_v60, %v13694_v34  ;;  %v5497_v37 = vld [vmem:[#allocation2 + $0x44] sm:$0x1] }
 0x623   :  { %v5596_v48 = vshll.u32 %v5495_v25, 16  ;;  %v5496_v25 = vld [vmem:[#allocation2 + $0x40] sm:$0xf]  ;;  %v5620_v32 = vrot.slane %v5618_v31, 5  ;;  %v5610_v31 = vshll.u32 %v5497_v37, 16 }
 0x624   :  { %v4349_v52 = vpop.f32.mrf.mxu2  ;;  %5189 = vmatmul.bf16.gmra.mxu1 %v5113_v54  ;;  %v13612_v54 = vrot.slane %v4943_v44, 10  ;;  %v5594_v40 = vrot.slane %v5593_v4, 4  ;;  %v3621_v44 = vadd.f32 %v17156_v9, %v17178_v43  ;;  %v5601_v60 = vshrl.u32 %v5496_v25, 16 }
 0x625   :  { %v17438_v14 = vadd.f32 %v4349_v52, %v17405_v39  ;;  %v17442_v50 = vpop.f32.mrf.mxu3  ;;  %v3620_v39 = vadd.f32 %v19782_v55, %v17151_v42  ;;  %v1512_v42 = vpack.c.bf16 %v1416_v49, %v1416_v49  ;;  %v5584_v55 = vrot.slane %v5582_v26, 5  ;;  %v4948_v49 = vld [vmem:[#allocation2 + $0x3c] sm:$0x3] }
 0x626   :  { %v5018_v21 = vsel %vm16824_vm11, %v13612_v54, %v5017_v5  ;;  %v5029_v26 = vrot.slane %v4950_v17, 6  ;;  %v15637_v17 = vld [vmem:[%s19718_s3 + $0x328] sm:$0xff] }
 0x627   :  { %1560 = vst [vmem:[#allocation2 + $0xbc] sm:$0x3] %v1512_v42  ;;  %v5604_v42 = vshll.u32 %v5496_v25, 16  ;;  %6177 = vmatpush.bf16.msra.mxu1 %v15637_v17 }
 0x629   :  { %v4034_v36 = vpop.f32.mrf.mxu1 }
 0x62a   :  { %v17446_v22 = vadd.f32 %v4034_v36, %v3620_v39  ;;  %5866 = vmatmul.bf16.gmra.mxu3 %v5790_v15  ;;  %v5598_v39 = vrot.slane %v5596_v48, 5  ;;  %v5580_v36 = vrot.slane %v5579_v20, 4  ;;  %v5617_v48 = vrot.slane %v5615_v53, 4  ;;  %v15610_v53 = vld [vmem:[#allocation2 + $0x34] sm:$0xf0] }
 0x62b   :  { %v5025_v20 = vrot.slane %v4948_v49, 6 }
 0x62c   :  { %v4351_v62 = vpop.f32.mrf.mxu2  ;;  %v5599_v63 = vsel %vm16317_vm5, %v5594_v40, %v5598_v39  ;;  %v5585_v9 = vsel %vm16317_vm5, %v5580_v36, %v5584_v55  ;;  %v5603_v55 = vrot.slane %v5601_v60, 4  ;;  %v5606_v39 = vrot.slane %v5604_v42, 5 }
 0x62d   :  { %v17451_v52 = vadd.f32 %v4351_v62, %v17418_v18  ;;  %v17458_v30 = vpop.f32.mrf.mxu3  ;;  %v5100_v18 = vunpack.c.l.b16 %v5018_v21  ;;  %v5778_v43 = vunpack.c.l.b16 %v5599_v63  ;;  %v4949_v62 = vld [vmem:[#allocation2 + $0x40] sm:$0xc]  ;;  %v5777_v34 = vunpack.c.l.b16 %v5585_v9  ;;  %v13698_v9 = vld [vmem:[#allocation2 + $0x30] sm:$0xf] }
 0x62e   :  { %v5621_v63 = vor.u32 %v5620_v32, %v5617_v48  ;;  %v5607_v49 = vor.u32 %v5606_v39, %v5603_v55  ;;  %v13699_v60 = vor.u32 %v15610_v53, %v13698_v9  ;;  %v3623_v48 = vadd.f32 %v17209_v58, %v17225_v45  ;;  %v4954_v39 = vld [vmem:[#allocation2 + $0x74] sm:$0x3] }
 0x62f   :  { %v5114_v27 = vpack.c.b16 %v5101_v3, %v5100_v18  ;;  %v4947_v3 = vld [vmem:[#allocation2 + $0x38] sm:$0xc]  ;;  %v5791_v18 = vpack.c.b16 %v5778_v43, %v5777_v34  ;;  %v5612_v32 = vrot.slane %v5610_v31, 5  ;;  %v5037_v31 = vrot.slane %v4954_v39, 6 }
 0x630   :  { %v5622_v42 = vrot.slane %v5621_v63, 4  ;;  %v4953_v63 = vld [vmem:[#allocation2 + $0x70] sm:$0xc]  ;;  %v15636_v39 = vld [vmem:[%s19718_s3 + $0x320] sm:$0xff] }
 0x631   :  { %5416 = vmatmul.bf16.gmra.mxu2 %v13695_v38  ;;  %v4037_v5 = vpop.f32.mrf.mxu1  ;;  %v13615_v38 = vrot.slane %v4949_v62, 10  ;;  %6178 = vmatpush.bf16.msra.mxu1 %v15636_v39 }
 0x632   :  { %v17462_v15 = vadd.f32 %v4037_v5, %v3621_v44  ;;  %v5499_v44 = vld [vmem:[#allocation2 + $0x4c] sm:$0x1] }
 0x633   :  { %v5030_v36 = vsel %vm16824_vm11, %v13615_v38, %v5029_v26 }
 0x634   :  { %v4354_v54 = vpop.f32.mrf.mxu2  ;;  %5194 = vmatmul.bf16.gmra.mxu1 %v5114_v27  ;;  %v13614_v27 = vrot.slane %v4947_v3, 10  ;;  %v5103_v43 = vunpack.c.l.b16 %v5030_v36  ;;  %v4952_v36 = vld [vmem:[#allocation2 + $0x6c] sm:$0x3] }
 0x635   :  { %v17467_v4 = vadd.f32 %v4354_v54, %v17433_v23  ;;  %v17471_v21 = vpop.f32.mrf.mxu3  ;;  %v3622_v23 = vadd.f32 %v17180_v28, %v17197_v19  ;;  %v5624_v54 = vshll.u32 %v5499_v44, 16 }
 0x636   :  { %v5026_v19 = vsel %vm16824_vm11, %v13614_v27, %v5025_v20  ;;  %v5608_v20 = vrot.slane %v5607_v49, 4  ;;  %v5033_v49 = vrot.slane %v4952_v36, 6 }
 0x637   :  { %v5102_v26 = vunpack.c.l.b16 %v5026_v19  ;;  %v5626_v34 = vrot.slane %v5624_v54, 5 }
 0x638   :  { %v5613_v58 = vsel %vm16317_vm5, %v5608_v20, %v5612_v32 }
 0x639   :  { %v4039_v40 = vpop.f32.mrf.mxu1  ;;  %v5779_v9 = vunpack.c.l.b16 %v5613_v58  ;;  %v13702_v58 = vld [vmem:[#allocation2 + $0x40] sm:$0xf] }
 0x63a   :  { %v17475_v5 = vadd.f32 %v4039_v40, %v3622_v23  ;;  %5871 = vmatmul.bf16.gmra.mxu3 %v5791_v18  ;;  %v5115_v23 = vpack.c.b16 %v5103_v43, %v5102_v26  ;;  %v5627_v40 = vsel %vm16317_vm5, %v5622_v42, %v5626_v34  ;;  %v5500_v18 = vld [vmem:[#allocation2 + $0x70] sm:$0xf]  ;;  %v4951_v43 = vld [vmem:[#allocation2 + $0x68] sm:$0xc] }
 0x63b   :  { %v5780_v45 = vunpack.c.l.b16 %v5627_v40  ;;  %v5632_v53 = vshll.u32 %v5500_v18, 16 }
 0x63c   :  { %v4356_v25 = vpop.f32.mrf.mxu2 }
 0x63d   :  { %v17480_v28 = vadd.f32 %v4356_v25, %v17446_v22  ;;  %v17487_v62 = vpop.f32.mrf.mxu3  ;;  %v5502_v22 = vld [vmem:[#allocation2 + $0x78] sm:$0xf]  ;;  %v5629_v25 = vshrl.u32 %v5500_v18, 16  ;;  %v5792_v26 = vpack.c.b16 %v5780_v45, %v5779_v9  ;;  %v5634_v34 = vrot.slane %v5632_v53, 5 }
 0x63e   :  { %v5643_v37 = vshrl.u32 %v5502_v22, 16  ;;  %v5646_v44 = vshll.u32 %v5502_v22, 16  ;;  %v5501_v22 = vld [vmem:[#allocation2 + $0x74] sm:$0x1] }
 0x63f   :  { %v5631_v32 = vrot.slane %v5629_v25, 4 }
 0x640   :  { %v5645_v54 = vrot.slane %v5643_v37, 4  ;;  %v5648_v17 = vrot.slane %v5646_v44, 5  ;;  %v15611_v37 = vld [vmem:[#allocation2 + $0x44] sm:$0xf0]  ;;  %v5638_v44 = vshll.u32 %v5501_v22, 16 }
 0x641   :  { %5421 = vmatmul.bf16.gmra.mxu2 %v13699_v60  ;;  %v4042_v3 = vpop.f32.mrf.mxu1  ;;  %v13617_v60 = vrot.slane %v4953_v63, 10  ;;  %v5635_v36 = vor.u32 %v5634_v34, %v5631_v32  ;;  %v13703_v25 = vor.u32 %v15611_v37, %v13702_v58  ;;  %v4958_v34 = vld [vmem:[#allocation2 + $0x84] sm:$0x3] }
 0x642   :  { %v17491_v38 = vadd.f32 %v4042_v3, %v3623_v48  ;;  %v5503_v48 = vld [vmem:[#allocation2 + $0x7c] sm:$0x1]  ;;  %v5649_v40 = vor.u32 %v5648_v17, %v5645_v54  ;;  %v3625_v54 = vadd.f32 %v17256_v47, %v17278_v29  ;;  %v5640_v17 = vrot.slane %v5638_v44, 5 }
 0x643   :  { %v5038_v20 = vsel %vm16824_vm11, %v13617_v60, %v5037_v31  ;;  %v5045_v44 = vrot.slane %v4958_v34, 6  ;;  %v15635_v34 = vld [vmem:[%s19718_s3 + $0x318] sm:$0xff] }
 0x644   :  { %v4359_v55 = vpop.f32.mrf.mxu2  ;;  %5199 = vmatmul.bf16.gmra.mxu1 %v5115_v23  ;;  %v13616_v23 = vrot.slane %v4951_v43, 10  ;;  %v5105_v45 = vunpack.c.l.b16 %v5038_v20  ;;  %v5650_v53 = vrot.slane %v5649_v40, 4  ;;  %v4956_v20 = vld [vmem:[#allocation2 + $0x7c] sm:$0x3]  ;;  %v4957_v40 = vld [vmem:[#allocation2 + $0x80] sm:$0xc] }
 0x645   :  { %v17496_v27 = vadd.f32 %v4359_v55, %v17462_v15  ;;  %v17500_v19 = vpop.f32.mrf.mxu3  ;;  %v3624_v15 = vadd.f32 %v17227_v7, %v17245_v24  ;;  %v5652_v55 = vshll.u32 %v5503_v48, 16  ;;  %6179 = vmatpush.bf16.msra.mxu1 %v15635_v34  ;;  %v4961_v34 = vld [vmem:[#allocation2 + $0x90] sm:$0xc] }
 0x646   :  { %v5034_v24 = vsel %vm16824_vm11, %v13616_v23, %v5033_v49  ;;  %v5636_v49 = vrot.slane %v5635_v36, 4  ;;  %v5041_v36 = vrot.slane %v4956_v20, 6  ;;  %v13706_v20 = vld [vmem:[#allocation2 + $0x70] sm:$0xf] }
 0x647   :  { %v5104_v31 = vunpack.c.l.b16 %v5034_v24  ;;  %v5654_v9 = vrot.slane %v5652_v55, 5 }
 0x648   :  { %v5641_v47 = vsel %vm16317_vm5, %v5636_v49, %v5640_v17 }
 0x649   :  { %v4044_v42 = vpop.f32.mrf.mxu1  ;;  %v5781_v58 = vunpack.c.l.b16 %v5641_v47  ;;  %v15821_v47 = vld [vmem:[%s19720_s5 + $0x228] sm:$0xff] }
 0x64a   :  { %v17504_v3 = vadd.f32 %v4044_v42, %v3624_v15  ;;  %5876 = vmatmul.bf16.gmra.mxu3 %v5792_v26  ;;  %v5116_v15 = vpack.c.b16 %v5105_v45, %v5104_v31  ;;  %v5655_v42 = vsel %vm16317_vm5, %v5650_v53, %v5654_v9  ;;  %v5504_v26 = vld [vmem:[#allocation2 + $0x80] sm:$0xf]  ;;  %v4955_v45 = vld [vmem:[#allocation2 + $0x78] sm:$0xc]  ;;  %12089 = vmatpush.bf16.msrb.mxu0 %v15821_v47 }
 0x64b   :  { %v5782_v29 = vunpack.c.l.b16 %v5655_v42  ;;  %v5660_v37 = vshll.u32 %v5504_v26, 16 }
 0x64c   :  { %v4361_v18 = vpop.f32.mrf.mxu2 }
 0x64d   :  { %v17509_v7 = vadd.f32 %v4361_v18, %v17475_v5  ;;  %v17516_v63 = vpop.f32.mrf.mxu3  ;;  %v5506_v5 = vld [vmem:[#allocation2 + $0x88] sm:$0xf]  ;;  %v5657_v18 = vshrl.u32 %v5504_v26, 16  ;;  %v5793_v31 = vpack.c.b16 %v5782_v29, %v5781_v58  ;;  %v5662_v9 = vrot.slane %v5660_v37, 5  ;;  %v15655_v29 = vld [vmem:[%s19718_s3 + $0x3b8] sm:$0xff] }
 0x64e   :  { %v5671_v22 = vshrl.u32 %v5506_v5, 16  ;;  %v5674_v48 = vshll.u32 %v5506_v5, 16  ;;  %v5505_v5 = vld [vmem:[#allocation2 + $0x84] sm:$0x1]  ;;  %7011 = vmatpush.bf16.msra.mxu3 %v15655_v29  ;;  %v3627_v58 = vadd.f32 %v17324_v61, %v17343_v51 }
 0x64f   :  { %v5659_v17 = vrot.slane %v5657_v18, 4 }
 0x650   :  { %v5673_v55 = vrot.slane %v5671_v22, 4  ;;  %v5676_v39 = vrot.slane %v5674_v48, 5  ;;  %v15612_v22 = vld [vmem:[#allocation2 + $0x74] sm:$0xf0]  ;;  %v5666_v48 = vshll.u32 %v5505_v5, 16 }
 0x651   :  { %5426 = vmatmul.bf16.gmra.mxu2 %v13703_v25  ;;  %v4047_v43 = vpop.f32.mrf.mxu1  ;;  %v13619_v25 = vrot.slane %v4957_v40, 10  ;;  %v5663_v40 = vor.u32 %v5662_v9, %v5659_v17  ;;  %v13707_v37 = vor.u32 %v15612_v22, %v13706_v20  ;;  %v5508_v9 = vld [vmem:[#allocation2 + $0x90] sm:$0xf]  ;;  %v15646_v22 = vld [vmem:[%s19718_s3 + $0x370] sm:$0xff] }
 0x652   :  { %v17520_v60 = vadd.f32 %v4047_v43, %v3625_v54  ;;  %v5507_v54 = vld [vmem:[#allocation2 + $0x8c] sm:$0x1]  ;;  %v5677_v42 = vor.u32 %v5676_v39, %v5673_v55  ;;  %v5510_v39 = vld [vmem:[#allocation2 + $0x98] sm:$0xf]  ;;  %v5685_v47 = vshrl.u32 %v5508_v9, 16  ;;  %v5688_v29 = vshll.u32 %v5508_v9, 16 }
 0x653   :  { %v5046_v49 = vsel %vm16824_vm11, %v13619_v25, %v5045_v44  ;;  %v15654_v25 = vld [vmem:[%s19718_s3 + $0x3b0] sm:$0xff]  ;;  %v5664_v5 = vrot.slane %v5663_v40, 4  ;;  %v5699_v61 = vshrl.u32 %v5510_v39, 16  ;;  %v5702_v51 = vshll.u32 %v5510_v39, 16 }
 0x654   :  { %v4364_v32 = vpop.f32.mrf.mxu2  ;;  %5204 = vmatmul.bf16.gmra.mxu1 %v5116_v15  ;;  %v13618_v15 = vrot.slane %v4955_v45, 10  ;;  %v5678_v44 = vrot.slane %v5677_v42, 4  ;;  %v5668_v45 = vrot.slane %v5666_v48, 5  ;;  %7012 = vmatpush.bf16.msra.mxu3 %v15654_v25  ;;  %v3628_v39 = vadd.f32 %v17353_v56, %v17369_v1  ;;  %v15634_v56 = vld [vmem:[%s19718_s3 + $0x310] sm:$0xff] }
 0x655   :  { %v17525_v23 = vadd.f32 %v4364_v32, %v17491_v38  ;;  %v17529_v24 = vpop.f32.mrf.mxu3  ;;  %v3626_v38 = vadd.f32 %v17286_v35, %v17311_v10  ;;  %v5680_v32 = vshll.u32 %v5507_v54, 16  ;;  %v5704_v40 = vrot.slane %v5702_v51, 5  ;;  %6180 = vmatpush.bf16.msra.mxu1 %v15634_v56 }
 0x656   :  { %v5042_v10 = vsel %vm16824_vm11, %v13618_v15, %v5041_v36  ;;  %v15647_v36 = vld [vmem:[%s19718_s3 + $0x378] sm:$0xff] }
 0x657   :  { %v5106_v55 = vunpack.c.l.b16 %v5042_v10  ;;  %6689 = vmatpush.bf16.msra.mxu2 %v15647_v36  ;;  %v15653_v10 = vld [vmem:[%s19718_s3 + $0x3a8] sm:$0xff] }
 0x658   :  { %7013 = vmatpush.bf16.msra.mxu3 %v15653_v10 }
 0x659   :  { %v4049_v53 = vpop.f32.mrf.mxu1 }
 0x65a   :  { %v17533_v43 = vadd.f32 %v4049_v53, %v3626_v38  ;;  %5881 = vmatmul.bf16.gmra.mxu3 %v5793_v31  ;;  %v5682_v38 = vrot.slane %v5680_v32, 5  ;;  %v4960_v32 = vld [vmem:[#allocation2 + $0x8c] sm:$0x3] }
 0x65b   :  { %6690 = vmatpush.bf16.msra.mxu2 %v15646_v22 }
 0x65c   :  { %v4366_v26 = vpop.f32.mrf.mxu2  ;;  %v5683_v17 = vsel %vm16317_vm5, %v5678_v44, %v5682_v38  ;;  %v15652_v38 = vld [vmem:[%s19718_s3 + $0x3a0] sm:$0xff] }
 0x65d   :  { %v17538_v35 = vadd.f32 %v4366_v26, %v17504_v3  ;;  %v5107_v3 = vunpack.c.l.b16 %v5046_v49  ;;  %v17551_v18 = vpop.f32.mrf.mxu3  ;;  %v4962_v49 = vld [vmem:[#allocation2 + $0x94] sm:$0x3]  ;;  %v5669_v26 = vsel %vm16317_vm5, %v5664_v5, %v5668_v45  ;;  %v5784_v48 = vunpack.c.l.b16 %v5683_v17  ;;  %7014 = vmatpush.bf16.msra.mxu3 %v15652_v38 }
 0x65e   :  { %v5783_v44 = vunpack.c.l.b16 %v5669_v26  ;;  %v13621_v45 = vrot.slane %v4961_v34, 10  ;;  %v5687_v5 = vrot.slane %v5685_v47, 4  ;;  %v5690_v17 = vrot.slane %v5688_v29, 5  ;;  %v15651_v34 = vld [vmem:[%s19718_s3 + $0x398] sm:$0xff]  ;;  %v13710_v47 = vld [vmem:[#allocation2 + $0x80] sm:$0xf] }
 0x65f   :  { %v5117_v31 = vpack.c.b16 %v5107_v3, %v5106_v55  ;;  %v5701_v3 = vrot.slane %v5699_v61, 4  ;;  %v4959_v55 = vld [vmem:[#allocation2 + $0x88] sm:$0xc]  ;;  %v15643_v38 = vld [vmem:[%s19718_s3 + $0x358] sm:$0xff] }
 0x660   :  { %v5794_v25 = vpack.c.b16 %v5784_v48, %v5783_v44  ;;  %v13620_v61 = vrot.slane %v4959_v55, 10  ;;  %v5514_v55 = vld [vmem:[#allocation2 + $0xa8] sm:$0xf] }
 0x661   :  { %5431 = vmatmul.bf16.gmra.mxu2 %v13707_v37  ;;  %v4052_v53 = vpop.f32.mrf.mxu1  ;;  %v15645_v37 = vld [vmem:[%s19718_s3 + $0x368] sm:$0xff]  ;;  %7015 = vmatpush.bf16.msra.mxu3 %v15651_v34 }
 0x662   :  { %v17561_v54 = vadd.f32 %v4052_v53, %v3627_v58  ;;  %v5049_v58 = vrot.slane %v4960_v32, 6  ;;  %v5509_v53 = vld [vmem:[#allocation2 + $0x94] sm:$0x1]  ;;  %6691 = vmatpush.bf16.msra.mxu2 %v15645_v37  ;;  %v15644_v32 = vld [vmem:[%s19718_s3 + $0x360] sm:$0xff]  ;;  %v4965_v34 = vld [vmem:[#allocation2 + $0xa0] sm:$0xc] }
 0x663   :  { %v5694_v10 = vshll.u32 %v5509_v53, 16 }
 0x664   :  { %v4369_v15 = vpop.f32.mrf.mxu2  ;;  %5209 = vmatmul.bf16.gmra.mxu1 %v5117_v31  ;;  %v5511_v31 = vld [vmem:[#allocation2 + $0x9c] sm:$0x1]  ;;  %v5050_v22 = vsel %vm16824_vm11, %v13620_v61, %v5049_v58 }
 0x665   :  { %v17566_v42 = vadd.f32 %v4369_v15, %v17520_v60  ;;  %v17576_v20 = vpop.f32.mrf.mxu3  ;;  %v5053_v60 = vrot.slane %v4962_v49, 6  ;;  %v5705_v15 = vor.u32 %v5704_v40, %v5701_v3  ;;  %v15613_v49 = vld [vmem:[#allocation2 + $0x84] sm:$0xf0]  ;;  %v5708_v48 = vshll.u32 %v5511_v31, 16  ;;  %v15632_v61 = vld [vmem:[%s19718_s3 + $0x300] sm:$0xff] }
 0x666   :  { %v13711_v40 = vor.u32 %v15613_v49, %v13710_v47  ;;  %6692 = vmatpush.bf16.msra.mxu2 %v15644_v32  ;;  %v5108_v44 = vunpack.c.l.b16 %v5050_v22  ;;  %v5696_v58 = vrot.slane %v5694_v10, 5  ;;  %v4966_v49 = vld [vmem:[#allocation2 + $0xa4] sm:$0x3]  ;;  %v15642_v22 = vld [vmem:[%s19718_s3 + $0x350] sm:$0xff]  ;;  %v4964_v32 = vld [vmem:[#allocation2 + $0x9c] sm:$0x3] }
 0x667   :  { %v5054_v51 = vsel %vm16824_vm11, %v13621_v45, %v5053_v60  ;;  %v5691_v60 = vor.u32 %v5690_v17, %v5687_v5  ;;  %v5706_v37 = vrot.slane %v5705_v15, 4  ;;  %v5710_v45 = vrot.slane %v5708_v48, 5  ;;  %v5512_v15 = vld [vmem:[#allocation2 + $0xa0] sm:$0xf] }
 0x668   :  { %v5109_v29 = vunpack.c.l.b16 %v5054_v51  ;;  %v5730_v17 = vshll.u32 %v5514_v55, 16  ;;  %v15649_v10 = vld [vmem:[%s19718_s3 + $0x388] sm:$0xff]  ;;  %v5713_v47 = vshrl.u32 %v5512_v15, 16 }
 0x669   :  { %v4054_v36 = vpop.f32.mrf.mxu1  ;;  %v5692_v31 = vrot.slane %v5691_v60, 4 }
 0x66a   :  { %v17586_v9 = vadd.f32 %v4054_v36, %v3628_v39  ;;  %5886 = vmatmul.bf16.gmra.mxu3 %v5794_v25  ;;  %v3629_v39 = vadd.f32 %v17376_v41, %v17384_v0  ;;  %v15650_v36 = vld [vmem:[%s19718_s3 + $0x390] sm:$0xff]  ;;  %v5118_v53 = vpack.c.b16 %v5109_v29, %v5108_v44  ;;  %v5711_v41 = vsel %vm16317_vm5, %v5706_v37, %v5710_v45 }
 0x66b   :  { %v5727_v0 = vshrl.u32 %v5514_v55, 16  ;;  %6693 = vmatpush.bf16.msra.mxu2 %v15643_v38  ;;  %7016 = vmatpush.bf16.msra.mxu3 %v15650_v36  ;;  %v5786_v48 = vunpack.c.l.b16 %v5711_v41  ;;  %v5716_v29 = vshll.u32 %v5512_v15, 16  ;;  %v5061_v44 = vrot.slane %v4966_v49, 6 }
 0x66c   :  { %v4371_v1 = vpop.f32.mrf.mxu2  ;;  %v3630_v55 = vadd.f32 %v17388_v46, %v17400_v33  ;;  %v5057_v36 = vrot.slane %v4964_v32, 6  ;;  %v15614_v46 = vld [vmem:[#allocation2 + $0x94] sm:$0xf0] }
 0x66d   :  { %v17594_v26 = vadd.f32 %v4371_v1, %v17533_v43  ;;  %v15633_v43 = vld [vmem:[%s19718_s3 + $0x308] sm:$0xff]  ;;  %v17607_v3 = vpop.f32.mrf.mxu3  ;;  %v5697_v1 = vsel %vm16317_vm5, %v5692_v31, %v5696_v58  ;;  %v5729_v60 = vrot.slane %v5727_v0, 4  ;;  %v15648_v58 = vld [vmem:[%s19718_s3 + $0x380] sm:$0xff]  ;;  %v5515_v31 = vld [vmem:[#allocation2 + $0xac] sm:$0x1]  ;;  %v5715_v0 = vrot.slane %v5713_v47, 4 }
 0x66e   :  { %6181 = vmatpush.bf16.msra.mxu1 %v15633_v43  ;;  %v5732_v43 = vrot.slane %v5730_v17, 5  ;;  %v5785_v37 = vunpack.c.l.b16 %v5697_v1  ;;  %v5718_v17 = vrot.slane %v5716_v29, 5 }
 0x66f   :  { %6694 = vmatpush.bf16.msra.mxu2 %v15642_v22  ;;  %7017 = vmatpush.bf16.msra.mxu3 %v15649_v10  ;;  %v5736_v22 = vshll.u32 %v5515_v31, 16  ;;  %v15640_v10 = vld [vmem:[%s19718_s3 + $0x340] sm:$0xff] }
 0x670   :  { %v5795_v38 = vpack.c.b16 %v5786_v48, %v5785_v37  ;;  %v13714_v48 = vld [vmem:[#allocation2 + $0x90] sm:$0xf]  ;;  %v5936_v31 = vld [vmem:[#allocation2 + $0x18] sm:$0xe] }
 0x671   :  { %5436 = vmatmul.bf16.gmra.mxu2 %v13711_v40  ;;  %v4057_v25 = vpop.f32.mrf.mxu1  ;;  %v15641_v40 = vld [vmem:[%s19718_s3 + $0x348] sm:$0xff]  ;;  %v13715_v47 = vor.u32 %v15614_v46, %v13714_v48  ;;  %v5934_v46 = vld [vmem:[#allocation2 + $0x10] sm:$0xe] }
 0x672   :  { %v17617_v5 = vadd.f32 %v4057_v25, %v3629_v39  ;;  %6182 = vmatpush.bf16.msra.mxu1 %v15632_v61  ;;  %v4963_v39 = vld [vmem:[#allocation2 + $0x98] sm:$0xc]  ;;  %v13623_v25 = vrot.slane %v4965_v34, 10  ;;  %v5733_v61 = vor.u32 %v5732_v43, %v5729_v60  ;;  %v5719_v60 = vor.u32 %v5718_v17, %v5715_v0 }
 0x673   :  { %6695 = vmatpush.bf16.msra.mxu2 %v15641_v40  ;;  %v13622_v33 = vrot.slane %v4963_v39, 10  ;;  %7018 = vmatpush.bf16.msra.mxu3 %v15648_v58  ;;  %v5937_v39 = vld [vmem:[#allocation2 + $0x1c] sm:$0x1]  ;;  %v6258_v58 = vld [vmem:[#allocation2 + $0x18] sm:$0xe] }
 0x674   :  { %v4374_v51 = vpop.f32.mrf.mxu2  ;;  %5214 = vmatmul.bf16.gmra.mxu1 %v5118_v53  ;;  %v5513_v53 = vld [vmem:[#allocation2 + $0xa4] sm:$0x1]  ;;  %v5062_v15 = vsel %vm16824_vm11, %v13623_v25, %v5061_v44  ;;  %v5734_v43 = vrot.slane %v5733_v61, 4  ;;  %v5738_v44 = vrot.slane %v5736_v22, 5  ;;  %v6004_v17 = vrot.slane %v5937_v39, 5 }
 0x675   :  { %v17625_v56 = vadd.f32 %v4374_v51, %v17561_v54  ;;  %v17635_v54 = vpop.f32.mrf.mxu3  ;;  %v5722_v49 = vshll.u32 %v5513_v53, 16  ;;  %v5058_v32 = vsel %vm16824_vm11, %v13622_v33, %v5057_v36  ;;  %v5111_v29 = vunpack.c.l.b16 %v5062_v15  ;;  %v6259_v22 = vld [vmem:[#allocation2 + $0x1c] sm:$0x3] }
 0x676   :  { %v5110_v40 = vunpack.c.l.b16 %v5058_v32  ;;  %v5720_v36 = vrot.slane %v5719_v60, 4  ;;  %v5739_v25 = vsel %vm16317_vm5, %v5734_v43, %v5738_v44  ;;  %v6307_v61 = vshrl.u32 %v6258_v58, 16  ;;  %v6256_v32 = vld [vmem:[#allocation2 + $0x10] sm:$0xe]  ;;  %v6773_v60 = vld [vmem:[#allocation2 + $0x1c] sm:$0x3] }
 0x677   :  { %6696 = vmatpush.bf16.msra.mxu2 %v15640_v10  ;;  %v5724_v37 = vrot.slane %v5722_v49, 5  ;;  %v6310_v33 = vshll.u32 %v6258_v58, 16  ;;  %v13801_v49 = vrot.slane %v5936_v31, 9  ;;  %v6319_v39 = vshll.u32 %v6259_v22, 16 }
 0x678   :  { %v6309_v43 = vrot.slane %v6307_v61, 5  ;;  %v6840_v61 = vrot.slane %v6773_v60, 6 }
 0x679   :  { %v4059_v45 = vpop.f32.mrf.mxu1  ;;  %v6312_v44 = vrot.slane %v6310_v33, 6  ;;  %v13718_v33 = vld [vmem:[#allocation2 + $0xa0] sm:$0xf] }
 0x67a   :  { %v17645_v41 = vadd.f32 %v4059_v45, %v3630_v55  ;;  %5891 = vmatmul.bf16.gmra.mxu3 %v5795_v38  ;;  %v5119_v38 = vpack.c.b16 %v5111_v29, %v5110_v40  ;;  %v6005_v29 = vsel %vm16301_vm4, %v13801_v49, %v6004_v17  ;;  %v6770_v17 = vld [vmem:[#allocation2 + $0x10] sm:$0xc] }
 0x67b   :  { %v6096_v31 = vunpack.c.l.b16 %v6005_v29  ;;  %v13912_v29 = vrot.slane %v6770_v17, 10 }
 0x67c   :  { %v4376_v51 = vpop.f32.mrf.mxu2 }
 0x67d   :  { %v17650_v1 = vadd.f32 %v4376_v51, %v17586_v9  ;;  %v17657_v34 = vpop.f32.mrf.mxu3  ;;  %v3631_v9 = vadd.f32 %v17402_v16, %v17410_v13  ;;  %v5725_v16 = vsel %vm16317_vm5, %v5720_v36, %v5724_v37  ;;  %v5935_v13 = vld [vmem:[#allocation2 + $0x14] sm:$0x1]  ;;  %v5788_v51 = vunpack.c.l.b16 %v5739_v25 }
 0x67e   :  { %v5787_v10 = vunpack.c.l.b16 %v5725_v16  ;;  %v6000_v48 = vrot.slane %v5935_v13, 5  ;;  %v6257_v37 = vld [vmem:[#allocation2 + $0x14] sm:$0x3]  ;;  %v6289_v36 = vshrl.u32 %v6256_v32, 16  ;;  %v6292_v25 = vshll.u32 %v6256_v32, 16 }
 0x67f   :  { %v6772_v16 = vld [vmem:[#allocation2 + $0x18] sm:$0xc]  ;;  %v6321_v32 = vrot.slane %v6319_v39, 6 }
 0x680   :  { %v5796_v40 = vpack.c.b16 %v5788_v51, %v5787_v10  ;;  %v6298_v51 = vshrl.u32 %v6257_v37, 16  ;;  %v6291_v11 = vrot.slane %v6289_v36, 5 }
 0x681   :  { %5441 = vmatmul.bf16.gmra.mxu2 %v13715_v47  ;;  %v4062_v55 = vpop.f32.mrf.mxu1  ;;  %v13800_v47 = vrot.slane %v5934_v46, 9  ;;  %v6301_v46 = vshll.u32 %v6257_v37, 16 }
 0x682   :  { %v17661_v45 = vadd.f32 %v4062_v55, %v3631_v9  ;;  %v6316_v55 = vshrl.u32 %v6259_v22, 16  ;;  %v6313_v22 = vor.u32 %v6312_v44, %v6309_v43  ;;  %v6300_v37 = vrot.slane %v6298_v51, 5  ;;  %v5940_v51 = vld [vmem:[#allocation2 + $0x28] sm:$0xe] }
 0x684   :  { %v4379_v53 = vpop.f32.mrf.mxu2  ;;  %5219 = vmatmul.bf16.gmra.mxu1 %v5119_v38  ;;  %v6771_v38 = vld [vmem:[#allocation2 + $0x14] sm:$0x3]  ;;  %v6318_v10 = vrot.slane %v6316_v55, 5  ;;  %v6314_v44 = vrot.slane %v6313_v22, 4 }
 0x685   :  { %v17666_v0 = vadd.f32 %v4379_v53, %v17617_v5  ;;  %v17670_v15 = vpop.f32.mrf.mxu3  ;;  %v3632_v5 = vadd.f32 %v17414_v8, %v17422_v2  ;;  %v15615_v8 = vld [vmem:[#allocation2 + $0xa4] sm:$0xf0]  ;;  %v6001_v2 = vsel %vm16301_vm4, %v13800_v47, %v6000_v48  ;;  %v6836_v49 = vrot.slane %v6771_v38, 6 }
 0x686   :  { %v6294_v48 = vrot.slane %v6292_v25, 6  ;;  %v6095_v47 = vunpack.c.l.b16 %v6001_v2  ;;  %v6303_v38 = vrot.slane %v6301_v46, 6  ;;  %v6322_v55 = vor.u32 %v6321_v32, %v6318_v10  ;;  %v6262_v2 = vld [vmem:[#allocation2 + $0x28] sm:$0xe]  ;;  %v6260_v32 = vld [vmem:[#allocation2 + $0x20] sm:$0xe] }
 0x687   :  { %v6837_v36 = vsel %vm16824_vm11, %v13912_v29, %v6836_v49  ;;  %v6343_v10 = vshrl.u32 %v6262_v2, 16  ;;  %v4904_v29 = vadd.f32 %v17442_v50, %v17451_v52 }
 0x688   :  { %v6295_v25 = vor.u32 %v6294_v48, %v6291_v11  ;;  %v6931_v46 = vunpack.c.l.b16 %v6837_v36  ;;  %v6325_v36 = vshrl.u32 %v6260_v32, 16 }
 0x689   :  { %v4064_v9 = vpop.f32.mrf.mxu1 }
 0x68a   :  { %v17676_v58 = vadd.f32 %v4064_v9, %v3632_v5  ;;  %5896 = vmatmul.bf16.gmra.mxu3 %v5796_v40  ;;  %v13719_v9 = vor.u32 %v15615_v8, %v13718_v33  ;;  %v13913_v40 = vrot.slane %v6772_v16, 10  ;;  %v5941_v8 = vld [vmem:[#allocation2 + $0x2c] sm:$0x1]  ;;  %v6323_v33 = vsel %vm16811_vm8, %v6314_v44, %v6322_v55 }
 0x68b   :  { %v6012_v22 = vrot.slane %v5941_v8, 5  ;;  %v6296_v11 = vrot.slane %v6295_v25, 4  ;;  %v6328_v25 = vshll.u32 %v6260_v32, 16  ;;  %v6345_v8 = vrot.slane %v6343_v10, 5  ;;  %v15671_v32 = vld [vmem:[%s19718_s3 + $0x3f8] sm:$0xff] }
 0x68c   :  { %v4381_v53 = vpop.f32.mrf.mxu2  ;;  %v6841_v60 = vsel %vm16824_vm11, %v13913_v40, %v6840_v61  ;;  %v5939_v61 = vld [vmem:[#allocation2 + $0x24] sm:$0x1]  ;;  %7238 = vmatpush.bf16.msrb.mxu1 %v15671_v32  ;;  %v5942_v32 = vld [vmem:[#allocation2 + $0x30] sm:$0xe] }
 0x68d   :  { %v17681_v13 = vadd.f32 %v4381_v53, %v17645_v41  ;;  %v17683_v5 = vpop.f32.mrf.mxu3  ;;  %v4903_v41 = vadd.f32 %v17429_v57, %v17438_v14  ;;  %v6111_v53 = vpack.c.b16 %v6096_v31, %v6095_v47  ;;  %v6932_v17 = vunpack.c.l.b16 %v6841_v60  ;;  %v5938_v31 = vld [vmem:[#allocation2 + $0x20] sm:$0xe]  ;;  %v6263_v47 = vld [vmem:[#allocation2 + $0x2c] sm:$0x3] }
 0x68e   :  { %v6304_v14 = vor.u32 %v6303_v38, %v6300_v37  ;;  %v6008_v48 = vrot.slane %v5939_v61, 5  ;;  %v6610_v60 = vunpack.c.l.b16 %v6323_v33  ;;  %v13802_v37 = vrot.slane %v5938_v31, 9  ;;  %v6775_v38 = vld [vmem:[#allocation2 + $0x24] sm:$0x3]  ;;  %v6774_v31 = vld [vmem:[#allocation2 + $0x20] sm:$0xc] }
 0x68f   :  { %v6947_v40 = vpack.c.b16 %v6932_v17, %v6931_v46  ;;  %v6352_v50 = vshrl.u32 %v6263_v47, 16  ;;  %v6355_v52 = vshll.u32 %v6263_v47, 16  ;;  %v6844_v46 = vrot.slane %v6775_v38, 6 }
 0x690   :  { %v6327_v47 = vrot.slane %v6325_v36, 5 }
 0x691   :  { %5446 = vmatmul.bf16.gmra.mxu2 %v13719_v9  ;;  %v5185_v43 = vpop.f32.mrf.mxu1  ;;  %v6346_v9 = vshll.u32 %v6262_v2, 16  ;;  %v6357_v38 = vrot.slane %v6355_v52, 6 }
 0x692   :  { %v17689_v39 = vadd.f32 %v5185_v43, %v4903_v41  ;;  %v6305_v41 = vsel %vm16811_vm8, %v6296_v11, %v6304_v14  ;;  %v6261_v43 = vld [vmem:[#allocation2 + $0x24] sm:$0x3] }
 0x693   :  { %v6348_v17 = vrot.slane %v6346_v9, 6  ;;  %v6609_v14 = vunpack.c.l.b16 %v6305_v41  ;;  %v6334_v11 = vshrl.u32 %v6261_v43, 16  ;;  %v6337_v10 = vshll.u32 %v6261_v43, 16 }
 0x694   :  { %v4384_v16 = vpop.f32.mrf.mxu2  ;;  %6183 = vmatmul.bf16.vlgmr.msra.gmra.mxu1 %v6111_v53  ;;  %v6777_v53 = vld [vmem:[#allocation2 + $0x2c] sm:$0x3]  ;;  %v4905_v43 = vadd.f32 %v17458_v30, %v17467_v4 }
 0x695   :  { %v17694_v57 = vadd.f32 %v4384_v16, %v17661_v45  ;;  %v17698_v49 = vpop.f32.mrf.mxu3  ;;  %v13803_v45 = vrot.slane %v5940_v51, 9  ;;  %v6776_v16 = vld [vmem:[#allocation2 + $0x28] sm:$0xc]  ;;  %v6009_v51 = vsel %vm16301_vm4, %v13802_v37, %v6008_v48  ;;  %v6625_v41 = vpack.c.b16 %v6610_v60, %v6609_v14 }
 0x696   :  { %v6349_v48 = vor.u32 %v6348_v17, %v6345_v8  ;;  %v6354_v37 = vrot.slane %v6352_v50, 5 }
 0x697   :  { %v6013_v55 = vsel %vm16301_vm4, %v13803_v45, %v6012_v22  ;;  %v6848_v22 = vrot.slane %v6777_v53, 6  ;;  %v13915_v45 = vrot.slane %v6776_v16, 10  ;;  %v6339_v16 = vrot.slane %v6337_v10, 6 }
 0x698   :  { %v6098_v9 = vunpack.c.l.b16 %v6013_v55  ;;  %v6336_v55 = vrot.slane %v6334_v11, 5  ;;  %v6350_v50 = vrot.slane %v6349_v48, 4  ;;  %v6358_v52 = vor.u32 %v6357_v38, %v6354_v37 }
 0x699   :  { %v5187_v44 = vpop.f32.mrf.mxu1  ;;  %v6849_v53 = vsel %vm16824_vm11, %v13915_v45, %v6848_v22  ;;  %v5945_v22 = vld [vmem:[#allocation2 + $0x3c] sm:$0x1] }
 0x69a   :  { %v17706_v2 = vadd.f32 %v5187_v44, %v4904_v29  ;;  %7019 = vmatmul.bf16.vlgmr.msra.gmra.mxu3 %v6947_v40  ;;  %v6330_v40 = vrot.slane %v6328_v25, 6  ;;  %v13914_v44 = vrot.slane %v6774_v31, 10  ;;  %v6934_v14 = vunpack.c.l.b16 %v6849_v53  ;;  %v5943_v31 = vld [vmem:[#allocation2 + $0x34] sm:$0x1] }
 0x69b   :  { %v6340_v4 = vor.u32 %v6339_v16, %v6336_v55  ;;  %v6020_v38 = vrot.slane %v5945_v22, 5  ;;  %v6779_v53 = vld [vmem:[#allocation2 + $0x34] sm:$0x3] }
 0x69c   :  { %v4386_v61 = vpop.f32.mrf.mxu2  ;;  %v6845_v25 = vsel %vm16824_vm11, %v13914_v44, %v6844_v46  ;;  %v6331_v60 = vor.u32 %v6330_v40, %v6327_v47  ;;  %v6264_v46 = vld [vmem:[#allocation2 + $0x30] sm:$0xe]  ;;  %v5944_v47 = vld [vmem:[#allocation2 + $0x38] sm:$0xe]  ;;  %v6267_v40 = vld [vmem:[#allocation2 + $0x3c] sm:$0x3] }
 0x69d   :  { %v17711_v33 = vadd.f32 %v4386_v61, %v17676_v58  ;;  %v17716_v29 = vpop.f32.mrf.mxu3  ;;  %v6097_v58 = vunpack.c.l.b16 %v6009_v51  ;;  %v6266_v51 = vld [vmem:[#allocation2 + $0x38] sm:$0xe]  ;;  %v6933_v11 = vunpack.c.l.b16 %v6845_v25  ;;  %v6265_v55 = vld [vmem:[#allocation2 + $0x34] sm:$0x3]  ;;  %v6361_v16 = vshrl.u32 %v6264_v46, 16 }
 0x69e   :  { %v6332_v10 = vrot.slane %v6331_v60, 4  ;;  %v6382_v48 = vshll.u32 %v6266_v51, 16  ;;  %v13805_v60 = vrot.slane %v5944_v47, 9  ;;  %v6391_v22 = vshll.u32 %v6267_v40, 16 }
 0x69f   :  { %v6112_v17 = vpack.c.b16 %v6098_v9, %v6097_v58  ;;  %v6359_v9 = vsel %vm16811_vm8, %v6350_v50, %v6358_v52  ;;  %v6948_v37 = vpack.c.b16 %v6934_v14, %v6933_v11  ;;  %v4906_v58 = vadd.f32 %v17471_v21, %v17480_v28  ;;  %v6780_v14 = vld [vmem:[#allocation2 + $0x38] sm:$0xc] }
 0x6a0   :  { %v6341_v44 = vsel %vm16811_vm8, %v6332_v10, %v6340_v4  ;;  %v6612_v25 = vunpack.c.l.b16 %v6359_v9  ;;  %v6364_v50 = vshll.u32 %v6264_v46, 16  ;;  %v6388_v52 = vshrl.u32 %v6267_v40, 16  ;;  %v6778_v46 = vld [vmem:[#allocation2 + $0x30] sm:$0xc]  ;;  %v15670_v40 = vld [vmem:[%s19718_s3 + $0x3f0] sm:$0xff] }
 0x6a1   :  { %6697 = vmatmul.bf16.vlgmr.msra.gmra.mxu2 %v6625_v41  ;;  %v5190_v36 = vpop.f32.mrf.mxu1  ;;  %v6379_v41 = vshrl.u32 %v6266_v51, 16  ;;  %v6611_v28 = vunpack.c.l.b16 %v6341_v44  ;;  %v6021_v11 = vsel %vm16301_vm4, %v13805_v60, %v6020_v38  ;;  %v6852_v10 = vrot.slane %v6779_v53, 6  ;;  %7239 = vmatpush.bf16.msrb.mxu1 %v15670_v40 }
 0x6a2   :  { %v17724_v8 = vadd.f32 %v5190_v36, %v4905_v43  ;;  %v13804_v43 = vrot.slane %v5942_v32, 9  ;;  %v6370_v47 = vshrl.u32 %v6265_v55, 16  ;;  %v6366_v44 = vrot.slane %v6364_v50, 6 }
 0x6a3   :  { %v6381_v51 = vrot.slane %v6379_v41, 5  ;;  %v6626_v41 = vpack.c.b16 %v6612_v25, %v6611_v28  ;;  %v6390_v53 = vrot.slane %v6388_v52, 5  ;;  %v13916_v60 = vrot.slane %v6778_v46, 10  ;;  %v6270_v28 = vld [vmem:[#allocation2 + $0x48] sm:$0xe] }
 0x6a4   :  { %v5412_v61 = vpop.f32.mrf.mxu2  ;;  %6188 = vmatmul.bf16.gmra.mxu1 %v6112_v17  ;;  %v6781_v17 = vld [vmem:[#allocation2 + $0x3c] sm:$0x3]  ;;  %v6372_v25 = vrot.slane %v6370_v47, 5  ;;  %v5949_v46 = vld [vmem:[#allocation2 + $0x4c] sm:$0x1] }
 0x6a5   :  { %v17727_v30 = vadd.f32 %v5412_v61, %v17689_v39  ;;  %v17729_v45 = vpop.f32.mrf.mxu3  ;;  %v6016_v39 = vrot.slane %v5943_v31, 5  ;;  %v6384_v31 = vrot.slane %v6382_v48, 6  ;;  %v6856_v9 = vrot.slane %v6781_v17, 6  ;;  %v6268_v47 = vld [vmem:[#allocation2 + $0x40] sm:$0xe] }
 0x6a6   :  { %v13917_v48 = vrot.slane %v6780_v14, 10  ;;  %v6853_v50 = vsel %vm16824_vm11, %v13916_v60, %v6852_v10  ;;  %v6397_v60 = vshrl.u32 %v6268_v47, 16 }
 0x6a7   :  { %v6017_v4 = vsel %vm16301_vm4, %v13804_v43, %v6016_v39  ;;  %v6100_v43 = vunpack.c.l.b16 %v6021_v11  ;;  %v6385_v38 = vor.u32 %v6384_v31, %v6381_v51 }
 0x6a8   :  { %v6857_v17 = vsel %vm16824_vm11, %v13917_v48, %v6856_v9  ;;  %v6935_v9 = vunpack.c.l.b16 %v6853_v50  ;;  %v5947_v48 = vld [vmem:[#allocation2 + $0x44] sm:$0x1] }
 0x6a9   :  { %v5192_v36 = vpop.f32.mrf.mxu1  ;;  %v6386_v31 = vrot.slane %v6385_v38, 4  ;;  %v6936_v11 = vunpack.c.l.b16 %v6857_v17  ;;  %v6028_v38 = vrot.slane %v5949_v46, 5  ;;  %v6269_v50 = vld [vmem:[#allocation2 + $0x44] sm:$0x3] }
 0x6aa   :  { %v17737_v61 = vadd.f32 %v5192_v36, %v4906_v58  ;;  %7024 = vmatmul.bf16.gmra.mxu3 %v6948_v37  ;;  %v6373_v58 = vshll.u32 %v6265_v55, 16  ;;  %v6363_v37 = vrot.slane %v6361_v16, 5  ;;  %v6393_v36 = vrot.slane %v6391_v22, 6  ;;  %v6783_v46 = vld [vmem:[#allocation2 + $0x44] sm:$0x3] }
 0x6ab   :  { %v4907_v55 = vadd.f32 %v17487_v62, %v17496_v27 }
 0x6ac   :  { %v5414_v21 = vpop.f32.mrf.mxu2  ;;  %v6375_v14 = vrot.slane %v6373_v58, 6  ;;  %v6394_v22 = vor.u32 %v6393_v36, %v6390_v53  ;;  %v6415_v58 = vshrl.u32 %v6270_v28, 16  ;;  %v6271_v53 = vld [vmem:[#allocation2 + $0x4c] sm:$0x3] }
 0x6ad   :  { %v17744_v32 = vadd.f32 %v5414_v21, %v17706_v2  ;;  %v17749_v39 = vpop.f32.mrf.mxu3  ;;  %v6099_v2 = vunpack.c.l.b16 %v6017_v4  ;;  %v6367_v21 = vor.u32 %v6366_v44, %v6363_v37  ;;  %v5948_v37 = vld [vmem:[#allocation2 + $0x48] sm:$0xe]  ;;  %v6418_v44 = vshll.u32 %v6270_v28, 16 }
 0x6ae   :  { %v6376_v27 = vor.u32 %v6375_v14, %v6372_v25  ;;  %v6024_v14 = vrot.slane %v5947_v48, 5  ;;  %v6424_v28 = vshrl.u32 %v6271_v53, 16  ;;  %v15669_v48 = vld [vmem:[%s19718_s3 + $0x3e8] sm:$0xff] }
 0x6af   :  { %v6113_v52 = vpack.c.b16 %v6100_v43, %v6099_v2  ;;  %v6368_v10 = vrot.slane %v6367_v21, 4  ;;  %v6949_v43 = vpack.c.b16 %v6936_v11, %v6935_v9  ;;  %v5946_v2 = vld [vmem:[#allocation2 + $0x40] sm:$0xe]  ;;  %v6417_v21 = vrot.slane %v6415_v58, 5  ;;  %7240 = vmatpush.bf16.msrb.mxu1 %v15669_v48  ;;  %v5952_v48 = vld [vmem:[#allocation2 + $0x78] sm:$0xe] }
 0x6b0   :  { %v6406_v58 = vshrl.u32 %v6269_v50, 16 }
 0x6b1   :  { %6702 = vmatmul.bf16.gmra.mxu2 %v6626_v41  ;;  %v5195_v16 = vpop.f32.mrf.mxu1  ;;  %v6395_v41 = vsel %vm16811_vm8, %v6386_v31, %v6394_v22  ;;  %v6377_v36 = vsel %vm16811_vm8, %v6368_v10, %v6376_v27  ;;  %v6785_v31 = vld [vmem:[#allocation2 + $0x4c] sm:$0x3]  ;;  %v6420_v22 = vrot.slane %v6418_v44, 6  ;;  %v6399_v10 = vrot.slane %v6397_v60, 5 }
 0x6b2   :  { %v17757_v51 = vadd.f32 %v5195_v16, %v4907_v55  ;;  %v6400_v55 = vshll.u32 %v6268_v47, 16  ;;  %v6614_v25 = vunpack.c.l.b16 %v6395_v41  ;;  %v13807_v16 = vrot.slane %v5948_v37, 9  ;;  %v6784_v47 = vld [vmem:[#allocation2 + $0x48] sm:$0xc] }
 0x6b3   :  { %v6409_v41 = vshll.u32 %v6269_v50, 16  ;;  %v6860_v60 = vrot.slane %v6783_v46, 6  ;;  %v4909_v50 = vadd.f32 %v17516_v63, %v17525_v23  ;;  %v6274_v46 = vld [vmem:[#allocation2 + $0x78] sm:$0xe] }
 0x6b4   :  { %v5417_v4 = vpop.f32.mrf.mxu2  ;;  %6193 = vmatmul.bf16.gmra.mxu1 %v6113_v52  ;;  %v6029_v27 = vsel %vm16301_vm4, %v13807_v16, %v6028_v38  ;;  %v13919_v16 = vrot.slane %v6784_v47, 10 }
 0x6b5   :  { %v17760_v62 = vadd.f32 %v5417_v4, %v17724_v8  ;;  %v17762_v40 = vpop.f32.mrf.mxu3  ;;  %v4908_v8 = vadd.f32 %v17500_v19, %v17509_v7  ;;  %v6427_v4 = vshll.u32 %v6271_v53, 16  ;;  %v6613_v19 = vunpack.c.l.b16 %v6377_v36  ;;  %v6782_v36 = vld [vmem:[#allocation2 + $0x40] sm:$0xc] }
 0x6b6   :  { %v13806_v7 = vrot.slane %v5946_v2, 9  ;;  %v6402_v53 = vrot.slane %v6400_v55, 6  ;;  %v6102_v38 = vunpack.c.l.b16 %v6029_v27  ;;  %v6426_v2 = vrot.slane %v6424_v28, 5 }
 0x6b7   :  { %v6627_v37 = vpack.c.b16 %v6614_v25, %v6613_v19  ;;  %v6411_v19 = vrot.slane %v6409_v41, 6 }
 0x6b8   :  { %v6025_v44 = vsel %vm16301_vm4, %v13806_v7, %v6024_v14  ;;  %v6403_v7 = vor.u32 %v6402_v53, %v6399_v10 }
 0x6b9   :  { %v5197_v17 = vpop.f32.mrf.mxu1  ;;  %v6101_v25 = vunpack.c.l.b16 %v6025_v44  ;;  %v6451_v44 = vshrl.u32 %v6274_v46, 16 }
 0x6ba   :  { %v17770_v52 = vadd.f32 %v5197_v17, %v4908_v8  ;;  %7029 = vmatmul.bf16.gmra.mxu3 %v6949_v43  ;;  %v6864_v43 = vrot.slane %v6785_v31, 6  ;;  %v6429_v17 = vrot.slane %v6427_v4, 6  ;;  %v13918_v31 = vrot.slane %v6782_v36, 10  ;;  %v5953_v4 = vld [vmem:[#allocation2 + $0x7c] sm:$0x1] }
 0x6bb   :  { %v6036_v10 = vrot.slane %v5953_v4, 5 }
 0x6bc   :  { %v5419_v11 = vpop.f32.mrf.mxu2  ;;  %v6865_v55 = vsel %vm16824_vm11, %v13919_v16, %v6864_v43  ;;  %v6430_v28 = vor.u32 %v6429_v17, %v6426_v2  ;;  %v6861_v63 = vsel %vm16824_vm11, %v13918_v31, %v6860_v60  ;;  %v6454_v2 = vshll.u32 %v6274_v46, 16  ;;  %v6275_v60 = vld [vmem:[#allocation2 + $0x7c] sm:$0x3] }
 0x6bd   :  { %v17775_v9 = vadd.f32 %v5419_v11, %v17737_v61  ;;  %v17782_v8 = vpop.f32.mrf.mxu3  ;;  %v6421_v61 = vor.u32 %v6420_v22, %v6417_v21  ;;  %v6408_v11 = vrot.slane %v6406_v58, 5  ;;  %v6114_v21 = vpack.c.b16 %v6102_v38, %v6101_v25 }
 0x6be   :  { %v6938_v58 = vunpack.c.l.b16 %v6865_v55  ;;  %v6937_v53 = vunpack.c.l.b16 %v6861_v63  ;;  %v6404_v38 = vrot.slane %v6403_v7, 4  ;;  %v13809_v17 = vrot.slane %v5952_v48, 9 }
 0x6bf   :  { %v6422_v22 = vrot.slane %v6421_v61, 4  ;;  %v6412_v41 = vor.u32 %v6411_v19, %v6408_v11  ;;  %v5950_v61 = vld [vmem:[#allocation2 + $0x70] sm:$0xe]  ;;  %v6453_v7 = vrot.slane %v6451_v44, 5  ;;  %v6460_v4 = vshrl.u32 %v6275_v60, 16 }
 0x6c0   :  { %v6950_v16 = vpack.c.b16 %v6938_v58, %v6937_v53  ;;  %v6272_v11 = vld [vmem:[#allocation2 + $0x70] sm:$0xe]  ;;  %v13808_v31 = vrot.slane %v5950_v61, 9  ;;  %v6037_v55 = vsel %vm16301_vm4, %v13809_v17, %v6036_v10  ;;  %v6463_v46 = vshll.u32 %v6275_v60, 16  ;;  %v6787_v53 = vld [vmem:[#allocation2 + $0x74] sm:$0x3] }
 0x6c1   :  { %6707 = vmatmul.bf16.gmra.mxu2 %v6627_v37  ;;  %v5200_v14 = vpop.f32.mrf.mxu1  ;;  %v5951_v37 = vld [vmem:[#allocation2 + $0x74] sm:$0x1]  ;;  %v6431_v36 = vsel %vm16811_vm8, %v6422_v22, %v6430_v28  ;;  %v6456_v28 = vrot.slane %v6454_v2, 6  ;;  %v6433_v63 = vshrl.u32 %v6272_v11, 16  ;;  %v6436_v58 = vshll.u32 %v6272_v11, 16 }
 0x6c2   :  { %v17788_v27 = vadd.f32 %v5200_v14, %v4909_v50  ;;  %v6413_v50 = vsel %vm16811_vm8, %v6404_v38, %v6412_v41  ;;  %v6032_v25 = vrot.slane %v5951_v37, 5  ;;  %v6616_v14 = vunpack.c.l.b16 %v6431_v36  ;;  %v6273_v22 = vld [vmem:[#allocation2 + $0x74] sm:$0x3]  ;;  %v15668_v37 = vld [vmem:[%s19718_s3 + $0x3e0] sm:$0xff]  ;;  %v6786_v17 = vld [vmem:[#allocation2 + $0x70] sm:$0xc] }
 0x6c3   :  { %v6104_v44 = vunpack.c.l.b16 %v6037_v55  ;;  %v6788_v38 = vld [vmem:[#allocation2 + $0x78] sm:$0xc]  ;;  %v6442_v36 = vshrl.u32 %v6273_v22, 16  ;;  %v6445_v61 = vshll.u32 %v6273_v22, 16  ;;  %7241 = vmatpush.bf16.msrb.mxu1 %v15668_v37  ;;  %v6438_v11 = vrot.slane %v6436_v58, 6 }
 0x6c4   :  { %v5422_v47 = vpop.f32.mrf.mxu2  ;;  %6198 = vmatmul.bf16.gmra.mxu1 %v6114_v21  ;;  %v6033_v48 = vsel %vm16301_vm4, %v13808_v31, %v6032_v25  ;;  %v6435_v25 = vrot.slane %v6433_v63, 5  ;;  %v13921_v31 = vrot.slane %v6788_v38, 10  ;;  %v13920_v22 = vrot.slane %v6786_v17, 10  ;;  %v5957_v63 = vld [vmem:[#allocation2 + $0x8c] sm:$0x1] }
 0x6c5   :  { %v17793_v23 = vadd.f32 %v5422_v47, %v17757_v51  ;;  %v17795_v43 = vpop.f32.mrf.mxu3  ;;  %v4910_v51 = vadd.f32 %v17529_v24, %v17538_v35  ;;  %v6615_v35 = vunpack.c.l.b16 %v6413_v50  ;;  %v6789_v47 = vld [vmem:[#allocation2 + $0x7c] sm:$0x3]  ;;  %v6103_v50 = vunpack.c.l.b16 %v6033_v48 }
 0x6c6   :  { %19783 = vst [vmem:[#allocation24_spill] sm:$0xff] %v17795_v43  ;;  %v6872_v60 = vrot.slane %v6789_v47, 6  ;;  %v6439_v47 = vor.u32 %v6438_v11, %v6435_v25 }
 0x6c7   :  { %v6628_v10 = vpack.c.b16 %v6616_v14, %v6615_v35  ;;  %v6868_v14 = vrot.slane %v6787_v53, 6  ;;  %v6444_v35 = vrot.slane %v6442_v36, 5  ;;  %v5954_v36 = vld [vmem:[#allocation2 + $0x80] sm:$0xe] }
 0x6c9   :  { %v5202_v19 = vpop.f32.mrf.mxu1 }
 0x6ca   :  { %v17805_v21 = vadd.f32 %v5202_v19, %v4910_v51  ;;  %7034 = vmatmul.bf16.gmra.mxu3 %v6950_v16  ;;  %v6457_v51 = vor.u32 %v6456_v28, %v6453_v7  ;;  %v6465_v16 = vrot.slane %v6463_v46, 6  ;;  %v4911_v19 = vadd.f32 %v17551_v18, %v17566_v42  ;;  %v6278_v42 = vld [vmem:[#allocation2 + $0x88] sm:$0xe] }
 0x6cb   :  { %v6873_v7 = vsel %vm16824_vm11, %v13921_v31, %v6872_v60  ;;  %v6869_v18 = vsel %vm16824_vm11, %v13920_v22, %v6868_v14  ;;  %v6440_v60 = vrot.slane %v6439_v47, 4 }
 0x6cc   :  { %v5424_v24 = vpop.f32.mrf.mxu2  ;;  %v6458_v28 = vrot.slane %v6457_v51, 4  ;;  %v6940_v48 = vunpack.c.l.b16 %v6873_v7  ;;  %v6939_v17 = vunpack.c.l.b16 %v6869_v18  ;;  %v6487_v51 = vshrl.u32 %v6278_v42, 16  ;;  %v6793_v7 = vld [vmem:[#allocation2 + $0x8c] sm:$0x3] }
 0x6cd   :  { %v17808_v41 = vadd.f32 %v5424_v24, %v17770_v52  ;;  %v17815_v2 = vpop.f32.mrf.mxu3  ;;  %v6462_v52 = vrot.slane %v6460_v4, 5  ;;  %v6115_v24 = vpack.c.b16 %v6104_v44, %v6103_v50  ;;  %v5956_v44 = vld [vmem:[#allocation2 + $0x88] sm:$0xe] }
 0x6ce   :  { %19784 = vst [vmem:[#allocation18_spill] sm:$0xff] %v17815_v2  ;;  %v6447_v2 = vrot.slane %v6445_v61, 6  ;;  %v6044_v61 = vrot.slane %v5957_v63, 5  ;;  %v13811_v25 = vrot.slane %v5956_v44, 9  ;;  %v6489_v47 = vrot.slane %v6487_v51, 5  ;;  %v15667_v44 = vld [vmem:[%s19718_s3 + $0x3d8] sm:$0xff] }
 0x6cf   :  { %v6466_v4 = vor.u32 %v6465_v16, %v6462_v52  ;;  %v6490_v52 = vshll.u32 %v6278_v42, 16  ;;  %v4912_v16 = vadd.f32 %v17576_v20, %v17594_v26  ;;  %7242 = vmatpush.bf16.msrb.mxu1 %v15667_v44  ;;  %v6282_v44 = vld [vmem:[#allocation2 + $0x98] sm:$0xe] }
 0x6d0   :  { %v6448_v37 = vor.u32 %v6447_v2, %v6444_v35  ;;  %v6279_v2 = vld [vmem:[#allocation2 + $0x8c] sm:$0x3]  ;;  %v6045_v35 = vsel %vm16301_vm4, %v13811_v25, %v6044_v61  ;;  %v6880_v61 = vrot.slane %v6793_v7, 6 }
 0x6d1   :  { %6712 = vmatmul.bf16.gmra.mxu2 %v6628_v10  ;;  %v5205_v55 = vpop.f32.mrf.mxu1  ;;  %v5955_v10 = vld [vmem:[#allocation2 + $0x84] sm:$0x1]  ;;  %v6467_v38 = vsel %vm16811_vm8, %v6458_v28, %v6466_v4  ;;  %v6492_v63 = vrot.slane %v6490_v52, 6  ;;  %v6496_v18 = vshrl.u32 %v6279_v2, 16  ;;  %v6499_v42 = vshll.u32 %v6279_v2, 16 }
 0x6d2   :  { %v17819_v43 = vadd.f32 %v5205_v55, %v4911_v19  ;;  %v6040_v50 = vrot.slane %v5955_v10, 5  ;;  %v6951_v19 = vpack.c.b16 %v6940_v48, %v6939_v17  ;;  %v6449_v14 = vsel %vm16811_vm8, %v6440_v60, %v6448_v37  ;;  %v6277_v28 = vld [vmem:[#allocation2 + $0x84] sm:$0x3]  ;;  %v6790_v52 = vld [vmem:[#allocation2 + $0x80] sm:$0xc] }
 0x6d3   :  { %v6618_v31 = vunpack.c.l.b16 %v6467_v38  ;;  %v13810_v55 = vrot.slane %v5954_v36, 9  ;;  %v6617_v37 = vunpack.c.l.b16 %v6449_v14  ;;  %v15687_v38 = vld [vmem:[%s19718_s3 + $0x478] sm:$0xff]  ;;  %v6478_v17 = vshrl.u32 %v6277_v28, 16 }
 0x6d4   :  { %v5427_v46 = vpop.f32.mrf.mxu2  ;;  %6203 = vmatmul.bf16.gmra.mxu1 %v6115_v24  ;;  %v6791_v24 = vld [vmem:[#allocation2 + $0x84] sm:$0x3]  ;;  %v6481_v60 = vshll.u32 %v6277_v28, 16  ;;  %v6106_v51 = vunpack.c.l.b16 %v6045_v35  ;;  %8010 = vmatpush.bf16.msrb.mxu3 %v15687_v38  ;;  %v6493_v2 = vor.u32 %v6492_v63, %v6489_v47  ;;  %v4913_v14 = vadd.f32 %v17607_v3, %v17625_v56  ;;  %v15678_v38 = vld [vmem:[%s19718_s3 + $0x430] sm:$0xff] }
 0x6d5   :  { %v17824_v58 = vadd.f32 %v5427_v46, %v17788_v27  ;;  %v17828_v53 = vpop.f32.mrf.mxu3  ;;  %v6276_v27 = vld [vmem:[#allocation2 + $0x80] sm:$0xe]  ;;  %v6792_v46 = vld [vmem:[#allocation2 + $0x88] sm:$0xc]  ;;  %v6041_v10 = vsel %vm16301_vm4, %v13810_v55, %v6040_v50  ;;  %v6876_v36 = vrot.slane %v6791_v24, 6  ;;  %v15679_v24 = vld [vmem:[%s19718_s3 + $0x438] sm:$0xff] }
 0x6d6   :  { %v6469_v4 = vshrl.u32 %v6276_v27, 16  ;;  %v6472_v20 = vshll.u32 %v6276_v27, 16  ;;  %v6105_v55 = vunpack.c.l.b16 %v6041_v10  ;;  %v13922_v7 = vrot.slane %v6790_v52, 10  ;;  %7688 = vmatpush.bf16.msrb.mxu2 %v15679_v24  ;;  %v5959_v52 = vld [vmem:[#allocation2 + $0x94] sm:$0x1] }
 0x6d7   :  { %v6494_v63 = vrot.slane %v6493_v2, 4 }
 0x6d8   :  { %v6471_v25 = vrot.slane %v6469_v4, 5  ;;  %v6474_v50 = vrot.slane %v6472_v20, 6  ;;  %v6480_v4 = vrot.slane %v6478_v17, 5  ;;  %v6483_v20 = vrot.slane %v6481_v60, 6  ;;  %v6280_v60 = vld [vmem:[#allocation2 + $0x90] sm:$0xe] }
 0x6d9   :  { %v5207_v11 = vpop.f32.mrf.mxu1  ;;  %v6877_v56 = vsel %vm16824_vm11, %v13922_v7, %v6876_v36  ;;  %v5960_v36 = vld [vmem:[#allocation2 + $0x98] sm:$0xe] }
 0x6da   :  { %v17836_v22 = vadd.f32 %v5207_v11, %v4912_v16  ;;  %7039 = vmatmul.bf16.gmra.mxu3 %v6951_v19  ;;  %v13923_v16 = vrot.slane %v6792_v46, 10  ;;  %v6498_v11 = vrot.slane %v6496_v18, 5  ;;  %v6501_v19 = vrot.slane %v6499_v42, 6  ;;  %v5961_v42 = vld [vmem:[#allocation2 + $0x9c] sm:$0x1]  ;;  %7689 = vmatpush.bf16.msrb.mxu2 %v15678_v38 }
 0x6db   :  { %v6116_v46 = vpack.c.b16 %v6106_v51, %v6105_v55  ;;  %v6475_v47 = vor.u32 %v6474_v50, %v6471_v25  ;;  %v6484_v17 = vor.u32 %v6483_v20, %v6480_v4  ;;  %v6941_v51 = vunpack.c.l.b16 %v6877_v56  ;;  %v15684_v25 = vld [vmem:[%s19718_s3 + $0x460] sm:$0xff]  ;;  %v6281_v20 = vld [vmem:[#allocation2 + $0x94] sm:$0x3] }
 0x6dc   :  { %v5429_v26 = vpop.f32.mrf.mxu2  ;;  %v6881_v28 = vsel %vm16824_vm11, %v13923_v16, %v6880_v61  ;;  %v6502_v18 = vor.u32 %v6501_v19, %v6498_v11  ;;  %v15685_v61 = vld [vmem:[%s19718_s3 + $0x468] sm:$0xff]  ;;  %v5958_v11 = vld [vmem:[#allocation2 + $0x90] sm:$0xe]  ;;  %v6523_v19 = vshrl.u32 %v6282_v44, 16  ;;  %v4914_v55 = vadd.f32 %v17635_v54, %v17650_v1  ;;  %v6797_v54 = vld [vmem:[#allocation2 + $0x9c] sm:$0x3] }
 0x6dd   :  { %v17841_v48 = vadd.f32 %v5429_v26, %v17805_v21  ;;  %v17851_v27 = vpop.f32.mrf.mxu3  ;;  %v6629_v21 = vpack.c.b16 %v6618_v31, %v6617_v37  ;;  %v15686_v31 = vld [vmem:[%s19718_s3 + $0x470] sm:$0xff]  ;;  %v6942_v10 = vunpack.c.l.b16 %v6881_v28  ;;  %v15677_v16 = vld [vmem:[%s19718_s3 + $0x428] sm:$0xff]  ;;  %v6476_v50 = vrot.slane %v6475_v47, 4 }
 0x6de   :  { %8011 = vmatpush.bf16.msrb.mxu3 %v15686_v31  ;;  %v6503_v2 = vsel %vm16811_vm8, %v6494_v63, %v6502_v18  ;;  %v13813_v31 = vrot.slane %v5960_v36, 9  ;;  %v6048_v4 = vrot.slane %v5959_v52, 5  ;;  %v13812_v63 = vrot.slane %v5958_v11, 9  ;;  %7690 = vmatpush.bf16.msrb.mxu2 %v15677_v16  ;;  %v15666_v1 = vld [vmem:[%s19718_s3 + $0x3d0] sm:$0xff]  ;;  %v15820_v16 = vld [vmem:[%s19720_s5 + $0x220] sm:$0xff] }
 0x6df   :  { %v6952_v24 = vpack.c.b16 %v6942_v10, %v6941_v51  ;;  %v6485_v28 = vsel %vm16811_vm8, %v6476_v50, %v6484_v17  ;;  %v6620_v47 = vunpack.c.l.b16 %v6503_v2  ;;  %v6525_v38 = vrot.slane %v6523_v19, 5  ;;  %7243 = vmatpush.bf16.msrb.mxu1 %v15666_v1  ;;  %v15683_v50 = vld [vmem:[%s19718_s3 + $0x458] sm:$0xff]  ;;  %12090 = vmatpush.bf16.msrb.mxu0 %v15820_v16 }
 0x6e0   :  { %v6619_v51 = vunpack.c.l.b16 %v6485_v28  ;;  %v6514_v52 = vshrl.u32 %v6281_v20, 16  ;;  %v6888_v2 = vrot.slane %v6797_v54, 6 }
 0x6e1   :  { %6717 = vmatmul.bf16.gmra.mxu2 %v6629_v21  ;;  %v5210_v35 = vpop.f32.mrf.mxu1 }
 0x6e2   :  { %v17863_v26 = vadd.f32 %v5210_v35, %v4913_v14  ;;  %8012 = vmatpush.bf16.msrb.mxu3 %v15685_v61  ;;  %v6526_v14 = vshll.u32 %v6282_v44, 16  ;;  %v6283_v35 = vld [vmem:[#allocation2 + $0x9c] sm:$0x3]  ;;  %v6796_v44 = vld [vmem:[#allocation2 + $0x98] sm:$0xc] }
 0x6e3   :  { %v6532_v17 = vshrl.u32 %v6283_v35, 16  ;;  %v6535_v36 = vshll.u32 %v6283_v35, 16  ;;  %v6794_v35 = vld [vmem:[#allocation2 + $0x90] sm:$0xc]  ;;  %v13925_v28 = vrot.slane %v6796_v44, 10 }
 0x6e4   :  { %v5432_v3 = vpop.f32.mrf.mxu2  ;;  %6208 = vmatmul.bf16.gmra.mxu1 %v6116_v46  ;;  %v6505_v46 = vshrl.u32 %v6280_v60, 16  ;;  %v6528_v61 = vrot.slane %v6526_v14, 6  ;;  %v15665_v14 = vld [vmem:[%s19718_s3 + $0x3c8] sm:$0xff]  ;;  %v13924_v54 = vrot.slane %v6794_v35, 10 }
 0x6e5   :  { %v17868_v37 = vadd.f32 %v5432_v3, %v17819_v43  ;;  %v17876_v21 = vpop.f32.mrf.mxu3  ;;  %v6052_v43 = vrot.slane %v5961_v42, 5  ;;  %v6508_v3 = vshll.u32 %v6280_v60, 16  ;;  %v6795_v42 = vld [vmem:[#allocation2 + $0x94] sm:$0x3]  ;;  %v6534_v1 = vrot.slane %v6532_v17, 5  ;;  %7244 = vmatpush.bf16.msrb.mxu1 %v15665_v14 }
 0x6e6   :  { %8013 = vmatpush.bf16.msrb.mxu3 %v15684_v25  ;;  %v15676_v25 = vld [vmem:[%s19718_s3 + $0x420] sm:$0xff]  ;;  %v6507_v11 = vrot.slane %v6505_v46, 5  ;;  %v6889_v44 = vsel %vm16824_vm11, %v13925_v28, %v6888_v2  ;;  %v15674_v2 = vld [vmem:[%s19718_s3 + $0x410] sm:$0xff]  ;;  %v5962_v14 = vld [vmem:[#allocation2 + $0xa0] sm:$0xe] }
 0x6e7   :  { %v6053_v18 = vsel %vm16301_vm4, %v13813_v31, %v6052_v43  ;;  %v6517_v43 = vshll.u32 %v6281_v20, 16  ;;  %v6510_v19 = vrot.slane %v6508_v3, 6  ;;  %7691 = vmatpush.bf16.msrb.mxu2 %v15676_v25  ;;  %v6529_v20 = vor.u32 %v6528_v61, %v6525_v38  ;;  %v5963_v35 = vld [vmem:[#allocation2 + $0xa4] sm:$0x1] }
 0x6e8   :  { %v6108_v31 = vunpack.c.l.b16 %v6053_v18  ;;  %v6516_v3 = vrot.slane %v6514_v52, 5  ;;  %v15682_v18 = vld [vmem:[%s19718_s3 + $0x450] sm:$0xff]  ;;  %v6944_v25 = vunpack.c.l.b16 %v6889_v44  ;;  %v6056_v44 = vrot.slane %v5963_v35, 5 }
 0x6e9   :  { %v5212_v7 = vpop.f32.mrf.mxu1  ;;  %v6511_v38 = vor.u32 %v6510_v19, %v6507_v11  ;;  %v15681_v11 = vld [vmem:[%s19718_s3 + $0x448] sm:$0xff] }
 0x6ea   :  { %v17890_v56 = vadd.f32 %v5212_v7, %v4914_v55  ;;  %7044 = vmatmul.bf16.gmra.mxu3 %v6952_v24  ;;  %v6630_v24 = vpack.c.b16 %v6620_v47, %v6619_v51  ;;  %v6884_v7 = vrot.slane %v6795_v42, 6  ;;  %v15675_v47 = vld [vmem:[%s19718_s3 + $0x418] sm:$0xff]  ;;  %v6530_v51 = vrot.slane %v6529_v20, 4  ;;  %v15673_v20 = vld [vmem:[%s19718_s3 + $0x408] sm:$0xff] }
 0x6eb   :  { %8014 = vmatpush.bf16.msrb.mxu3 %v15683_v50  ;;  %7692 = vmatpush.bf16.msrb.mxu2 %v15675_v47  ;;  %v6512_v19 = vrot.slane %v6511_v38, 4  ;;  %v6287_v47 = vld [vmem:[#allocation2 + $0xac] sm:$0x3] }
 0x6ec   :  { %v5434_v10 = vpop.f32.mrf.mxu2 }
 0x6ed   :  { %v17898_v60 = vadd.f32 %v5434_v10, %v17836_v22  ;;  %v6049_v22 = vsel %vm16301_vm4, %v13812_v63, %v6048_v4  ;;  %v17914_v55 = vpop.f32.mrf.mxu3  ;;  %v6537_v10 = vrot.slane %v6535_v36, 6  ;;  %v4915_v4 = vadd.f32 %v17657_v34, %v17666_v0  ;;  %v15664_v0 = vld [vmem:[%s19718_s3 + $0x3c0] sm:$0xff] }
 0x6ee   :  { %v6107_v46 = vunpack.c.l.b16 %v6049_v22  ;;  %v6519_v63 = vrot.slane %v6517_v43, 6  ;;  %v6885_v36 = vsel %vm16824_vm11, %v13924_v54, %v6884_v7  ;;  %v6286_v43 = vld [vmem:[#allocation2 + $0xa8] sm:$0xe]  ;;  %v5965_v22 = vld [vmem:[#allocation2 + $0xac] sm:$0x1]  ;;  %7245 = vmatpush.bf16.msrb.mxu1 %v15664_v0  ;;  %v13814_v54 = vrot.slane %v5962_v14, 9 }
 0x6ef   :  { %v6538_v52 = vor.u32 %v6537_v10, %v6534_v1  ;;  %8015 = vmatpush.bf16.msrb.mxu3 %v15682_v18  ;;  %v5964_v7 = vld [vmem:[#allocation2 + $0xa8] sm:$0xe]  ;;  %v6559_v28 = vshrl.u32 %v6286_v43, 16  ;;  %7693 = vmatpush.bf16.msrb.mxu2 %v15674_v2  ;;  %v6060_v10 = vrot.slane %v5965_v22, 5  ;;  %v15680_v18 = vld [vmem:[%s19718_s3 + $0x440] sm:$0xff]  ;;  %v6571_v22 = vshll.u32 %v6287_v47, 16 }
 0x6f0   :  { %v6117_v34 = vpack.c.b16 %v6108_v31, %v6107_v46  ;;  %v6520_v50 = vor.u32 %v6519_v63, %v6516_v3  ;;  %v4916_v46 = vadd.f32 %v17670_v15, %v17681_v13  ;;  %v13815_v38 = vrot.slane %v5964_v7, 9 }
 0x6f1   :  { %6722 = vmatmul.bf16.gmra.mxu2 %v6630_v24  ;;  %v5215_v42 = vpop.f32.mrf.mxu1  ;;  %v6284_v24 = vld [vmem:[#allocation2 + $0xa0] sm:$0xe]  ;;  %v6539_v1 = vsel %vm16811_vm8, %v6530_v51, %v6538_v52  ;;  %v6561_v15 = vrot.slane %v6559_v28, 5  ;;  %v6057_v14 = vsel %vm16301_vm4, %v13814_v54, %v6056_v44 }
 0x6f2   :  { %v17926_v61 = vadd.f32 %v5215_v42, %v4915_v4  ;;  %v6562_v4 = vshll.u32 %v6286_v43, 16  ;;  %v6521_v63 = vsel %vm16811_vm8, %v6512_v19, %v6520_v50  ;;  %v6544_v51 = vshll.u32 %v6284_v24, 16  ;;  %v6801_v43 = vld [vmem:[#allocation2 + $0xac] sm:$0x3]  ;;  %v15672_v19 = vld [vmem:[%s19718_s3 + $0x400] sm:$0xff] }
 0x6f3   :  { %8016 = vmatpush.bf16.msrb.mxu3 %v15681_v11  ;;  %7694 = vmatpush.bf16.msrb.mxu2 %v15673_v20  ;;  %v6061_v52 = vsel %vm16301_vm4, %v13815_v38, %v6060_v10  ;;  %v6568_v50 = vshrl.u32 %v6287_v47, 16  ;;  %v6621_v11 = vunpack.c.l.b16 %v6521_v63  ;;  %v6896_v10 = vrot.slane %v6801_v43, 6 }
 0x6f4   :  { %v5437_v17 = vpop.f32.mrf.mxu2  ;;  %6213 = vmatmul.bf16.gmra.mxu1 %v6117_v34  ;;  %v6541_v34 = vshrl.u32 %v6284_v24, 16  ;;  %v6799_v24 = vld [vmem:[#allocation2 + $0xa4] sm:$0x3]  ;;  %v6573_v47 = vrot.slane %v6571_v22, 6 }
 0x6f5   :  { %v17934_v16 = vadd.f32 %v5437_v17, %v17863_v26  ;;  %v17942_v31 = vpop.f32.mrf.mxu3  ;;  %v6943_v26 = vunpack.c.l.b16 %v6885_v36  ;;  %v6622_v17 = vunpack.c.l.b16 %v6539_v1  ;;  %v6285_v36 = vld [vmem:[#allocation2 + $0xa4] sm:$0x3]  ;;  %v6110_v1 = vunpack.c.l.b16 %v6061_v52 }
 0x6f6   :  { %v6550_v35 = vshrl.u32 %v6285_v36, 16  ;;  %v6553_v7 = vshll.u32 %v6285_v36, 16  ;;  %v6570_v63 = vrot.slane %v6568_v50, 5  ;;  %v6892_v54 = vrot.slane %v6799_v24, 6  ;;  %v7321_v24 = vld [vmem:[#allocation2 + $0x20] sm:$0xf] }
 0x6f7   :  { %v6953_v3 = vpack.c.b16 %v6944_v25, %v6943_v26  ;;  %v6564_v25 = vrot.slane %v6562_v4, 6  ;;  %8017 = vmatpush.bf16.msrb.mxu3 %v15680_v18  ;;  %v6800_v26 = vld [vmem:[#allocation2 + $0xa8] sm:$0xc]  ;;  %v6631_v20 = vpack.c.b16 %v6622_v17, %v6621_v11  ;;  %7695 = vmatpush.bf16.msrb.mxu2 %v15672_v19  ;;  %v6798_v4 = vld [vmem:[#allocation2 + $0xa0] sm:$0xc]  ;;  %v4917_v18 = vadd.f32 %v17683_v5, %v17694_v57 }
 0x6f8   :  { %v13927_v44 = vrot.slane %v6800_v26, 10  ;;  %v6552_v36 = vrot.slane %v6550_v35, 5  ;;  %v6574_v50 = vor.u32 %v6573_v47, %v6570_v63  ;;  %v7319_v19 = vld [vmem:[#allocation2 + $0x18] sm:$0xf] }
 0x6f9   :  { %v5217_v42 = vpop.f32.mrf.mxu1 }
 0x6fa   :  { %v17956_v0 = vadd.f32 %v5217_v42, %v4916_v46  ;;  %7049 = vmatmul.bf16.gmra.mxu3 %v6953_v3  ;;  %v6546_v46 = vrot.slane %v6544_v51, 6  ;;  %v6565_v3 = vor.u32 %v6564_v25, %v6561_v15  ;;  %v6109_v42 = vunpack.c.l.b16 %v6057_v14 }
 0x6fb   :  { %v6897_v51 = vsel %vm16824_vm11, %v13927_v44, %v6896_v10 }
 0x6fc   :  { %v5439_v13 = vpop.f32.mrf.mxu2  ;;  %v6118_v52 = vpack.c.b16 %v6110_v1, %v6109_v42  ;;  %v6566_v25 = vrot.slane %v6565_v3, 4  ;;  %v6946_v57 = vunpack.c.l.b16 %v6897_v51  ;;  %v7355_v1 = vshll.u32 %v7319_v19, 16 }
 0x6fd   :  { %v17961_v2 = vadd.f32 %v5439_v13, %v17890_v56  ;;  %v17968_v28 = vpop.f32.mrf.mxu3  ;;  %v6543_v56 = vrot.slane %v6541_v34, 5  ;;  %v6555_v13 = vrot.slane %v6553_v7, 6  ;;  %v13926_v34 = vrot.slane %v6798_v4, 10 }
 0x6fe   :  { %v6575_v7 = vsel %vm16811_vm8, %v6566_v25, %v6574_v50  ;;  %v7369_v3 = vshll.u32 %v7321_v24, 16  ;;  %v15656_v25 = vld [vmem:[#allocation2 + $0x1c] sm:$0xf0]  ;;  %v7769_v50 = vld [vmem:[#allocation2 + $0x18] sm:$0xe] }
 0x6ff   :  { %v6547_v43 = vor.u32 %v6546_v46, %v6543_v56  ;;  %v6893_v5 = vsel %vm16824_vm11, %v13926_v34, %v6892_v54  ;;  %v6556_v11 = vor.u32 %v6555_v13, %v6552_v36  ;;  %v7366_v46 = vshrl.u32 %v7321_v24, 16  ;;  %v7770_v54 = vld [vmem:[#allocation2 + $0x1c] sm:$0x1] }
 0x700   :  { %v6945_v26 = vunpack.c.l.b16 %v6893_v5  ;;  %v6624_v47 = vunpack.c.l.b16 %v6575_v7  ;;  %v7357_v13 = vrot.slane %v7355_v1, 5  ;;  %v7371_v51 = vrot.slane %v7369_v3, 5 }
 0x701   :  { %6727 = vmatmul.bf16.gmra.mxu2 %v6631_v20  ;;  %v5220_v38 = vpop.f32.mrf.mxu1  ;;  %v6548_v35 = vrot.slane %v6547_v43, 4  ;;  %v4918_v20 = vadd.f32 %v17698_v49, %v17711_v33  ;;  %v7771_v49 = vld [vmem:[#allocation2 + $0x20] sm:$0xe]  ;;  %v7322_v33 = vld [vmem:[#allocation2 + $0x24] sm:$0x1]  ;;  %v7368_v34 = vrot.slane %v7366_v46, 4 }
 0x702   :  { %v17972_v17 = vadd.f32 %v5220_v38, %v4917_v18  ;;  %v6954_v56 = vpack.c.b16 %v6946_v57, %v6945_v26  ;;  %v7772_v18 = vld [vmem:[#allocation2 + $0x24] sm:$0x1]  ;;  %v7835_v5 = vrot.slane %v7770_v54, 5  ;;  %v14105_v57 = vrot.slane %v7771_v49, 9  ;;  %v7323_v49 = vld [vmem:[#allocation2 + $0x28] sm:$0xf] }
 0x703   :  { %v6557_v4 = vsel %vm16811_vm8, %v6548_v35, %v6556_v11  ;;  %v7320_v11 = vld [vmem:[#allocation2 + $0x1c] sm:$0x1]  ;;  %v13994_v35 = vld [vmem:[#allocation2 + $0x18] sm:$0xf]  ;;  %v14104_v7 = vrot.slane %v7769_v50, 9  ;;  %v7383_v50 = vshll.u32 %v7323_v49, 16 }
 0x704   :  { %v5442_v15 = vpop.f32.mrf.mxu2  ;;  %6218 = vmatmul.bf16.gmra.mxu1 %v6118_v52  ;;  %v6623_v38 = vunpack.c.l.b16 %v6557_v4  ;;  %v7839_v52 = vrot.slane %v7772_v18, 5 }
 0x705   :  { %v17977_v22 = vadd.f32 %v5442_v15, %v17926_v61  ;;  %v17981_v14 = vpop.f32.mrf.mxu3  ;;  %v7352_v61 = vshrl.u32 %v7319_v19, 16  ;;  %v7375_v19 = vshll.u32 %v7322_v33, 16  ;;  %v7836_v46 = vsel %vm16301_vm4, %v14104_v7, %v7835_v5  ;;  %v7325_v33 = vld [vmem:[#allocation2 + $0x30] sm:$0xf] }
 0x706   :  { %v6632_v43 = vpack.c.b16 %v6624_v47, %v6623_v38  ;;  %v7930_v54 = vunpack.c.l.b16 %v7836_v46  ;;  %v7394_v5 = vshrl.u32 %v7325_v33, 16  ;;  %v7775_v7 = vld [vmem:[#allocation2 + $0x30] sm:$0xe] }
 0x707   :  { %v7354_v36 = vrot.slane %v7352_v61, 4  ;;  %v7372_v61 = vor.u32 %v7371_v51, %v7368_v34  ;;  %v7377_v3 = vrot.slane %v7375_v19, 5 }
 0x709   :  { %v5222_v10 = vpop.f32.mrf.mxu1  ;;  %v7358_v24 = vor.u32 %v7357_v13, %v7354_v36  ;;  %v7373_v18 = vrot.slane %v7372_v61, 4  ;;  %v9633_v36 = vld [vmem:[#allocation2 + $0xb4] sm:$0x1] }
 0x70a   :  { %v5240_v63 = vadd.f32 %v5222_v10, %v4918_v20  ;;  %7054 = vmatmul.bf16.gmra.mxu3 %v6954_v56  ;;  %v7840_v20 = vsel %vm16301_vm4, %v14105_v57, %v7839_v52  ;;  %v13995_v10 = vor.u32 %v15656_v25, %v13994_v35  ;;  %v7361_v56 = vshll.u32 %v7320_v11, 16 }
 0x70b   :  { %v7378_v13 = vsel %vm16317_vm5, %v7373_v18, %v7377_v3  ;;  %v5903_v52 = vadd.f32 %v17729_v45, %v17744_v32  ;;  %v7380_v25 = vshrl.u32 %v7323_v49, 16  ;;  %v7397_v57 = vshll.u32 %v7325_v33, 16  ;;  %v7326_v32 = vld [vmem:[#allocation2 + $0x34] sm:$0x1]  ;;  %v7324_v49 = vld [vmem:[#allocation2 + $0x2c] sm:$0x1] }
 0x70c   :  { %v5444_v42 = vpop.f32.mrf.mxu2  ;;  %v7363_v38 = vrot.slane %v7361_v56, 5  ;;  %v7609_v19 = vunpack.c.l.b16 %v7378_v13  ;;  %v7396_v56 = vrot.slane %v7394_v5, 4  ;;  %v14107_v18 = vrot.slane %v7775_v7, 9  ;;  %v13998_v13 = vld [vmem:[#allocation2 + $0x28] sm:$0xf] }
 0x70d   :  { %v17990_v44 = vadd.f32 %v5444_v42, %v17956_v0  ;;  %v17992_v15 = vpop.f32.mrf.mxu3  ;;  %v5902_v0 = vadd.f32 %v17716_v29, %v17727_v30  ;;  %v7931_v29 = vunpack.c.l.b16 %v7840_v20  ;;  %v7359_v30 = vrot.slane %v7358_v24, 4  ;;  %v7774_v24 = vld [vmem:[#allocation2 + $0x2c] sm:$0x1]  ;;  %v15695_v20 = vld [vmem:[%s19718_s3 + $0x4b8] sm:$0xff] }
 0x70e   :  { %v7382_v61 = vrot.slane %v7380_v25, 4  ;;  %8524 = vmatpush.bf16.msra.mxu1 %v15695_v20 }
 0x70f   :  { %v7946_v34 = vpack.c.b16 %v7931_v29, %v7930_v54  ;;  %v7773_v29 = vld [vmem:[#allocation2 + $0x28] sm:$0xe]  ;;  %v7403_v54 = vshll.u32 %v7326_v32, 16  ;;  %v7329_v32 = vld [vmem:[#allocation2 + $0x40] sm:$0xf] }
 0x711   :  { %6732 = vmatmul.bf16.gmra.mxu2 %v6632_v43  ;;  %v6184_v26 = vpop.f32.mrf.mxu1  ;;  %v7776_v43 = vld [vmem:[#allocation2 + $0x34] sm:$0x1] }
 0x712   :  { %v17998_v1 = vadd.f32 %v6184_v26, %v5902_v0  ;;  %v7847_v45 = vrot.slane %v7776_v43, 5 }
 0x714   :  { %v5447_v4 = vpop.f32.mrf.mxu2  ;;  %7246 = vmatmul.bf16.vlgmr.msrb.gmra.mxu1 %v13995_v10  ;;  %v7385_v10 = vrot.slane %v7383_v50, 5 }
 0x715   :  { %v18003_v47 = vadd.f32 %v5447_v4, %v17972_v17  ;;  %v18005_v42 = vpop.f32.mrf.mxu3  ;;  %v7364_v17 = vsel %vm16317_vm5, %v7359_v30, %v7363_v38  ;;  %v7399_v4 = vrot.slane %v7397_v57, 5  ;;  %v15657_v30 = vld [vmem:[#allocation2 + $0x2c] sm:$0xf0]  ;;  %v5904_v38 = vadd.f32 %v17749_v39, %v17760_v62 }
 0x716   :  { %v7608_v35 = vunpack.c.l.b16 %v7364_v17  ;;  %v7386_v17 = vor.u32 %v7385_v10, %v7382_v61  ;;  %v13999_v25 = vor.u32 %v15657_v30, %v13998_v13  ;;  %v7389_v57 = vshll.u32 %v7324_v49, 16  ;;  %v7780_v49 = vld [vmem:[#allocation2 + $0x44] sm:$0x1] }
 0x717   :  { %v5905_v10 = vadd.f32 %v17762_v40, %v17775_v9  ;;  %v7422_v30 = vshrl.u32 %v7329_v32, 16  ;;  %v7330_v40 = vld [vmem:[#allocation2 + $0x44] sm:$0x1]  ;;  %v15694_v9 = vld [vmem:[%s19718_s3 + $0x4b0] sm:$0xff] }
 0x718   :  { %v7624_v3 = vpack.c.b16 %v7609_v19, %v7608_v35  ;;  %v7405_v19 = vrot.slane %v7403_v54, 5  ;;  %v7327_v35 = vld [vmem:[#allocation2 + $0x38] sm:$0xf]  ;;  %v7391_v20 = vrot.slane %v7389_v57, 5  ;;  %8525 = vmatpush.bf16.msra.mxu1 %v15694_v9  ;;  %v7333_v9 = vld [vmem:[#allocation2 + $0x50] sm:$0xf] }
 0x719   :  { %v6186_v51 = vpop.f32.mrf.mxu1 }
 0x71a   :  { %v6225_v11 = vadd.f32 %v6186_v51, %v5903_v52  ;;  %8018 = vmatmul.bf16.vlgmr.msrb.gmra.mxu3 %v7946_v34  ;;  %v14106_v52 = vrot.slane %v7773_v29, 9  ;;  %v7848_v34 = vsel %vm16301_vm4, %v14107_v18, %v7847_v45  ;;  %v7400_v51 = vor.u32 %v7399_v4, %v7396_v56 }
 0x71b   :  { %v7933_v62 = vunpack.c.l.b16 %v7848_v34  ;;  %v7408_v4 = vshrl.u32 %v7327_v35, 16  ;;  %v7411_v29 = vshll.u32 %v7327_v35, 16  ;;  %v7779_v34 = vld [vmem:[#allocation2 + $0x40] sm:$0xe] }
 0x71c   :  { %v5449_v0 = vpop.f32.mrf.mxu2 }
 0x71d   :  { %v18013_v26 = vadd.f32 %v5449_v0, %v5240_v63  ;;  %v18018_v46 = vpop.f32.mrf.mxu3  ;;  %v7843_v63 = vrot.slane %v7774_v24, 5  ;;  %v7387_v0 = vrot.slane %v7386_v17, 4  ;;  %v7401_v24 = vrot.slane %v7400_v51, 4 }
 0x71e   :  { %v7410_v17 = vrot.slane %v7408_v4, 4  ;;  %v7413_v51 = vrot.slane %v7411_v29, 5 }
 0x71f   :  { %v7844_v5 = vsel %vm16301_vm4, %v14106_v52, %v7843_v63  ;;  %v7406_v61 = vsel %vm16317_vm5, %v7401_v24, %v7405_v19  ;;  %v7425_v63 = vshll.u32 %v7329_v32, 16  ;;  %v7778_v52 = vld [vmem:[#allocation2 + $0x3c] sm:$0x1]  ;;  %v7855_v19 = vrot.slane %v7780_v49, 5 }
 0x720   :  { %v7932_v45 = vunpack.c.l.b16 %v7844_v5  ;;  %v7611_v54 = vunpack.c.l.b16 %v7406_v61  ;;  %v5906_v24 = vadd.f32 %v17782_v8, %v17793_v23  ;;  %v7851_v35 = vrot.slane %v7778_v52, 5  ;;  %v7328_v32 = vld [vmem:[#allocation2 + $0x3c] sm:$0x1]  ;;  %v14002_v61 = vld [vmem:[#allocation2 + $0x38] sm:$0xf] }
 0x721   :  { %7696 = vmatmul.bf16.vlgmr.msrb.gmra.mxu2 %v7624_v3  ;;  %v6189_v33 = vpop.f32.mrf.mxu1  ;;  %v7392_v3 = vsel %vm16317_vm5, %v7387_v0, %v7391_v20  ;;  %v7431_v0 = vshll.u32 %v7330_v40, 16  ;;  %v7331_v23 = vld [vmem:[#allocation2 + $0x48] sm:$0xf] }
 0x722   :  { %v18024_v43 = vadd.f32 %v6189_v33, %v5904_v38  ;;  %v7947_v56 = vpack.c.b16 %v7933_v62, %v7932_v45  ;;  %v7610_v13 = vunpack.c.l.b16 %v7392_v3  ;;  %v15658_v62 = vld [vmem:[#allocation2 + $0x3c] sm:$0xf0]  ;;  %v14109_v45 = vrot.slane %v7779_v34, 9 }
 0x724   :  { %v6698_v50 = vpop.f32.mrf.mxu2  ;;  %7251 = vmatmul.bf16.gmra.mxu1 %v13999_v25  ;;  %v7424_v25 = vrot.slane %v7422_v30, 4  ;;  %v7625_v57 = vpack.c.b16 %v7611_v54, %v7610_v13  ;;  %v7856_v29 = vsel %vm16301_vm4, %v14109_v45, %v7855_v19  ;;  %v7433_v54 = vrot.slane %v7431_v0, 5 }
 0x725   :  { %v18029_v39 = vadd.f32 %v6698_v50, %v17998_v1  ;;  %v18031_v7 = vpop.f32.mrf.mxu3  ;;  %v7427_v50 = vrot.slane %v7425_v63, 5  ;;  %v7417_v63 = vshll.u32 %v7328_v32, 16  ;;  %v7935_v49 = vunpack.c.l.b16 %v7856_v29  ;;  %v7784_v32 = vld [vmem:[#allocation2 + $0x54] sm:$0x1] }
 0x726   :  { %v7450_v0 = vshrl.u32 %v7333_v9, 16 }
 0x729   :  { %v6191_v1 = vpop.f32.mrf.mxu1 }
 0x72a   :  { %v18039_v18 = vadd.f32 %v6191_v1, %v5905_v10  ;;  %8023 = vmatmul.bf16.gmra.mxu3 %v7947_v56  ;;  %v7414_v10 = vor.u32 %v7413_v51, %v7410_v17  ;;  %v7428_v56 = vor.u32 %v7427_v50, %v7424_v25  ;;  %v14003_v1 = vor.u32 %v15658_v62, %v14002_v61  ;;  %v7782_v61 = vld [vmem:[#allocation2 + $0x4c] sm:$0x1] }
 0x72b   :  { %v7419_v17 = vrot.slane %v7417_v63, 5  ;;  %v7436_v25 = vshrl.u32 %v7331_v23, 16  ;;  %v7863_v63 = vrot.slane %v7784_v32, 5 }
 0x72c   :  { %v6700_v38 = vpop.f32.mrf.mxu2  ;;  %v7415_v13 = vrot.slane %v7414_v10, 4  ;;  %v7429_v52 = vrot.slane %v7428_v56, 4 }
 0x72d   :  { %v18041_v33 = vadd.f32 %v6700_v38, %v6225_v11  ;;  %v18046_v5 = vpop.f32.mrf.mxu3  ;;  %v7777_v11 = vld [vmem:[#allocation2 + $0x38] sm:$0xe]  ;;  %v7438_v10 = vrot.slane %v7436_v25, 4 }
 0x72e   :  { %v14108_v3 = vrot.slane %v7777_v11, 9  ;;  %v7434_v51 = vsel %vm16317_vm5, %v7429_v52, %v7433_v54  ;;  %v7420_v11 = vsel %vm16317_vm5, %v7415_v13, %v7419_v17  ;;  %v7452_v54 = vrot.slane %v7450_v0, 4  ;;  %v7781_v13 = vld [vmem:[#allocation2 + $0x48] sm:$0xe]  ;;  %v7332_v52 = vld [vmem:[#allocation2 + $0x4c] sm:$0x1] }
 0x72f   :  { %v7613_v45 = vunpack.c.l.b16 %v7434_v51  ;;  %v19787_v51 = vld [vmem:[#allocation18_spill] sm:$0xff] }
 0x730   :  { %v7852_v8 = vsel %vm16301_vm4, %v14108_v3, %v7851_v35  ;;  %v7334_v3 = vld [vmem:[#allocation2 + $0x54] sm:$0x1]  ;;  %v5908_v25 = vadd.f32 %v19787_v51, %v17824_v58 }
 0x731   :  { %7701 = vmatmul.bf16.gmra.mxu2 %v7625_v57  ;;  %v6194_v20 = vpop.f32.mrf.mxu1  ;;  %v7934_v34 = vunpack.c.l.b16 %v7852_v8  ;;  %v7439_v57 = vshll.u32 %v7331_v23, 16  ;;  %v7459_v17 = vshll.u32 %v7334_v3, 16 }
 0x732   :  { %v18050_v4 = vadd.f32 %v6194_v20, %v5906_v24  ;;  %v7453_v24 = vshll.u32 %v7333_v9, 16  ;;  %v15659_v9 = vld [vmem:[#allocation2 + $0x4c] sm:$0xf0] }
 0x733   :  { %v7948_v62 = vpack.c.b16 %v7935_v49, %v7934_v34  ;;  %v7441_v29 = vrot.slane %v7439_v57, 5  ;;  %v14006_v57 = vld [vmem:[#allocation2 + $0x48] sm:$0xf] }
 0x734   :  { %v6703_v30 = vpop.f32.mrf.mxu2  ;;  %7256 = vmatmul.bf16.gmra.mxu1 %v14003_v1  ;;  %v7783_v1 = vld [vmem:[#allocation2 + $0x50] sm:$0xe]  ;;  %v7455_v8 = vrot.slane %v7453_v24, 5  ;;  %v14007_v24 = vor.u32 %v15659_v9, %v14006_v57  ;;  %v7788_v9 = vld [vmem:[#allocation2 + $0x84] sm:$0x1] }
 0x735   :  { %v18055_v38 = vadd.f32 %v6703_v30, %v18024_v43  ;;  %v18059_v40 = vpop.f32.mrf.mxu3  ;;  %v19786_v43 = vld [vmem:[#allocation24_spill] sm:$0xff]  ;;  %v15693_v30 = vld [vmem:[%s19718_s3 + $0x4a8] sm:$0xff]  ;;  %v14111_v34 = vrot.slane %v7783_v1, 9  ;;  %v7786_v57 = vld [vmem:[#allocation2 + $0x7c] sm:$0x1] }
 0x736   :  { %v5907_v50 = vadd.f32 %v19786_v43, %v17808_v41  ;;  %v7612_v41 = vunpack.c.l.b16 %v7420_v11  ;;  %8526 = vmatpush.bf16.msra.mxu1 %v15693_v30  ;;  %v7442_v43 = vor.u32 %v7441_v29, %v7438_v10  ;;  %v7456_v11 = vor.u32 %v7455_v8, %v7452_v54  ;;  %v7337_v54 = vld [vmem:[#allocation2 + $0x80] sm:$0xf] }
 0x737   :  { %v7481_v51 = vshll.u32 %v7337_v54, 16 }
 0x738   :  { %v7626_v49 = vpack.c.b16 %v7613_v45, %v7612_v41  ;;  %v7445_v45 = vshll.u32 %v7332_v52, 16  ;;  %v7443_v10 = vrot.slane %v7442_v43, 4  ;;  %v7457_v1 = vrot.slane %v7456_v11, 4  ;;  %v7338_v11 = vld [vmem:[#allocation2 + $0x84] sm:$0x1] }
 0x739   :  { %v6196_v19 = vpop.f32.mrf.mxu1 }
 0x73a   :  { %v18067_v35 = vadd.f32 %v6196_v19, %v5907_v50  ;;  %8028 = vmatmul.bf16.gmra.mxu3 %v7948_v62  ;;  %v14110_v19 = vrot.slane %v7781_v13, 9  ;;  %v7864_v62 = vsel %vm16301_vm4, %v14111_v34, %v7863_v63  ;;  %v7447_v30 = vrot.slane %v7445_v45, 5  ;;  %v7335_v63 = vld [vmem:[#allocation2 + $0x78] sm:$0xf] }
 0x73b   :  { %v7937_v58 = vunpack.c.l.b16 %v7864_v62  ;;  %v7467_v34 = vshll.u32 %v7335_v63, 16  ;;  %v7871_v62 = vrot.slane %v7788_v9, 5 }
 0x73c   :  { %v6705_v20 = vpop.f32.mrf.mxu2 }
 0x73d   :  { %v18070_v56 = vadd.f32 %v6705_v20, %v18039_v18  ;;  %v18075_v23 = vpop.f32.mrf.mxu3  ;;  %v7859_v18 = vrot.slane %v7782_v61, 5  ;;  %v7461_v61 = vrot.slane %v7459_v17, 5  ;;  %v7478_v17 = vshrl.u32 %v7337_v54, 16 }
 0x73e   :  { %v5910_v54 = vadd.f32 %v17851_v27, %v17868_v37 }
 0x73f   :  { %v7860_v20 = vsel %vm16301_vm4, %v14110_v19, %v7859_v18  ;;  %v7462_v8 = vsel %vm16317_vm5, %v7457_v1, %v7461_v61  ;;  %v7464_v18 = vshrl.u32 %v7335_v63, 16  ;;  %v7483_v61 = vrot.slane %v7481_v51, 5  ;;  %v7785_v1 = vld [vmem:[#allocation2 + $0x78] sm:$0xe] }
 0x740   :  { %v7936_v29 = vunpack.c.l.b16 %v7860_v20  ;;  %v7615_v43 = vunpack.c.l.b16 %v7462_v8  ;;  %v7480_v20 = vrot.slane %v7478_v17, 4  ;;  %v7487_v63 = vshll.u32 %v7338_v11, 16  ;;  %v7336_v8 = vld [vmem:[#allocation2 + $0x7c] sm:$0x1]  ;;  %v7339_v11 = vld [vmem:[#allocation2 + $0x88] sm:$0xf] }
 0x741   :  { %7706 = vmatmul.bf16.gmra.mxu2 %v7626_v49  ;;  %v6199_v50 = vpop.f32.mrf.mxu1  ;;  %v5909_v49 = vadd.f32 %v17828_v53, %v17841_v48  ;;  %v7787_v48 = vld [vmem:[#allocation2 + $0x80] sm:$0xe]  ;;  %v7466_v45 = vrot.slane %v7464_v18, 4 }
 0x742   :  { %v18081_v0 = vadd.f32 %v6199_v50, %v5908_v25  ;;  %v7949_v13 = vpack.c.b16 %v7937_v58, %v7936_v29  ;;  %v15660_v29 = vld [vmem:[#allocation2 + $0x7c] sm:$0xf0]  ;;  %v7484_v18 = vor.u32 %v7483_v61, %v7480_v20  ;;  %v5911_v61 = vadd.f32 %v17876_v21, %v17898_v60  ;;  %v7342_v60 = vld [vmem:[#allocation2 + $0x94] sm:$0x1] }
 0x744   :  { %v6708_v32 = vpop.f32.mrf.mxu2  ;;  %7261 = vmatmul.bf16.gmra.mxu1 %v14007_v24  ;;  %v15692_v24 = vld [vmem:[%s19718_s3 + $0x4a0] sm:$0xff] }
 0x745   :  { %v18086_v41 = vadd.f32 %v6708_v32, %v18050_v4  ;;  %v18088_v3 = vpop.f32.mrf.mxu3  ;;  %v7448_v4 = vsel %vm16317_vm5, %v7443_v10, %v7447_v30  ;;  %v7469_v32 = vrot.slane %v7467_v34, 5  ;;  %8527 = vmatpush.bf16.msra.mxu1 %v15692_v24  ;;  %v14113_v30 = vrot.slane %v7787_v48, 9 }
 0x746   :  { %v7614_v53 = vunpack.c.l.b16 %v7448_v4  ;;  %v14112_v4 = vrot.slane %v7785_v1, 9  ;;  %v7485_v48 = vrot.slane %v7484_v18, 4  ;;  %v7492_v1 = vshrl.u32 %v7339_v11, 16  ;;  %v15719_v18 = vld [vmem:[%s19718_s3 + $0x538] sm:$0xff] }
 0x747   :  { %v7470_v9 = vor.u32 %v7469_v32, %v7466_v45  ;;  %v7341_v45 = vld [vmem:[#allocation2 + $0x90] sm:$0xf]  ;;  %9073 = vmatpush.bf16.msra.mxu3 %v15719_v18  ;;  %v15717_v18 = vld [vmem:[%s19718_s3 + $0x528] sm:$0xff] }
 0x748   :  { %v7627_v10 = vpack.c.b16 %v7615_v43, %v7614_v53 }
 0x749   :  { %v6201_v52 = vpop.f32.mrf.mxu1  ;;  %v7471_v53 = vrot.slane %v7470_v9, 4  ;;  %v15691_v9 = vld [vmem:[%s19718_s3 + $0x498] sm:$0xff] }
 0x74a   :  { %v18096_v25 = vadd.f32 %v6201_v52, %v5909_v49  ;;  %8033 = vmatmul.bf16.gmra.mxu3 %v7949_v13  ;;  %v14010_v13 = vld [vmem:[#allocation2 + $0x78] sm:$0xf]  ;;  %v7872_v52 = vsel %vm16301_vm4, %v14113_v30, %v7871_v62  ;;  %v7506_v30 = vshrl.u32 %v7341_v45, 16  ;;  %8528 = vmatpush.bf16.msra.mxu1 %v15691_v9  ;;  %v15702_v9 = vld [vmem:[%s19718_s3 + $0x4f0] sm:$0xff] }
 0x74b   :  { %v14011_v17 = vor.u32 %v15660_v29, %v14010_v13  ;;  %v7939_v37 = vunpack.c.l.b16 %v7872_v52  ;;  %v7790_v13 = vld [vmem:[#allocation2 + $0x8c] sm:$0x1] }
 0x74c   :  { %v6710_v50 = vpop.f32.mrf.mxu2 }
 0x74d   :  { %v18099_v19 = vadd.f32 %v6710_v50, %v18067_v35  ;;  %v18104_v58 = vpop.f32.mrf.mxu3  ;;  %v7867_v35 = vrot.slane %v7786_v57, 5  ;;  %v7473_v50 = vshll.u32 %v7336_v8, 16  ;;  %v7489_v57 = vrot.slane %v7487_v63, 5 }
 0x74e   :  { %v7509_v63 = vshll.u32 %v7341_v45, 16  ;;  %v5912_v45 = vadd.f32 %v17914_v55, %v17934_v16 }
 0x74f   :  { %v7868_v43 = vsel %vm16301_vm4, %v14112_v4, %v7867_v35  ;;  %v7475_v32 = vrot.slane %v7473_v50, 5  ;;  %v7490_v20 = vsel %vm16317_vm5, %v7485_v48, %v7489_v57  ;;  %v7495_v35 = vshll.u32 %v7339_v11, 16  ;;  %v7792_v4 = vld [vmem:[#allocation2 + $0x94] sm:$0x1]  ;;  %v15661_v48 = vld [vmem:[#allocation2 + $0x8c] sm:$0xf0] }
 0x750   :  { %v7938_v24 = vunpack.c.l.b16 %v7868_v43  ;;  %v7617_v8 = vunpack.c.l.b16 %v7490_v20  ;;  %v7508_v50 = vrot.slane %v7506_v30, 4  ;;  %v7511_v57 = vrot.slane %v7509_v63, 5  ;;  %v7789_v11 = vld [vmem:[#allocation2 + $0x88] sm:$0xe] }
 0x751   :  { %7711 = vmatmul.bf16.gmra.mxu2 %v7627_v10  ;;  %v6204_v49 = vpop.f32.mrf.mxu1  ;;  %v7476_v29 = vsel %vm16317_vm5, %v7471_v53, %v7475_v32  ;;  %v7497_v43 = vrot.slane %v7495_v35, 5  ;;  %v7875_v32 = vrot.slane %v7790_v13, 5 }
 0x752   :  { %v18110_v34 = vadd.f32 %v6204_v49, %v5910_v54  ;;  %v7950_v10 = vpack.c.b16 %v7939_v37, %v7938_v24  ;;  %v7616_v21 = vunpack.c.l.b16 %v7476_v29  ;;  %v7515_v24 = vshll.u32 %v7342_v60, 16  ;;  %v14014_v29 = vld [vmem:[#allocation2 + $0x88] sm:$0xf] }
 0x753   :  { %v7512_v30 = vor.u32 %v7511_v57, %v7508_v50  ;;  %v7343_v50 = vld [vmem:[#allocation2 + $0x98] sm:$0xf] }
 0x754   :  { %v6713_v51 = vpop.f32.mrf.mxu2  ;;  %7266 = vmatmul.bf16.gmra.mxu1 %v14011_v17  ;;  %v7791_v17 = vld [vmem:[#allocation2 + $0x90] sm:$0xe]  ;;  %v7628_v53 = vpack.c.b16 %v7617_v8, %v7616_v21  ;;  %v14015_v8 = vor.u32 %v15661_v48, %v14014_v29 }
 0x755   :  { %v18115_v27 = vadd.f32 %v6713_v51, %v18081_v0  ;;  %v18117_v62 = vpop.f32.mrf.mxu3  ;;  %v7494_v51 = vrot.slane %v7492_v1, 4  ;;  %v14115_v20 = vrot.slane %v7791_v17, 9  ;;  %v15718_v1 = vld [vmem:[%s19718_s3 + $0x530] sm:$0xff] }
 0x756   :  { %9074 = vmatpush.bf16.msra.mxu3 %v15718_v1 }
 0x757   :  { %v7498_v35 = vor.u32 %v7497_v43, %v7494_v51  ;;  %v7513_v43 = vrot.slane %v7512_v30, 4 }
 0x759   :  { %v6206_v0 = vpop.f32.mrf.mxu1  ;;  %v7499_v51 = vrot.slane %v7498_v35, 4 }
 0x75a   :  { %v18125_v54 = vadd.f32 %v6206_v0, %v5911_v61  ;;  %8038 = vmatmul.bf16.gmra.mxu3 %v7950_v10  ;;  %v7340_v61 = vld [vmem:[#allocation2 + $0x8c] sm:$0x1]  ;;  %v15703_v10 = vld [vmem:[%s19718_s3 + $0x4f8] sm:$0xff] }
 0x75b   :  { %8846 = vmatpush.bf16.msra.mxu2 %v15703_v10  ;;  %v7501_v13 = vshll.u32 %v7340_v61, 16  ;;  %9075 = vmatpush.bf16.msra.mxu3 %v15717_v18  ;;  %v15700_v18 = vld [vmem:[%s19718_s3 + $0x4e0] sm:$0xff] }
 0x75c   :  { %v6715_v49 = vpop.f32.mrf.mxu2 }
 0x75d   :  { %v18128_v52 = vadd.f32 %v6715_v49, %v18096_v25  ;;  %v18136_v37 = vpop.f32.mrf.mxu3  ;;  %v7879_v25 = vrot.slane %v7792_v4, 5  ;;  %v14114_v49 = vrot.slane %v7789_v11, 9  ;;  %v7517_v4 = vrot.slane %v7515_v24, 5 }
 0x75e   :  { %v7503_v11 = vrot.slane %v7501_v13, 5 }
 0x75f   :  { %v7880_v55 = vsel %vm16301_vm4, %v14115_v20, %v7879_v25  ;;  %v7876_v60 = vsel %vm16301_vm4, %v14114_v49, %v7875_v32  ;;  %8847 = vmatpush.bf16.msra.mxu2 %v15702_v9  ;;  %v15716_v25 = vld [vmem:[%s19718_s3 + $0x520] sm:$0xff]  ;;  %v7518_v24 = vsel %vm16317_vm5, %v7513_v43, %v7517_v4  ;;  %v7520_v32 = vshrl.u32 %v7343_v50, 16  ;;  %v15690_v49 = vld [vmem:[%s19718_s3 + $0x490] sm:$0xff] }
 0x760   :  { %v7941_v17 = vunpack.c.l.b16 %v7880_v55  ;;  %v7940_v48 = vunpack.c.l.b16 %v7876_v60  ;;  %v7523_v20 = vshll.u32 %v7343_v50, 16  ;;  %v7504_v1 = vsel %vm16317_vm5, %v7499_v51, %v7503_v11  ;;  %9076 = vmatpush.bf16.msra.mxu3 %v15716_v25  ;;  %v7795_v55 = vld [vmem:[#allocation2 + $0xa0] sm:$0xe]  ;;  %8529 = vmatpush.bf16.msra.mxu1 %v15690_v49  ;;  %v7793_v25 = vld [vmem:[#allocation2 + $0x98] sm:$0xe] }
 0x761   :  { %7716 = vmatmul.bf16.gmra.mxu2 %v7628_v53  ;;  %v6209_v0 = vpop.f32.mrf.mxu1  ;;  %v15701_v53 = vld [vmem:[%s19718_s3 + $0x4e8] sm:$0xff]  ;;  %v7619_v30 = vunpack.c.l.b16 %v7518_v24  ;;  %v7618_v4 = vunpack.c.l.b16 %v7504_v1  ;;  %v7522_v60 = vrot.slane %v7520_v32, 4  ;;  %v15714_v1 = vld [vmem:[%s19718_s3 + $0x510] sm:$0xff] }
 0x762   :  { %v18146_v63 = vadd.f32 %v6209_v0, %v5912_v45  ;;  %v5913_v45 = vadd.f32 %v17942_v31, %v17961_v2  ;;  %v7951_v10 = vpack.c.b16 %v7941_v17, %v7940_v48  ;;  %v7794_v2 = vld [vmem:[#allocation2 + $0x9c] sm:$0x1]  ;;  %v7525_v9 = vrot.slane %v7523_v20, 5  ;;  %v15715_v17 = vld [vmem:[%s19718_s3 + $0x518] sm:$0xff]  ;;  %v15689_v51 = vld [vmem:[%s19718_s3 + $0x488] sm:$0xff] }
 0x763   :  { %8848 = vmatpush.bf16.msra.mxu2 %v15701_v53  ;;  %v7629_v53 = vpack.c.b16 %v7619_v30, %v7618_v4  ;;  %v7344_v48 = vld [vmem:[#allocation2 + $0x9c] sm:$0x1]  ;;  %v15662_v11 = vld [vmem:[#allocation2 + $0x9c] sm:$0xf0]  ;;  %v7883_v24 = vrot.slane %v7794_v2, 5  ;;  %v5914_v20 = vadd.f32 %v17968_v28, %v17977_v22  ;;  %v14116_v30 = vrot.slane %v7793_v25, 9 }
 0x764   :  { %v6718_v16 = vpop.f32.mrf.mxu2  ;;  %7271 = vmatmul.bf16.gmra.mxu1 %v14015_v8  ;;  %v7796_v8 = vld [vmem:[#allocation2 + $0xa4] sm:$0x1]  ;;  %9077 = vmatpush.bf16.msra.mxu3 %v15715_v17  ;;  %v7529_v22 = vshll.u32 %v7344_v48, 16  ;;  %v15688_v2 = vld [vmem:[%s19718_s3 + $0x480] sm:$0xff] }
 0x765   :  { %v18151_v21 = vadd.f32 %v6718_v16, %v18110_v34  ;;  %v18161_v57 = vpop.f32.mrf.mxu3  ;;  %v7345_v34 = vld [vmem:[#allocation2 + $0xa0] sm:$0xf]  ;;  %v7346_v16 = vld [vmem:[#allocation2 + $0xa4] sm:$0x1]  ;;  %v7887_v43 = vrot.slane %v7796_v8, 5  ;;  %8530 = vmatpush.bf16.msra.mxu1 %v15689_v51 }
 0x766   :  { %19788 = vst [vmem:[#allocation8_spill] sm:$0xff] %v18161_v57  ;;  %v7534_v0 = vshrl.u32 %v7345_v34, 16  ;;  %v7537_v29 = vshll.u32 %v7345_v34, 16  ;;  %v7543_v32 = vshll.u32 %v7346_v16, 16  ;;  %v7884_v16 = vsel %vm16301_vm4, %v14116_v30, %v7883_v24  ;;  %v8092_v51 = vld [vmem:[#allocation2 + $0x1c] sm:$0x3] }
 0x767   :  { %8849 = vmatpush.bf16.msra.mxu2 %v15700_v18  ;;  %v7942_v48 = vunpack.c.l.b16 %v7884_v16 }
 0x768   :  { %v7536_v50 = vrot.slane %v7534_v0, 4  ;;  %9078 = vmatpush.bf16.msra.mxu3 %v15714_v1  ;;  %v7545_v4 = vrot.slane %v7543_v32, 5  ;;  %v15712_v32 = vld [vmem:[%s19718_s3 + $0x500] sm:$0xff]  ;;  %v5915_v1 = vadd.f32 %v17981_v14, %v17990_v44  ;;  %v7798_v14 = vld [vmem:[#allocation2 + $0xac] sm:$0x1] }
 0x769   :  { %v6211_v61 = vpop.f32.mrf.mxu1  ;;  %8531 = vmatpush.bf16.msra.mxu1 %v15688_v2  ;;  %v8093_v2 = vld [vmem:[#allocation2 + $0x20] sm:$0xe]  ;;  %v7800_v44 = vld [vmem:[#allocation2 + $0xb4] sm:$0x1] }
 0x76a   :  { %v18175_v35 = vadd.f32 %v6211_v61, %v5913_v45  ;;  %8043 = vmatmul.bf16.gmra.mxu3 %v7951_v10  ;;  %v14117_v45 = vrot.slane %v7795_v55, 9  ;;  %v7526_v61 = vor.u32 %v7525_v9, %v7522_v60  ;;  %v15699_v10 = vld [vmem:[%s19718_s3 + $0x4d8] sm:$0xff]  ;;  %v8091_v60 = vld [vmem:[#allocation2 + $0x18] sm:$0xe] }
 0x76b   :  { %8850 = vmatpush.bf16.msra.mxu2 %v15699_v10  ;;  %v8124_v24 = vshrl.u32 %v8091_v60, 16  ;;  %v8133_v10 = vshrl.u32 %v8092_v51, 16 }
 0x76c   :  { %v6720_v31 = vpop.f32.mrf.mxu2  ;;  %v7888_v8 = vsel %vm16301_vm4, %v14117_v45, %v7887_v43  ;;  %v7527_v17 = vrot.slane %v7526_v61, 4  ;;  %v15698_v43 = vld [vmem:[%s19718_s3 + $0x4d0] sm:$0xff]  ;;  %v15697_v45 = vld [vmem:[%s19718_s3 + $0x4c8] sm:$0xff]  ;;  %v8127_v61 = vshll.u32 %v8091_v60, 16  ;;  %v8136_v60 = vshll.u32 %v8092_v51, 16  ;;  %v15819_v51 = vld [vmem:[%s19720_s5 + $0x218] sm:$0xff] }
 0x76d   :  { %v18181_v13 = vadd.f32 %v6720_v31, %v18125_v54  ;;  %v7539_v54 = vrot.slane %v7537_v29, 5  ;;  %v18192_v34 = vpop.f32.mrf.mxu3  ;;  %v14018_v29 = vld [vmem:[#allocation2 + $0x98] sm:$0xf]  ;;  %v7943_v18 = vunpack.c.l.b16 %v7888_v8  ;;  %12091 = vmatpush.bf16.msrb.mxu0 %v15819_v51 }
 0x76e   :  { %19789 = vst [vmem:[#allocation17_spill] sm:$0xff] %v18192_v34  ;;  %v14019_v28 = vor.u32 %v15662_v11, %v14018_v29  ;;  %v7349_v11 = vld [vmem:[#allocation2 + $0xb0] sm:$0xf]  ;;  %v5916_v34 = vadd.f32 %v17992_v15, %v18003_v47 }
 0x76f   :  { %v7540_v49 = vor.u32 %v7539_v54, %v7536_v50  ;;  %v15713_v50 = vld [vmem:[%s19718_s3 + $0x508] sm:$0xff]  ;;  %8851 = vmatpush.bf16.msra.mxu2 %v15698_v43 }
 0x770   :  { %9079 = vmatpush.bf16.msra.mxu3 %v15713_v50  ;;  %v8094_v43 = vld [vmem:[#allocation2 + $0x24] sm:$0x3] }
 0x771   :  { %7721 = vmatmul.bf16.gmra.mxu2 %v7629_v53  ;;  %v6214_v0 = vpop.f32.mrf.mxu1  ;;  %v7541_v54 = vrot.slane %v7540_v49, 4  ;;  %v7347_v53 = vld [vmem:[#allocation2 + $0xa8] sm:$0xf] }
 0x772   :  { %v18204_v31 = vadd.f32 %v6214_v0, %v5914_v20  ;;  %v7952_v0 = vpack.c.b16 %v7943_v18, %v7942_v48  ;;  %v7548_v8 = vshrl.u32 %v7347_v53, 16  ;;  %v7551_v49 = vshll.u32 %v7347_v53, 16  ;;  %v7350_v48 = vld [vmem:[#allocation2 + $0xb4] sm:$0x1] }
 0x773   :  { %v7546_v20 = vsel %vm16317_vm5, %v7541_v54, %v7545_v4  ;;  %v8126_v4 = vrot.slane %v8124_v24, 5  ;;  %8852 = vmatpush.bf16.msra.mxu2 %v15697_v45  ;;  %v8129_v18 = vrot.slane %v8127_v61, 6  ;;  %v15696_v24 = vld [vmem:[%s19718_s3 + $0x4c0] sm:$0xff]  ;;  %v7799_v45 = vld [vmem:[#allocation2 + $0xb0] sm:$0xe] }
 0x774   :  { %v6723_v55 = vpop.f32.mrf.mxu2  ;;  %7276 = vmatmul.bf16.gmra.mxu1 %v14019_v28  ;;  %v7562_v28 = vshrl.u32 %v7349_v11, 16  ;;  %v7621_v16 = vunpack.c.l.b16 %v7546_v20  ;;  %9080 = vmatpush.bf16.msra.mxu3 %v15712_v32  ;;  %v7550_v32 = vrot.slane %v7548_v8, 4  ;;  %v7553_v20 = vrot.slane %v7551_v49, 5 }
 0x775   :  { %v18212_v9 = vadd.f32 %v6723_v55, %v18146_v63  ;;  %v18220_v25 = vpop.f32.mrf.mxu3  ;;  %v7531_v63 = vrot.slane %v7529_v22, 5  ;;  %v7565_v22 = vshll.u32 %v7349_v11, 16  ;;  %v8145_v11 = vshll.u32 %v8093_v2, 16 }
 0x776   :  { %19791 = vst [vmem:[#allocation10_spill] sm:$0xff] %v18220_v25  ;;  %v7564_v61 = vrot.slane %v7562_v28, 4  ;;  %v7571_v25 = vshll.u32 %v7350_v48, 16  ;;  %v7891_v8 = vrot.slane %v7798_v14, 5  ;;  %v14119_v49 = vrot.slane %v7799_v45, 9 }
 0x777   :  { %19790 = vst [vmem:[#allocation9_spill] sm:$0xff] %v18212_v9  ;;  %v7532_v29 = vsel %vm16317_vm5, %v7527_v17, %v7531_v63  ;;  %v18236_v17 = vrot.slane %v8133_v10, 5  ;;  %v8142_v63 = vshrl.u32 %v8093_v2, 16  ;;  %v7567_v10 = vrot.slane %v7565_v22, 5  ;;  %8853 = vmatpush.bf16.msra.mxu2 %v15696_v24  ;;  %v15663_v2 = vld [vmem:[#allocation2 + $0xac] sm:$0xf0] }
 0x778   :  { %v7620_v53 = vunpack.c.l.b16 %v7532_v29  ;;  %v8138_v29 = vrot.slane %v8136_v60, 6  ;;  %v7348_v28 = vld [vmem:[#allocation2 + $0xac] sm:$0x1]  ;;  %v8130_v22 = vor.u32 %v8129_v18, %v8126_v4  ;;  %v7573_v15 = vrot.slane %v7571_v25, 5 }
 0x779   :  { %v6216_v30 = vpop.f32.mrf.mxu1  ;;  %v8144_v60 = vrot.slane %v8142_v63, 5 }
 0x77a   :  { %v18234_v55 = vadd.f32 %v6216_v30, %v5915_v1  ;;  %8048 = vmatmul.bf16.gmra.mxu3 %v7952_v0  ;;  %v7895_v0 = vrot.slane %v7800_v44, 5  ;;  %v8151_v30 = vshrl.u32 %v8094_v43, 16  ;;  %v7568_v44 = vor.u32 %v7567_v10, %v7564_v61 }
 0x77b   :  { %v5917_v10 = vadd.f32 %v18005_v42, %v18013_v26 }
 0x77c   :  { %v6725_v50 = vpop.f32.mrf.mxu2  ;;  %v8153_v47 = vrot.slane %v8151_v30, 5 }
 0x77d   :  { %v18239_v54 = vadd.f32 %v6725_v50, %v18175_v35  ;;  %v18247_v1 = vpop.f32.mrf.mxu3  ;;  %v7630_v35 = vpack.c.b16 %v7621_v16, %v7620_v53  ;;  %v7797_v50 = vld [vmem:[#allocation2 + $0xa8] sm:$0xe]  ;;  %v7554_v16 = vor.u32 %v7553_v20, %v7550_v32  ;;  %v8147_v53 = vrot.slane %v8145_v11, 6 }
 0x77e   :  { %19793 = vst [vmem:[#allocation20_spill] sm:$0xff] %v18247_v1  ;;  %v14022_v1 = vld [vmem:[#allocation2 + $0xa8] sm:$0xf]  ;;  %v14118_v57 = vrot.slane %v7797_v50, 9  ;;  %v8131_v32 = vrot.slane %v8130_v22, 4  ;;  %v8139_v20 = vor.u32 %v8138_v29, %v18236_v17 }
 0x77f   :  { %19792 = vst [vmem:[#allocation15_spill] sm:$0xff] %v18239_v54  ;;  %v8154_v54 = vshll.u32 %v8094_v43, 16  ;;  %v14023_v24 = vor.u32 %v15663_v2, %v14022_v1  ;;  %v7896_v43 = vsel %vm16301_vm4, %v14119_v49, %v7895_v0  ;;  %v8148_v11 = vor.u32 %v8147_v53, %v8144_v60  ;;  %v8095_v2 = vld [vmem:[#allocation2 + $0x28] sm:$0xe]  ;;  %v8097_v17 = vld [vmem:[#allocation2 + $0x30] sm:$0xe] }
 0x780   :  { %v7892_v18 = vsel %vm16301_vm4, %v14118_v57, %v7891_v8  ;;  %v7945_v63 = vunpack.c.l.b16 %v7896_v43  ;;  %v8140_v49 = vsel %vm16811_vm8, %v8131_v32, %v8139_v20  ;;  %v8096_v22 = vld [vmem:[#allocation2 + $0x2c] sm:$0x3]  ;;  %v8163_v60 = vshll.u32 %v8095_v2, 16 }
 0x781   :  { %7726 = vmatmul.bf16.gmra.mxu2 %v7630_v35  ;;  %v6219_v9 = vpop.f32.mrf.mxu1  ;;  %v7557_v35 = vshll.u32 %v7348_v28, 16  ;;  %v8156_v14 = vrot.slane %v8154_v54, 6  ;;  %v7944_v61 = vunpack.c.l.b16 %v7892_v18  ;;  %v8149_v30 = vrot.slane %v8148_v11, 4 }
 0x782   :  { %v18251_v51 = vadd.f32 %v6219_v9, %v5916_v34  ;;  %v7555_v34 = vrot.slane %v7554_v16, 4  ;;  %v7569_v9 = vrot.slane %v7568_v44, 4  ;;  %v8098_v16 = vld [vmem:[#allocation2 + $0x34] sm:$0x3]  ;;  %v8160_v44 = vshrl.u32 %v8095_v2, 16 }
 0x783   :  { %v7559_v25 = vrot.slane %v7557_v35, 5  ;;  %v7953_v57 = vpack.c.b16 %v7945_v63, %v7944_v61  ;;  %v8178_v53 = vshrl.u32 %v8097_v17, 16  ;;  %v8190_v18 = vshll.u32 %v8098_v16, 16  ;;  %v8608_v63 = vld [vmem:[#allocation2 + $0x24] sm:$0x3] }
 0x784   :  { %v6728_v48 = vpop.f32.mrf.mxu2  ;;  %7281 = vmatmul.bf16.gmra.mxu1 %v14023_v24  ;;  %v7574_v54 = vsel %vm16317_vm5, %v7569_v9, %v7573_v15  ;;  %v8181_v24 = vshll.u32 %v8097_v17, 16  ;;  %v8444_v15 = vunpack.c.l.b16 %v8140_v49  ;;  %v8165_v9 = vrot.slane %v8163_v60, 6 }
 0x785   :  { %v18256_v4 = vadd.f32 %v6728_v48, %v18204_v31  ;;  %v18260_v45 = vpop.f32.mrf.mxu3  ;;  %v8157_v31 = vor.u32 %v8156_v14, %v8153_v47  ;;  %v7560_v0 = vsel %vm16317_vm5, %v7555_v34, %v7559_v25  ;;  %v7623_v8 = vunpack.c.l.b16 %v7574_v54 }
 0x786   :  { %v7622_v26 = vunpack.c.l.b16 %v7560_v0  ;;  %v8169_v47 = vshrl.u32 %v8096_v22, 16  ;;  %v8187_v14 = vshrl.u32 %v8098_v16, 16  ;;  %v8162_v34 = vrot.slane %v8160_v44, 5 }
 0x787   :  { %v8158_v28 = vsel %vm16811_vm8, %v8149_v30, %v8157_v31  ;;  %v8172_v11 = vshll.u32 %v8096_v22, 16  ;;  %v8180_v20 = vrot.slane %v8178_v53, 5  ;;  %v8183_v61 = vrot.slane %v8181_v24, 6  ;;  %v8606_v31 = vld [vmem:[#allocation2 + $0x1c] sm:$0x3] }
 0x788   :  { %v7631_v48 = vpack.c.b16 %v7623_v8, %v7622_v26  ;;  %v8445_v35 = vunpack.c.l.b16 %v8158_v28  ;;  %v8189_v0 = vrot.slane %v8187_v14, 5  ;;  %v8192_v30 = vrot.slane %v8190_v18, 6  ;;  %v15704_v26 = vld [vmem:[#allocation2 + $0x24] sm:$0xf0]  ;;  %v14298_v53 = vld [vmem:[#allocation2 + $0x20] sm:$0xf] }
 0x789   :  { %v6221_v1 = vpop.f32.mrf.mxu1  ;;  %v8171_v8 = vrot.slane %v8169_v47, 5  ;;  %v8174_v17 = vrot.slane %v8172_v11, 6  ;;  %v8184_v28 = vor.u32 %v8183_v61, %v8180_v20  ;;  %v8102_v20 = vld [vmem:[#allocation2 + $0x44] sm:$0x3]  ;;  %v15727_v61 = vld [vmem:[%s19718_s3 + $0x578] sm:$0xff] }
 0x78a   :  { %v18269_v50 = vadd.f32 %v6221_v1, %v5917_v10  ;;  %8053 = vmatmul.bf16.gmra.mxu3 %v7953_v57  ;;  %v8460_v54 = vpack.c.b16 %v8445_v35, %v8444_v15  ;;  %v8607_v10 = vld [vmem:[#allocation2 + $0x20] sm:$0xc]  ;;  %v8675_v57 = vrot.slane %v8608_v63, 6  ;;  %v8193_v60 = vor.u32 %v8192_v30, %v8189_v0  ;;  %v8099_v63 = vld [vmem:[#allocation2 + $0x38] sm:$0xe]  ;;  %9523 = vmatpush.bf16.msrb.mxu1 %v15727_v61 }
 0x78b   :  { %v14217_v49 = vrot.slane %v8607_v10, 10  ;;  %v14299_v15 = vor.u32 %v15704_v26, %v14298_v53  ;;  %v8185_v14 = vrot.slane %v8184_v28, 4  ;;  %v8199_v10 = vshll.u32 %v8099_v63, 16  ;;  %v14302_v61 = vld [vmem:[#allocation2 + $0x30] sm:$0xf] }
 0x78c   :  { %v6730_v29 = vpop.f32.mrf.mxu2 }
 0x78d   :  { %v18276_v42 = vadd.f32 %v6730_v29, %v18234_v55  ;;  %v18278_v43 = vpop.f32.mrf.mxu3  ;;  %v7060_v55 = vadd.f32 %v18018_v46, %v18029_v39  ;;  %v8605_v46 = vld [vmem:[#allocation2 + $0x18] sm:$0xc]  ;;  %v8166_v39 = vor.u32 %v8165_v9, %v8162_v34  ;;  %v8671_v29 = vrot.slane %v8606_v31, 6  ;;  %v8101_v34 = vld [vmem:[#allocation2 + $0x40] sm:$0xe] }
 0x78e   :  { %v14216_v16 = vrot.slane %v8605_v46, 10  ;;  %v8676_v44 = vsel %vm16824_vm11, %v14217_v49, %v8675_v57  ;;  %v8194_v11 = vsel %vm16811_vm8, %v8185_v14, %v8193_v60  ;;  %v8196_v31 = vshrl.u32 %v8099_v63, 16 }
 0x78f   :  { %v8167_v24 = vrot.slane %v8166_v39, 4  ;;  %v8217_v57 = vshll.u32 %v8101_v34, 16  ;;  %v8447_v30 = vunpack.c.l.b16 %v8194_v11  ;;  %v8223_v46 = vshrl.u32 %v8102_v20, 16 }
 0x790   :  { %v8672_v47 = vsel %vm16824_vm11, %v14216_v16, %v8671_v29  ;;  %v7062_v39 = vadd.f32 %v18046_v5, %v18055_v38  ;;  %v8612_v29 = vld [vmem:[#allocation2 + $0x34] sm:$0x3]  ;;  %v8198_v60 = vrot.slane %v8196_v31, 5 }
 0x791   :  { %7731 = vmatmul.bf16.gmra.mxu2 %v7631_v48  ;;  %v7247_v32 = vpop.f32.mrf.mxu1  ;;  %v8175_v48 = vor.u32 %v8174_v17, %v8171_v8  ;;  %v8610_v17 = vld [vmem:[#allocation2 + $0x2c] sm:$0x3]  ;;  %v8225_v14 = vrot.slane %v8223_v46, 5 }
 0x792   :  { %v18282_v25 = vadd.f32 %v7247_v32, %v7060_v55  ;;  %v8767_v55 = vunpack.c.l.b16 %v8676_v44  ;;  %v8611_v44 = vld [vmem:[#allocation2 + $0x30] sm:$0xc]  ;;  %v8679_v63 = vrot.slane %v8610_v17, 6 }
 0x793   :  { %v8176_v32 = vsel %vm16811_vm8, %v8167_v24, %v8175_v48  ;;  %v8219_v24 = vrot.slane %v8217_v57, 6 }
 0x794   :  { %v6733_v1 = vpop.f32.mrf.mxu2  ;;  %8532 = vmatmul.bf16.vlgmr.msra.gmra.mxu1 %v8460_v54  ;;  %v8100_v54 = vld [vmem:[#allocation2 + $0x3c] sm:$0x3]  ;;  %v8446_v8 = vunpack.c.l.b16 %v8176_v32 }
 0x795   :  { %v18285_v2 = vadd.f32 %v6733_v1, %v18251_v51  ;;  %v18287_v22 = vpop.f32.mrf.mxu3  ;;  %v7061_v51 = vadd.f32 %v18031_v7, %v18041_v33  ;;  %v8766_v33 = vunpack.c.l.b16 %v8672_v47  ;;  %v8214_v1 = vshrl.u32 %v8101_v34, 16 }
 0x796   :  { %v8205_v49 = vshrl.u32 %v8100_v54, 16  ;;  %v8208_v28 = vshll.u32 %v8100_v54, 16  ;;  %v8683_v47 = vrot.slane %v8612_v29, 6  ;;  %v14219_v34 = vrot.slane %v8611_v44, 10  ;;  %v8105_v29 = vld [vmem:[#allocation2 + $0x50] sm:$0xe] }
 0x797   :  { %v8782_v0 = vpack.c.b16 %v8767_v55, %v8766_v33  ;;  %v8216_v53 = vrot.slane %v8214_v1, 5  ;;  %v8609_v55 = vld [vmem:[#allocation2 + $0x28] sm:$0xc]  ;;  %v7063_v1 = vadd.f32 %v18059_v40, %v18070_v56  ;;  %v8106_v44 = vld [vmem:[#allocation2 + $0x54] sm:$0x3] }
 0x798   :  { %v8207_v33 = vrot.slane %v8205_v49, 5  ;;  %v8210_v32 = vrot.slane %v8208_v28, 6  ;;  %v14218_v54 = vrot.slane %v8609_v55, 10  ;;  %v8684_v31 = vsel %vm16824_vm11, %v14219_v34, %v8683_v47 }
 0x799   :  { %v7249_v35 = vpop.f32.mrf.mxu1  ;;  %v8769_v17 = vunpack.c.l.b16 %v8684_v31  ;;  %v8259_v55 = vshrl.u32 %v8106_v44, 16 }
 0x79a   :  { %v18295_v18 = vadd.f32 %v7249_v35, %v7061_v51  ;;  %9081 = vmatmul.bf16.vlgmr.msra.gmra.mxu3 %v14299_v15  ;;  %v8201_v51 = vrot.slane %v8199_v10, 6  ;;  %v8461_v35 = vpack.c.b16 %v8447_v30, %v8446_v8  ;;  %v8211_v46 = vor.u32 %v8210_v32, %v8207_v33 }
 0x79c   :  { %v6735_v9 = vpop.f32.mrf.mxu2  ;;  %v8202_v11 = vor.u32 %v8201_v51, %v8198_v60 }
 0x79d   :  { %v18300_v7 = vadd.f32 %v6735_v9, %v18269_v50  ;;  %v8226_v50 = vshll.u32 %v8102_v20, 16  ;;  %v18309_v26 = vpop.f32.mrf.mxu3  ;;  %v15705_v9 = vld [vmem:[#allocation2 + $0x34] sm:$0xf0]  ;;  %v8220_v20 = vor.u32 %v8219_v24, %v8216_v53  ;;  %v15726_v53 = vld [vmem:[%s19718_s3 + $0x570] sm:$0xff] }
 0x79e   :  { %v8203_v30 = vrot.slane %v8202_v11, 4  ;;  %9524 = vmatpush.bf16.msrb.mxu1 %v15726_v53  ;;  %v8616_v11 = vld [vmem:[#allocation2 + $0x44] sm:$0x3] }
 0x79f   :  { %v8228_v5 = vrot.slane %v8226_v50, 6  ;;  %v8221_v50 = vrot.slane %v8220_v20, 4 }
 0x7a0   :  { %v8212_v24 = vsel %vm16811_vm8, %v8203_v30, %v8211_v46  ;;  %v8613_v30 = vld [vmem:[#allocation2 + $0x38] sm:$0xc]  ;;  %v8691_v46 = vrot.slane %v8616_v11, 6  ;;  %v8109_v11 = vld [vmem:[#allocation2 + $0x80] sm:$0xe] }
 0x7a1   :  { %8854 = vmatmul.bf16.vlgmr.msra.gmra.mxu2 %v8782_v0  ;;  %v7252_v16 = vpop.f32.mrf.mxu1  ;;  %v8229_v10 = vor.u32 %v8228_v5, %v8225_v14  ;;  %v8680_v0 = vsel %vm16824_vm11, %v14218_v54, %v8679_v63  ;;  %v8104_v5 = vld [vmem:[#allocation2 + $0x4c] sm:$0x3]  ;;  %v7064_v63 = vadd.f32 %v18075_v23, %v18086_v41  ;;  %v8448_v34 = vunpack.c.l.b16 %v8212_v24 }
 0x7a2   :  { %v18311_v48 = vadd.f32 %v7252_v16, %v7062_v39  ;;  %v8103_v39 = vld [vmem:[#allocation2 + $0x48] sm:$0xe]  ;;  %v8768_v16 = vunpack.c.l.b16 %v8680_v0  ;;  %v8241_v54 = vshrl.u32 %v8104_v5, 16  ;;  %v8244_v31 = vshll.u32 %v8104_v5, 16 }
 0x7a3   :  { %v8230_v40 = vsel %vm16811_vm8, %v8221_v50, %v8229_v10  ;;  %v8232_v60 = vshrl.u32 %v8103_v39, 16  ;;  %v8235_v51 = vshll.u32 %v8103_v39, 16  ;;  %v8261_v50 = vrot.slane %v8259_v55, 5 }
 0x7a4   :  { %v7697_v15 = vpop.f32.mrf.mxu2  ;;  %8537 = vmatmul.bf16.gmra.mxu1 %v8461_v35  ;;  %v8250_v35 = vshrl.u32 %v8105_v29, 16  ;;  %v8783_v47 = vpack.c.b16 %v8769_v17, %v8768_v16  ;;  %v8449_v14 = vunpack.c.l.b16 %v8230_v40  ;;  %v8243_v40 = vrot.slane %v8241_v54, 5 }
 0x7a5   :  { %v18314_v38 = vadd.f32 %v7697_v15, %v18282_v25  ;;  %v14303_v25 = vor.u32 %v15705_v9, %v14302_v61  ;;  %v18324_v49 = vpop.f32.mrf.mxu3  ;;  %v8253_v15 = vshll.u32 %v8105_v29, 16  ;;  %v8614_v9 = vld [vmem:[#allocation2 + $0x3c] sm:$0x3]  ;;  %v8234_v33 = vrot.slane %v8232_v60, 5  ;;  %v8615_v61 = vld [vmem:[#allocation2 + $0x40] sm:$0xc] }
 0x7a6   :  { %v8237_v32 = vrot.slane %v8235_v51, 6  ;;  %v8252_v10 = vrot.slane %v8250_v35, 5  ;;  %v8687_v41 = vrot.slane %v8614_v9, 6  ;;  %v14221_v17 = vrot.slane %v8615_v61, 10  ;;  %v15706_v60 = vld [vmem:[#allocation2 + $0x44] sm:$0xf0] }
 0x7a7   :  { %v8246_v16 = vrot.slane %v8244_v31, 6  ;;  %v14220_v51 = vrot.slane %v8613_v30, 10  ;;  %v7065_v35 = vadd.f32 %v18088_v3, %v18099_v19  ;;  %v15725_v31 = vld [vmem:[%s19718_s3 + $0x568] sm:$0xff] }
 0x7a8   :  { %v8692_v53 = vsel %vm16824_vm11, %v14221_v17, %v8691_v46  ;;  %v8108_v46 = vld [vmem:[#allocation2 + $0x7c] sm:$0x3]  ;;  %9525 = vmatpush.bf16.msrb.mxu1 %v15725_v31 }
 0x7a9   :  { %v7254_v57 = vpop.f32.mrf.mxu1  ;;  %v8247_v55 = vor.u32 %v8246_v16, %v8243_v40  ;;  %v8771_v9 = vunpack.c.l.b16 %v8692_v53  ;;  %v8620_v40 = vld [vmem:[#allocation2 + $0x54] sm:$0x3]  ;;  %v8277_v53 = vshrl.u32 %v8108_v46, 16 }
 0x7aa   :  { %v18322_v8 = vadd.f32 %v7254_v57, %v7063_v1  ;;  %9086 = vmatmul.bf16.gmra.mxu3 %v14303_v25  ;;  %v8255_v1 = vrot.slane %v8253_v15, 6  ;;  %v8462_v57 = vpack.c.b16 %v8449_v14, %v8448_v34  ;;  %v8688_v15 = vsel %vm16824_vm11, %v14220_v51, %v8687_v41  ;;  %v8619_v51 = vld [vmem:[#allocation2 + $0x50] sm:$0xc] }
 0x7ab   :  { %v8770_v19 = vunpack.c.l.b16 %v8688_v15  ;;  %v7066_v41 = vadd.f32 %v18104_v58, %v18115_v27 }
 0x7ac   :  { %v7699_v28 = vpop.f32.mrf.mxu2 }
 0x7ad   :  { %v18329_v56 = vadd.f32 %v7699_v28, %v18295_v18  ;;  %v8262_v18 = vshll.u32 %v8106_v44, 16  ;;  %v18343_v29 = vpop.f32.mrf.mxu3  ;;  %v8238_v28 = vor.u32 %v8237_v32, %v8234_v33  ;;  %v8256_v44 = vor.u32 %v8255_v1, %v8252_v10 }
 0x7ae   :  { %v8286_v1 = vshrl.u32 %v8109_v11, 16 }
 0x7af   :  { %v8264_v39 = vrot.slane %v8262_v18, 6  ;;  %v8239_v5 = vrot.slane %v8238_v28, 4  ;;  %v8257_v18 = vrot.slane %v8256_v44, 4  ;;  %v8618_v28 = vld [vmem:[#allocation2 + $0x4c] sm:$0x3] }
 0x7b0   :  { %v8695_v27 = vrot.slane %v8618_v28, 6 }
 0x7b1   :  { %8859 = vmatmul.bf16.gmra.mxu2 %v8783_v47  ;;  %v7257_v20 = vpop.f32.mrf.mxu1  ;;  %v8265_v24 = vor.u32 %v8264_v39, %v8261_v50  ;;  %v8248_v10 = vsel %vm16811_vm8, %v8239_v5, %v8247_v55  ;;  %v8617_v5 = vld [vmem:[#allocation2 + $0x48] sm:$0xc]  ;;  %v8699_v55 = vrot.slane %v8620_v40, 6  ;;  %v8113_v40 = vld [vmem:[#allocation2 + $0x90] sm:$0xe] }
 0x7b2   :  { %v18338_v25 = vadd.f32 %v7257_v20, %v7064_v63  ;;  %v8107_v63 = vld [vmem:[#allocation2 + $0x78] sm:$0xe]  ;;  %v8110_v20 = vld [vmem:[#allocation2 + $0x84] sm:$0x3]  ;;  %v8450_v17 = vunpack.c.l.b16 %v8248_v10  ;;  %v7067_v10 = vadd.f32 %v18117_v62, %v18128_v52 }
 0x7b3   :  { %v8266_v32 = vsel %vm16811_vm8, %v8257_v18, %v8265_v24  ;;  %v8268_v61 = vshrl.u32 %v8107_v63, 16  ;;  %v8271_v54 = vshll.u32 %v8107_v63, 16  ;;  %v8298_v39 = vshll.u32 %v8110_v20, 16 }
 0x7b4   :  { %v7702_v0 = vpop.f32.mrf.mxu2  ;;  %8542 = vmatmul.bf16.gmra.mxu1 %v8462_v57  ;;  %v8289_v57 = vshll.u32 %v8109_v11, 16  ;;  %v8451_v30 = vunpack.c.l.b16 %v8266_v32  ;;  %v8280_v24 = vshll.u32 %v8108_v46, 16 }
 0x7b5   :  { %v18341_v23 = vadd.f32 %v7702_v0, %v18311_v48  ;;  %v14306_v48 = vld [vmem:[#allocation2 + $0x40] sm:$0xf]  ;;  %v8784_v0 = vpack.c.b16 %v8771_v9, %v8770_v19  ;;  %v18363_v50 = vpop.f32.mrf.mxu3  ;;  %v8270_v16 = vrot.slane %v8268_v61, 5  ;;  %v8273_v44 = vrot.slane %v8271_v54, 6 }
 0x7b6   :  { %v14307_v14 = vor.u32 %v15706_v60, %v14306_v48  ;;  %v8291_v48 = vrot.slane %v8289_v57, 6  ;;  %v8300_v63 = vrot.slane %v8298_v39, 6  ;;  %v14223_v9 = vrot.slane %v8619_v51, 10 }
 0x7b7   :  { %v8274_v11 = vor.u32 %v8273_v44, %v8270_v16  ;;  %v8282_v32 = vrot.slane %v8280_v24, 6  ;;  %v14222_v61 = vrot.slane %v8617_v5, 10 }
 0x7b8   :  { %v8700_v54 = vsel %vm16824_vm11, %v14223_v9, %v8699_v55  ;;  %v8622_v9 = vld [vmem:[#allocation2 + $0x7c] sm:$0x3] }
 0x7b9   :  { %v7259_v47 = vpop.f32.mrf.mxu1  ;;  %v8275_v46 = vrot.slane %v8274_v11, 4  ;;  %v8773_v28 = vunpack.c.l.b16 %v8700_v54  ;;  %v8624_v11 = vld [vmem:[#allocation2 + $0x84] sm:$0x3] }
 0x7ba   :  { %v18351_v34 = vadd.f32 %v7259_v47, %v7065_v35  ;;  %9091 = vmatmul.bf16.gmra.mxu3 %v14307_v14  ;;  %v8288_v35 = vrot.slane %v8286_v1, 5  ;;  %v8463_v47 = vpack.c.b16 %v8451_v30, %v8450_v17  ;;  %v14310_v1 = vld [vmem:[#allocation2 + $0x50] sm:$0xf] }
 0x7bc   :  { %v7704_v33 = vpop.f32.mrf.mxu2  ;;  %v8292_v19 = vor.u32 %v8291_v48, %v8288_v35  ;;  %v8112_v35 = vld [vmem:[#allocation2 + $0x8c] sm:$0x3] }
 0x7bd   :  { %v18356_v3 = vadd.f32 %v7704_v33, %v18322_v8  ;;  %v8295_v8 = vshrl.u32 %v8110_v20, 16  ;;  %v8279_v33 = vrot.slane %v8277_v53, 5  ;;  %v15707_v20 = vld [vmem:[#allocation2 + $0x54] sm:$0xf0]  ;;  %v18378_v57 = vpop.f32.mrf.mxu3  ;;  %v8316_v54 = vshll.u32 %v8112_v35, 16 }
 0x7be   :  { %v14311_v30 = vor.u32 %v15707_v20, %v14310_v1  ;;  %v8293_v39 = vrot.slane %v8292_v19, 4  ;;  %v15724_v53 = vld [vmem:[%s19718_s3 + $0x560] sm:$0xff]  ;;  %v8623_v20 = vld [vmem:[#allocation2 + $0x80] sm:$0xc] }
 0x7bf   :  { %v8297_v18 = vrot.slane %v8295_v8, 5  ;;  %v8283_v8 = vor.u32 %v8282_v32, %v8279_v33  ;;  %9526 = vmatpush.bf16.msrb.mxu1 %v15724_v53  ;;  %v8313_v32 = vshrl.u32 %v8112_v35, 16 }
 0x7c1   :  { %8864 = vmatmul.bf16.gmra.mxu2 %v8784_v0  ;;  %v7262_v60 = vpop.f32.mrf.mxu1  ;;  %v8301_v31 = vor.u32 %v8300_v63, %v8297_v18  ;;  %v8284_v24 = vsel %vm16811_vm8, %v8275_v46, %v8283_v8  ;;  %v7068_v63 = vadd.f32 %v18136_v37, %v18151_v21  ;;  %v8707_v46 = vrot.slane %v8624_v11, 6  ;;  %v8117_v11 = vld [vmem:[#allocation2 + $0xa0] sm:$0xe] }
 0x7c2   :  { %v18367_v15 = vadd.f32 %v7262_v60, %v7066_v41  ;;  %v8111_v41 = vld [vmem:[#allocation2 + $0x88] sm:$0xe]  ;;  %v8114_v60 = vld [vmem:[#allocation2 + $0x94] sm:$0x3] }
 0x7c3   :  { %v8302_v62 = vsel %vm16811_vm8, %v8293_v39, %v8301_v31  ;;  %v8304_v51 = vshrl.u32 %v8111_v41, 16  ;;  %v8307_v48 = vshll.u32 %v8111_v41, 16  ;;  %v8331_v18 = vshrl.u32 %v8114_v60, 16  ;;  %v8621_v39 = vld [vmem:[#allocation2 + $0x78] sm:$0xc] }
 0x7c4   :  { %v7707_v14 = vpop.f32.mrf.mxu2  ;;  %8547 = vmatmul.bf16.gmra.mxu1 %v8463_v47  ;;  %v8322_v47 = vshrl.u32 %v8113_v40, 16  ;;  %v8453_v55 = vunpack.c.l.b16 %v8302_v62  ;;  %v8703_v41 = vrot.slane %v8622_v9, 6  ;;  %v8315_v62 = vrot.slane %v8313_v32, 5 }
 0x7c5   :  { %v18370_v58 = vadd.f32 %v7707_v14, %v18338_v25  ;;  %v8696_v25 = vsel %vm16824_vm11, %v14222_v61, %v8695_v27  ;;  %v8325_v14 = vshll.u32 %v8113_v40, 16  ;;  %v8452_v27 = vunpack.c.l.b16 %v8284_v24  ;;  %v15708_v40 = vld [vmem:[#allocation2 + $0x84] sm:$0xf0] }
 0x7c6   :  { %v8772_v44 = vunpack.c.l.b16 %v8696_v25  ;;  %v8306_v33 = vrot.slane %v8304_v51, 5  ;;  %v8309_v61 = vrot.slane %v8307_v48, 6  ;;  %v8324_v31 = vrot.slane %v8322_v47, 5  ;;  %v14314_v51 = vld [vmem:[#allocation2 + $0x80] sm:$0xf]  ;;  %v19794_v48 = vld [vmem:[#allocation8_spill] sm:$0xff] }
 0x7c7   :  { %v8464_v25 = vpack.c.b16 %v8453_v55, %v8452_v27  ;;  %v8333_v8 = vrot.slane %v8331_v18, 5  ;;  %v14224_v53 = vrot.slane %v8621_v39, 10  ;;  %v7069_v47 = vadd.f32 %v19794_v48, %v18181_v13  ;;  %v8116_v39 = vld [vmem:[#allocation2 + $0x9c] sm:$0x3]  ;;  %v15742_v48 = vld [vmem:[%s19718_s3 + $0x5f0] sm:$0xff] }
 0x7c8   :  { %v8785_v5 = vpack.c.b16 %v8773_v28, %v8772_v44  ;;  %v14225_v28 = vrot.slane %v8623_v20, 10  ;;  %v8318_v44 = vrot.slane %v8316_v54, 6  ;;  %v8118_v20 = vld [vmem:[#allocation2 + $0xa4] sm:$0x3] }
 0x7c9   :  { %v7264_v0 = vpop.f32.mrf.mxu1 }
 0x7ca   :  { %v18380_v17 = vadd.f32 %v7264_v0, %v7067_v10  ;;  %9096 = vmatmul.bf16.gmra.mxu3 %v14311_v30  ;;  %v8327_v10 = vrot.slane %v8325_v14, 6  ;;  %v18396_v0 = vpop.f32.mrf.mxu3  ;;  %v8708_v24 = vsel %vm16824_vm11, %v14225_v28, %v8707_v46  ;;  %v8319_v18 = vor.u32 %v8318_v44, %v8315_v62  ;;  %v19796_v62 = vld [vmem:[#allocation17_spill] sm:$0xff] }
 0x7cb   :  { %v8775_v9 = vunpack.c.l.b16 %v8708_v24  ;;  %v8358_v46 = vshrl.u32 %v8117_v11, 16  ;;  %v8367_v28 = vshrl.u32 %v8118_v20, 16 }
 0x7cc   :  { %v7709_v16 = vpop.f32.mrf.mxu2 }
 0x7cd   :  { %v18385_v52 = vadd.f32 %v7709_v16, %v18351_v34  ;;  %v8334_v34 = vshll.u32 %v8114_v60, 16  ;;  %v8310_v16 = vor.u32 %v8309_v61, %v8306_v33  ;;  %v8328_v60 = vor.u32 %v8327_v10, %v8324_v31  ;;  %v15723_v31 = vld [vmem:[%s19718_s3 + $0x558] sm:$0xff] }
 0x7ce   :  { %v15743_v10 = vld [vmem:[%s19718_s3 + $0x5f8] sm:$0xff]  ;;  %9527 = vmatpush.bf16.msrb.mxu1 %v15723_v31  ;;  %v15734_v31 = vld [vmem:[%s19718_s3 + $0x5b0] sm:$0xff] }
 0x7cf   :  { %v8336_v37 = vrot.slane %v8334_v34, 6  ;;  %v8311_v55 = vrot.slane %v8310_v16, 4  ;;  %v8329_v34 = vrot.slane %v8328_v60, 4  ;;  %10359 = vmatpush.bf16.msrb.mxu3 %v15743_v10  ;;  %v19795_v16 = vld [vmem:[#allocation9_spill] sm:$0xff]  ;;  %v15741_v10 = vld [vmem:[%s19718_s3 + $0x5e8] sm:$0xff] }
 0x7d0   :  { %v7070_v44 = vadd.f32 %v19796_v62, %v19795_v16 }
 0x7d1   :  { %8869 = vmatmul.bf16.gmra.mxu2 %v8785_v5  ;;  %v7267_v19 = vpop.f32.mrf.mxu1  ;;  %v8337_v35 = vor.u32 %v8336_v37, %v8333_v8  ;;  %v8704_v5 = vsel %vm16824_vm11, %v14224_v53, %v8703_v41  ;;  %v8626_v41 = vld [vmem:[#allocation2 + $0x8c] sm:$0x3] }
 0x7d2   :  { %v18394_v1 = vadd.f32 %v7267_v19, %v7068_v63  ;;  %v8115_v63 = vld [vmem:[#allocation2 + $0x98] sm:$0xe]  ;;  %v8774_v19 = vunpack.c.l.b16 %v8704_v5  ;;  %v8352_v5 = vshll.u32 %v8116_v39, 16 }
 0x7d3   :  { %v8338_v32 = vsel %vm16811_vm8, %v8329_v34, %v8337_v35  ;;  %v8340_v61 = vshrl.u32 %v8115_v63, 16  ;;  %v8343_v54 = vshll.u32 %v8115_v63, 16  ;;  %v15735_v35 = vld [vmem:[%s19718_s3 + $0x5b8] sm:$0xff]  ;;  %10360 = vmatpush.bf16.msrb.mxu3 %v15742_v48 }
 0x7d4   :  { %v7712_v30 = vpop.f32.mrf.mxu2  ;;  %8552 = vmatmul.bf16.gmra.mxu1 %v8464_v25  ;;  %v18420_v25 = vpop.f32.mrf.mxu3  ;;  %v8786_v8 = vpack.c.b16 %v8775_v9, %v8774_v19  ;;  %v8455_v37 = vunpack.c.l.b16 %v8338_v32  ;;  %9845 = vmatpush.bf16.msrb.mxu2 %v15735_v35 }
 0x7d5   :  { %v18399_v21 = vadd.f32 %v7712_v30, %v18367_v15  ;;  %v14315_v15 = vor.u32 %v15708_v40, %v14314_v51  ;;  %v8320_v30 = vsel %vm16811_vm8, %v8311_v55, %v8319_v18  ;;  %v8370_v40 = vshll.u32 %v8118_v20, 16  ;;  %v8628_v51 = vld [vmem:[#allocation2 + $0x94] sm:$0x3]  ;;  %v8625_v20 = vld [vmem:[#allocation2 + $0x88] sm:$0xc] }
 0x7d6   :  { %v8454_v60 = vunpack.c.l.b16 %v8320_v30  ;;  %v8342_v53 = vrot.slane %v8340_v61, 5  ;;  %v8345_v24 = vrot.slane %v8343_v54, 6  ;;  %v8360_v55 = vrot.slane %v8358_v46, 5  ;;  %v15709_v30 = vld [vmem:[#allocation2 + $0x94] sm:$0xf0] }
 0x7d7   :  { %v8372_v32 = vrot.slane %v8370_v40, 6  ;;  %v8711_v61 = vrot.slane %v8626_v41, 6  ;;  %10361 = vmatpush.bf16.msrb.mxu3 %v15741_v10  ;;  %v14226_v40 = vrot.slane %v8625_v20, 10  ;;  %v15732_v10 = vld [vmem:[%s19718_s3 + $0x5a0] sm:$0xff] }
 0x7d8   :  { %v8465_v63 = vpack.c.b16 %v8455_v37, %v8454_v60  ;;  %v8346_v46 = vor.u32 %v8345_v24, %v8342_v53  ;;  %9846 = vmatpush.bf16.msrb.mxu2 %v15734_v31  ;;  %v19798_v60 = vld [vmem:[#allocation10_spill] sm:$0xff] }
 0x7d9   :  { %v7269_v14 = vpop.f32.mrf.mxu1  ;;  %v8712_v35 = vsel %vm16824_vm11, %v14226_v40, %v8711_v61  ;;  %v8630_v40 = vld [vmem:[#allocation2 + $0x9c] sm:$0x3] }
 0x7da   :  { %v18407_v27 = vadd.f32 %v7269_v14, %v7069_v47  ;;  %9101 = vmatmul.bf16.gmra.mxu3 %v14315_v15  ;;  %v8627_v15 = vld [vmem:[#allocation2 + $0x90] sm:$0xc]  ;;  %v8349_v14 = vshrl.u32 %v8116_v39, 16  ;;  %v15740_v39 = vld [vmem:[%s19718_s3 + $0x5e0] sm:$0xff]  ;;  %v8347_v48 = vrot.slane %v8346_v46, 4  ;;  %v8776_v61 = vunpack.c.l.b16 %v8712_v35  ;;  %v15721_v46 = vld [vmem:[%s19718_s3 + $0x548] sm:$0xff] }
 0x7db   :  { %v14227_v54 = vrot.slane %v8627_v15, 10  ;;  %10362 = vmatpush.bf16.msrb.mxu3 %v15740_v39  ;;  %v8120_v39 = vld [vmem:[#allocation2 + $0xac] sm:$0x3] }
 0x7dc   :  { %v7714_v33 = vpop.f32.mrf.mxu2  ;;  %v18449_v41 = vpop.f32.mrf.mxu3 }
 0x7dd   :  { %v18412_v13 = vadd.f32 %v7714_v33, %v18380_v17  ;;  %v8361_v17 = vshll.u32 %v8117_v11, 16  ;;  %v8715_v11 = vrot.slane %v8628_v51, 6  ;;  %v8369_v33 = vrot.slane %v8367_v28, 5  ;;  %v14318_v28 = vld [vmem:[#allocation2 + $0x90] sm:$0xf] }
 0x7de   :  { %v14319_v53 = vor.u32 %v15709_v30, %v14318_v28  ;;  %v15739_v30 = vld [vmem:[%s19718_s3 + $0x5d8] sm:$0xff] }
 0x7df   :  { %v8363_v18 = vrot.slane %v8361_v17, 6  ;;  %v8351_v17 = vrot.slane %v8349_v14, 5  ;;  %v8716_v16 = vsel %vm16824_vm11, %v14227_v54, %v8715_v11  ;;  %v8373_v62 = vor.u32 %v8372_v32, %v8369_v33  ;;  %v8119_v14 = vld [vmem:[#allocation2 + $0xa8] sm:$0xe]  ;;  %v8122_v33 = vld [vmem:[#allocation2 + $0xb4] sm:$0x3]  ;;  %10363 = vmatpush.bf16.msrb.mxu3 %v15739_v30 }
 0x7e0   :  { %v18464_v32 = vld [vmem:[#allocation2 + $0x20] sm:$0xf]  ;;  %v8376_v54 = vshrl.u32 %v8119_v14, 16  ;;  %v8379_v31 = vshll.u32 %v8119_v14, 16 }
 0x7e1   :  { %8874 = vmatmul.bf16.gmra.mxu2 %v8786_v8  ;;  %v7272_v47 = vpop.f32.mrf.mxu1  ;;  %v8354_v8 = vrot.slane %v8352_v5, 6  ;;  %v8364_v37 = vor.u32 %v8363_v18, %v8360_v55  ;;  %v8777_v55 = vunpack.c.l.b16 %v8716_v16  ;;  %v8121_v18 = vld [vmem:[#allocation2 + $0xb0] sm:$0xe]  ;;  %v9187_v28 = vshrl.u32 %v18464_v32, 16  ;;  %v9926_v30 = vld [vmem:[#allocation2 + $0x20] sm:$0xe] }
 0x7e2   :  { %v18432_v34 = vadd.f32 %v7272_v47, %v7070_v44  ;;  %v19797_v44 = vld [vmem:[#allocation15_spill] sm:$0xff]  ;;  %v8403_v16 = vshrl.u32 %v8122_v33, 16  ;;  %v8378_v35 = vrot.slane %v8376_v54, 5  ;;  %v15720_v54 = vld [vmem:[%s19718_s3 + $0x540] sm:$0xff] }
 0x7e3   :  { %v7071_v51 = vadd.f32 %v19798_v60, %v19797_v44  ;;  %v8355_v47 = vor.u32 %v8354_v8, %v8351_v17  ;;  %v8365_v15 = vrot.slane %v8364_v37, 4  ;;  %v8394_v17 = vshrl.u32 %v8121_v18, 16  ;;  %v9156_v44 = vld [vmem:[#allocation2 + $0x28] sm:$0xf] }
 0x7e4   :  { %v7717_v9 = vpop.f32.mrf.mxu2  ;;  %8557 = vmatmul.bf16.gmra.mxu1 %v8465_v63  ;;  %v15722_v63 = vld [vmem:[%s19718_s3 + $0x550] sm:$0xff]  ;;  %v8397_v8 = vshll.u32 %v8121_v18, 16  ;;  %v8787_v37 = vpack.c.b16 %v8777_v55, %v8776_v61  ;;  %v18489_v14 = vpop.f32.mrf.mxu3  ;;  %v8631_v18 = vld [vmem:[#allocation2 + $0xa0] sm:$0xc] }
 0x7e5   :  { %v18435_v19 = vadd.f32 %v7717_v9, %v18394_v1  ;;  %v15733_v1 = vld [vmem:[%s19718_s3 + $0x5a8] sm:$0xff]  ;;  %v8374_v11 = vsel %vm16811_vm8, %v8365_v15, %v8373_v62  ;;  %9528 = vmatpush.bf16.msrb.mxu1 %v15722_v63  ;;  %v8406_v62 = vshll.u32 %v8122_v33, 16  ;;  %v19800_v60 = vld [vmem:[#allocation20_spill] sm:$0xff]  ;;  %v8385_v63 = vshrl.u32 %v8120_v39, 16 }
 0x7e6   :  { %9847 = vmatpush.bf16.msrb.mxu2 %v15733_v1  ;;  %v8457_v1 = vunpack.c.l.b16 %v8374_v11  ;;  %v15738_v15 = vld [vmem:[%s19718_s3 + $0x5d0] sm:$0xff]  ;;  %v8399_v11 = vrot.slane %v8397_v8, 6  ;;  %v9201_v8 = vshrl.u32 %v9156_v44, 16 }
 0x7e7   :  { %10364 = vmatpush.bf16.msrb.mxu3 %v15738_v15  ;;  %v15710_v15 = vld [vmem:[#allocation2 + $0xa4] sm:$0xf0] }
 0x7e9   :  { %v7274_v24 = vpop.f32.mrf.mxu1  ;;  %9529 = vmatpush.bf16.msrb.mxu1 %v15721_v46 }
 0x7ea   :  { %v18457_v5 = vadd.f32 %v7274_v24, %v7071_v51  ;;  %9106 = vmatmul.bf16.gmra.mxu3 %v14319_v53  ;;  %9848 = vmatpush.bf16.msrb.mxu2 %v15732_v10  ;;  %v7072_v51 = vadd.f32 %v19800_v60, %v18256_v4  ;;  %v8632_v24 = vld [vmem:[#allocation2 + $0xa4] sm:$0x3]  ;;  %v8396_v4 = vrot.slane %v8394_v17, 5  ;;  %v9190_v10 = vshll.u32 %v18464_v32, 16 }
 0x7eb   :  { %v8408_v17 = vrot.slane %v8406_v62, 6  ;;  %v15737_v32 = vld [vmem:[%s19718_s3 + $0x5c8] sm:$0xff] }
 0x7ec   :  { %v7719_v9 = vpop.f32.mrf.mxu2  ;;  %v8400_v62 = vor.u32 %v8399_v11, %v8396_v4  ;;  %10365 = vmatpush.bf16.msrb.mxu3 %v15737_v32  ;;  %v14322_v4 = vld [vmem:[#allocation2 + $0xa0] sm:$0xf] }
 0x7ed   :  { %v18467_v20 = vadd.f32 %v7719_v9, %v18407_v27  ;;  %v8356_v27 = vsel %vm16811_vm8, %v8347_v48, %v8355_v47  ;;  %v8381_v48 = vrot.slane %v8379_v31, 6  ;;  %v15731_v47 = vld [vmem:[%s19718_s3 + $0x598] sm:$0xff]  ;;  %v8388_v9 = vshll.u32 %v8120_v39, 16  ;;  %9530 = vmatpush.bf16.msrb.mxu1 %v15720_v54 }
 0x7ee   :  { %v8456_v53 = vunpack.c.l.b16 %v8356_v27  ;;  %9849 = vmatpush.bf16.msrb.mxu2 %v15731_v47  ;;  %v18496_v31 = vrot.slane %v9187_v28, 4  ;;  %v8629_v27 = vld [vmem:[#allocation2 + $0x98] sm:$0xc]  ;;  %v8405_v39 = vrot.slane %v8403_v16, 5  ;;  %v15730_v28 = vld [vmem:[%s19718_s3 + $0x590] sm:$0xff]  ;;  %v8401_v32 = vrot.slane %v8400_v62, 4 }
 0x7ef   :  { %19799 = vst [vmem:[#allocation11_spill] sm:$0xff] %v18467_v20  ;;  %v8382_v47 = vor.u32 %v8381_v48, %v8378_v35  ;;  %v8390_v16 = vrot.slane %v8388_v9, 6  ;;  %v7073_v9 = vadd.f32 %v18260_v45, %v18276_v42 }
 0x7f0   :  { %v8466_v61 = vpack.c.b16 %v8457_v1, %v8456_v53  ;;  %v8719_v1 = vrot.slane %v8630_v40, 6  ;;  %v9204_v53 = vshll.u32 %v9156_v44, 16  ;;  %v15729_v40 = vld [vmem:[%s19718_s3 + $0x588] sm:$0xff]  ;;  %v15736_v44 = vld [vmem:[%s19718_s3 + $0x5c0] sm:$0xff]  ;;  %v8409_v48 = vor.u32 %v8408_v17, %v8405_v39 }
 0x7f1   :  { %8879 = vmatmul.bf16.gmra.mxu2 %v8787_v37  ;;  %v7277_v55 = vpop.f32.mrf.mxu1  ;;  %v8723_v37 = vrot.slane %v8632_v24, 6  ;;  %v8387_v24 = vrot.slane %v8385_v63, 5  ;;  %v9962_v63 = vshll.u32 %v9926_v30, 16  ;;  %10366 = vmatpush.bf16.msrb.mxu3 %v15736_v44  ;;  %v9927_v39 = vld [vmem:[#allocation2 + $0x24] sm:$0x3] }
 0x7f2   :  { %v18491_v33 = vadd.f32 %v7277_v55, %v7072_v51  ;;  %v14229_v51 = vrot.slane %v8631_v18, 10  ;;  %v9192_v55 = vrot.slane %v9190_v10, 5  ;;  %9850 = vmatpush.bf16.msrb.mxu2 %v15730_v28  ;;  %v9959_v18 = vshrl.u32 %v9926_v30, 16  ;;  %v18522_v30 = vpop.f32.mrf.mxu3 }
 0x7f3   :  { %v9206_v54 = vrot.slane %v9204_v53, 5  ;;  %v8391_v28 = vor.u32 %v8390_v16, %v8387_v24  ;;  %v8410_v42 = vsel %vm16811_vm8, %v8401_v32, %v8409_v48  ;;  %v15728_v24 = vld [vmem:[%s19718_s3 + $0x580] sm:$0xff]  ;;  %v8635_v32 = vld [vmem:[#allocation2 + $0xb0] sm:$0xc] }
 0x7f4   :  { %v7722_v46 = vpop.f32.mrf.mxu2  ;;  %8562 = vmatmul.bf16.gmra.mxu1 %v8466_v61  ;;  %v8724_v35 = vsel %vm16824_vm11, %v14229_v51, %v8723_v37  ;;  %v9203_v61 = vrot.slane %v9201_v8, 4  ;;  %v9193_v51 = vor.u32 %v9192_v55, %v18496_v31  ;;  %v8459_v44 = vunpack.c.l.b16 %v8410_v42 }
 0x7f5   :  { %v18500_v60 = vadd.f32 %v7722_v46, %v18432_v34  ;;  %v14228_v34 = vrot.slane %v8629_v27, 10  ;;  %v14323_v46 = vor.u32 %v15710_v15, %v14322_v4  ;;  %v8383_v27 = vrot.slane %v8382_v47, 4  ;;  %v9928_v47 = vld [vmem:[#allocation2 + $0x28] sm:$0xe]  ;;  %v8636_v4 = vld [vmem:[#allocation2 + $0xb4] sm:$0x3] }
 0x7f6   :  { %v8779_v37 = vunpack.c.l.b16 %v8724_v35  ;;  %9851 = vmatpush.bf16.msrb.mxu2 %v15729_v40  ;;  %v9207_v62 = vor.u32 %v9206_v54, %v9203_v61  ;;  %v9961_v15 = vrot.slane %v9959_v18, 5  ;;  %v9971_v35 = vshll.u32 %v9927_v39, 16  ;;  %v9929_v18 = vld [vmem:[#allocation2 + $0x2c] sm:$0x3] }
 0x7f7   :  { %19801 = vst [vmem:[#allocation12_spill] sm:$0xff] %v18500_v60  ;;  %v8720_v11 = vsel %vm16824_vm11, %v14228_v34, %v8719_v1  ;;  %v9155_v60 = vld [vmem:[#allocation2 + $0x24] sm:$0x1]  ;;  %v9157_v1 = vld [vmem:[#allocation2 + $0x2c] sm:$0x1]  ;;  %v8392_v16 = vsel %vm16811_vm8, %v8383_v27, %v8391_v28  ;;  %v9964_v34 = vrot.slane %v9962_v63, 6 }
 0x7f8   :  { %v8778_v8 = vunpack.c.l.b16 %v8720_v11  ;;  %v9196_v53 = vshll.u32 %v9155_v60, 16  ;;  %v9210_v48 = vshll.u32 %v9157_v1, 16  ;;  %v9980_v31 = vshll.u32 %v9928_v47, 16  ;;  %v8634_v28 = vld [vmem:[#allocation2 + $0xac] sm:$0x3] }
 0x7f9   :  { %v7279_v10 = vpop.f32.mrf.mxu1  ;;  %v7074_v60 = vadd.f32 %v18278_v43, %v18285_v2  ;;  %v8458_v55 = vunpack.c.l.b16 %v8392_v16  ;;  %v9208_v61 = vrot.slane %v9207_v62, 4  ;;  %v9965_v63 = vor.u32 %v9964_v34, %v9961_v15  ;;  %v15711_v34 = vld [vmem:[#allocation2 + $0xb4] sm:$0xf0] }
 0x7fa   :  { %v18520_v20 = vadd.f32 %v7279_v10, %v7073_v9  ;;  %9111 = vmatmul.bf16.gmra.mxu3 %v14323_v46  ;;  %v8788_v40 = vpack.c.b16 %v8779_v37, %v8778_v8  ;;  %9852 = vmatpush.bf16.msrb.mxu2 %v15728_v24  ;;  %v9977_v9 = vshrl.u32 %v9928_v47, 16  ;;  %v9194_v10 = vrot.slane %v9193_v51, 4  ;;  %v8633_v51 = vld [vmem:[#allocation2 + $0xa8] sm:$0xc]  ;;  %v9160_v24 = vld [vmem:[#allocation2 + $0x38] sm:$0xf]  ;;  %v18542_v16 = vpop.f32.mrf.mxu3 }
 0x7fb   :  { %v9198_v46 = vrot.slane %v9196_v53, 5  ;;  %v8467_v27 = vpack.c.b16 %v8459_v44, %v8458_v55  ;;  %v9212_v8 = vrot.slane %v9210_v48, 5  ;;  %v9982_v43 = vrot.slane %v9980_v31, 6 }
 0x7fc   :  { %v7724_v45 = vpop.f32.mrf.mxu2  ;;  %v9979_v1 = vrot.slane %v9977_v9, 5  ;;  %v9986_v53 = vshrl.u32 %v9929_v18, 16  ;;  %v9989_v47 = vshll.u32 %v9929_v18, 16  ;;  %v8727_v62 = vrot.slane %v8634_v28, 6 }
 0x7fd   :  { %v18527_v17 = vadd.f32 %v7724_v45, %v18457_v5  ;;  %v9968_v5 = vshrl.u32 %v9927_v39, 16  ;;  %v9973_v45 = vrot.slane %v9971_v35, 6  ;;  %v8731_v39 = vrot.slane %v8636_v4, 6  ;;  %v14326_v4 = vld [vmem:[#allocation2 + $0xb0] sm:$0xf] }
 0x7fe   :  { %v14231_v15 = vrot.slane %v8635_v32, 10  ;;  %v9213_v44 = vsel %vm16317_vm5, %v9208_v61, %v9212_v8  ;;  %v14230_v48 = vrot.slane %v8633_v51, 10  ;;  %v9229_v31 = vshrl.u32 %v9160_v24, 16  ;;  %v9604_v8 = vld [vmem:[#allocation2 + $0x20] sm:$0xe]  ;;  %11378 = vmatpush.bf16.msra.mxu2 %v15767_v6 }
 0x7ff   :  { %v9970_v37 = vrot.slane %v9968_v5, 5  ;;  %v9966_v5 = vrot.slane %v9965_v63, 4  ;;  %v7075_v55 = vadd.f32 %v18287_v22, %v18300_v7  ;;  %v9988_v18 = vrot.slane %v9986_v53, 5  ;;  %v9930_v51 = vld [vmem:[#allocation2 + $0x30] sm:$0xe] }
 0x800   :  { %v8732_v9 = vsel %vm16824_vm11, %v14231_v15, %v8731_v39  ;;  %v8728_v61 = vsel %vm16824_vm11, %v14230_v48, %v8727_v62  ;;  %v9444_v63 = vunpack.c.l.b16 %v9213_v44  ;;  %v9606_v15 = vld [vmem:[#allocation2 + $0x28] sm:$0xe]  ;;  %v9931_v48 = vld [vmem:[#allocation2 + $0x34] sm:$0x3] }
 0x801   :  { %8884 = vmatmul.bf16.gmra.mxu2 %v8788_v40  ;;  %v7282_v11 = vpop.f32.mrf.mxu1  ;;  %v9199_v40 = vsel %vm16317_vm5, %v9194_v10, %v9198_v46  ;;  %v9974_v35 = vor.u32 %v9973_v45, %v9970_v37  ;;  %v14327_v46 = vor.u32 %v15711_v34, %v14326_v4  ;;  %v8781_v37 = vunpack.c.l.b16 %v8732_v9  ;;  %v9159_v34 = vld [vmem:[#allocation2 + $0x34] sm:$0x1]  ;;  %v15818_v44 = vld [vmem:[%s19720_s5 + $0x210] sm:$0xff]  ;;  %v9932_v9 = vld [vmem:[#allocation2 + $0x38] sm:$0xe] }
 0x802   :  { %v18537_v54 = vadd.f32 %v7282_v11, %v7074_v60  ;;  %v9232_v60 = vshll.u32 %v9160_v24, 16  ;;  %v9983_v11 = vor.u32 %v9982_v43, %v9979_v1  ;;  %v9443_v39 = vunpack.c.l.b16 %v9199_v40  ;;  %12092 = vmatpush.bf16.msrb.mxu0 %v15818_v44 }
 0x803   :  { %v18558_v45 = vsel %vm16811_vm8, %v9966_v5, %v9974_v35  ;;  %v9231_v1 = vrot.slane %v9229_v31, 4  ;;  %v9998_v4 = vshll.u32 %v9930_v51, 16 }
 0x804   :  { %v7727_v42 = vpop.f32.mrf.mxu2  ;;  %8567 = vmatmul.bf16.gmra.mxu1 %v8467_v27  ;;  %v9991_v27 = vrot.slane %v9989_v47, 6  ;;  %v9234_v43 = vrot.slane %v9232_v60, 5  ;;  %v8780_v47 = vunpack.c.l.b16 %v8728_v61  ;;  %v9984_v24 = vrot.slane %v9983_v11, 4  ;;  %v9161_v60 = vld [vmem:[#allocation2 + $0x3c] sm:$0x1]  ;;  %v18567_v11 = vpop.f32.mrf.mxu3 }
 0x805   :  { %v18540_v2 = vadd.f32 %v7727_v42, %v18491_v33  ;;  %v9158_v33 = vld [vmem:[#allocation2 + $0x30] sm:$0xf]  ;;  %v9605_v42 = vld [vmem:[#allocation2 + $0x24] sm:$0x1]  ;;  %v9459_v5 = vpack.c.b16 %v9444_v63, %v9443_v39  ;;  %v10279_v35 = vunpack.c.l.b16 %v18558_v45  ;;  %v8059_v61 = vadd.f32 %v18309_v26, %v18314_v38  ;;  %v9933_v39 = vld [vmem:[#allocation2 + $0x3c] sm:$0x3] }
 0x806   :  { %v9215_v28 = vshrl.u32 %v9158_v33, 16  ;;  %v9218_v22 = vshll.u32 %v9158_v33, 16  ;;  %v9992_v62 = vor.u32 %v9991_v27, %v9988_v18  ;;  %v9670_v40 = vrot.slane %v9605_v42, 5 }
 0x807   :  { %v8789_v31 = vpack.c.b16 %v8781_v37, %v8780_v47  ;;  %v14408_v18 = vrot.slane %v9604_v8, 9  ;;  %v14409_v27 = vrot.slane %v9606_v15, 9  ;;  %v10004_v37 = vshrl.u32 %v9931_v48, 16 }
 0x808   :  { %v9217_v33 = vrot.slane %v9215_v28, 4  ;;  %v9993_v63 = vsel %vm16811_vm8, %v9984_v24, %v9992_v62  ;;  %v9607_v28 = vld [vmem:[#allocation2 + $0x2c] sm:$0x1]  ;;  %v10007_v45 = vshll.u32 %v9931_v48, 16  ;;  %v10013_v8 = vshrl.u32 %v9932_v9, 16 }
 0x809   :  { %v7284_v10 = vpop.f32.mrf.mxu1  ;;  %v10000_v26 = vrot.slane %v9998_v4, 6  ;;  %v10280_v15 = vunpack.c.l.b16 %v9993_v63  ;;  %v9674_v24 = vrot.slane %v9607_v28, 5 }
 0x80a   :  { %v18554_v32 = vadd.f32 %v7284_v10, %v7075_v55  ;;  %9116 = vmatmul.bf16.gmra.mxu3 %v14327_v46  ;;  %v9995_v55 = vshrl.u32 %v9930_v51, 16  ;;  %v9224_v10 = vshll.u32 %v9159_v34, 16  ;;  %v9235_v46 = vor.u32 %v9234_v43, %v9231_v1 }
 0x80b   :  { %v10016_v51 = vshll.u32 %v9932_v9, 16  ;;  %v10009_v48 = vrot.slane %v10007_v45, 6  ;;  %v9675_v4 = vsel %vm16301_vm4, %v14409_v27, %v9674_v24  ;;  %v9610_v45 = vld [vmem:[#allocation2 + $0x38] sm:$0xe]  ;;  %v9608_v24 = vld [vmem:[#allocation2 + $0x30] sm:$0xe] }
 0x80c   :  { %v7729_v7 = vpop.f32.mrf.mxu2  ;;  %v9997_v47 = vrot.slane %v9995_v55, 5  ;;  %v9226_v62 = vrot.slane %v9224_v10, 5  ;;  %v9236_v34 = vrot.slane %v9235_v46, 4  ;;  %v10295_v55 = vpack.c.b16 %v10280_v15, %v10279_v35  ;;  %v18591_v35 = vpop.f32.mrf.mxu3 }
 0x80d   :  { %v18561_v53 = vadd.f32 %v7729_v7, %v18520_v20  ;;  %v9220_v20 = vrot.slane %v9218_v22, 5  ;;  %v18575_v22 = vsel %vm16301_vm4, %v14408_v18, %v9670_v40  ;;  %v9238_v7 = vshll.u32 %v9161_v60, 16 }
 0x80e   :  { %v10006_v40 = vrot.slane %v10004_v37, 5  ;;  %v10015_v18 = vrot.slane %v10013_v8, 5  ;;  %v10018_v9 = vrot.slane %v10016_v51, 6  ;;  %v9765_v10 = vunpack.c.l.b16 %v18575_v22  ;;  %v9162_v22 = vld [vmem:[#allocation2 + $0x40] sm:$0xf] }
 0x80f   :  { %v9221_v43 = vor.u32 %v9220_v20, %v9217_v33  ;;  %v9240_v60 = vrot.slane %v9238_v7, 5  ;;  %v10001_v33 = vor.u32 %v10000_v26, %v9997_v47  ;;  %v9164_v20 = vld [vmem:[#allocation2 + $0x48] sm:$0xf]  ;;  %v8060_v46 = vadd.f32 %v18324_v49, %v18329_v56  ;;  %v9611_v7 = vld [vmem:[#allocation2 + $0x3c] sm:$0x1] }
 0x810   :  { %v10010_v28 = vor.u32 %v10009_v48, %v10006_v40  ;;  %v10019_v27 = vor.u32 %v10018_v9, %v10015_v18  ;;  %v9257_v51 = vshrl.u32 %v9164_v20, 16  ;;  %v9766_v26 = vunpack.c.l.b16 %v9675_v4  ;;  %v15751_v9 = vld [vmem:[%s19718_s3 + $0x638] sm:$0xff]  ;;  %v9936_v4 = vld [vmem:[#allocation2 + $0x48] sm:$0xe] }
 0x811   :  { %8889 = vmatmul.bf16.gmra.mxu2 %v8789_v31  ;;  %v8533_v42 = vpop.f32.mrf.mxu1  ;;  %v10022_v31 = vshrl.u32 %v9933_v39, 16  ;;  %v10002_v49 = vrot.slane %v10001_v33, 4  ;;  %v9682_v40 = vrot.slane %v9611_v7, 5  ;;  %v9246_v18 = vshll.u32 %v9162_v22, 16  ;;  %10681 = vmatpush.bf16.msra.mxu1 %v15751_v9 }
 0x812   :  { %v18577_v1 = vadd.f32 %v8533_v42, %v8059_v61  ;;  %v10025_v61 = vshll.u32 %v9933_v39, 16  ;;  %v9222_v42 = vrot.slane %v9221_v43, 4  ;;  %v9260_v43 = vshll.u32 %v9164_v20, 16 }
 0x813   :  { %v10024_v37 = vrot.slane %v10022_v31, 5  ;;  %v10011_v31 = vsel %vm16811_vm8, %v10002_v49, %v10010_v28  ;;  %v9259_v20 = vrot.slane %v9257_v51, 4  ;;  %v9163_v28 = vld [vmem:[#allocation2 + $0x44] sm:$0x1]  ;;  %v10049_v51 = vshrl.u32 %v9936_v4, 16 }
 0x814   :  { %v7732_v38 = vpop.f32.mrf.mxu2  ;;  %9531 = vmatmul.bf16.vlgmr.msrb.gmra.mxu1 %v9459_v5  ;;  %v9609_v5 = vld [vmem:[#allocation2 + $0x34] sm:$0x1]  ;;  %v9227_v63 = vsel %vm16317_vm5, %v9222_v42, %v9226_v62  ;;  %v10027_v8 = vrot.slane %v10025_v61, 6  ;;  %v9934_v61 = vld [vmem:[#allocation2 + $0x40] sm:$0xe]  ;;  %v10020_v42 = vrot.slane %v10019_v27, 4  ;;  %v8061_v27 = vadd.f32 %v18343_v29, %v18341_v23  ;;  %v18613_v23 = vpop.f32.mrf.mxu3 }
 0x815   :  { %v18580_v44 = vadd.f32 %v7732_v38, %v18537_v54  ;;  %v9241_v54 = vsel %vm16317_vm5, %v9236_v34, %v9240_v60  ;;  %v9445_v15 = vunpack.c.l.b16 %v9227_v63  ;;  %v9678_v62 = vrot.slane %v9609_v5, 5 }
 0x816   :  { %v9446_v38 = vunpack.c.l.b16 %v9241_v54  ;;  %v14411_v34 = vrot.slane %v9610_v45, 9  ;;  %v9243_v60 = vshrl.u32 %v9162_v22, 16  ;;  %v10028_v33 = vor.u32 %v10027_v8, %v10024_v37  ;;  %v9935_v45 = vld [vmem:[#allocation2 + $0x44] sm:$0x3]  ;;  %v9165_v37 = vld [vmem:[#allocation2 + $0x4c] sm:$0x1] }
 0x817   :  { %v9781_v54 = vpack.c.b16 %v9766_v26, %v9765_v10  ;;  %v10031_v7 = vshrl.u32 %v9934_v61, 16  ;;  %v9248_v22 = vrot.slane %v9246_v18, 5  ;;  %v10052_v49 = vshll.u32 %v9936_v4, 16 }
 0x818   :  { %v9460_v5 = vpack.c.b16 %v9446_v38, %v9445_v15  ;;  %v9683_v63 = vsel %vm16301_vm4, %v14411_v34, %v9682_v40  ;;  %v9245_v8 = vrot.slane %v9243_v60, 4  ;;  %v9252_v15 = vshll.u32 %v9163_v28, 16 }
 0x819   :  { %v8535_v39 = vpop.f32.mrf.mxu1  ;;  %v10040_v34 = vshrl.u32 %v9935_v45, 16  ;;  %v10043_v40 = vshll.u32 %v9935_v45, 16  ;;  %v9266_v60 = vshll.u32 %v9165_v37, 16  ;;  %v10033_v18 = vrot.slane %v10031_v7, 5  ;;  %v18618_v37 = vld [vmem:[#allocation2 + $0x40] sm:$0xe] }
 0x81a   :  { %v18593_v47 = vadd.f32 %v8535_v39, %v8060_v46  ;;  %10367 = vmatmul.bf16.vlgmr.msrb.gmra.mxu3 %v10295_v55  ;;  %v9262_v55 = vrot.slane %v9260_v43, 5  ;;  %v14410_v46 = vrot.slane %v9608_v24, 9  ;;  %v10034_v39 = vshll.u32 %v9934_v61, 16  ;;  %v9937_v24 = vld [vmem:[#allocation2 + $0x4c] sm:$0x3] }
 0x81b   :  { %v10029_v43 = vsel %vm16811_vm8, %v10020_v42, %v10028_v33  ;;  %v9249_v42 = vor.u32 %v9248_v22, %v9245_v8  ;;  %v10051_v33 = vrot.slane %v10049_v51, 5  ;;  %v10058_v4 = vshrl.u32 %v9937_v24, 16  ;;  %v18622_v8 = vld [vmem:[#allocation2 + $0x44] sm:$0x1]  ;;  %v9168_v22 = vld [vmem:[#allocation2 + $0x58] sm:$0xf] }
 0x81c   :  { %v7734_v56 = vpop.f32.mrf.mxu2  ;;  %v9679_v26 = vsel %vm16301_vm4, %v14410_v46, %v9678_v62  ;;  %v9263_v38 = vor.u32 %v9262_v55, %v9259_v20  ;;  %v10036_v9 = vrot.slane %v10034_v39, 6  ;;  %v10282_v62 = vunpack.c.l.b16 %v10029_v43 }
 0x81d   :  { %v18596_v48 = vadd.f32 %v7734_v56, %v18554_v32  ;;  %v10281_v32 = vunpack.c.l.b16 %v10011_v31  ;;  %v9768_v31 = vunpack.c.l.b16 %v9683_v63  ;;  %v10054_v55 = vrot.slane %v10052_v49, 6 }
 0x81e   :  { %v9264_v20 = vrot.slane %v9263_v38, 4  ;;  %v9767_v46 = vunpack.c.l.b16 %v9679_v26  ;;  %v9254_v28 = vrot.slane %v9252_v15, 5  ;;  %v10042_v45 = vrot.slane %v10040_v34, 5  ;;  %v9166_v15 = vld [vmem:[#allocation2 + $0x50] sm:$0xf] }
 0x81f   :  { %v10037_v63 = vor.u32 %v10036_v9, %v10033_v18  ;;  %v10296_v7 = vpack.c.b16 %v10282_v62, %v10281_v32  ;;  %v9250_v39 = vrot.slane %v9249_v42, 4  ;;  %v10055_v26 = vor.u32 %v10054_v55, %v10051_v33  ;;  %v9940_v62 = vld [vmem:[#allocation2 + $0x58] sm:$0xe] }
 0x820   :  { %v10060_v38 = vrot.slane %v10058_v4, 5  ;;  %v14412_v32 = vrot.slane %v18618_v37, 9  ;;  %v9285_v18 = vshrl.u32 %v9168_v22, 16  ;;  %v9288_v9 = vshll.u32 %v9168_v22, 16 }
 0x821   :  { %9853 = vmatmul.bf16.vlgmr.msrb.gmra.mxu2 %v9781_v54  ;;  %v8538_v10 = vpop.f32.mrf.mxu1  ;;  %v10061_v54 = vshll.u32 %v9937_v24, 16  ;;  %v9255_v34 = vsel %vm16317_vm5, %v9250_v39, %v9254_v28  ;;  %v9271_v55 = vshrl.u32 %v9166_v15, 16  ;;  %v9274_v4 = vshll.u32 %v9166_v15, 16 }
 0x822   :  { %v18611_v56 = vadd.f32 %v8538_v10, %v8061_v27  ;;  %v10045_v27 = vrot.slane %v10043_v40, 6  ;;  %v9268_v10 = vrot.slane %v9266_v60, 5  ;;  %v9938_v40 = vld [vmem:[#allocation2 + $0x50] sm:$0xe]  ;;  %v9686_v60 = vrot.slane %v18622_v8, 5 }
 0x823   :  { %v10063_v49 = vrot.slane %v10061_v54, 6  ;;  %v15750_v54 = vld [vmem:[%s19718_s3 + $0x630] sm:$0xff]  ;;  %v10056_v28 = vrot.slane %v10055_v26, 4  ;;  %v10088_v39 = vshll.u32 %v9940_v62, 16  ;;  %v9287_v22 = vrot.slane %v9285_v18, 4 }
 0x824   :  { %v8855_v29 = vpop.f32.mrf.mxu2  ;;  %9536 = vmatmul.bf16.gmra.mxu1 %v9460_v5  ;;  %v9782_v5 = vpack.c.b16 %v9768_v31, %v9767_v46  ;;  %v9269_v43 = vsel %vm16317_vm5, %v9264_v20, %v9268_v10  ;;  %v10038_v31 = vrot.slane %v10037_v63, 4  ;;  %v9615_v20 = vld [vmem:[#allocation2 + $0x4c] sm:$0x1]  ;;  %v18638_v46 = vpop.f32.mrf.mxu3  ;;  %v10067_v10 = vshrl.u32 %v9938_v40, 16  ;;  %v9169_v18 = vld [vmem:[#allocation2 + $0x5c] sm:$0x1] }
 0x825   :  { %v18616_v61 = vadd.f32 %v8855_v29, %v18577_v1  ;;  %v8062_v1 = vadd.f32 %v18363_v50, %v18356_v3  ;;  %v10046_v3 = vor.u32 %v10045_v27, %v10042_v45  ;;  %v9614_v50 = vld [vmem:[#allocation2 + $0x48] sm:$0xe]  ;;  %v9448_v33 = vunpack.c.l.b16 %v9269_v43  ;;  %10682 = vmatpush.bf16.msra.mxu1 %v15750_v54 }
 0x826   :  { %v10064_v45 = vor.u32 %v10063_v49, %v10060_v38  ;;  %v14413_v27 = vrot.slane %v9614_v50, 9  ;;  %v9447_v63 = vunpack.c.l.b16 %v9255_v34  ;;  %v9690_v8 = vrot.slane %v9615_v20, 5  ;;  %v9941_v34 = vld [vmem:[#allocation2 + $0x5c] sm:$0x3] }
 0x827   :  { %v10047_v37 = vsel %vm16811_vm8, %v10038_v31, %v10046_v3  ;;  %v10070_v43 = vshll.u32 %v9938_v40, 16  ;;  %v8063_v26 = vadd.f32 %v18378_v57, %v18370_v58  ;;  %v9273_v49 = vrot.slane %v9271_v55, 4 }
 0x828   :  { %v9461_v38 = vpack.c.b16 %v9448_v33, %v9447_v63  ;;  %v9276_v15 = vrot.slane %v9274_v4, 5  ;;  %v10065_v3 = vsel %vm16811_vm8, %v10056_v28, %v10064_v45  ;;  %v10069_v31 = vrot.slane %v10067_v10, 5 }
 0x829   :  { %v8540_v51 = vpop.f32.mrf.mxu1  ;;  %v10072_v58 = vrot.slane %v10070_v43, 6  ;;  %v10094_v57 = vshrl.u32 %v9941_v34, 16  ;;  %v10097_v33 = vshll.u32 %v9941_v34, 16  ;;  %v10283_v4 = vunpack.c.l.b16 %v10047_v37 }
 0x82a   :  { %v18626_v24 = vadd.f32 %v8540_v51, %v8062_v1  ;;  %10372 = vmatmul.bf16.gmra.mxu3 %v10296_v7  ;;  %v9939_v1 = vld [vmem:[#allocation2 + $0x54] sm:$0x3]  ;;  %v10085_v7 = vshrl.u32 %v9940_v62, 16  ;;  %v9290_v51 = vrot.slane %v9288_v9, 5  ;;  %v9277_v28 = vor.u32 %v9276_v15, %v9273_v49 }
 0x82b   :  { %v10076_v54 = vshrl.u32 %v9939_v1, 16  ;;  %v10079_v9 = vshll.u32 %v9939_v1, 16  ;;  %v10284_v45 = vunpack.c.l.b16 %v10065_v3  ;;  %v9687_v10 = vsel %vm16301_vm4, %v14412_v32, %v9686_v60  ;;  %v9172_v1 = vld [vmem:[#allocation2 + $0x88] sm:$0xf]  ;;  %v9170_v32 = vld [vmem:[#allocation2 + $0x80] sm:$0xf] }
 0x82c   :  { %v8857_v29 = vpop.f32.mrf.mxu2  ;;  %v10087_v40 = vrot.slane %v10085_v7, 5  ;;  %v9691_v63 = vsel %vm16301_vm4, %v14413_v27, %v9690_v8  ;;  %v18655_v43 = vpop.f32.mrf.mxu3  ;;  %v10099_v37 = vrot.slane %v10097_v33, 6  ;;  %v8064_v49 = vadd.f32 %v18396_v0, %v18385_v52 }
 0x82d   :  { %v18633_v42 = vadd.f32 %v8857_v29, %v18593_v47  ;;  %v9167_v47 = vld [vmem:[#allocation2 + $0x54] sm:$0x1]  ;;  %v9278_v15 = vrot.slane %v9277_v28, 4  ;;  %v9313_v60 = vshrl.u32 %v9172_v1, 16  ;;  %v9316_v34 = vshll.u32 %v9172_v1, 16 }
 0x82e   :  { %v9280_v29 = vshll.u32 %v9167_v47, 16  ;;  %v9294_v47 = vshll.u32 %v9169_v18, 16  ;;  %v10297_v8 = vpack.c.b16 %v10284_v45, %v10283_v4  ;;  %v9770_v3 = vunpack.c.l.b16 %v9691_v63  ;;  %v9171_v4 = vld [vmem:[#allocation2 + $0x84] sm:$0x1]  ;;  %v9942_v1 = vld [vmem:[#allocation2 + $0x80] sm:$0xe] }
 0x82f   :  { %19802 = vst [vmem:[#allocation19_spill] sm:$0xff] %v18633_v42  ;;  %v9291_v42 = vor.u32 %v9290_v51, %v9287_v22  ;;  %v10081_v22 = vrot.slane %v10079_v9, 6  ;;  %v18663_v9 = vld [vmem:[#allocation2 + $0x50] sm:$0xe]  ;;  %v9315_v28 = vrot.slane %v9313_v60, 4  ;;  %v9318_v45 = vrot.slane %v9316_v34, 5 }
 0x830   :  { %v9282_v7 = vrot.slane %v9280_v29, 5  ;;  %v9296_v29 = vrot.slane %v9294_v47, 5  ;;  %v14414_v63 = vrot.slane %v18663_v9, 9  ;;  %v8065_v60 = vadd.f32 %v18420_v25, %v18399_v21 }
 0x831   :  { %9858 = vmatmul.bf16.gmra.mxu2 %v9782_v5  ;;  %v8543_v50 = vpop.f32.mrf.mxu1  ;;  %v10090_v5 = vrot.slane %v10088_v39, 6  ;;  %v10078_v39 = vrot.slane %v10076_v54, 5  ;;  %v9319_v34 = vor.u32 %v9318_v45, %v9315_v28 }
 0x832   :  { %v18646_v62 = vadd.f32 %v8543_v50, %v8063_v26  ;;  %v10073_v26 = vor.u32 %v10072_v58, %v10069_v31  ;;  %v9769_v50 = vunpack.c.l.b16 %v9687_v10  ;;  %v9302_v58 = vshll.u32 %v9170_v32, 16  ;;  %v15749_v10 = vld [vmem:[%s19718_s3 + $0x628] sm:$0xff] }
 0x833   :  { %v10091_v51 = vor.u32 %v10090_v5, %v10087_v40  ;;  %v10082_v31 = vor.u32 %v10081_v22, %v10078_v39  ;;  %v18665_v40 = vld [vmem:[#allocation2 + $0x54] sm:$0x1]  ;;  %10683 = vmatpush.bf16.msra.mxu1 %v15749_v10  ;;  %v9320_v45 = vrot.slane %v9319_v34, 4 }
 0x834   :  { %v8860_v20 = vpop.f32.mrf.mxu2  ;;  %9541 = vmatmul.bf16.gmra.mxu1 %v9461_v38  ;;  %v10096_v38 = vrot.slane %v10094_v57, 5  ;;  %v10074_v33 = vrot.slane %v10073_v26, 4  ;;  %v9694_v47 = vrot.slane %v18665_v40, 5  ;;  %v9944_v26 = vld [vmem:[#allocation2 + $0x88] sm:$0xe] }
 0x835   :  { %v18649_v55 = vadd.f32 %v8860_v20, %v18611_v56  ;;  %v9292_v56 = vrot.slane %v9291_v42, 4  ;;  %v9283_v42 = vsel %vm16317_vm5, %v9278_v15, %v9282_v7  ;;  %v10092_v18 = vrot.slane %v10091_v51, 4  ;;  %v9618_v51 = vld [vmem:[#allocation2 + $0x58] sm:$0xe] }
 0x836   :  { %v10100_v5 = vor.u32 %v10099_v37, %v10096_v38  ;;  %v9299_v20 = vshrl.u32 %v9170_v32, 16  ;;  %v9783_v7 = vpack.c.b16 %v9770_v3, %v9769_v50  ;;  %v9449_v39 = vunpack.c.l.b16 %v9283_v42  ;;  %v9173_v37 = vld [vmem:[#allocation2 + $0x8c] sm:$0x1]  ;;  %v18683_v3 = vpop.f32.mrf.mxu3 }
 0x837   :  { %v9297_v0 = vsel %vm16317_vm5, %v9292_v56, %v9296_v29  ;;  %v9619_v56 = vld [vmem:[#allocation2 + $0x5c] sm:$0x1]  ;;  %v9304_v15 = vrot.slane %v9302_v58, 5  ;;  %v9308_v32 = vshll.u32 %v9171_v4, 16  ;;  %v10106_v50 = vshll.u32 %v9942_v1, 16 }
 0x838   :  { %v9450_v22 = vunpack.c.l.b16 %v9297_v0  ;;  %v10101_v38 = vsel %vm16811_vm8, %v10092_v18, %v10100_v5  ;;  %v14415_v42 = vrot.slane %v9618_v51, 9  ;;  %v10121_v9 = vshrl.u32 %v9944_v26, 16 }
 0x839   :  { %v8545_v27 = vpop.f32.mrf.mxu1  ;;  %v10124_v40 = vshll.u32 %v9944_v26, 16  ;;  %v10286_v0 = vunpack.c.l.b16 %v10101_v38  ;;  %v9322_v5 = vshll.u32 %v9173_v37, 16  ;;  %v9310_v21 = vrot.slane %v9308_v32, 5  ;;  %v9176_v32 = vld [vmem:[#allocation2 + $0x98] sm:$0xf] }
 0x83a   :  { %v18659_v54 = vadd.f32 %v8545_v27, %v8064_v49  ;;  %10377 = vmatmul.bf16.gmra.mxu3 %v10297_v8  ;;  %v9301_v49 = vrot.slane %v9299_v20, 4  ;;  %v9943_v27 = vld [vmem:[#allocation2 + $0x84] sm:$0x3]  ;;  %v10103_v8 = vshrl.u32 %v9942_v1, 16  ;;  %v9945_v20 = vld [vmem:[#allocation2 + $0x8c] sm:$0x3]  ;;  %v9122_v12 = vadd.f32 %v18683_v3, %v18616_v61 }
 0x83b   :  { %v10112_v25 = vshrl.u32 %v9943_v27, 16  ;;  %v10115_v4 = vshll.u32 %v9943_v27, 16  ;;  %v10108_v1 = vrot.slane %v10106_v50, 6  ;;  %v10126_v51 = vrot.slane %v10124_v40, 6 }
 0x83c   :  { %v8862_v52 = vpop.f32.mrf.mxu2  ;;  %v10105_v10 = vrot.slane %v10103_v8, 5  ;;  %v10133_v26 = vshll.u32 %v9945_v20, 16  ;;  %v9324_v38 = vrot.slane %v9322_v5, 5  ;;  %v9341_v40 = vshrl.u32 %v9176_v32, 16 }
 0x83d   :  { %v18670_v57 = vadd.f32 %v8862_v52, %v18626_v24  ;;  %v10083_v24 = vsel %vm16811_vm8, %v10074_v33, %v10082_v31  ;;  %v9698_v31 = vrot.slane %v9619_v56, 5  ;;  %v9462_v52 = vpack.c.b16 %v9450_v22, %v9449_v39 }
 0x83e   :  { %v9305_v33 = vor.u32 %v9304_v15, %v9301_v49  ;;  %v10130_v56 = vshrl.u32 %v9945_v20, 16  ;;  %v10285_v39 = vunpack.c.l.b16 %v10083_v24  ;;  %v9695_v22 = vsel %vm16301_vm4, %v14414_v63, %v9694_v47  ;;  %v18702_v5 = vpop.f32.mrf.mxu3  ;;  %v9620_v20 = vld [vmem:[#allocation2 + $0x80] sm:$0xe] }
 0x83f   :  { %v9699_v37 = vsel %vm16301_vm4, %v14415_v42, %v9698_v31  ;;  %v10114_v15 = vrot.slane %v10112_v25, 5  ;;  %v9325_v27 = vsel %vm16317_vm5, %v9320_v45, %v9324_v38  ;;  %v10109_v8 = vor.u32 %v10108_v1, %v10105_v10  ;;  %v15748_v45 = vld [vmem:[%s19718_s3 + $0x620] sm:$0xff]  ;;  %v9622_v38 = vld [vmem:[#allocation2 + $0x88] sm:$0xe] }
 0x840   :  { %v9306_v49 = vrot.slane %v9305_v33, 4  ;;  %v10298_v34 = vpack.c.b16 %v10286_v0, %v10285_v39  ;;  %v10132_v50 = vrot.slane %v10130_v56, 5  ;;  %v9772_v31 = vunpack.c.l.b16 %v9699_v37  ;;  %v9948_v10 = vld [vmem:[#allocation2 + $0x98] sm:$0xe]  ;;  %10684 = vmatpush.bf16.msra.mxu1 %v15748_v45 }
 0x841   :  { %9863 = vmatmul.bf16.gmra.mxu2 %v9783_v7  ;;  %v8548_v29 = vpop.f32.mrf.mxu1  ;;  %v10123_v7 = vrot.slane %v10121_v9, 5  ;;  %v9174_v9 = vld [vmem:[#allocation2 + $0x90] sm:$0xf]  ;;  %v9771_v33 = vunpack.c.l.b16 %v9695_v22  ;;  %v10110_v25 = vrot.slane %v10109_v8, 4  ;;  %v9343_v37 = vrot.slane %v9341_v40, 4 }
 0x842   :  { %v18685_v18 = vadd.f32 %v8548_v29, %v8065_v60  ;;  %v8066_v60 = vadd.f32 %v18449_v41, %v18412_v13  ;;  %v9311_v63 = vsel %vm16317_vm5, %v9306_v49, %v9310_v21  ;;  %v10135_v29 = vrot.slane %v10133_v26, 6  ;;  %v9949_v40 = vld [vmem:[#allocation2 + $0x9c] sm:$0x3] }
 0x843   :  { %v10127_v47 = vor.u32 %v10126_v51, %v10123_v7  ;;  %v9452_v41 = vunpack.c.l.b16 %v9325_v27  ;;  %v9451_v21 = vunpack.c.l.b16 %v9311_v63  ;;  %v9621_v51 = vld [vmem:[#allocation2 + $0x84] sm:$0x1]  ;;  %v9327_v56 = vshrl.u32 %v9174_v9, 16 }
 0x844   :  { %v8865_v58 = vpop.f32.mrf.mxu2  ;;  %9546 = vmatmul.bf16.gmra.mxu1 %v9462_v52  ;;  %v9344_v52 = vshll.u32 %v9176_v32, 16  ;;  %v10136_v7 = vor.u32 %v10135_v29, %v10132_v50  ;;  %v9330_v26 = vshll.u32 %v9174_v9, 16  ;;  %v9784_v39 = vpack.c.b16 %v9772_v31, %v9771_v33  ;;  %v9946_v32 = vld [vmem:[#allocation2 + $0x90] sm:$0xe] }
 0x845   :  { %v18688_v28 = vadd.f32 %v8865_v58, %v18646_v62  ;;  %v10117_v62 = vrot.slane %v10115_v4, 6  ;;  %v9623_v4 = vld [vmem:[#allocation2 + $0x8c] sm:$0x1]  ;;  %v10128_v1 = vrot.slane %v10127_v47, 4  ;;  %v14416_v27 = vrot.slane %v9620_v20, 9 }
 0x846   :  { %v9346_v49 = vrot.slane %v9344_v52, 5  ;;  %v9702_v8 = vrot.slane %v9621_v51, 5  ;;  %v10160_v63 = vshll.u32 %v9948_v10, 16  ;;  %v14417_v29 = vrot.slane %v9622_v38, 9 }
 0x847   :  { %v10118_v0 = vor.u32 %v10117_v62, %v10114_v15  ;;  %v9706_v15 = vrot.slane %v9623_v4, 5  ;;  %v9175_v62 = vld [vmem:[#allocation2 + $0x94] sm:$0x1]  ;;  %v10137_v50 = vsel %vm16811_vm8, %v10128_v1, %v10136_v7  ;;  %v9329_v31 = vrot.slane %v9327_v56, 4  ;;  %v18723_v7 = vpop.f32.mrf.mxu3 }
 0x848   :  { %v9332_v9 = vrot.slane %v9330_v26, 5  ;;  %v10142_v33 = vshll.u32 %v9946_v32, 16  ;;  %v10162_v45 = vrot.slane %v10160_v63, 6  ;;  %v10169_v1 = vshll.u32 %v9949_v40, 16 }
 0x849   :  { %v8550_v24 = vpop.f32.mrf.mxu1  ;;  %v10119_v22 = vsel %vm16811_vm8, %v10110_v25, %v10118_v0  ;;  %v10139_v0 = vshrl.u32 %v9946_v32, 16  ;;  %v10288_v51 = vunpack.c.l.b16 %v10137_v50  ;;  %v9180_v50 = vld [vmem:[#allocation2 + $0xa8] sm:$0xf] }
 0x84a   :  { %v18700_v42 = vadd.f32 %v8550_v24, %v8066_v60  ;;  %10382 = vmatmul.bf16.gmra.mxu3 %v10298_v34  ;;  %v10157_v60 = vshrl.u32 %v9948_v10, 16  ;;  %v8067_v34 = vadd.f32 %v18489_v14, %v18435_v19  ;;  %v9177_v24 = vld [vmem:[#allocation2 + $0x9c] sm:$0x1]  ;;  %v9707_v19 = vsel %vm16301_vm4, %v14417_v29, %v9706_v15 }
 0x84b   :  { %v9336_v14 = vshll.u32 %v9175_v62, 16  ;;  %v9350_v20 = vshll.u32 %v9177_v24, 16  ;;  %v10166_v10 = vshrl.u32 %v9949_v40, 16  ;;  %v9333_v56 = vor.u32 %v9332_v9, %v9329_v31 }
 0x84c   :  { %v8867_v13 = vpop.f32.mrf.mxu2  ;;  %v10159_v25 = vrot.slane %v10157_v60, 5  ;;  %v10287_v38 = vunpack.c.l.b16 %v10119_v22  ;;  %v10144_v15 = vrot.slane %v10142_v33, 6  ;;  %v9703_v62 = vsel %vm16301_vm4, %v14416_v27, %v9702_v8  ;;  %v9624_v33 = vld [vmem:[#allocation2 + $0x90] sm:$0xe] }
 0x84d   :  { %v18705_v58 = vadd.f32 %v8867_v13, %v18659_v54  ;;  %v9463_v54 = vpack.c.b16 %v9452_v41, %v9451_v21  ;;  %v9347_v13 = vor.u32 %v9346_v49, %v9343_v37  ;;  %v9947_v41 = vld [vmem:[#allocation2 + $0x94] sm:$0x3]  ;;  %v10141_v49 = vrot.slane %v10139_v0, 5 }
 0x84e   :  { %v10148_v26 = vshrl.u32 %v9947_v41, 16  ;;  %v9774_v32 = vunpack.c.l.b16 %v9707_v19  ;;  %v9352_v60 = vrot.slane %v9350_v20, 5  ;;  %v10163_v24 = vor.u32 %v10162_v45, %v10159_v25 }
 0x84f   :  { %v9348_v37 = vrot.slane %v9347_v13, 4  ;;  %v10168_v63 = vrot.slane %v10166_v10, 5  ;;  %v10299_v31 = vpack.c.b16 %v10288_v51, %v10287_v38  ;;  %v9334_v9 = vrot.slane %v9333_v56, 4  ;;  %v9625_v10 = vld [vmem:[#allocation2 + $0x94] sm:$0x1] }
 0x850   :  { %v10150_v22 = vrot.slane %v10148_v26, 5  ;;  %v10145_v8 = vor.u32 %v10144_v15, %v10141_v49  ;;  %v9773_v0 = vunpack.c.l.b16 %v9703_v62  ;;  %v9369_v19 = vshrl.u32 %v9180_v50, 16  ;;  %v9627_v38 = vld [vmem:[#allocation2 + $0x9c] sm:$0x1] }
 0x851   :  { %9868 = vmatmul.bf16.gmra.mxu2 %v9784_v39  ;;  %v8553_v47 = vpop.f32.mrf.mxu1  ;;  %v10151_v39 = vshll.u32 %v9947_v41, 16  ;;  %v9353_v27 = vsel %vm16317_vm5, %v9348_v37, %v9352_v60  ;;  %v10164_v25 = vrot.slane %v10163_v24, 4  ;;  %v14418_v15 = vrot.slane %v9624_v33, 9 }
 0x852   :  { %v18716_v52 = vadd.f32 %v8553_v47, %v8067_v34  ;;  %v10171_v47 = vrot.slane %v10169_v1, 6  ;;  %v15747_v1 = vld [vmem:[%s19718_s3 + $0x618] sm:$0xff]  ;;  %v9785_v51 = vpack.c.b16 %v9774_v32, %v9773_v0  ;;  %v9454_v56 = vunpack.c.l.b16 %v9353_v27 }
 0x853   :  { %v10153_v40 = vrot.slane %v10151_v39, 6  ;;  %v9626_v39 = vld [vmem:[#allocation2 + $0x98] sm:$0xe]  ;;  %v10146_v49 = vrot.slane %v10145_v8, 4  ;;  %10685 = vmatpush.bf16.msra.mxu1 %v15747_v1  ;;  %v9710_v60 = vrot.slane %v9625_v10, 5 }
 0x854   :  { %v8870_v21 = vpop.f32.mrf.mxu2  ;;  %9551 = vmatmul.bf16.gmra.mxu1 %v9463_v54  ;;  %v19803_v54 = vld [vmem:[#allocation11_spill] sm:$0xff]  ;;  %v10172_v45 = vor.u32 %v10171_v47, %v10168_v63  ;;  %v19804_v47 = vld [vmem:[#allocation12_spill] sm:$0xff] }
 0x855   :  { %v18721_v4 = vadd.f32 %v8870_v21, %v18685_v18  ;;  %v9338_v18 = vrot.slane %v9336_v14, 5  ;;  %v8068_v34 = vadd.f32 %v18522_v30, %v19803_v54  ;;  %v9178_v21 = vld [vmem:[#allocation2 + $0xa0] sm:$0xf]  ;;  %v9372_v14 = vshll.u32 %v9180_v50, 16  ;;  %v9181_v8 = vld [vmem:[#allocation2 + $0xac] sm:$0x1] }
 0x856   :  { %v10154_v26 = vor.u32 %v10153_v40, %v10150_v22  ;;  %v9355_v62 = vshrl.u32 %v9178_v21, 16  ;;  %v9358_v54 = vshll.u32 %v9178_v21, 16  ;;  %v9950_v63 = vld [vmem:[#allocation2 + $0xa0] sm:$0xe]  ;;  %v8069_v32 = vadd.f32 %v18542_v16, %v19804_v47 }
 0x857   :  { %v9339_v30 = vsel %vm16317_vm5, %v9334_v9, %v9338_v18  ;;  %v9952_v18 = vld [vmem:[#allocation2 + $0xa8] sm:$0xe]  ;;  %v9374_v24 = vrot.slane %v9372_v14, 5  ;;  %v10173_v50 = vsel %vm16811_vm8, %v10164_v25, %v10172_v45  ;;  %v9179_v9 = vld [vmem:[#allocation2 + $0xa4] sm:$0x1]  ;;  %v10175_v16 = vshrl.u32 %v9950_v63, 16 }
 0x858   :  { %v9453_v37 = vunpack.c.l.b16 %v9339_v30  ;;  %v10155_v27 = vsel %vm16811_vm8, %v10146_v49, %v10154_v26  ;;  %v10193_v0 = vshrl.u32 %v9952_v18, 16  ;;  %v10196_v30 = vshll.u32 %v9952_v18, 16 }
 0x859   :  { %v8555_v29 = vpop.f32.mrf.mxu1  ;;  %v9357_v21 = vrot.slane %v9355_v62, 4  ;;  %v10178_v14 = vshll.u32 %v9950_v63, 16  ;;  %v10290_v25 = vunpack.c.l.b16 %v10173_v50  ;;  %v9360_v45 = vrot.slane %v9358_v54, 5 }
 0x85a   :  { %v18729_v13 = vadd.f32 %v8555_v29, %v8068_v34  ;;  %10387 = vmatmul.bf16.gmra.mxu3 %v10299_v31  ;;  %v9371_v34 = vrot.slane %v9369_v19, 4  ;;  %v14419_v29 = vrot.slane %v9626_v39, 9  ;;  %v9714_v31 = vrot.slane %v9627_v38, 5  ;;  %v9953_v19 = vld [vmem:[#allocation2 + $0xac] sm:$0x3] }
 0x85b   :  { %v9464_v40 = vpack.c.b16 %v9454_v56, %v9453_v37  ;;  %v9364_v1 = vshll.u32 %v9179_v9, 16  ;;  %v9378_v26 = vshll.u32 %v9181_v8, 16  ;;  %v10195_v37 = vrot.slane %v10193_v0, 5 }
 0x85c   :  { %v8872_v41 = vpop.f32.mrf.mxu2  ;;  %v10198_v49 = vrot.slane %v10196_v30, 6  ;;  %v10202_v18 = vshrl.u32 %v9953_v19, 16  ;;  %v10205_v47 = vshll.u32 %v9953_v19, 16  ;;  %v10289_v62 = vunpack.c.l.b16 %v10155_v27 }
 0x85d   :  { %v18736_v20 = vadd.f32 %v8872_v41, %v18700_v42  ;;  %v18741_v42 = vpop.f32.mrf.mxu3  ;;  %v9951_v41 = vld [vmem:[#allocation2 + $0xa4] sm:$0x3]  ;;  %v9711_v63 = vsel %vm16301_vm4, %v14418_v15, %v9710_v60  ;;  %v10180_v50 = vrot.slane %v10178_v14, 6  ;;  %v9715_v54 = vsel %vm16301_vm4, %v14419_v29, %v9714_v31 }
 0x85e   :  { %v10184_v39 = vshrl.u32 %v9951_v41, 16  ;;  %v10187_v38 = vshll.u32 %v9951_v41, 16  ;;  %v8070_v9 = vadd.f32 %v18567_v11, %v18527_v17  ;;  %v9184_v41 = vld [vmem:[#allocation2 + $0xb8] sm:$0xf]  ;;  %v9380_v30 = vrot.slane %v9378_v26, 5 }
 0x85f   :  { %v10199_v15 = vor.u32 %v10198_v49, %v10195_v37  ;;  %v10204_v60 = vrot.slane %v10202_v18, 5  ;;  %v10207_v19 = vrot.slane %v10205_v47, 6  ;;  %v9776_v29 = vunpack.c.l.b16 %v9715_v54  ;;  %v9631_v49 = vld [vmem:[#allocation2 + $0xac] sm:$0x1] }
 0x860   :  { %v10189_v8 = vrot.slane %v10187_v38, 6 }
 0x861   :  { %9873 = vmatmul.bf16.gmra.mxu2 %v9785_v51  ;;  %v8558_v22 = vpop.f32.mrf.mxu1  ;;  %v9375_v51 = vor.u32 %v9374_v24, %v9371_v34  ;;  %v9361_v34 = vor.u32 %v9360_v45, %v9357_v21  ;;  %v15746_v21 = vld [vmem:[%s19718_s3 + $0x610] sm:$0xff]  ;;  %v9775_v45 = vunpack.c.l.b16 %v9711_v63  ;;  %v10200_v38 = vrot.slane %v10199_v15, 4 }
 0x862   :  { %v18749_v33 = vadd.f32 %v8558_v22, %v8069_v32  ;;  %v10177_v32 = vrot.slane %v10175_v16, 5  ;;  %v10300_v22 = vpack.c.b16 %v10290_v25, %v10289_v62  ;;  %v9400_v25 = vshll.u32 %v9184_v41, 16  ;;  %10686 = vmatpush.bf16.msra.mxu1 %v15746_v21 }
 0x863   :  { %v9376_v24 = vrot.slane %v9375_v51, 4  ;;  %v9362_v11 = vrot.slane %v9361_v34, 4  ;;  %v15745_v51 = vld [vmem:[%s19718_s3 + $0x608] sm:$0xff]  ;;  %v10208_v37 = vor.u32 %v10207_v19, %v10204_v60  ;;  %v9786_v18 = vpack.c.b16 %v9776_v29, %v9775_v45  ;;  %v9183_v19 = vld [vmem:[#allocation2 + $0xb4] sm:$0x1] }
 0x864   :  { %v8875_v10 = vpop.f32.mrf.mxu2  ;;  %9556 = vmatmul.bf16.gmra.mxu1 %v9464_v40  ;;  %v10186_v40 = vrot.slane %v10184_v39, 5  ;;  %v10181_v31 = vor.u32 %v10180_v50, %v10177_v32  ;;  %v9628_v32 = vld [vmem:[#allocation2 + $0xa0] sm:$0xe]  ;;  %v9630_v50 = vld [vmem:[#allocation2 + $0xa8] sm:$0xe] }
 0x865   :  { %v18752_v56 = vadd.f32 %v8875_v10, %v18716_v52  ;;  %v9366_v52 = vrot.slane %v9364_v1, 5  ;;  %v18760_v0 = vpop.f32.mrf.mxu3  ;;  %v9381_v14 = vsel %vm16317_vm5, %v9376_v24, %v9380_v30  ;;  %v9397_v10 = vshrl.u32 %v9184_v41, 16  ;;  %v9182_v1 = vld [vmem:[#allocation2 + $0xb0] sm:$0xf] }
 0x866   :  { %v10190_v39 = vor.u32 %v10189_v8, %v10186_v40  ;;  %v9456_v47 = vunpack.c.l.b16 %v9381_v14  ;;  %v10182_v62 = vrot.slane %v10181_v31, 4  ;;  %v9383_v54 = vshrl.u32 %v9182_v1, 16  ;;  %10687 = vmatpush.bf16.msra.mxu1 %v15745_v51  ;;  %v9954_v29 = vld [vmem:[#allocation2 + $0xb0] sm:$0xe]  ;;  %v15744_v14 = vld [vmem:[%s19718_s3 + $0x600] sm:$0xff] }
 0x867   :  { %v9367_v26 = vsel %vm16317_vm5, %v9362_v11, %v9366_v52  ;;  %v9386_v63 = vshll.u32 %v9182_v1, 16  ;;  %v9399_v34 = vrot.slane %v9397_v10, 4  ;;  %v9402_v24 = vrot.slane %v9400_v25, 5  ;;  %v9629_v52 = vld [vmem:[#allocation2 + $0xa4] sm:$0x1] }
 0x868   :  { %v9455_v41 = vunpack.c.l.b16 %v9367_v26  ;;  %v9722_v40 = vrot.slane %v9631_v49, 5  ;;  %v10209_v30 = vsel %vm16811_vm8, %v10200_v38, %v10208_v37  ;;  %v14420_v15 = vrot.slane %v9628_v32, 9  ;;  %v9185_v11 = vld [vmem:[#allocation2 + $0xbc] sm:$0x1]  ;;  %v9955_v32 = vld [vmem:[#allocation2 + $0xb4] sm:$0x3] }
 0x869   :  { %v8560_v27 = vpop.f32.mrf.mxu1  ;;  %v14421_v60 = vrot.slane %v9630_v50, 9  ;;  %v9718_v45 = vrot.slane %v9629_v52, 5  ;;  %v9385_v1 = vrot.slane %v9383_v54, 4  ;;  %v9388_v51 = vrot.slane %v9386_v63, 5 }
 0x86a   :  { %v18762_v16 = vadd.f32 %v8560_v27, %v8070_v9  ;;  %10392 = vmatmul.bf16.gmra.mxu3 %v10300_v22  ;;  %v9956_v9 = vld [vmem:[#allocation2 + $0xb8] sm:$0xe]  ;;  %v8071_v22 = vadd.f32 %v18591_v35, %v18540_v2  ;;  %v10191_v27 = vsel %vm16811_vm8, %v10182_v62, %v10190_v39  ;;  %v9465_v21 = vpack.c.b16 %v9456_v47, %v9455_v41  ;;  %v9957_v39 = vld [vmem:[#allocation2 + $0xbc] sm:$0x3] }
 0x86b   :  { %v10229_v2 = vshrl.u32 %v9956_v9, 16  ;;  %v10232_v35 = vshll.u32 %v9956_v9, 16  ;;  %v9403_v26 = vor.u32 %v9402_v24, %v9399_v34  ;;  %v10291_v37 = vunpack.c.l.b16 %v10191_v27  ;;  %10688 = vmatpush.bf16.msra.mxu1 %v15744_v14 }
 0x86c   :  { %v18767_v17 = vpop.f32.mrf.mxu2  ;;  %v10292_v49 = vunpack.c.l.b16 %v10209_v30  ;;  %v9392_v47 = vshll.u32 %v9183_v19, 16  ;;  %v9406_v62 = vshll.u32 %v9185_v11, 16  ;;  %v10211_v50 = vshrl.u32 %v9954_v29, 16 }
 0x86d   :  { %v18787_v10 = vpop.f32.mrf.mxu3  ;;  %v10214_v9 = vshll.u32 %v9954_v29, 16  ;;  %v10234_v54 = vrot.slane %v10232_v35, 6  ;;  %v10238_v63 = vshrl.u32 %v9957_v39, 16  ;;  %v10241_v34 = vshll.u32 %v9957_v39, 16 }
 0x86e   :  { %v9389_v41 = vor.u32 %v9388_v51, %v9385_v1  ;;  %v9404_v52 = vrot.slane %v9403_v26, 4  ;;  %v10220_v27 = vshrl.u32 %v9955_v32, 16  ;;  %v10223_v30 = vshll.u32 %v9955_v32, 16 }
 0x86f   :  { %v9394_v19 = vrot.slane %v9392_v47, 5  ;;  %v9408_v29 = vrot.slane %v9406_v62, 5  ;;  %v10216_v11 = vrot.slane %v10214_v9, 6  ;;  %v10240_v14 = vrot.slane %v10238_v63, 5 }
 0x870   :  { %v9390_v1 = vrot.slane %v9389_v41, 4  ;;  %v10225_v51 = vrot.slane %v10223_v30, 6  ;;  %v8073_v32 = vadd.f32 %v18638_v46, %v18580_v44  ;;  %v9634_v41 = vld [vmem:[#allocation2 + $0xb8] sm:$0xe]  ;;  %v9632_v46 = vld [vmem:[#allocation2 + $0xb0] sm:$0xe] }
 0x871   :  { %9878 = vmatmul.bf16.gmra.mxu2 %v9786_v18  ;;  %v8563_v8 = vpop.f32.mrf.mxu1  ;;  %v9723_v18 = vsel %vm16301_vm4, %v14421_v60, %v9722_v40  ;;  %v10301_v40 = vpack.c.b16 %v10292_v49, %v10291_v37 }
 0x872   :  { %v18782_v31 = vadd.f32 %v8563_v8, %v8071_v22  ;;  %v10231_v22 = vrot.slane %v10229_v2, 5  ;;  %v9778_v24 = vunpack.c.l.b16 %v9723_v18  ;;  %v8072_v8 = vadd.f32 %v18613_v23, %v18561_v53 }
 0x873   :  { %v9409_v53 = vsel %vm16317_vm5, %v9404_v52, %v9408_v29  ;;  %v10222_v23 = vrot.slane %v10220_v27, 5  ;;  %v9395_v37 = vsel %vm16317_vm5, %v9390_v1, %v9394_v19  ;;  %v10443_v27 = vld [vmem:[#allocation2 + $0x2c] sm:$0x3]  ;;  %v14423_v19 = vrot.slane %v9634_v41, 9  ;;  %v10441_v29 = vld [vmem:[#allocation2 + $0x24] sm:$0x3] }
 0x874   :  { %v8880_v25 = vpop.f32.mrf.mxu2  ;;  %9561 = vmatmul.bf16.gmra.mxu1 %v9465_v21  ;;  %v10213_v21 = vrot.slane %v10211_v50, 5  ;;  %v10235_v35 = vor.u32 %v10234_v54, %v10231_v22  ;;  %v9458_v49 = vunpack.c.l.b16 %v9409_v53  ;;  %v9457_v50 = vunpack.c.l.b16 %v9395_v37  ;;  %v9635_v22 = vld [vmem:[#allocation2 + $0xbc] sm:$0x1] }
 0x875   :  { %v18790_v38 = vadd.f32 %v8880_v25, %v18749_v33  ;;  %v9719_v33 = vsel %vm16301_vm4, %v14420_v15, %v9718_v45  ;;  %v10243_v25 = vrot.slane %v10241_v34, 6  ;;  %v18804_v26 = vpop.f32.mrf.mxu3  ;;  %v10226_v9 = vor.u32 %v10225_v51, %v10222_v23  ;;  %v10447_v41 = vld [vmem:[#allocation2 + $0x3c] sm:$0x3] }
 0x876   :  { %v9777_v45 = vunpack.c.l.b16 %v9719_v33  ;;  %v10217_v18 = vor.u32 %v10216_v11, %v10213_v21  ;;  %v10236_v47 = vrot.slane %v10235_v35, 4  ;;  %v9466_v34 = vpack.c.b16 %v9458_v49, %v9457_v50  ;;  %v10442_v21 = vld [vmem:[#allocation2 + $0x28] sm:$0xc] }
 0x877   :  { %v10244_v62 = vor.u32 %v10243_v25, %v10240_v14  ;;  %v14422_v14 = vrot.slane %v9632_v46, 9  ;;  %v10506_v51 = vrot.slane %v10441_v29, 6  ;;  %v19805_v46 = vld [vmem:[#allocation19_spill] sm:$0xff] }
 0x878   :  { %v9787_v39 = vpack.c.b16 %v9778_v24, %v9777_v45  ;;  %v10218_v33 = vrot.slane %v10217_v18, 4  ;;  %v8074_v45 = vadd.f32 %v18655_v43, %v18596_v48 }
 0x879   :  { %v8565_v60 = vpop.f32.mrf.mxu1  ;;  %v10245_v24 = vsel %vm16811_vm8, %v10236_v47, %v10244_v62  ;;  %v14520_v47 = vrot.slane %v10440_v59, 10 }
 0x87a   :  { %v18798_v2 = vadd.f32 %v8565_v60, %v8072_v8  ;;  %10397 = vmatmul.bf16.gmra.mxu3 %v10301_v40  ;;  %v9730_v8 = vrot.slane %v9635_v22, 5  ;;  %v10227_v44 = vsel %vm16811_vm8, %v10218_v33, %v10226_v9  ;;  %v10294_v30 = vunpack.c.l.b16 %v10245_v24 }
 0x87b   :  { %v9726_v60 = vrot.slane %v9633_v36, 5  ;;  %v10293_v35 = vunpack.c.l.b16 %v10227_v44  ;;  %v10507_v48 = vsel %vm16824_vm11, %v14520_v47, %v10506_v51  ;;  %v10518_v44 = vrot.slane %v10447_v41, 6  ;;  %v10449_v47 = vld [vmem:[#allocation2 + $0x44] sm:$0x3] }
 0x87c   :  { %v18800_v15 = vpop.f32.mrf.mxu2  ;;  %v9731_v25 = vsel %vm16301_vm4, %v14423_v19, %v9730_v8  ;;  %v10601_v9 = vunpack.c.l.b16 %v10507_v48  ;;  %v10446_v8 = vld [vmem:[#allocation2 + $0x38] sm:$0xc]  ;;  %v9125_v48 = vadd.f32 %v18741_v42, %v18670_v57  ;;  %v9126_v57 = vadd.f32 %v18760_v0, %v18688_v28 }
 0x87d   :  { %v18817_v11 = vpop.f32.mrf.mxu3  ;;  %v10302_v53 = vpack.c.b16 %v10294_v30, %v10293_v35  ;;  %v9727_v23 = vsel %vm16301_vm4, %v14422_v14, %v9726_v60  ;;  %v9780_v49 = vunpack.c.l.b16 %v9731_v25  ;;  %v10444_v30 = vld [vmem:[#allocation2 + $0x30] sm:$0xc]  ;;  %v14523_v3 = vrot.slane %v10446_v8, 10  ;;  %v15817_v14 = vld [vmem:[%s19720_s5 + $0x208] sm:$0xff] }
 0x87e   :  { %12093 = vmatpush.bf16.msrb.mxu0 %v15817_v14 }
 0x87f   :  { %v10519_v35 = vsel %vm16824_vm11, %v14523_v3, %v10518_v44 }
 0x880   :  { %v10604_v25 = vunpack.c.l.b16 %v10519_v35  ;;  %v10452_v35 = vld [vmem:[#allocation2 + $0x50] sm:$0xc] }
 0x881   :  { %9883 = vmatmul.bf16.gmra.mxu2 %v9787_v39  ;;  %v8568_v54 = vpop.f32.mrf.mxu1  ;;  %v14521_v39 = vrot.slane %v10442_v21, 10 }
 0x882   :  { %v8587_v63 = vadd.f32 %v8568_v54, %v8073_v32  ;;  %v9779_v32 = vunpack.c.l.b16 %v9727_v23 }
 0x884   :  { %v8885_v52 = vpop.f32.mrf.mxu2  ;;  %9566 = vmatmul.bf16.gmra.mxu1 %v9466_v34  ;;  %v9788_v43 = vpack.c.b16 %v9780_v49, %v9779_v32 }
 0x885   :  { %v18813_v40 = vadd.f32 %v8885_v52, %v18782_v31  ;;  %v10510_v31 = vrot.slane %v10443_v27, 6  ;;  %v18835_v22 = vpop.f32.mrf.mxu3  ;;  %v10445_v52 = vld [vmem:[#allocation2 + $0x34] sm:$0x3]  ;;  %v9123_v27 = vadd.f32 %v18702_v5, %v19805_v46 }
 0x886   :  { %v10514_v61 = vrot.slane %v10445_v52, 6 }
 0x887   :  { %v10511_v62 = vsel %vm16824_vm11, %v14521_v39, %v10510_v31  ;;  %v9124_v31 = vadd.f32 %v18723_v7, %v18649_v55  ;;  %v10451_v39 = vld [vmem:[#allocation2 + $0x4c] sm:$0x3]  ;;  %v10522_v55 = vrot.slane %v10449_v47, 6 }
 0x888   :  { %v10602_v50 = vunpack.c.l.b16 %v10511_v62  ;;  %v10450_v62 = vld [vmem:[#allocation2 + $0x48] sm:$0xc]  ;;  %v10526_v32 = vrot.slane %v10451_v39, 6 }
 0x889   :  { %v8570_v1 = vpop.f32.mrf.mxu1  ;;  %v14525_v7 = vrot.slane %v10450_v62, 10 }
 0x88a   :  { %v18825_v37 = vadd.f32 %v8570_v1, %v8074_v45  ;;  %10402 = vmatmul.bf16.gmra.mxu3 %v10302_v53  ;;  %v10617_v33 = vpack.c.b16 %v10602_v50, %v10601_v9 }
 0x88c   :  { %v18827_v18 = vpop.f32.mrf.mxu2 }
 0x88d   :  { %v18843_v29 = vpop.f32.mrf.mxu3 }
 0x891   :  { %9888 = vmatmul.bf16.gmra.mxu2 %v9788_v43  ;;  %v9532_v54 = vpop.f32.mrf.mxu1  ;;  %v10448_v43 = vld [vmem:[#allocation2 + $0x40] sm:$0xc] }
 0x892   :  { %v9572_v34 = vadd.f32 %v9532_v54, %v9122_v12  ;;  %v14524_v54 = vrot.slane %v10448_v43, 10  ;;  %v10459_v43 = vld [vmem:[#allocation2 + $0x8c] sm:$0x3] }
 0x894   :  { %v8890_v24 = vpop.f32.mrf.mxu2  ;;  %10689 = vmatmul.bf16.vlgmr.msra.gmra.mxu1 %v10617_v33  ;;  %v10523_v33 = vsel %vm16824_vm11, %v14524_v54, %v10522_v55  ;;  %v10458_v55 = vld [vmem:[#allocation2 + $0x88] sm:$0xc]  ;;  %v9129_v54 = vadd.f32 %v18817_v11, %v18736_v20  ;;  %v9130_v20 = vadd.f32 %v18835_v22, %v18752_v56 }
 0x895   :  { %v18837_v36 = vadd.f32 %v8890_v24, %v8587_v63  ;;  %v14522_v63 = vrot.slane %v10444_v30, 10  ;;  %v18858_v49 = vpop.f32.mrf.mxu3  ;;  %v10605_v42 = vunpack.c.l.b16 %v10523_v33  ;;  %v10455_v30 = vld [vmem:[#allocation2 + $0x5c] sm:$0x3] }
 0x896   :  { %v10534_v3 = vrot.slane %v10455_v30, 6 }
 0x897   :  { %v10515_v5 = vsel %vm16824_vm11, %v14522_v63, %v10514_v61  ;;  %v10454_v61 = vld [vmem:[#allocation2 + $0x58] sm:$0xc]  ;;  %v9127_v63 = vadd.f32 %v18787_v10, %v18705_v58  ;;  %v9128_v58 = vadd.f32 %v18804_v26, %v18721_v4  ;;  %v14529_v26 = vrot.slane %v10458_v55, 10 }
 0x898   :  { %v10603_v45 = vunpack.c.l.b16 %v10515_v5  ;;  %v14527_v0 = vrot.slane %v10454_v61, 10 }
 0x899   :  { %v9534_v60 = vpop.f32.mrf.mxu1 }
 0x89a   :  { %v18841_v19 = vadd.f32 %v9534_v60, %v9123_v27  ;;  %v10618_v53 = vpack.c.b16 %v10604_v25, %v10603_v45  ;;  %v10453_v60 = vld [vmem:[#allocation2 + $0x54] sm:$0x3]  ;;  %v14526_v45 = vrot.slane %v10452_v35, 10 }
 0x89b   :  { %v10530_v28 = vrot.slane %v10453_v60, 6 }
 0x89c   :  { %v18845_v21 = vpop.f32.mrf.mxu2 }
 0x89d   :  { %v18870_v41 = vpop.f32.mrf.mxu3 }
 0x8a1   :  { %v9537_v59 = vpop.f32.mrf.mxu1 }
 0x8a2   :  { %v9574_v1 = vadd.f32 %v9537_v59, %v9124_v31  ;;  %v10535_v59 = vsel %vm16824_vm11, %v14527_v0, %v10534_v3  ;;  %v10462_v0 = vld [vmem:[#allocation2 + $0x98] sm:$0xc] }
 0x8a3   :  { %v14531_v56 = vrot.slane %v10462_v0, 10  ;;  %v10471_v0 = vld [vmem:[#allocation2 + $0xbc] sm:$0x3] }
 0x8a4   :  { %v9854_v23 = vpop.f32.mrf.mxu2  ;;  %10694 = vmatmul.bf16.gmra.mxu1 %v10618_v53  ;;  %v10608_v53 = vunpack.c.l.b16 %v10535_v59  ;;  %v10460_v59 = vld [vmem:[#allocation2 + $0x90] sm:$0xc] }
 0x8a5   :  { %v18856_v51 = vadd.f32 %v9854_v23, %v9572_v34  ;;  %v10527_v34 = vsel %vm16824_vm11, %v14525_v7, %v10526_v32  ;;  %v18878_v14 = vpop.f32.mrf.mxu3  ;;  %v10542_v7 = vrot.slane %v10459_v43, 6 }
 0x8a6   :  { %v10606_v24 = vunpack.c.l.b16 %v10527_v34  ;;  %v10456_v34 = vld [vmem:[#allocation2 + $0x80] sm:$0xc] }
 0x8a8   :  { %v10619_v44 = vpack.c.b16 %v10606_v24, %v10605_v42  ;;  %v14528_v42 = vrot.slane %v10456_v34, 10  ;;  %v10467_v34 = vld [vmem:[#allocation2 + $0xac] sm:$0x3] }
 0x8a9   :  { %v9539_v50 = vpop.f32.mrf.mxu1 }
 0x8aa   :  { %v18862_v12 = vadd.f32 %v9539_v50, %v9125_v48  ;;  %v10457_v50 = vld [vmem:[#allocation2 + $0x84] sm:$0x3] }
 0x8ab   :  { %v10538_v4 = vrot.slane %v10457_v50, 6 }
 0x8ac   :  { %v18864_v9 = vpop.f32.mrf.mxu2 }
 0x8ad   :  { %v18888_v62 = vpop.f32.mrf.mxu3 }
 0x8b1   :  { %v9542_v52 = vpop.f32.mrf.mxu1 }
 0x8b2   :  { %v9576_v8 = vadd.f32 %v9542_v52, %v9126_v57  ;;  %v10543_v52 = vsel %vm16824_vm11, %v14529_v26, %v10542_v7  ;;  %v10558_v26 = vrot.slane %v10467_v34, 6 }
 0x8b3   :  { %v10610_v30 = vunpack.c.l.b16 %v10543_v52 }
 0x8b4   :  { %v9859_v46 = vpop.f32.mrf.mxu2  ;;  %10699 = vmatmul.bf16.gmra.mxu1 %v10619_v44 }
 0x8b5   :  { %v18874_v27 = vadd.f32 %v9859_v46, %v9574_v1  ;;  %v10531_v1 = vsel %vm16824_vm11, %v14526_v45, %v10530_v28  ;;  %v18898_v44 = vpop.f32.mrf.mxu3  ;;  %v10539_v46 = vsel %vm16824_vm11, %v14528_v42, %v10538_v4  ;;  %v10461_v28 = vld [vmem:[#allocation2 + $0x94] sm:$0x3]  ;;  %v10466_v4 = vld [vmem:[#allocation2 + $0xa8] sm:$0xc] }
 0x8b6   :  { %v10607_v10 = vunpack.c.l.b16 %v10531_v1  ;;  %v10609_v11 = vunpack.c.l.b16 %v10539_v46  ;;  %v14533_v52 = vrot.slane %v10466_v4, 10  ;;  %v8910_v4 = vadd.f32 %v18845_v21, %v18825_v37 }
 0x8b8   :  { %v10620_v47 = vpack.c.b16 %v10608_v53, %v10607_v10  ;;  %v10621_v3 = vpack.c.b16 %v10610_v30, %v10609_v11  ;;  %v10546_v53 = vrot.slane %v10461_v28, 6  ;;  %v9134_v11 = vadd.f32 %v18878_v14, %v18813_v40 }
 0x8b9   :  { %v9544_v5 = vpop.f32.mrf.mxu1  ;;  %v8908_v28 = vadd.f32 %v18827_v18, %v18798_v2 }
 0x8ba   :  { %v9577_v25 = vadd.f32 %v9544_v5, %v9127_v63  ;;  %v10463_v5 = vld [vmem:[#allocation2 + $0x9c] sm:$0x3] }
 0x8bb   :  { %v10550_v45 = vrot.slane %v10463_v5, 6 }
 0x8bc   :  { %v18880_v31 = vpop.f32.mrf.mxu2 }
 0x8bd   :  { %v10551_v10 = vsel %vm16824_vm11, %v14531_v56, %v10550_v45  ;;  %v10566_v56 = vrot.slane %v10471_v0, 6 }
 0x8c1   :  { %v9547_v23 = vpop.f32.mrf.mxu1 }
 0x8c2   :  { %v9578_v39 = vadd.f32 %v9547_v23, %v9128_v58  ;;  %v14530_v58 = vrot.slane %v10460_v59, 10  ;;  %v10469_v59 = vld [vmem:[#allocation2 + $0xb4] sm:$0x3] }
 0x8c3   :  { %v10562_v40 = vrot.slane %v10469_v59, 6 }
 0x8c4   :  { %v9864_v32 = vpop.f32.mrf.mxu2  ;;  %10704 = vmatmul.bf16.gmra.mxu1 %v10620_v47  ;;  %v10612_v47 = vunpack.c.l.b16 %v10551_v10 }
 0x8c5   :  { %v18890_v48 = vadd.f32 %v9864_v32, %v9576_v8  ;;  %v9132_v32 = vadd.f32 %v18858_v49, %v18790_v38  ;;  %v10559_v38 = vsel %vm16824_vm11, %v14533_v52, %v10558_v26  ;;  %v15759_v26 = vld [vmem:[%s19720_s5 + $0x38] sm:$0xff] }
 0x8c6   :  { %11451 = vmatpush.bf16.msra.mxu3 %v15759_v26 }
 0x8c9   :  { %v9549_v33 = vpop.f32.mrf.mxu1 }
 0x8ca   :  { %v9579_v24 = vadd.f32 %v9549_v33, %v9129_v54  ;;  %v10465_v33 = vld [vmem:[#allocation2 + $0xa4] sm:$0x3] }
 0x8cb   :  { %v10554_v42 = vrot.slane %v10465_v33, 6 }
 0x8cc   :  { %v9866_v57 = vpop.f32.mrf.mxu2 }
 0x8cd   :  { %v18896_v8 = vadd.f32 %v9866_v57, %v9577_v25  ;;  %v18908_v25 = vpop.f32.mrf.mxu3 }
 0x8d1   :  { %v9552_v60 = vpop.f32.mrf.mxu1 }
 0x8d2   :  { %v18904_v61 = vadd.f32 %v9552_v60, %v9130_v20  ;;  %v10614_v20 = vunpack.c.l.b16 %v10559_v38  ;;  %v9895_v38 = vadd.f32 %v18864_v9, %v18841_v19 }
 0x8d4   :  { %v9869_v63 = vpop.f32.mrf.mxu2  ;;  %10709 = vmatmul.bf16.gmra.mxu1 %v10621_v3 }
 0x8d5   :  { %v18906_v35 = vadd.f32 %v9869_v63, %v9578_v39  ;;  %v10547_v39 = vsel %vm16824_vm11, %v14530_v58, %v10546_v53  ;;  %v10368_v50 = vpop.f32.mrf.mxu3  ;;  %v10470_v53 = vld [vmem:[#allocation2 + $0xb8] sm:$0xc]  ;;  %v10468_v58 = vld [vmem:[#allocation2 + $0xb0] sm:$0xc] }
 0x8d6   :  { %v10611_v43 = vunpack.c.l.b16 %v10547_v39  ;;  %v14535_v14 = vrot.slane %v10470_v53, 10  ;;  %v10408_v37 = vadd.f32 %v10368_v50, %v18856_v51 }
 0x8d8   :  { %v10622_v54 = vpack.c.b16 %v10612_v47, %v10611_v43  ;;  %v14534_v47 = vrot.slane %v10468_v58, 10 }
 0x8d9   :  { %v18910_v1 = vpop.f32.mrf.mxu1 }
 0x8da   :  { %v10563_v2 = vsel %vm16824_vm11, %v14534_v47, %v10562_v40 }
 0x8dc   :  { %v9871_v22 = vpop.f32.mrf.mxu2 }
 0x8dd   :  { %v18914_v23 = vadd.f32 %v9871_v22, %v9579_v24  ;;  %v10464_v24 = vld [vmem:[#allocation2 + $0xa0] sm:$0xc]  ;;  %v10370_v46 = vpop.f32.mrf.mxu3  ;;  %v9135_v22 = vadd.f32 %v18888_v62, %v8908_v28  ;;  %v10615_v62 = vunpack.c.l.b16 %v10563_v2 }
 0x8de   :  { %v14532_v30 = vrot.slane %v10464_v24, 10  ;;  %v10409_v50 = vadd.f32 %v10370_v46, %v9895_v38 }
 0x8e0   :  { %v10555_v49 = vsel %vm16824_vm11, %v14532_v30, %v10554_v42 }
 0x8e1   :  { %v9557_v55 = vpop.f32.mrf.mxu1  ;;  %v10613_v60 = vunpack.c.l.b16 %v10555_v49  ;;  %v15766_v49 = vld [vmem:[%s19720_s5 + $0x70] sm:$0xff] }
 0x8e2   :  { %v18920_v7 = vadd.f32 %v9557_v55, %v9132_v32  ;;  %v10567_v32 = vsel %vm16824_vm11, %v14535_v14, %v10566_v56  ;;  %v9136_v55 = vadd.f32 %v18898_v44, %v18837_v36  ;;  %v9137_v36 = vadd.f32 %v18908_v25, %v8910_v4  ;;  %v15758_v25 = vld [vmem:[%s19720_s5 + $0x30] sm:$0xff]  ;;  %11379 = vmatpush.bf16.msra.mxu2 %v15766_v49 }
 0x8e3   :  { %v10623_v5 = vpack.c.b16 %v10614_v20, %v10613_v60  ;;  %v10616_v18 = vunpack.c.l.b16 %v10567_v32  ;;  %11452 = vmatpush.bf16.msra.mxu3 %v15758_v25 }
 0x8e4   :  { %10714 = vmatmul.bf16.gmra.mxu1 %v10622_v54  ;;  %v18971_v51 = vpop.f32.mrf.mxu2 }
 0x8e5   :  { %v18934_v45 = vpop.f32.mrf.mxu3  ;;  %v10624_v33 = vpack.c.b16 %v10616_v18, %v10615_v62 }
 0x8e6   :  { %v10410_v4 = vadd.f32 %v18934_v45, %v18874_v27  ;;  %v15757_v27 = vld [vmem:[%s19720_s5 + $0x28] sm:$0xff] }
 0x8e7   :  { %11453 = vmatpush.bf16.msra.mxu3 %v15757_v27 }
 0x8e9   :  { %v18922_v57 = vpop.f32.mrf.mxu1 }
 0x8ec   :  { %v18998_v26 = vpop.f32.mrf.mxu2 }
 0x8ed   :  { %v18943_v43 = vpop.f32.mrf.mxu3 }
 0x8f1   :  { %v9562_v3 = vpop.f32.mrf.mxu1 }
 0x8f2   :  { %v18930_v63 = vadd.f32 %v9562_v3, %v9134_v11 }
 0x8f4   :  { %10719 = vmatmul.bf16.gmra.mxu1 %v10623_v5 }
 0x8f5   :  { %v18958_v44 = vpop.f32.mrf.mxu3 }
 0x8f9   :  { %v9564_v10 = vpop.f32.mrf.mxu1 }
 0x8fa   :  { %v18937_v39 = vadd.f32 %v9564_v10, %v9135_v22 }
 0x8fd   :  { %v10380_v30 = vpop.f32.mrf.mxu3 }
 0x8fe   :  { %v18974_v19 = vadd.f32 %v10380_v30, %v18896_v8 }
 0x901   :  { %v9567_v54 = vpop.f32.mrf.mxu1 }
 0x902   :  { %v18947_v34 = vadd.f32 %v9567_v54, %v9136_v55 }
 0x904   :  { %10724 = vmatmul.bf16.gmra.mxu1 %v10624_v33 }
 0x905   :  { %v18976_v10 = vpop.f32.mrf.mxu3 }
 0x909   :  { %v9569_v24 = vpop.f32.mrf.mxu1 }
 0x90a   :  { %v18960_v42 = vadd.f32 %v9569_v24, %v9137_v36  ;;  %v15760_v24 = vld [vmem:[%s19720_s5 + $0x40] sm:$0xff] }
 0x90d   :  { %v10385_v30 = vpop.f32.mrf.mxu3 }
 0x911   :  { %v10690_v21 = vpop.f32.mrf.mxu1 }
 0x912   :  { %v10730_v52 = vadd.f32 %v10690_v21, %v10408_v37  ;;  %v15765_v21 = vld [vmem:[%s19720_s5 + $0x68] sm:$0xff] }
 0x913   :  { %11380 = vmatpush.bf16.msra.mxu2 %v15765_v21 }
 0x914   :  { %v10794_v20 = vrot.slane %v10730_v52, 2  ;;  %v10795_v11 = vrot.slane %v10730_v52, 4  ;;  %v10796_v60 = vrot.slane %v10730_v52, 6  ;;  %v14584_v3 = vrot.slane %v10730_v52, 9 }
 0x916   :  { %v14585_v28 = vrot.slane %v10794_v20, 9  ;;  %v14586_v0 = vrot.slane %v10795_v11, 9  ;;  %v14587_v59 = vrot.slane %v10796_v60, 9  ;;  %v18978_v40 = vmax.f32 %v10730_v52, %v14584_v3 }
 0x917   :  { %v9897_v52 = vadd.f32 %v18880_v31, %v18862_v12 }
 0x918   :  { %v18982_v2 = vmax.f32 %v10794_v20, %v14585_v28  ;;  %v18984_v8 = vmax.f32 %v10795_v11, %v14586_v0  ;;  %v18986_v18 = vmax.f32 %v10796_v60, %v14587_v59  ;;  %v15756_v11 = vld [vmem:[%s19720_s5 + $0x20] sm:$0xff]  ;;  %v19027_v0 = vpop.f32.mrf.mxu2 }
 0x919   :  { %v10692_v5 = vpop.f32.mrf.mxu1  ;;  %v10411_v20 = vadd.f32 %v18943_v43, %v9897_v52  ;;  %v15764_v60 = vld [vmem:[%s19720_s5 + $0x60] sm:$0xff]  ;;  %11454 = vmatpush.bf16.msra.mxu3 %v15756_v11  ;;  %v15755_v43 = vld [vmem:[%s19720_s5 + $0x18] sm:$0xff] }
 0x91a   :  { %v10731_v9 = vadd.f32 %v10692_v5, %v10409_v50  ;;  %v19022_v50 = vadd.f32 %v10385_v30, %v18914_v23  ;;  %11381 = vmatpush.bf16.msra.mxu2 %v15764_v60 }
 0x91c   :  { %v10797_v53 = vrot.slane %v10731_v9, 2  ;;  %v10798_v56 = vrot.slane %v10731_v9, 4  ;;  %v10799_v22 = vrot.slane %v10731_v9, 6  ;;  %v14588_v58 = vrot.slane %v10731_v9, 9 }
 0x91d   :  { %11455 = vmatpush.bf16.msra.mxu3 %v15755_v43  ;;  %v15753_v43 = vld [vmem:[%s19720_s5 + $0x8] sm:$0xff] }
 0x91e   :  { %v14589_v14 = vrot.slane %v10797_v53, 9  ;;  %v14590_v47 = vrot.slane %v10798_v56, 9  ;;  %v14591_v46 = vrot.slane %v10799_v22, 9  ;;  %v18980_v32 = vmax.f32 %v10731_v9, %v14588_v58 }
 0x920   :  { %v18988_v55 = vmax.f32 %v10797_v53, %v14589_v14  ;;  %v18990_v62 = vmax.f32 %v10798_v56, %v14590_v47  ;;  %v18992_v54 = vmax.f32 %v10799_v22, %v14591_v46 }
 0x921   :  { %v10695_v6 = vpop.f32.mrf.mxu1 }
 0x922   :  { %v10732_v45 = vadd.f32 %v10695_v6, %v10410_v4 }
 0x924   :  { %v10800_v38 = vrot.slane %v10732_v45, 2  ;;  %v10801_v49 = vrot.slane %v10732_v45, 4  ;;  %v10802_v25 = vrot.slane %v10732_v45, 6  ;;  %v14592_v12 = vrot.slane %v10732_v45, 9 }
 0x926   :  { %v14593_v5 = vrot.slane %v10800_v38, 9  ;;  %v14594_v9 = vrot.slane %v10801_v49, 9  ;;  %v14595_v28 = vrot.slane %v10802_v25, 9  ;;  %v19029_v23 = vmax.f32 %v10732_v45, %v14592_v12  ;;  %v15763_v12 = vld [vmem:[%s19720_s5 + $0x58] sm:$0xff] }
 0x927   :  { %11382 = vmatpush.bf16.msra.mxu2 %v15763_v12  ;;  %v15783_v12 = vld [vmem:[%s19720_s5 + $0xf8] sm:$0xff] }
 0x928   :  { %v19033_v4 = vmax.f32 %v10800_v38, %v14593_v5  ;;  %v19035_v6 = vmax.f32 %v10801_v49, %v14594_v9  ;;  %v19037_v21 = vmax.f32 %v10802_v25, %v14595_v28 }
 0x929   :  { %v10697_v31 = vpop.f32.mrf.mxu1 }
 0x92a   :  { %v10733_v3 = vadd.f32 %v10697_v31, %v10411_v20  ;;  %19806 = vst [vmem:[#allocation22_spill] sm:$0xff] %v19035_v6  ;;  %v10412_v20 = vadd.f32 %v18958_v44, %v18890_v48  ;;  %v15754_v31 = vld [vmem:[%s19720_s5 + $0x10] sm:$0xff]  ;;  %v15816_v48 = vld [vmem:[%s19720_s5 + $0x200] sm:$0xff]  ;;  %v19064_v44 = vpop.f32.mrf.mxu2 }
 0x92b   :  { %11456 = vmatpush.bf16.msra.mxu3 %v15754_v31  ;;  %12094 = vmatpush.bf16.msrb.mxu0 %v15816_v48 }
 0x92c   :  { %v10803_v59 = vrot.slane %v10733_v3, 2  ;;  %v10804_v53 = vrot.slane %v10733_v3, 4  ;;  %v10805_v56 = vrot.slane %v10733_v3, 6  ;;  %v14596_v22 = vrot.slane %v10733_v3, 9 }
 0x92e   :  { %v14597_v58 = vrot.slane %v10803_v59, 9  ;;  %v14598_v14 = vrot.slane %v10804_v53, 9  ;;  %v14599_v47 = vrot.slane %v10805_v56, 9  ;;  %v19031_v46 = vmax.f32 %v10733_v3, %v14596_v22  ;;  %v15762_v3 = vld [vmem:[%s19720_s5 + $0x50] sm:$0xff] }
 0x92f   :  { %11383 = vmatpush.bf16.msra.mxu2 %v15762_v3  ;;  %11457 = vmatpush.bf16.msra.mxu3 %v15753_v43 }
 0x930   :  { %v19039_v27 = vmax.f32 %v10803_v59, %v14597_v58  ;;  %v19041_v52 = vmax.f32 %v10804_v53, %v14598_v14  ;;  %v19043_v30 = vmax.f32 %v10805_v56, %v14599_v47  ;;  %v19072_v56 = vpop.f32.mrf.mxu3  ;;  %v15761_v58 = vld [vmem:[%s19720_s5 + $0x48] sm:$0xff]  ;;  %v15752_v14 = vld [vmem:[%s19720_s5] sm:$0xff] }
 0x931   :  { %v10700_v11 = vpop.f32.mrf.mxu1 }
 0x932   :  { %19807 = vst [vmem:[#allocation13_spill] sm:$0xff] %v19041_v52  ;;  %v10734_v60 = vadd.f32 %v10700_v11, %v10412_v20 }
 0x933   :  { %19808 = vst [vmem:[#allocation14_spill] sm:$0xff] %v19043_v30  ;;  %11384 = vmatpush.bf16.msra.mxu2 %v15761_v58  ;;  %11458 = vmatpush.bf16.msra.mxu3 %v15752_v14  ;;  %v19105_v58 = vpop.f32.mrf.mxu2 }
 0x934   :  { %v10806_v5 = vrot.slane %v10734_v60, 2  ;;  %v10807_v9 = vrot.slane %v10734_v60, 4  ;;  %v10808_v28 = vrot.slane %v10734_v60, 6  ;;  %v14600_v59 = vrot.slane %v10734_v60, 9 }
 0x936   :  { %v14601_v47 = vrot.slane %v10806_v5, 9  ;;  %v14602_v20 = vrot.slane %v10807_v9, 9  ;;  %v14603_v11 = vrot.slane %v10808_v28, 9  ;;  %v19084_v43 = vmax.f32 %v10734_v60, %v14600_v59  ;;  %v15775_v59 = vld [vmem:[%s19720_s5 + $0xb8] sm:$0xff] }
 0x937   :  { %v10414_v60 = vadd.f32 %v18976_v10, %v18906_v35  ;;  %11632 = vmatpush.bf16.msrb.mxu3 %v15783_v12  ;;  %11385 = vmatpush.bf16.msra.mxu2 %v15760_v24  ;;  %v15781_v12 = vld [vmem:[%s19720_s5 + $0xe8] sm:$0xff] }
 0x938   :  { %v19091_v37 = vmax.f32 %v10806_v5, %v14601_v47  ;;  %v19093_v45 = vmax.f32 %v10807_v9, %v14602_v20  ;;  %v19095_v36 = vmax.f32 %v10808_v28, %v14603_v11  ;;  %v15773_v24 = vld [vmem:[%s19720_s5 + $0xa8] sm:$0xff]  ;;  %v8904_v47 = vadd.f32 %v18767_v17, %v18729_v13  ;;  %v15779_v13 = vld [vmem:[%s19720_s5 + $0xd8] sm:$0xff] }
 0x939   :  { %v10702_v53 = vpop.f32.mrf.mxu1 }
 0x93a   :  { %v10735_v22 = vadd.f32 %v10702_v53, %v18974_v19  ;;  %19809 = vst [vmem:[#allocation21_spill] sm:$0xff] %v19093_v45  ;;  %v9902_v45 = vadd.f32 %v18971_v51, %v18904_v61 }
 0x93b   :  { %19810 = vst [vmem:[#allocation16_spill] sm:$0xff] %v19095_v36  ;;  %11541 = vmatpush.bf16.msrb.mxu2 %v15775_v59 }
 0x93c   :  { %v10809_v31 = vrot.slane %v10735_v22, 2  ;;  %v10810_v48 = vrot.slane %v10735_v22, 4  ;;  %v10811_v19 = vrot.slane %v10735_v22, 6  ;;  %v14604_v3 = vrot.slane %v10735_v22, 9 }
 0x93e   :  { %v14605_v53 = vrot.slane %v10809_v31, 9  ;;  %v14606_v49 = vrot.slane %v10810_v48, 9  ;;  %v14607_v25 = vrot.slane %v10811_v19, 9  ;;  %v19086_v38 = vmax.f32 %v10735_v22, %v14604_v3  ;;  %v15782_v22 = vld [vmem:[%s19720_s5 + $0xf0] sm:$0xff] }
 0x93f   :  { %11633 = vmatpush.bf16.msrb.mxu3 %v15782_v22  ;;  %v19138_v22 = vpop.f32.mrf.mxu2 }
 0x940   :  { %v19107_v5 = vmax.f32 %v10809_v31, %v14605_v53  ;;  %v19109_v9 = vmax.f32 %v10810_v48, %v14606_v49  ;;  %v19111_v28 = vmax.f32 %v10811_v19, %v14607_v25  ;;  %v19121_v49 = vpop.f32.mrf.mxu3  ;;  %v15774_v25 = vld [vmem:[%s19720_s5 + $0xb0] sm:$0xff]  ;;  %v15831_v31 = vld [vmem:[%s19720_s5 + $0x278] sm:$0xff]  ;;  %v15780_v53 = vld [vmem:[%s19720_s5 + $0xe0] sm:$0xff] }
 0x941   :  { %v10705_v10 = vpop.f32.mrf.mxu1  ;;  %11542 = vmatpush.bf16.msrb.mxu2 %v15774_v25  ;;  %12178 = vmatpush.bf16.msrb.mxu1 %v15831_v31  ;;  %v15772_v31 = vld [vmem:[%s19720_s5 + $0xa0] sm:$0xff] }
 0x942   :  { %19811 = vst [vmem:[#allocation23_spill] sm:$0xff] %v19109_v9  ;;  %v10736_v11 = vadd.f32 %v10705_v10, %v10414_v60 }
 0x943   :  { %19812 = vst [vmem:[#allocation25_spill] sm:$0xff] %v19111_v28  ;;  %11634 = vmatpush.bf16.msrb.mxu3 %v15781_v12 }
 0x944   :  { %v10812_v48 = vrot.slane %v10736_v11, 2  ;;  %v10813_v19 = vrot.slane %v10736_v11, 4  ;;  %v10814_v3 = vrot.slane %v10736_v11, 6  ;;  %v14608_v60 = vrot.slane %v10736_v11, 9 }
 0x945   :  { %11543 = vmatpush.bf16.msrb.mxu2 %v15773_v24 }
 0x946   :  { %v14609_v25 = vrot.slane %v10812_v48, 9  ;;  %v14610_v12 = vrot.slane %v10813_v19, 9  ;;  %v14611_v20 = vrot.slane %v10814_v3, 9 }
 0x947   :  { %11635 = vmatpush.bf16.msrb.mxu3 %v15780_v53  ;;  %v9131_v53 = vadd.f32 %v18843_v29, %v8904_v47  ;;  %v15771_v29 = vld [vmem:[%s19720_s5 + $0x98] sm:$0xff]  ;;  %v10416_v47 = vadd.f32 %v19072_v56, %v9902_v45  ;;  %v9889_v45 = vpop.f32.mrf.mxu2  ;;  %v19192_v56 = vld [vmem:[%s19719_s4] ss:$0 sm:$0xff] }
 0x948   :  { %v19153_v17 = vpop.f32.mrf.mxu3  ;;  %v19158_v52 = vmax.f32 %v10812_v48, %v14609_v25  ;;  %v19160_v6 = vmax.f32 %v10813_v19, %v14610_v12  ;;  %v19162_v61 = vmax.f32 %v10814_v3, %v14611_v20  ;;  %v19196_v19 = vrot.slane %v19192_v56, 1  ;;  %v15770_v3 = vld [vmem:[%s19720_s5 + $0x90] sm:$0xff] }
 0x949   :  { %v10707_v59 = vpop.f32.mrf.mxu1  ;;  %11544 = vmatpush.bf16.msrb.mxu2 %v15772_v31  ;;  %v19813_v25 = vmax.f32 %v18978_v40, %v18980_v32  ;;  %v9904_v40 = vadd.f32 %v19027_v0, %v18920_v7  ;;  %v19815_v0 = vmax.f32 %v19029_v23, %v19031_v46  ;;  %v15828_v46 = vld [vmem:[%s19720_s5 + $0x260] sm:$0xff] }
 0x94a   :  { %v10737_v10 = vadd.f32 %v10707_v59, %v19022_v50  ;;  %v19148_v50 = vmax.f32 %v10736_v11, %v14608_v60 }
 0x94b   :  { %11636 = vmatpush.bf16.msrb.mxu3 %v15779_v13 }
 0x94c   :  { %v10815_v14 = vrot.slane %v10737_v10, 2  ;;  %v10816_v35 = vrot.slane %v10737_v10, 4  ;;  %v10817_v33 = vrot.slane %v10737_v10, 6  ;;  %v14612_v9 = vrot.slane %v10737_v10, 9 }
 0x94d   :  { %11545 = vmatpush.bf16.msrb.mxu2 %v15771_v29  ;;  %v15769_v29 = vld [vmem:[%s19720_s5 + $0x88] sm:$0xff] }
 0x94e   :  { %v14613_v59 = vrot.slane %v10815_v14, 9  ;;  %v14614_v28 = vrot.slane %v10816_v35, 9  ;;  %v14615_v36 = vrot.slane %v10817_v33, 9  ;;  %v19155_v24 = vmax.f32 %v10737_v10, %v14612_v9  ;;  %v15777_v10 = vld [vmem:[%s19720_s5 + $0xc8] sm:$0xff] }
 0x94f   :  { %v8906_v9 = vadd.f32 %v18800_v15, %v18762_v16 }
 0x950   :  { %v19164_v51 = vmax.f32 %v10815_v14, %v14613_v59  ;;  %v19166_v11 = vmax.f32 %v10816_v35, %v14614_v28  ;;  %v19168_v60 = vmax.f32 %v10817_v33, %v14615_v36  ;;  %v15778_v33 = vld [vmem:[%s19720_s5 + $0xd0] sm:$0xff]  ;;  %v9581_v36 = vadd.f32 %v18910_v1, %v9131_v53  ;;  %v10395_v59 = vpop.f32.mrf.mxu3 }
 0x951   :  { %v10710_v20 = vpop.f32.mrf.mxu1  ;;  %11637 = vmatpush.bf16.msrb.mxu3 %v15778_v33  ;;  %v9133_v48 = vadd.f32 %v18870_v41, %v8906_v9  ;;  %v11188_v41 = vadd.f32 %v19192_v56, %v19813_v25  ;;  %11546 = vmatpush.bf16.msrb.mxu2 %v15770_v3  ;;  %v15829_v9 = vld [vmem:[%s19720_s5 + $0x268] sm:$0xff]  ;;  %v9906_v33 = vadd.f32 %v19105_v58, %v18930_v63  ;;  %v15768_v63 = vld [vmem:[%s19720_s5 + $0x80] sm:$0xff]  ;;  %v19241_v58 = vrot.slane %v19192_v56, 2 }
 0x952   :  { %v10738_v16 = vadd.f32 %v10710_v20, %v10416_v47  ;;  %v9903_v15 = vadd.f32 %v18998_v26, %v9581_v36  ;;  %v15830_v26 = vld [vmem:[%s19720_s5 + $0x270] sm:$0xff]  ;;  %v19235_v3 = vadd.f32 %v19192_v56, %v19815_v0 }
 0x953   :  { %v9583_v13 = vadd.f32 %v18922_v57, %v9133_v48  ;;  %12179 = vmatpush.bf16.msrb.mxu1 %v15830_v26  ;;  %v15776_v57 = vld [vmem:[%s19720_s5 + $0xc0] sm:$0xff]  ;;  %v11220_v7 = vmax.f32 %v11188_v41, 0.0  ;;  %v9891_v41 = vpop.f32.mrf.mxu2 }
 0x954   :  { %v10818_v1 = vrot.slane %v10738_v16, 2  ;;  %v10819_v12 = vrot.slane %v10738_v16, 4  ;;  %v10820_v31 = vrot.slane %v10738_v16, 6  ;;  %v10417_v53 = vadd.f32 %v19121_v49, %v9903_v15 }
 0x955   :  { %v14616_v32 = vrot.slane %v10738_v16, 9  ;;  %11638 = vmatpush.bf16.msrb.mxu3 %v15777_v10  ;;  %v9905_v49 = vadd.f32 %v19064_v44, %v9583_v13  ;;  %v19814_v15 = vmax.f32 %v18982_v2, %v18988_v55  ;;  %11547 = vmatpush.bf16.msrb.mxu2 %v15769_v29  ;;  %v11252_v14 = vpack.c.bf16 %v11220_v7, %v11220_v7 }
 0x956   :  { %v14617_v47 = vrot.slane %v10818_v1, 9  ;;  %v14618_v26 = vrot.slane %v10819_v12, 9  ;;  %v14619_v10 = vrot.slane %v10820_v31, 9  ;;  %v19254_v30 = vadd.f32 %v9891_v41, %v18960_v42 }
 0x957   :  { %v11189_v48 = vadd.f32 %v19196_v19, %v19814_v15  ;;  %12180 = vmatpush.bf16.msrb.mxu1 %v15829_v9  ;;  %v11114_v2 = vmax.f32 %v10738_v16, %v14616_v32 }
 0x958   :  { %v11115_v55 = vmax.f32 %v10818_v1, %v14617_v47  ;;  %v11116_v15 = vmax.f32 %v10819_v12, %v14618_v26  ;;  %v11117_v0 = vmax.f32 %v10820_v31, %v14619_v10  ;;  %v15827_v31 = vld [vmem:[%s19720_s5 + $0x258] sm:$0xff] }
 0x959   :  { %v10712_v20 = vpop.f32.mrf.mxu1  ;;  %11639 = vmatpush.bf16.msrb.mxu3 %v15776_v57  ;;  %v11221_v23 = vmax.f32 %v11189_v48, 0.0  ;;  %11548 = vmatpush.bf16.msrb.mxu2 %v15768_v63  ;;  %v19248_v57 = vadd.f32 %v19138_v22, %v18937_v39  ;;  %v19251_v48 = vadd.f32 %v9889_v45, %v18947_v34  ;;  %v11224_v34 = vmax.f32 %v19235_v3, 0.0 }
 0x95a   :  { %v10739_v36 = vadd.f32 %v10712_v20, %v10417_v53  ;;  %v19263_v22 = vrot.slane %v19241_v58, 1  ;;  %v10419_v45 = vadd.f32 %v10395_v59, %v9905_v49 }
 0x95b   :  { %v11253_v28 = vpack.c.bf16 %v11221_v23, %v11221_v23  ;;  %12181 = vmatpush.bf16.msrb.mxu1 %v15828_v46  ;;  %v15826_v23 = vld [vmem:[%s19720_s5 + $0x250] sm:$0xff] }
 0x95c   :  { %v10821_v25 = vrot.slane %v10739_v36, 2  ;;  %v10822_v44 = vrot.slane %v10739_v36, 4  ;;  %v10823_v13 = vrot.slane %v10739_v36, 6  ;;  %v14620_v35 = vrot.slane %v10739_v36, 9 }
 0x95e   :  { %v14621_v53 = vrot.slane %v10821_v25, 9  ;;  %v14622_v20 = vrot.slane %v10822_v44, 9  ;;  %v14623_v29 = vrot.slane %v10823_v13, 9  ;;  %v11118_v9 = vmax.f32 %v10739_v36, %v14620_v35  ;;  %v10398_v36 = vpop.f32.mrf.mxu3 }
 0x95f   :  { %v10418_v35 = vadd.f32 %v19153_v17, %v9904_v40  ;;  %12182 = vmatpush.bf16.msrb.mxu1 %v15827_v31 }
 0x960   :  { %v11119_v16 = vmax.f32 %v10821_v25, %v14621_v53  ;;  %v11120_v1 = vmax.f32 %v10822_v44, %v14622_v20  ;;  %v11121_v32 = vmax.f32 %v10823_v13, %v14623_v29  ;;  %v11162_v47 = vmax.f32 %v11114_v2, %v11118_v9 }
 0x961   :  { %v10715_v12 = vpop.f32.mrf.mxu1  ;;  %v11393_v25 = vunpack.c.l.b16 %v11252_v14  ;;  %v11319_v44 = vunpack.c.l.b16 %v11253_v28  ;;  %v19270_v53 = vadd.f32 %v10398_v36, %v9906_v33  ;;  %v15825_v33 = vld [vmem:[%s19720_s5 + $0x248] sm:$0xff] }
 0x962   :  { %v11163_v7 = vmax.f32 %v11115_v55, %v11119_v16  ;;  %v11164_v26 = vmax.f32 %v11116_v15, %v11120_v1  ;;  %v11165_v10 = vmax.f32 %v11117_v0, %v11121_v32  ;;  %v11204_v39 = vadd.f32 %v19192_v56, %v11162_v47 }
 0x963   :  { %v10740_v42 = vadd.f32 %v10715_v12, %v10418_v35  ;;  %v14698_v14 = vunpack.i.l.s16 %v11393_v25  ;;  %v14664_v15 = vunpack.i.l.s16 %v11319_v44  ;;  %12183 = vmatpush.bf16.msrb.mxu1 %v15826_v23  ;;  %v19816_v47 = vmax.f32 %v18986_v18, %v18992_v54  ;;  %v15855_v12 = vld [vmem:[%s19720_s5 + $0x338] sm:$0xff]  ;;  %v15854_v54 = vld [vmem:[%s19720_s5 + $0x330] sm:$0xff] }
 0x964   :  { %v11205_v17 = vadd.f32 %v19196_v19, %v11163_v7  ;;  %v11236_v40 = vmax.f32 %v11204_v39, 0.0  ;;  %v11207_v46 = vadd.f32 %v19263_v22, %v11165_v10  ;;  %v19273_v0 = vadd.f32 %v19241_v58, %v11164_v26  ;;  %12451 = vmatpush.bf16.msra.mxu0 %v15855_v12  ;;  %v15799_v12 = vld [vmem:[%s19720_s5 + $0x178] sm:$0xff] }
 0x965   :  { %v10824_v13 = vrot.slane %v10740_v42, 2  ;;  %v10825_v63 = vrot.slane %v10740_v42, 4  ;;  %v10826_v2 = vrot.slane %v10740_v42, 6  ;;  %v14624_v55 = vrot.slane %v10740_v42, 9 }
 0x966   :  { %v11268_v41 = vpack.c.bf16 %v11236_v40, %v11236_v40  ;;  %v11237_v59 = vmax.f32 %v11205_v17, 0.0  ;;  %v11191_v35 = vadd.f32 %v19263_v22, %v19816_v47  ;;  %v11239_v26 = vmax.f32 %v11207_v46, 0.0 }
 0x967   :  { %v14625_v49 = vrot.slane %v10824_v13, 9  ;;  %v14626_v20 = vrot.slane %v10825_v63, 9  ;;  %v14627_v29 = vrot.slane %v10826_v2, 9  ;;  %v11122_v16 = vmax.f32 %v10740_v42, %v14624_v55  ;;  %12184 = vmatpush.bf16.msrb.mxu1 %v15825_v33 }
 0x968   :  { %v11394_v28 = vunpack.c.l.b16 %v11268_v41  ;;  %v11269_v9 = vpack.c.bf16 %v11237_v59, %v11237_v59  ;;  %v11223_v42 = vmax.f32 %v11191_v35, 0.0  ;;  %v19817_v17 = vmax.f32 %v18984_v8, %v18990_v62  ;;  %v15824_v8 = vld [vmem:[%s19720_s5 + $0x240] sm:$0xff]  ;;  %12452 = vmatpush.bf16.msra.mxu0 %v15854_v54 }
 0x969   :  { %v11123_v1 = vmax.f32 %v10824_v13, %v14625_v49  ;;  %v10717_v32 = vpop.f32.mrf.mxu1  ;;  %v19285_v10 = vmax.f32 %v10825_v63, %v14626_v20  ;;  %v19287_v39 = vmax.f32 %v10826_v2, %v14627_v29  ;;  %v11271_v23 = vpack.c.bf16 %v11239_v26, %v11239_v26  ;;  %v15863_v49 = vld [vmem:[%s19720_s5 + $0x378] sm:$0xff] }
 0x96a   :  { %v10741_v31 = vadd.f32 %v10717_v32, %v10419_v45  ;;  %v14699_v36 = vunpack.i.l.s16 %v11394_v28  ;;  %v11320_v7 = vunpack.c.l.b16 %v11269_v9  ;;  %v19293_v18 = vadd.f32 %v19241_v58, %v19817_v17  ;;  %v10400_v45 = vpop.f32.mrf.mxu3 }
 0x96b   :  { %v11255_v55 = vpack.c.bf16 %v11223_v42, %v11223_v42  ;;  %v11575_v9 = vunpack.c.l.b16 %v11271_v23  ;;  %12185 = vmatpush.bf16.msrb.mxu1 %v15824_v8 }
 0x96c   :  { %v10827_v40 = vrot.slane %v10741_v31, 2  ;;  %v10828_v25 = vrot.slane %v10741_v31, 4  ;;  %v10829_v44 = vrot.slane %v10741_v31, 6  ;;  %v14628_v13 = vrot.slane %v10741_v31, 9 }
 0x96d   :  { %v11399_v63 = vrot.slane %v14699_v36, 7  ;;  %v14665_v2 = vunpack.i.l.s16 %v11320_v7  ;;  %v11574_v28 = vunpack.c.l.b16 %v11255_v55  ;;  %v14799_v26 = vunpack.i.l.s16 %v11575_v9 }
 0x96e   :  { %v14629_v62 = vrot.slane %v10827_v40, 9  ;;  %v14630_v46 = vrot.slane %v10828_v25, 9  ;;  %v14631_v41 = vrot.slane %v10829_v44, 9  ;;  %v11126_v59 = vmax.f32 %v10741_v31, %v14628_v13 }
 0x96f   :  { %v11400_v20 = vsel %vm11326_vm12, %v11399_v63, %v14698_v14  ;;  %v11325_v29 = vrot.slane %v14665_v2, 7  ;;  %v11238_v14 = vmax.f32 %v19273_v0, 0.0  ;;  %12542 = vmatpush.bf16.msra.mxu1 %v15863_v49  ;;  %v11580_v0 = vrot.slane %v14799_v26, 7 }
 0x970   :  { %v11127_v32 = vmax.f32 %v10827_v40, %v14629_v62  ;;  %v19305_v33 = vmax.f32 %v10828_v25, %v14630_v46  ;;  %v19307_v47 = vmax.f32 %v10829_v44, %v14631_v41  ;;  %v11166_v35 = vmax.f32 %v11122_v16, %v11126_v59  ;;  %v15791_v40 = vld [vmem:[%s19720_s5 + $0x138] sm:$0xff]  ;;  %v15862_v44 = vld [vmem:[%s19720_s5 + $0x370] sm:$0xff] }
 0x971   :  { %v10720_v31 = vpop.f32.mrf.mxu1  ;;  %v11401_v36 = vpack.c.b16 %v11400_v20, %v11400_v20  ;;  %v11327_v7 = vsel %vm11326_vm12, %v11325_v29, %v14664_v15  ;;  %v19818_v13 = vmax.f32 %v19148_v50, %v19155_v24  ;;  %v14798_v23 = vunpack.i.l.s16 %v11574_v28  ;;  %v15790_v50 = vld [vmem:[%s19720_s5 + $0x130] sm:$0xff]  ;;  %v15853_v29 = vld [vmem:[%s19720_s5 + $0x328] sm:$0xff] }
 0x972   :  { %v11167_v42 = vmax.f32 %v11123_v1, %v11127_v32  ;;  %v11168_v17 = vmax.f32 %v19285_v10, %v19305_v33  ;;  %v11169_v54 = vmax.f32 %v19287_v39, %v19307_v47  ;;  %v11208_v16 = vadd.f32 %v19192_v56, %v11166_v35  ;;  %v10403_v41 = vpop.f32.mrf.mxu3  ;;  %12453 = vmatpush.bf16.msra.mxu0 %v15853_v29  ;;  %v15857_v39 = vld [vmem:[%s19720_s5 + $0x348] sm:$0xff] }
 0x973   :  { %v10742_v15 = vadd.f32 %v10720_v31, %v19270_v53  ;;  %11459 = vmatmul.bf16.vlgmr.msra.gmra.mxu3 %v11401_v36  ;;  %v11328_v25 = vpack.c.b16 %v11327_v7, %v11327_v7  ;;  %v11222_v1 = vmax.f32 %v19293_v18, 0.0  ;;  %v19331_v63 = vadd.f32 %v19192_v56, %v19818_v13  ;;  %v15798_v53 = vld [vmem:[%s19720_s5 + $0x170] sm:$0xff]  ;;  %12543 = vmatpush.bf16.msra.mxu1 %v15862_v44  ;;  %v15789_v44 = vld [vmem:[%s19720_s5 + $0x128] sm:$0xff] }
 0x974   :  { %v11209_v2 = vadd.f32 %v19196_v19, %v11167_v42  ;;  %v11240_v55 = vmax.f32 %v11208_v16, 0.0  ;;  %11814 = vmatpush.bf16.msra.mxu3 %v15799_v12  ;;  %v10421_v24 = vadd.f32 %v10400_v45, %v19248_v57  ;;  %v19342_v59 = vsel %vm11326_vm12, %v11580_v0, %v14798_v23  ;;  %v15861_v57 = vld [vmem:[%s19720_s5 + $0x368] sm:$0xff] }
 0x975   :  { %v10830_v18 = vrot.slane %v10742_v15, 2  ;;  %v10831_v8 = vrot.slane %v10742_v15, 4  ;;  %v10832_v62 = vrot.slane %v10742_v15, 6  ;;  %v14632_v46 = vrot.slane %v10742_v15, 9  ;;  %11386 = vmatmul.bf16.vlgmr.msra.gmra.mxu2 %v11328_v25  ;;  %v15797_v12 = vld [vmem:[%s19720_s5 + $0x168] sm:$0xff] }
 0x976   :  { %11723 = vmatpush.bf16.msra.mxu2 %v15791_v40  ;;  %v11254_v49 = vpack.c.bf16 %v11222_v1, %v11222_v1  ;;  %v11270_v20 = vpack.c.bf16 %v11238_v14, %v11238_v14  ;;  %v19348_v35 = vadd.f32 %v10403_v41, %v19251_v48  ;;  %v19353_v45 = vpack.c.bf16 %v11240_v55, %v11240_v55  ;;  %v15852_v48 = vld [vmem:[%s19720_s5 + $0x320] sm:$0xff]  ;;  %v15793_v47 = vld [vmem:[%s19720_s5 + $0x148] sm:$0xff] }
 0x977   :  { %v14633_v28 = vrot.slane %v10830_v18, 9  ;;  %v14634_v9 = vrot.slane %v10831_v8, 9  ;;  %v14635_v32 = vrot.slane %v10832_v62, 9  ;;  %v19819_v7 = vmax.f32 %v19033_v4, %v19039_v27  ;;  %12544 = vmatpush.bf16.msra.mxu1 %v15861_v57  ;;  %v15860_v55 = vld [vmem:[%s19720_s5 + $0x360] sm:$0xff]  ;;  %12454 = vmatpush.bf16.msra.mxu0 %v15852_v48 }
 0x978   :  { %11815 = vmatpush.bf16.msra.mxu3 %v15798_v53  ;;  %v11483_v31 = vunpack.c.l.b16 %v11254_v49  ;;  %v11484_v36 = vunpack.c.l.b16 %v11270_v20  ;;  %v19365_v14 = vmax.f32 %v10742_v15, %v14632_v46  ;;  %v11582_v40 = vpack.c.b16 %v19342_v59, %v19342_v59 }
 0x979   :  { %v11193_v26 = vadd.f32 %v19196_v19, %v19819_v7  ;;  %v19367_v42 = vmax.f32 %v10830_v18, %v14633_v28  ;;  %v10722_v16 = vpop.f32.mrf.mxu1  ;;  %v11241_v25 = vmax.f32 %v11209_v2, 0.0  ;;  %v19371_v0 = vmax.f32 %v10831_v8, %v14634_v9  ;;  %v15788_v9 = vld [vmem:[%s19720_s5 + $0x120] sm:$0xff] }
 0x97a   :  { %11724 = vmatpush.bf16.msra.mxu2 %v15790_v50  ;;  %v10743_v1 = vadd.f32 %v10722_v16, %v10421_v24  ;;  %v14749_v4 = vunpack.i.l.s16 %v11484_v36  ;;  %v19376_v13 = vmax.f32 %v10832_v62, %v14635_v32  ;;  %v14748_v15 = vunpack.i.l.s16 %v11483_v31  ;;  %v15796_v62 = vld [vmem:[%s19720_s5 + $0x160] sm:$0xff]  ;;  %v15859_v36 = vld [vmem:[%s19720_s5 + $0x358] sm:$0xff] }
 0x97b   :  { %v11225_v27 = vmax.f32 %v11193_v26, 0.0  ;;  %v11273_v53 = vpack.c.bf16 %v11241_v25, %v11241_v25  ;;  %v19820_v2 = vmax.f32 %v19084_v43, %v19086_v38  ;;  %v15851_v38 = vld [vmem:[%s19720_s5 + $0x318] sm:$0xff]  ;;  %12545 = vmatpush.bf16.msra.mxu1 %v15860_v55  ;;  %v11256_v31 = vpack.c.bf16 %v11224_v34, %v11224_v34 }
 0x97c   :  { %v10833_v18 = vrot.slane %v10743_v1, 2  ;;  %v10834_v8 = vrot.slane %v10743_v1, 4  ;;  %v10835_v46 = vrot.slane %v10743_v1, 6  ;;  %v14636_v41 = vrot.slane %v10743_v1, 9  ;;  %11816 = vmatpush.bf16.msra.mxu3 %v15797_v12  ;;  %v15795_v25 = vld [vmem:[%s19720_s5 + $0x158] sm:$0xff]  ;;  %12455 = vmatpush.bf16.msra.mxu0 %v15851_v38  ;;  %v15849_v38 = vld [vmem:[%s19720_s5 + $0x308] sm:$0xff] }
 0x97d   :  { %v11196_v23 = vadd.f32 %v19192_v56, %v19820_v2  ;;  %v11489_v50 = vrot.slane %v14749_v4, 7  ;;  %v11257_v24 = vpack.c.bf16 %v11225_v27, %v11225_v27  ;;  %v11757_v59 = vunpack.c.l.b16 %v11273_v53  ;;  %v15850_v27 = vld [vmem:[%s19720_s5 + $0x310] sm:$0xff] }
 0x97e   :  { %v14637_v43 = vrot.slane %v10833_v18, 9  ;;  %v14638_v20 = vrot.slane %v10834_v8, 9  ;;  %v14639_v29 = vrot.slane %v10835_v46, 9  ;;  %v11134_v28 = vmax.f32 %v10743_v1, %v14636_v41  ;;  %11725 = vmatpush.bf16.msra.mxu2 %v15789_v44 }
 0x97f   :  { %v11228_v49 = vmax.f32 %v11196_v23, 0.0  ;;  %v11490_v32 = vsel %vm11326_vm12, %v11489_v50, %v14748_v15  ;;  %v11756_v57 = vunpack.c.l.b16 %v11257_v24  ;;  %v14899_v12 = vunpack.i.l.s16 %v11757_v59  ;;  %12546 = vmatpush.bf16.msra.mxu1 %v15859_v36 }
 0x980   :  { %v11135_v48 = vmax.f32 %v10833_v18, %v14637_v43  ;;  %v19401_v7 = vmax.f32 %v10834_v8, %v14638_v20  ;;  %v19403_v26 = vmax.f32 %v10835_v46, %v14639_v29  ;;  %v11170_v16 = vmax.f32 %v19365_v14, %v11134_v28  ;;  %11817 = vmatpush.bf16.msra.mxu3 %v15796_v62  ;;  %v15858_v18 = vld [vmem:[%s19720_s5 + $0x350] sm:$0xff]  ;;  %v10405_v8 = vpop.f32.mrf.mxu3 }
 0x981   :  { %v10725_v1 = vpop.f32.mrf.mxu1  ;;  %v14898_v3 = vunpack.i.l.s16 %v11756_v57  ;;  %v11762_v44 = vrot.slane %v14899_v12, 7  ;;  %v11260_v34 = vpack.c.bf16 %v11228_v49, %v11228_v49  ;;  %v11666_v4 = vunpack.c.l.b16 %v19353_v45  ;;  %v15787_v45 = vld [vmem:[%s19720_s5 + $0x118] sm:$0xff]  ;;  %12456 = vmatpush.bf16.msra.mxu0 %v15850_v27 }
 0x982   :  { %v11171_v15 = vmax.f32 %v19367_v42, %v11135_v48  ;;  %v11172_v14 = vmax.f32 %v19371_v0, %v19401_v7  ;;  %v11173_v55 = vmax.f32 %v19376_v13, %v19403_v26  ;;  %11726 = vmatpush.bf16.msra.mxu2 %v15788_v9  ;;  %v19419_v53 = vadd.f32 %v10725_v1, %v19348_v35  ;;  %v15800_v13 = vld [vmem:[%s19720_s5 + $0x180] sm:$0xff]  ;;  %v15839_v0 = vld [vmem:[%s19720_s5 + $0x2b8] sm:$0xff] }
 0x983   :  { %11640 = vmatmul.bf16.vlgmr.msrb.gmra.mxu3 %v11582_v40  ;;  %v11491_v2 = vpack.c.b16 %v11490_v32, %v11490_v32  ;;  %v19425_v23 = vsel %vm11326_vm12, %v11762_v44, %v14898_v3  ;;  %v11212_v42 = vadd.f32 %v19192_v56, %v11170_v16  ;;  %v11232_v35 = vmax.f32 %v19331_v63, 0.0  ;;  %v15794_v40 = vld [vmem:[%s19720_s5 + $0x150] sm:$0xff]  ;;  %12547 = vmatpush.bf16.msra.mxu1 %v15858_v18  ;;  %v15785_v3 = vld [vmem:[%s19720_s5 + $0x108] sm:$0xff]  ;;  %v19829_v26 = vld [vmem:[#allocation25_spill] sm:$0xff] }
 0x984   :  { %v11213_v46 = vadd.f32 %v19196_v19, %v11171_v15  ;;  %v10836_v41 = vrot.slane %v19419_v53, 2  ;;  %11818 = vmatpush.bf16.msra.mxu3 %v15795_v25  ;;  %v11665_v62 = vunpack.c.l.b16 %v11256_v31  ;;  %v10837_v50 = vrot.slane %v19419_v53, 4  ;;  %v15848_v25 = vld [vmem:[%s19720_s5 + $0x300] sm:$0xff]  ;;  %v19828_v7 = vld [vmem:[#allocation16_spill] sm:$0xff] }
 0x985   :  { %v10838_v24 = vrot.slane %v19419_v53, 6  ;;  %11549 = vmatmul.bf16.vlgmr.msrb.gmra.mxu2 %v11491_v2  ;;  %v10423_v59 = vadd.f32 %v10405_v8, %v19254_v30  ;;  %v12029_v49 = vunpack.c.l.b16 %v11260_v34  ;;  %v19447_v43 = vadd.f32 %v19241_v58, %v11168_v17  ;;  %v15786_v30 = vld [vmem:[%s19720_s5 + $0x110] sm:$0xff]  ;;  %12457 = vmatpush.bf16.msra.mxu0 %v15849_v38 }
 0x986   :  { %v19453_v20 = vadd.f32 %v19263_v22, %v11169_v54  ;;  %11727 = vmatpush.bf16.msra.mxu2 %v15787_v45  ;;  %v11244_v29 = vmax.f32 %v11212_v42, 0.0  ;;  %v14849_v28 = vunpack.i.l.s16 %v11666_v4  ;;  %v14640_v9 = vrot.slane %v19419_v53, 9 }
 0x987   :  { %v14641_v32 = vrot.slane %v10836_v41, 9  ;;  %v14642_v10 = vrot.slane %v10837_v50, 9  ;;  %v19821_v33 = vmax.f32 %v19091_v37, %v19107_v5  ;;  %v14848_v57 = vunpack.i.l.s16 %v11665_v62  ;;  %12548 = vmatpush.bf16.msra.mxu1 %v15857_v39 }
 0x988   :  { %11819 = vmatpush.bf16.msra.mxu3 %v15794_v40  ;;  %v11276_v54 = vpack.c.bf16 %v11244_v29, %v11244_v29  ;;  %v11671_v12 = vrot.slane %v14849_v28, 7  ;;  %v11245_v31 = vmax.f32 %v11213_v46, 0.0  ;;  %v14643_v36 = vrot.slane %v10838_v24, 9  ;;  %v15792_v40 = vld [vmem:[%s19720_s5 + $0x140] sm:$0xff] }
 0x989   :  { %v11197_v17 = vadd.f32 %v19196_v19, %v19821_v33  ;;  %v10727_v48 = vpop.f32.mrf.mxu1  ;;  %v11764_v37 = vpack.c.b16 %v19425_v23, %v19425_v23  ;;  %v15048_v5 = vunpack.i.l.s16 %v12029_v49  ;;  %v11138_v27 = vmax.f32 %v19419_v53, %v14640_v9  ;;  %v15856_v23 = vld [vmem:[%s19720_s5 + $0x340] sm:$0xff]  ;;  %v15815_v53 = vld [vmem:[%s19720_s5 + $0x1f8] sm:$0xff]  ;;  %12458 = vmatpush.bf16.msra.mxu0 %v15848_v25 }
 0x98a   :  { %11728 = vmatpush.bf16.msra.mxu2 %v15786_v30  ;;  %v10745_v1 = vadd.f32 %v10727_v48, %v10423_v59  ;;  %v12030_v44 = vunpack.c.l.b16 %v11276_v54  ;;  %v19478_v34 = vsel %vm11326_vm12, %v11671_v12, %v14848_v57  ;;  %v11277_v4 = vpack.c.bf16 %v11245_v31, %v11245_v31  ;;  %v15784_v9 = vld [vmem:[%s19720_s5 + $0x100] sm:$0xff] }
 0x98b   :  { %v11229_v16 = vmax.f32 %v11197_v17, 0.0  ;;  %v11139_v15 = vmax.f32 %v10836_v41, %v14641_v32  ;;  %v19481_v45 = vmax.f32 %v10837_v50, %v14642_v10  ;;  %v19822_v59 = vmax.f32 %v19158_v52, %v19164_v51  ;;  %v15807_v10 = vld [vmem:[%s19720_s5 + $0x1b8] sm:$0xff]  ;;  %12549 = vmatpush.bf16.msra.mxu1 %v15856_v23 }
 0x98c   :  { %v10839_v42 = vrot.slane %v10745_v1, 2  ;;  %v10840_v18 = vrot.slane %v10745_v1, 4  ;;  %v10841_v8 = vrot.slane %v10745_v1, 6  ;;  %v14644_v46 = vrot.slane %v10745_v1, 9  ;;  %11820 = vmatpush.bf16.msra.mxu3 %v15793_v47 }
 0x98d   :  { %v11261_v2 = vpack.c.bf16 %v11229_v16, %v11229_v16  ;;  %v15049_v41 = vunpack.i.l.s16 %v12030_v44  ;;  %v12121_v50 = vunpack.c.l.b16 %v11277_v4  ;;  %v11201_v49 = vadd.f32 %v19196_v19, %v19822_v59 }
 0x98e   :  { %v14645_v38 = vrot.slane %v10839_v42, 9  ;;  %v14646_v30 = vrot.slane %v10840_v18, 9  ;;  %v14647_v29 = vrot.slane %v10841_v8, 9  ;;  %v11142_v28 = vmax.f32 %v10745_v1, %v14644_v46  ;;  %11729 = vmatpush.bf16.msra.mxu2 %v15785_v3 }
 0x98f   :  { %v12120_v62 = vunpack.c.l.b16 %v11261_v2  ;;  %v19499_v32 = vmax.f32 %v10838_v24, %v14643_v36  ;;  %v12035_v33 = vrot.slane %v15049_v41, 7  ;;  %v15099_v52 = vunpack.i.l.s16 %v12121_v50  ;;  %v15814_v24 = vld [vmem:[%s19720_s5 + $0x1f0] sm:$0xff]  ;;  %v19823_v36 = vld [vmem:[#allocation14_spill] sm:$0xff] }
 0x990   :  { %v11143_v51 = vmax.f32 %v10839_v42, %v14645_v38  ;;  %v19504_v39 = vmax.f32 %v10840_v18, %v14646_v30  ;;  %v19506_v47 = vmax.f32 %v10841_v8, %v14647_v29  ;;  %v11174_v54 = vmax.f32 %v11138_v27, %v11142_v28  ;;  %11821 = vmatpush.bf16.msra.mxu3 %v15792_v40  ;;  %v15813_v42 = vld [vmem:[%s19720_s5 + $0x1e8] sm:$0xff]  ;;  %v15812_v29 = vld [vmem:[%s19720_s5 + $0x1e0] sm:$0xff] }
 0x991   :  { %v15098_v17 = vunpack.i.l.s16 %v12120_v62  ;;  %v12036_v57 = vsel %vm11326_vm12, %v12035_v33, %v15048_v5  ;;  %v12126_v12 = vrot.slane %v15099_v52, 7  ;;  %v11233_v31 = vmax.f32 %v11201_v49, 0.0  ;;  %v19825_v40 = vld [vmem:[#allocation22_spill] sm:$0xff] }
 0x992   :  { %v19824_v48 = vmax.f32 %v19037_v21, %v19823_v36  ;;  %v11175_v25 = vmax.f32 %v11139_v15, %v11143_v51  ;;  %v11176_v1 = vmax.f32 %v19481_v45, %v19504_v39  ;;  %v11177_v3 = vmax.f32 %v19499_v32, %v19506_v47  ;;  %11730 = vmatpush.bf16.msra.mxu2 %v15784_v9  ;;  %v15806_v21 = vld [vmem:[%s19720_s5 + $0x1b0] sm:$0xff]  ;;  %v15805_v62 = vld [vmem:[%s19720_s5 + $0x1a8] sm:$0xff]  ;;  %v15804_v51 = vld [vmem:[%s19720_s5 + $0x1a0] sm:$0xff] }
 0x993   :  { %v11216_v5 = vadd.f32 %v19192_v56, %v11174_v54  ;;  %11822 = vmatmul.bf16.vlgmr.msra.gmra.mxu3 %v11764_v37  ;;  %v12037_v44 = vpack.c.b16 %v12036_v57, %v12036_v57  ;;  %v12127_v4 = vsel %vm11326_vm12, %v12126_v12, %v15098_v17  ;;  %v11264_v27 = vpack.c.bf16 %v11232_v35, %v11232_v35  ;;  %v15832_v32 = vld [vmem:[%s19720_s5 + $0x280] sm:$0xff]  ;;  %v15871_v45 = vld [vmem:[%s19720_s5 + $0x3b8] sm:$0xff] }
 0x994   :  { %11996 = vmatpush.bf16.msrb.mxu3 %v15815_v53  ;;  %v11195_v16 = vadd.f32 %v19263_v22, %v19824_v48  ;;  %v11217_v2 = vadd.f32 %v19196_v19, %v11175_v25  ;;  %v11673_v56 = vpack.c.b16 %v19478_v34, %v19478_v34  ;;  %v12128_v37 = vpack.c.b16 %v12127_v4, %v12127_v4  ;;  %v19826_v19 = vld [vmem:[#allocation13_spill] sm:$0xff] }
 0x995   :  { %v11248_v23 = vmax.f32 %v11216_v5, 0.0  ;;  %12095 = vmatmul.bf16.vlgmr.msrb.gmra.mxu0 %v12037_v44  ;;  %v11265_v18 = vpack.c.bf16 %v11233_v31, %v11233_v31  ;;  %v11243_v8 = vmax.f32 %v19453_v20, 0.0  ;;  %v19827_v53 = vmax.f32 %v19825_v40, %v19826_v19  ;;  %v15811_v48 = vld [vmem:[%s19720_s5 + $0x1d8] sm:$0xff]  ;;  %v15808_v19 = vld [vmem:[%s19720_s5 + $0x1c0] sm:$0xff] }
 0x996   :  { %11905 = vmatpush.bf16.msrb.mxu2 %v15807_v10  ;;  %v11227_v15 = vmax.f32 %v11195_v16, 0.0  ;;  %v11249_v35 = vmax.f32 %v11217_v2, 0.0  ;;  %v11242_v34 = vmax.f32 %v19447_v43, 0.0  ;;  %12186 = vmatmul.bf16.vlgmr.msrb.gmra.mxu1 %v12128_v37  ;;  %v12393_v50 = vunpack.c.l.b16 %v11264_v27 }
 0x997   :  { %v11280_v46 = vpack.c.bf16 %v11248_v23, %v11248_v23  ;;  %11731 = vmatmul.bf16.vlgmr.msra.gmra.mxu2 %v11673_v56  ;;  %v11194_v41 = vadd.f32 %v19241_v58, %v19827_v53  ;;  %v11275_v59 = vpack.c.bf16 %v11243_v8, %v11243_v8  ;;  %v12484_v28 = vunpack.c.l.b16 %v11265_v18  ;;  %v15802_v8 = vld [vmem:[%s19720_s5 + $0x190] sm:$0xff]  ;;  %v15847_v53 = vld [vmem:[%s19720_s5 + $0x2f8] sm:$0xff] }
 0x998   :  { %11997 = vmatpush.bf16.msrb.mxu3 %v15814_v24  ;;  %v11259_v63 = vpack.c.bf16 %v11227_v15, %v11227_v15  ;;  %v11281_v49 = vpack.c.bf16 %v11249_v35, %v11249_v35  ;;  %v11274_v30 = vpack.c.bf16 %v11242_v34, %v11242_v34  ;;  %v15248_v54 = vunpack.i.l.s16 %v12393_v50  ;;  %v15803_v15 = vld [vmem:[%s19720_s5 + $0x198] sm:$0xff] }
 0x999   :  { %v12394_v20 = vunpack.c.l.b16 %v11280_v46  ;;  %v11226_v38 = vmax.f32 %v11194_v41, 0.0  ;;  %v11939_v43 = vunpack.c.l.b16 %v11275_v59  ;;  %v15298_v16 = vunpack.i.l.s16 %v12484_v28  ;;  %v15801_v46 = vld [vmem:[%s19720_s5 + $0x188] sm:$0xff]  ;;  %v19831_v34 = vld [vmem:[#allocation21_spill] sm:$0xff] }
 0x99a   :  { %11906 = vmatpush.bf16.msrb.mxu2 %v15806_v21  ;;  %v11938_v9 = vunpack.c.l.b16 %v11259_v63  ;;  %v12485_v33 = vunpack.c.l.b16 %v11281_v49  ;;  %v11848_v52 = vunpack.c.l.b16 %v11274_v30  ;;  %v15809_v63 = vld [vmem:[%s19720_s5 + $0x1c8] sm:$0xff]  ;;  %v11215_v35 = vadd.f32 %v19263_v22, %v11173_v55 }
 0x99b   :  { %v15249_v10 = vunpack.i.l.s16 %v12394_v20  ;;  %v11258_v17 = vpack.c.bf16 %v11226_v38, %v11226_v38  ;;  %v14999_v57 = vunpack.i.l.s16 %v11939_v43  ;;  %v11214_v40 = vadd.f32 %v19241_v58, %v11172_v14  ;;  %v15846_v38 = vld [vmem:[%s19720_s5 + $0x2f0] sm:$0xff] }
 0x99c   :  { %11998 = vmatpush.bf16.msrb.mxu3 %v15813_v42  ;;  %v15299_v12 = vunpack.i.l.s16 %v12485_v33  ;;  %v14949_v36 = vunpack.i.l.s16 %v11848_v52  ;;  %v14998_v25 = vunpack.i.l.s16 %v11938_v9  ;;  %v15810_v42 = vld [vmem:[%s19720_s5 + $0x1d0] sm:$0xff]  ;;  %v19830_v14 = vmax.f32 %v19828_v7, %v19829_v26 }
 0x99d   :  { %v12399_v24 = vrot.slane %v15249_v10, 7  ;;  %v11847_v31 = vunpack.c.l.b16 %v11258_v17  ;;  %v11944_v5 = vrot.slane %v14999_v57, 7  ;;  %v11247_v41 = vmax.f32 %v11215_v35, 0.0  ;;  %v15838_v10 = vld [vmem:[%s19720_s5 + $0x2b0] sm:$0xff] }
 0x99e   :  { %11907 = vmatpush.bf16.msrb.mxu2 %v15805_v62  ;;  %v12490_v4 = vrot.slane %v15299_v12, 7  ;;  %v11853_v27 = vrot.slane %v14949_v36, 7  ;;  %v11199_v55 = vadd.f32 %v19263_v22, %v19830_v14  ;;  %v19832_v62 = vld [vmem:[#allocation23_spill] sm:$0xff]  ;;  %v11246_v20 = vmax.f32 %v11214_v40, 0.0 }
 0x99f   :  { %v12400_v44 = vsel %vm11326_vm12, %v12399_v24, %v15248_v54  ;;  %v14948_v21 = vunpack.i.l.s16 %v11847_v31  ;;  %v11945_v2 = vsel %vm11326_vm12, %v11944_v5, %v14998_v25  ;;  %v19833_v50 = vmax.f32 %v19831_v34, %v19832_v62  ;;  %v15845_v54 = vld [vmem:[%s19720_s5 + $0x2e8] sm:$0xff] }
 0x9a0   :  { %11999 = vmatpush.bf16.msrb.mxu3 %v15812_v29  ;;  %v12491_v23 = vsel %vm11326_vm12, %v12490_v4, %v15298_v16  ;;  %v12401_v37 = vpack.c.b16 %v12400_v44, %v12400_v44  ;;  %v11946_v49 = vpack.c.b16 %v11945_v2, %v11945_v2  ;;  %v11231_v30 = vmax.f32 %v11199_v55, 0.0  ;;  %v15837_v36 = vld [vmem:[%s19720_s5 + $0x2a8] sm:$0xff]  ;;  %v15844_v44 = vld [vmem:[%s19720_s5 + $0x2e0] sm:$0xff]  ;;  %v15835_v2 = vld [vmem:[%s19720_s5 + $0x298] sm:$0xff] }
 0x9a1   :  { %v11854_v56 = vsel %vm11326_vm12, %v11853_v27, %v14948_v21  ;;  %v12492_v18 = vpack.c.b16 %v12491_v23, %v12491_v23  ;;  %v11198_v59 = vadd.f32 %v19241_v58, %v19833_v50  ;;  %v11279_v29 = vpack.c.bf16 %v11247_v41, %v11247_v41  ;;  %v15836_v27 = vld [vmem:[%s19720_s5 + $0x2a0] sm:$0xff]  ;;  %v15842_v23 = vld [vmem:[%s19720_s5 + $0x2d0] sm:$0xff]  ;;  %v15877_v14 = vld [vmem:[%s19720_s5 + $0x3e8] sm:$0xff] }
 0x9a2   :  { %11908 = vmatpush.bf16.msrb.mxu2 %v15804_v51  ;;  %v11278_v9 = vpack.c.bf16 %v11246_v20, %v11246_v20  ;;  %v11855_v43 = vpack.c.b16 %v11854_v56, %v11854_v56  ;;  %v11263_v33 = vpack.c.bf16 %v11231_v30, %v11231_v30  ;;  %v15834_v56 = vld [vmem:[%s19720_s5 + $0x290] sm:$0xff]  ;;  %v19834_v39 = vmax.f32 %v19162_v61, %v19168_v60  ;;  %v15869_v50 = vld [vmem:[%s19720_s5 + $0x3a8] sm:$0xff]  ;;  %v15876_v30 = vld [vmem:[%s19720_s5 + $0x3e0] sm:$0xff] }
 0x9a3   :  { %v11230_v28 = vmax.f32 %v11198_v59, 0.0  ;;  %v12303_v17 = vunpack.c.l.b16 %v11279_v29 }
 0x9a4   :  { %12000 = vmatpush.bf16.msrb.mxu3 %v15811_v48  ;;  %v12212_v51 = vunpack.c.l.b16 %v11278_v9  ;;  %v12302_v57 = vunpack.c.l.b16 %v11263_v33  ;;  %v11203_v47 = vadd.f32 %v19263_v22, %v19834_v39  ;;  %v15868_v9 = vld [vmem:[%s19720_s5 + $0x3a0] sm:$0xff]  ;;  %v15874_v33 = vld [vmem:[%s19720_s5 + $0x3d0] sm:$0xff] }
 0x9a5   :  { %12459 = vmatmul.bf16.vlgmr.msra.gmra.mxu0 %v12401_v37  ;;  %v11262_v52 = vpack.c.bf16 %v11230_v28, %v11230_v28  ;;  %v15199_v24 = vunpack.i.l.s16 %v12303_v17  ;;  %v15841_v37 = vld [vmem:[%s19720_s5 + $0x2c8] sm:$0xff]  ;;  %v15866_v17 = vld [vmem:[%s19720_s5 + $0x390] sm:$0xff] }
 0x9a6   :  { %11909 = vmatpush.bf16.msrb.mxu2 %v15803_v15  ;;  %12550 = vmatmul.bf16.vlgmr.msra.gmra.mxu1 %v12492_v18  ;;  %v15149_v31 = vunpack.i.l.s16 %v12212_v51  ;;  %v15198_v48 = vunpack.i.l.s16 %v12302_v57  ;;  %v15843_v15 = vld [vmem:[%s19720_s5 + $0x2d8] sm:$0xff]  ;;  %v11219_v18 = vadd.f32 %v19263_v22, %v11177_v3  ;;  %v19835_v3 = vmax.f32 %v19160_v6, %v19166_v11  ;;  %v15870_v6 = vld [vmem:[%s19720_s5 + $0x3b0] sm:$0xff]  ;;  %v15865_v51 = vld [vmem:[%s19720_s5 + $0x388] sm:$0xff] }
 0x9a7   :  { %v12211_v12 = vunpack.c.l.b16 %v11262_v52  ;;  %v12308_v16 = vrot.slane %v15199_v24, 7  ;;  %v15873_v52 = vld [vmem:[%s19720_s5 + $0x3c8] sm:$0xff]  ;;  %v15864_v57 = vld [vmem:[%s19720_s5 + $0x380] sm:$0xff] }
 0x9a8   :  { %12001 = vmatpush.bf16.msrb.mxu3 %v15810_v42  ;;  %v12217_v5 = vrot.slane %v15149_v31, 7  ;;  %v15833_v42 = vld [vmem:[%s19720_s5 + $0x288] sm:$0xff]  ;;  %v11202_v35 = vadd.f32 %v19241_v58, %v19835_v3 }
 0x9a9   :  { %v15148_v25 = vunpack.i.l.s16 %v12211_v12  ;;  %v12309_v4 = vsel %vm11326_vm12, %v12308_v16, %v15198_v48 }
 0x9aa   :  { %11910 = vmatpush.bf16.msrb.mxu2 %v15802_v8  ;;  %v11218_v8 = vadd.f32 %v19241_v58, %v11176_v1  ;;  %v11251_v1 = vmax.f32 %v11219_v18, 0.0  ;;  %v11234_v61 = vmax.f32 %v11202_v35, 0.0 }
 0x9ab   :  { %v12218_v21 = vsel %vm11326_vm12, %v12217_v5, %v15148_v25 }
 0x9ac   :  { %12002 = vmatpush.bf16.msrb.mxu3 %v15809_v63  ;;  %v15840_v63 = vld [vmem:[%s19720_s5 + $0x2c0] sm:$0xff]  ;;  %v11250_v40 = vmax.f32 %v11218_v8, 0.0  ;;  %v12219_v22 = vpack.c.b16 %v12218_v21, %v12218_v21  ;;  %v11266_v7 = vpack.c.bf16 %v11234_v61, %v11234_v61 }
 0x9ae   :  { %11911 = vmatpush.bf16.msrb.mxu2 %v15801_v46  ;;  %v15879_v46 = vld [vmem:[%s19720_s5 + $0x3f8] sm:$0xff]  ;;  %v11282_v60 = vpack.c.bf16 %v11250_v40, %v11250_v40  ;;  %v12575_v34 = vunpack.c.l.b16 %v11266_v7 }
 0x9b0   :  { %12003 = vmatpush.bf16.msrb.mxu3 %v15808_v19  ;;  %v12310_v19 = vpack.c.b16 %v12309_v4, %v12309_v4  ;;  %v12576_v26 = vunpack.c.l.b16 %v11282_v60 }
 0x9b2   :  { %11912 = vmatpush.bf16.msrb.mxu2 %v15800_v13  ;;  %v11235_v13 = vmax.f32 %v11203_v47, 0.0  ;;  %v15349_v62 = vunpack.i.l.s16 %v12576_v26 }
 0x9b3   :  { %12004 = vmatmul.bf16.vlgmr.msrb.gmra.mxu3 %v11946_v49  ;;  %v15348_v49 = vunpack.i.l.s16 %v12575_v34 }
 0x9b4   :  { %12360 = vmatpush.bf16.msra.mxu3 %v15847_v53  ;;  %v15878_v53 = vld [vmem:[%s19720_s5 + $0x3f0] sm:$0xff]  ;;  %v11267_v11 = vpack.c.bf16 %v11235_v13, %v11235_v13 }
 0x9b5   :  { %11913 = vmatmul.bf16.vlgmr.msrb.gmra.mxu2 %v11855_v43  ;;  %v15875_v43 = vld [vmem:[%s19720_s5 + $0x3d8] sm:$0xff] }
 0x9b6   :  { %12269 = vmatpush.bf16.msra.mxu2 %v15839_v0  ;;  %v11283_v0 = vpack.c.bf16 %v11251_v1, %v11251_v1  ;;  %v12666_v55 = vunpack.c.l.b16 %v11267_v11 }
 0x9b8   :  { %12361 = vmatpush.bf16.msra.mxu3 %v15846_v38  ;;  %v12667_v58 = vunpack.c.l.b16 %v11283_v0  ;;  %v15398_v59 = vunpack.i.l.s16 %v12666_v55  ;;  %v12581_v38 = vrot.slane %v15349_v62, 7  ;;  %v15883_v62 = vld [vmem:[%s19721_s6] ss:$0 sm:$0xff] }
 0x9ba   :  { %12270 = vmatpush.bf16.msra.mxu2 %v15838_v10  ;;  %v15399_v41 = vunpack.i.l.s16 %v12667_v58  ;;  %v12582_v28 = vsel %vm11326_vm12, %v12581_v38, %v15348_v49  ;;  %v15867_v10 = vld [vmem:[%s19720_s5 + $0x398] sm:$0xff] }
 0x9bb   :  { %v12583_v12 = vpack.c.b16 %v12582_v28, %v12582_v28 }
 0x9bc   :  { %12362 = vmatpush.bf16.msra.mxu3 %v15845_v54  ;;  %v12672_v20 = vrot.slane %v15399_v41, 7  ;;  %v15872_v54 = vld [vmem:[%s19720_s5 + $0x3c0] sm:$0xff] }
 0x9be   :  { %12271 = vmatpush.bf16.msra.mxu2 %v15837_v36  ;;  %v12673_v29 = vsel %vm11326_vm12, %v12672_v20, %v15398_v59 }
 0x9bf   :  { %v12674_v24 = vpack.c.b16 %v12673_v29, %v12673_v29 }
 0x9c0   :  { %12363 = vmatpush.bf16.msra.mxu3 %v15844_v44 }
 0x9c2   :  { %12272 = vmatpush.bf16.msra.mxu2 %v15836_v27 }
 0x9c4   :  { %12364 = vmatpush.bf16.msra.mxu3 %v15843_v15 }
 0x9c6   :  { %12273 = vmatpush.bf16.msra.mxu2 %v15835_v2 }
 0x9c8   :  { %12365 = vmatpush.bf16.msra.mxu3 %v15842_v23 }
 0x9ca   :  { %12274 = vmatpush.bf16.msra.mxu2 %v15834_v56 }
 0x9cc   :  { %12366 = vmatpush.bf16.msra.mxu3 %v15841_v37 }
 0x9ce   :  { %12275 = vmatpush.bf16.msra.mxu2 %v15833_v42 }
 0x9d0   :  { %12367 = vmatpush.bf16.msra.mxu3 %v15840_v63 }
 0x9d2   :  { %12276 = vmatpush.bf16.msra.mxu2 %v15832_v32 }
 0x9d3   :  { %12368 = vmatmul.bf16.vlgmr.msra.gmra.mxu3 %v12310_v19 }
 0x9d4   :  { %12724 = vmatpush.bf16.msrb.mxu3 %v15879_v46 }
 0x9d5   :  { %12277 = vmatmul.bf16.vlgmr.msra.gmra.mxu2 %v12219_v22 }
 0x9d6   :  { %12633 = vmatpush.bf16.msrb.mxu2 %v15871_v45 }
 0x9d8   :  { %12725 = vmatpush.bf16.msrb.mxu3 %v15878_v53 }
 0x9da   :  { %12634 = vmatpush.bf16.msrb.mxu2 %v15870_v6 }
 0x9dc   :  { %12726 = vmatpush.bf16.msrb.mxu3 %v15877_v14 }
 0x9de   :  { %12635 = vmatpush.bf16.msrb.mxu2 %v15869_v50 }
 0x9e0   :  { %12727 = vmatpush.bf16.msrb.mxu3 %v15876_v30 }
 0x9e2   :  { %12636 = vmatpush.bf16.msrb.mxu2 %v15868_v9 }
 0x9e4   :  { %12728 = vmatpush.bf16.msrb.mxu3 %v15875_v43 }
 0x9e6   :  { %12637 = vmatpush.bf16.msrb.mxu2 %v15867_v10 }
 0x9e8   :  { %12729 = vmatpush.bf16.msrb.mxu3 %v15874_v33 }
 0x9ea   :  { %12638 = vmatpush.bf16.msrb.mxu2 %v15866_v17 }
 0x9ec   :  { %12730 = vmatpush.bf16.msrb.mxu3 %v15873_v52 }
 0x9ee   :  { %12639 = vmatpush.bf16.msrb.mxu2 %v15865_v51 }
 0x9f0   :  { %12731 = vmatpush.bf16.msrb.mxu3 %v15872_v54 }
 0x9f2   :  { %12640 = vmatpush.bf16.msrb.mxu2 %v15864_v57 }
 0x9f3   :  { %12732 = vmatmul.bf16.vlgmr.msrb.gmra.mxu3 %v12674_v24 }
 0x9f5   :  { %12641 = vmatmul.bf16.vlgmr.msrb.gmra.mxu2 %v12583_v12 }
 0x9f6   :  { %v11460_v31 = vpop.f32.mrf.mxu3 }
 0x9f8   :  { %v11387_v36 = vpop.f32.mrf.mxu2 }
 0x9f9   :  { %v11461_v48 = vadd.f32 %v11460_v31, %v11387_v36 }
 0x9fe   :  { %v11462_v16 = vpop.f32.mrf.mxu3 }
 0xa00   :  { %v11389_v25 = vpop.f32.mrf.mxu2 }
 0xa06   :  { %v11641_v5 = vpop.f32.mrf.mxu3 }
 0xa08   :  { %v11550_v44 = vpop.f32.mrf.mxu2 }
 0xa09   :  { %v11554_v4 = vadd.f32 %v11550_v44, %v11461_v48 }
 0xa0b   :  { %v11645_v21 = vadd.f32 %v11641_v5, %v11554_v4 }
 0xa0e   :  { %v11643_v27 = vpop.f32.mrf.mxu3 }
 0xa10   :  { %v11552_v15 = vpop.f32.mrf.mxu2 }
 0xa12   :  { %v12096_v2 = vpop.f32.mrf.mxu0 }
 0xa13   :  { %v12187_v23 = vpop.f32.mrf.mxu1 }
 0xa16   :  { %v11823_v56 = vpop.f32.mrf.mxu3 }
 0xa1a   :  { %v11732_v37 = vpop.f32.mrf.mxu2  ;;  %v12098_v18 = vpop.f32.mrf.mxu0 }
 0xa1b   :  { %v11736_v42 = vadd.f32 %v11732_v37, %v11645_v21  ;;  %v12189_v8 = vpop.f32.mrf.mxu1 }
 0xa1d   :  { %v11827_v63 = vadd.f32 %v11823_v56, %v11736_v42 }
 0xa1e   :  { %v11825_v46 = vpop.f32.mrf.mxu3 }
 0xa22   :  { %v11734_v32 = vpop.f32.mrf.mxu2  ;;  %v12460_v45 = vpop.f32.mrf.mxu0 }
 0xa23   :  { %v12551_v39 = vpop.f32.mrf.mxu1 }
 0xa2a   :  { %v12462_v47 = vpop.f32.mrf.mxu0 }
 0xa2b   :  { %v12553_v1 = vpop.f32.mrf.mxu1 }
 0xa36   :  { %v12005_v3 = vpop.f32.mrf.mxu3 }
 0xa38   :  { %v11914_v35 = vpop.f32.mrf.mxu2 }
 0xa39   :  { %v11918_v40 = vadd.f32 %v11914_v35, %v11827_v63 }
 0xa3b   :  { %v12009_v19 = vadd.f32 %v12005_v3, %v11918_v40 }
 0xa3d   :  { %v12100_v53 = vadd.f32 %v12096_v2, %v12009_v19 }
 0xa3e   :  { %v12007_v13 = vpop.f32.mrf.mxu3 }
 0xa3f   :  { %v12191_v0 = vadd.f32 %v12187_v23, %v12100_v53 }
 0xa40   :  { %v11916_v61 = vpop.f32.mrf.mxu2 }
 0xa56   :  { %v12369_v60 = vpop.f32.mrf.mxu3 }
 0xa58   :  { %v12278_v22 = vpop.f32.mrf.mxu2 }
 0xa59   :  { %v12282_v6 = vadd.f32 %v12278_v22, %v12191_v0 }
 0xa5b   :  { %v12373_v11 = vadd.f32 %v12369_v60, %v12282_v6 }
 0xa5d   :  { %v12464_v58 = vadd.f32 %v12460_v45, %v12373_v11 }
 0xa5e   :  { %v12371_v7 = vpop.f32.mrf.mxu3 }
 0xa5f   :  { %v12555_v26 = vadd.f32 %v12551_v39, %v12464_v58 }
 0xa60   :  { %v12280_v14 = vpop.f32.mrf.mxu2 }
 0xa76   :  { %v12733_v55 = vpop.f32.mrf.mxu3 }
 0xa78   :  { %v12642_v41 = vpop.f32.mrf.mxu2 }
 0xa79   :  { %v12646_v34 = vadd.f32 %v12642_v41, %v12555_v26 }
 0xa7b   :  { %v12737_v50 = vadd.f32 %v12733_v55, %v12646_v34 }
 0xa7d   :  { %v12742_v59 = vadd.f32 %v15883_v62, %v12737_v50 }
 0xa7e   :  { %v12735_v20 = vpop.f32.mrf.mxu3 }
 0xa7f   :  { %12743 = vst [vmem:[#allocation4] sm:$0x3] %v12742_v59 }
 0xa80   :  { %v12644_v49 = vpop.f32.mrf.mxu2  ;;  %12754 = dma.vmem_to_hbm [thread:$0]  %s12750_s22, 32, %s12752_s24, [#allocation5]  }
 0xa81   :  { %15910 = dma.done.wait [#allocation5], 32  }
 0xa82   :  { %15911 = vsyncadd [#allocation5], 4294967264 }
 0xa83   :  { %12759 = vsyncpa [#allocation5], 1 }

</bundles_post_ra>
